<compile_context>
chip_gen: v6e
topology: v6e:2x2x1
jax: 0.10.0
libtpu: 0.0.40
codegen_flags: <defaults>
</compile_context>

<pallas_src>
import math

import numpy as np
import jax
import jax.numpy as jnp
from jax import lax
from jax.experimental import pallas as pl
from jax.experimental.pallas import tpu as pltpu


def _round_up(x, m):
    return -(-x // m) * m


# ----------------------------------------------------------------------------
# Parameter / filter-bank setup (plain JAX "glue")
# ----------------------------------------------------------------------------
def calc_bands_pha(start_hz, end_hz, n_bands):
    mid = jnp.linspace(start_hz, end_hz, n_bands)
    return jnp.stack([mid - mid / 4.0, mid + mid / 4.0], axis=1)


def calc_bands_amp(start_hz, end_hz, n_bands):
    mid = jnp.linspace(start_hz, end_hz, n_bands)
    return jnp.stack([mid - mid / 8.0, mid + mid / 8.0], axis=1)


def design_fir_bandpass(bands, fs, n_taps):
    """Hamming-windowed sinc band-pass FIR bank, unit gain at band centre.

    # TODO(synk): mngs.dsp's firwin order heuristic is not reproduced; a fixed
    # odd tap count is used instead (deterministic, no scipy/file dependency).
    """
    n_taps = int(n_taps) | 1  # force odd
    n = jnp.arange(n_taps, dtype=jnp.float32) - (n_taps - 1) / 2.0
    win = 0.54 - 0.46 * jnp.cos(
        2.0 * jnp.pi * jnp.arange(n_taps, dtype=jnp.float32) / (n_taps - 1)
    )
    lo = (bands[:, 0:1] / fs).astype(jnp.float32)
    hi = (bands[:, 1:2] / fs).astype(jnp.float32)
    h = 2.0 * hi * jnp.sinc(2.0 * hi * n[None, :]) - 2.0 * lo * jnp.sinc(
        2.0 * lo * n[None, :]
    )
    h = h * win[None, :]
    fc = (bands[:, 0:1] + bands[:, 1:2]) / 2.0 / fs
    k = jnp.arange(n_taps, dtype=jnp.float32)[None, :]
    gain = jnp.abs(
        jnp.sum(
            h.astype(jnp.complex64) * jnp.exp(-2j * jnp.pi * fc * k),
            axis=1,
            keepdims=True,
        )
    )
    return (h / gain).astype(jnp.float32)


# ----------------------------------------------------------------------------
# Pallas kernel 1: FIR bandpass.  Window (im2col) built inside VMEM, bf16 MXU.
# ----------------------------------------------------------------------------
def _make_bandpass_kernel(block_rows, T, k_taps):
    def kernel(x_ref, filt_ref, out_ref):
        # x_ref   : (block_rows, Tpad)      bf16 (padded signal rows)
        # filt_ref: (n_bands_p, k_taps)     bf16 (zero-padded FIR bank)
        # out_ref : (block_rows, n_bands_p, T) f32
        # Build the sliding-window tensor in VMEM: win[b, k, t] = x[b, t + k].
        win = jnp.stack(
            [x_ref[:, k:k + T] for k in range(k_taps)], axis=1
        )  # (block_rows, k_taps, T) bf16
        filt = filt_ref[...]
        for b in range(block_rows):  # small static unroll; 2-D MXU dots only
            out_ref[b] = jnp.dot(
                filt, win[b], preferred_element_type=jnp.float32
            ).astype(out_ref.dtype)

    return kernel


def bandpass_filter(x, filt_padded, n_bands, n_taps, block_rows=8):
    """x: (BCS, T) f32, filt_padded: (NBp, Ktaps) bf16 -> (BCS, n_bands, T) f32."""
    BCS, T = x.shape
    NBp, Ktaps = filt_padded.shape
    pad_left = (n_taps - 1) // 2
    BCSp = _round_up(BCS, block_rows)
    Tpad = _round_up(T + Ktaps - 1, 128)
    xp = jnp.pad(
        x.astype(jnp.bfloat16),
        ((0, BCSp - BCS), (pad_left, Tpad - T - pad_left)),
    )
    kernel = _make_bandpass_kernel(block_rows, T, Ktaps)
    out = pl.pallas_call(
        kernel,
        out_shape=jax.ShapeDtypeStruct((BCSp, NBp, T), jnp.float32),
        grid=(BCSp // block_rows,),
        in_specs=[
            pl.BlockSpec((block_rows, Tpad), lambda i: (i, 0)),
            pl.BlockSpec((NBp, Ktaps), lambda i: (0, 0)),
        ],
        out_specs=pl.BlockSpec((block_rows, NBp, T), lambda i: (i, 0, 0)),
        compiler_params=pltpu.CompilerParams(
            dimension_semantics=("parallel",),
            vmem_limit_bytes=48 * 1024 * 1024,
        ),
    )(xp, filt_padded)
    return out[:BCS, :n_bands, :]


# ----------------------------------------------------------------------------
# Hilbert transform (analytic signal)
# TODO(synk): FFT has no Pallas/Mosaic equivalent on TPU; kept as an XLA op.
# ----------------------------------------------------------------------------
def analytic_signal(x):
    """x: (..., T) real -> complex analytic signal (..., T)."""
    T = x.shape[-1]
    Xf = jnp.fft.fft(x.astype(jnp.float32), axis=-1)
    h = np.zeros(T, dtype=np.float32)
    if T % 2 == 0:
        h[0] = 1.0
        h[T // 2] = 1.0
        h[1:T // 2] = 2.0
    else:
        h[0] = 1.0
        h[1:(T + 1) // 2] = 2.0
    return jnp.fft.ifft(Xf * jnp.asarray(h), axis=-1)


# ----------------------------------------------------------------------------
# Pallas kernel 2: Tort modulation index
# ----------------------------------------------------------------------------
def _make_mi_kernel(n_pha, n_amp, n_seg, t_len, n_bins):
    log_nb = math.log(float(n_bins))
    eps = 1e-9
    inv_bin_w = float(n_bins) / (2.0 * math.pi)

    def kernel(pha_ref, amp_ref, out_ref):
        # pha_ref: (n_seg, n_pha, t_len) bf16
        # amp_ref: (n_seg, n_amp, t_len) bf16
        # out_ref: (1, n_pha, n_amp)     f32
        bins = lax.broadcasted_iota(jnp.int32, (1, n_bins, 1), 1)
        ones_row = jnp.ones((1, t_len), dtype=amp_ref.dtype)

        def seg_body(s, acc):
            ph = pha_ref[s].astype(jnp.float32)  # (n_pha, t_len)
            am = amp_ref[s]                      # (n_amp, t_len) bf16
            idx = jnp.clip(
                jnp.floor((ph + jnp.pi) * inv_bin_w), 0.0, n_bins - 1
            ).astype(jnp.int32)                                  # (n_pha, t_len)
            masks = (idx[:, None, :] == bins).astype(jnp.float32)  # (n_pha, nb, t)
            masks2 = masks.reshape(n_pha * n_bins, t_len).astype(jnp.bfloat16)
            # ones-row trick: one MXU matmul yields amp sums AND bin counts.
            am_aug = jnp.concatenate([am, ones_row], axis=0)     # (n_amp+1, t)
            res = lax.dot_general(
                masks2,
                am_aug,
                dimension_numbers=(((1,), (1,)), ((), ())),
                preferred_element_type=jnp.float32,
            ).reshape(n_pha, n_bins, n_amp + 1)
            sums = res[:, :, :n_amp]                             # (n_pha, nb, n_amp)
            counts = res[:, :, n_amp:]                           # (n_pha, nb, 1)
            # TODO(synk): epsilon placement differs slightly from mngs'
            # ModulationIndex internals (standard Tort-MI epsilons used here).
            means = sums * pl.reciprocal(counts + eps, approx=True)
            probs = means * pl.reciprocal(
                means.sum(axis=1, keepdims=True) + eps, approx=True
            )
            mi = (log_nb + (probs * jnp.log(probs + eps)).sum(axis=1)) / log_nb
            return acc + mi

        acc0 = jnp.zeros((n_pha, n_amp), jnp.float32)
        acc = lax.fori_loop(0, n_seg, seg_body, acc0)
        out_ref[0] = (acc * (1.0 / float(n_seg))).astype(out_ref.dtype)

    return kernel


def modulation_index(pha, amp, n_bins=18):
    """pha: (BC, S, Fp, Tt) bf16, amp: (BC, S, Fa, Tt) bf16 -> MI: (BC, Fp, Fa)."""
    BC, S, Fp, Tt = pha.shape
    _, _, Fa, _ = amp.shape
    kernel = _make_mi_kernel(Fp, Fa, S, Tt, n_bins)
    return pl.pallas_call(
        kernel,
        out_shape=jax.ShapeDtypeStruct((BC, Fp, Fa), jnp.float32),
        grid=(BC,),
        in_specs=[
            pl.BlockSpec((None, S, Fp, Tt), lambda i: (i, 0, 0, 0)),
            pl.BlockSpec((None, S, Fa, Tt), lambda i: (i, 0, 0, 0)),
        ],
        out_specs=pl.BlockSpec((1, Fp, Fa), lambda i: (i, 0, 0)),
        compiler_params=pltpu.CompilerParams(
            dimension_semantics=("parallel",),
            vmem_limit_bytes=48 * 1024 * 1024,
        ),
    )(pha, amp)


# ----------------------------------------------------------------------------
# PAC forward (mirrors the PyTorch module, n_perm=None / trainable=False)
# ----------------------------------------------------------------------------
def make_pac(
    seq_len,
    fs,
    pha_start_hz=2,
    pha_end_hz=20,
    pha_n_bands=50,
    amp_start_hz=60,
    amp_end_hz=160,
    amp_n_bands=30,
    n_taps=65,
    n_bins=18,
):
    factor = 0.8
    amp_end_hz = int(min(fs / 2 / (1 + factor) - 1, amp_end_hz))
    bands_pha = calc_bands_pha(pha_start_hz, pha_end_hz, pha_n_bands)
    bands_amp = calc_bands_amp(amp_start_hz, amp_end_hz, amp_n_bands)
    bands_all = jnp.concatenate([bands_pha, bands_amp], axis=0)

    filt = design_fir_bandpass(bands_all, float(fs), n_taps)  # (NB, n_taps_odd) f32
    n_bands, n_taps_real = int(filt.shape[0]), int(filt.shape[1])
    n_pha, n_amp = pha_n_bands, amp_n_bands

    # Pad the FIR bank for MXU/vreg alignment: taps -> multiple of 128,
    # bands -> multiple of 8 (zero rows/taps are exact no-ops).
    NBp = _round_up(n_bands, 8)
    Ktaps = max(128, _round_up(n_taps_real, 128))
    filt_bf16 = jnp.pad(
        filt, ((0, NBp - n_bands), (0, Ktaps - n_taps_real))
    ).astype(jnp.bfloat16)

    # TODO(synk): the n_perm surrogate / z-score path (torch.randint shuffling)
    # is not implemented; this covers n_perm=None only.

    def forward(x):
        if x.ndim == 3:  # (B, C, T) -> (B, C, 1, T)
            x = x[:, :, None, :]
        B, C, S, T = x.shape
        xf = x.reshape(B * C * S, T).astype(jnp.float32)

        # (B*C*S, n_bands, T) f32
        filtered = bandpass_filter(xf, filt_bf16, n_bands, n_taps_real)

        # Hilbert -> phase / amplitude; band split + edge trim fused here so no
        # large HBM transpose is needed before the MI kernel.
        z = analytic_signal(filtered)  # complex64 (B*C*S, n_bands, T)
        edge = T // 8
        Tt = T - 2 * edge
        # TODO(synk): PAC.forward applies .half(); bf16 is used here instead of
        # fp16 (TPU-native), so results differ at the bf16 rounding level.
        pha = jnp.angle(z[:, :n_pha, edge:T - edge]).astype(jnp.bfloat16)
        amp = jnp.abs(z[:, n_bands - n_amp:, edge:T - edge]).astype(jnp.bfloat16)

        pha = pha.reshape(B * C, S, n_pha, Tt)  # free reshape (S fastest in BCS)
        amp = amp.reshape(B * C, S, n_amp, Tt)

        pac = modulation_index(pha, amp, n_bins=n_bins)  # (B*C, Fp, Fa)
        return pac.reshape(B, C, n_pha, n_amp)

    return jax.jit(forward)


# ----------------------------------------------------------------------------
if __name__ == "__main__":
    seq_len = 256
    fs = 512.0
    batch, n_chs, n_segments = 2, 2, 2
    pha_n_bands, amp_n_bands = 8, 6

    key = jax.random.PRNGKey(0)
    x = jax.random.normal(
        key, (batch, n_chs, n_segments, seq_len), dtype=jnp.float32
    )

    pac_fn = make_pac(
        seq_len,
        fs,
        pha_start_hz=2,
        pha_end_hz=20,
        pha_n_bands=pha_n_bands,
        amp_start_hz=60,
        amp_end_hz=160,
        amp_n_bands=amp_n_bands,
    )

    out = pac_fn(x)
    out = jax.block_until_ready(out)

    assert out.shape == (batch, n_chs, pha_n_bands, amp_n_bands), out.shape
    assert bool(jnp.all(jnp.isfinite(out)))
    print("KERNEL_OK")
</pallas_src>

<mosaic_0001>
module attributes {stable_mosaic.version = 11 : i64} {
  func.func @kernel(%arg0: i32, %arg1: memref<8x384xbf16, #tpu.memory_space<vmem>>, %arg2: memref<16x128xbf16, #tpu.memory_space<vmem>>, %arg3: memref<8x16x256xf32, #tpu.memory_space<vmem>>) attributes {dimension_semantics = [#tpu.dimension_semantics<parallel>], iteration_bounds = array<i64: 1>, scalar_prefetch = 0 : i64, scratch_operands = 0 : i64, tpu.core_type = #tpu.core_type<tc>, window_params = [{transform_indices = @transform_0, window_bounds = array<i64: 8, 384>}, {pipeline_mode = #tpu.pipeline_mode<synchronous>, transform_indices = @transform_1, window_bounds = array<i64: 16, 128>}, {transform_indices = @transform_2, window_bounds = array<i64: 8, 16, 256>}]} {
    %c0 = arith.constant 0 : index
    %c0_0 = arith.constant 0 : index
    %0 = vector.load %arg1[%c0, %c0_0] : memref<8x384xbf16, #tpu.memory_space<vmem>>, vector<8x256xbf16>
    %c0_1 = arith.constant 0 : index
    %c1 = arith.constant 1 : index
    %1 = vector.load %arg1[%c0_1, %c1] : memref<8x384xbf16, #tpu.memory_space<vmem>>, vector<8x256xbf16>
    %c0_2 = arith.constant 0 : index
    %c2 = arith.constant 2 : index
    %2 = vector.load %arg1[%c0_2, %c2] : memref<8x384xbf16, #tpu.memory_space<vmem>>, vector<8x256xbf16>
    %c0_3 = arith.constant 0 : index
    %c3 = arith.constant 3 : index
    %3 = vector.load %arg1[%c0_3, %c3] : memref<8x384xbf16, #tpu.memory_space<vmem>>, vector<8x256xbf16>
    %c0_4 = arith.constant 0 : index
    %c4 = arith.constant 4 : index
    %4 = vector.load %arg1[%c0_4, %c4] : memref<8x384xbf16, #tpu.memory_space<vmem>>, vector<8x256xbf16>
    %c0_5 = arith.constant 0 : index
    %c5 = arith.constant 5 : index
    %5 = vector.load %arg1[%c0_5, %c5] : memref<8x384xbf16, #tpu.memory_space<vmem>>, vector<8x256xbf16>
    %c0_6 = arith.constant 0 : index
    %c6 = arith.constant 6 : index
    %6 = vector.load %arg1[%c0_6, %c6] : memref<8x384xbf16, #tpu.memory_space<vmem>>, vector<8x256xbf16>
    %c0_7 = arith.constant 0 : index
    %c7 = arith.constant 7 : index
    %7 = vector.load %arg1[%c0_7, %c7] : memref<8x384xbf16, #tpu.memory_space<vmem>>, vector<8x256xbf16>
    %c0_8 = arith.constant 0 : index
    %c8 = arith.constant 8 : index
    %8 = vector.load %arg1[%c0_8, %c8] : memref<8x384xbf16, #tpu.memory_space<vmem>>, vector<8x256xbf16>
    %c0_9 = arith.constant 0 : index
    %c9 = arith.constant 9 : index
    %9 = vector.load %arg1[%c0_9, %c9] : memref<8x384xbf16, #tpu.memory_space<vmem>>, vector<8x256xbf16>
    %c0_10 = arith.constant 0 : index
    %c10 = arith.constant 10 : index
    %10 = vector.load %arg1[%c0_10, %c10] : memref<8x384xbf16, #tpu.memory_space<vmem>>, vector<8x256xbf16>
    %c0_11 = arith.constant 0 : index
    %c11 = arith.constant 11 : index
    %11 = vector.load %arg1[%c0_11, %c11] : memref<8x384xbf16, #tpu.memory_space<vmem>>, vector<8x256xbf16>
    %c0_12 = arith.constant 0 : index
    %c12 = arith.constant 12 : index
    %12 = vector.load %arg1[%c0_12, %c12] : memref<8x384xbf16, #tpu.memory_space<vmem>>, vector<8x256xbf16>
    %c0_13 = arith.constant 0 : index
    %c13 = arith.constant 13 : index
    %13 = vector.load %arg1[%c0_13, %c13] : memref<8x384xbf16, #tpu.memory_space<vmem>>, vector<8x256xbf16>
    %c0_14 = arith.constant 0 : index
    %c14 = arith.constant 14 : index
    %14 = vector.load %arg1[%c0_14, %c14] : memref<8x384xbf16, #tpu.memory_space<vmem>>, vector<8x256xbf16>
    %c0_15 = arith.constant 0 : index
    %c15 = arith.constant 15 : index
    %15 = vector.load %arg1[%c0_15, %c15] : memref<8x384xbf16, #tpu.memory_space<vmem>>, vector<8x256xbf16>
    %c0_16 = arith.constant 0 : index
    %c16 = arith.constant 16 : index
    %16 = vector.load %arg1[%c0_16, %c16] : memref<8x384xbf16, #tpu.memory_space<vmem>>, vector<8x256xbf16>
    %c0_17 = arith.constant 0 : index
    %c17 = arith.constant 17 : index
    %17 = vector.load %arg1[%c0_17, %c17] : memref<8x384xbf16, #tpu.memory_space<vmem>>, vector<8x256xbf16>
    %c0_18 = arith.constant 0 : index
    %c18 = arith.constant 18 : index
    %18 = vector.load %arg1[%c0_18, %c18] : memref<8x384xbf16, #tpu.memory_space<vmem>>, vector<8x256xbf16>
    %c0_19 = arith.constant 0 : index
    %c19 = arith.constant 19 : index
    %19 = vector.load %arg1[%c0_19, %c19] : memref<8x384xbf16, #tpu.memory_space<vmem>>, vector<8x256xbf16>
    %c0_20 = arith.constant 0 : index
    %c20 = arith.constant 20 : index
    %20 = vector.load %arg1[%c0_20, %c20] : memref<8x384xbf16, #tpu.memory_space<vmem>>, vector<8x256xbf16>
    %c0_21 = arith.constant 0 : index
    %c21 = arith.constant 21 : index
    %21 = vector.load %arg1[%c0_21, %c21] : memref<8x384xbf16, #tpu.memory_space<vmem>>, vector<8x256xbf16>
    %c0_22 = arith.constant 0 : index
    %c22 = arith.constant 22 : index
    %22 = vector.load %arg1[%c0_22, %c22] : memref<8x384xbf16, #tpu.memory_space<vmem>>, vector<8x256xbf16>
    %c0_23 = arith.constant 0 : index
    %c23 = arith.constant 23 : index
    %23 = vector.load %arg1[%c0_23, %c23] : memref<8x384xbf16, #tpu.memory_space<vmem>>, vector<8x256xbf16>
    %c0_24 = arith.constant 0 : index
    %c24 = arith.constant 24 : index
    %24 = vector.load %arg1[%c0_24, %c24] : memref<8x384xbf16, #tpu.memory_space<vmem>>, vector<8x256xbf16>
    %c0_25 = arith.constant 0 : index
    %c25 = arith.constant 25 : index
    %25 = vector.load %arg1[%c0_25, %c25] : memref<8x384xbf16, #tpu.memory_space<vmem>>, vector<8x256xbf16>
    %c0_26 = arith.constant 0 : index
    %c26 = arith.constant 26 : index
    %26 = vector.load %arg1[%c0_26, %c26] : memref<8x384xbf16, #tpu.memory_space<vmem>>, vector<8x256xbf16>
    %c0_27 = arith.constant 0 : index
    %c27 = arith.constant 27 : index
    %27 = vector.load %arg1[%c0_27, %c27] : memref<8x384xbf16, #tpu.memory_space<vmem>>, vector<8x256xbf16>
    %c0_28 = arith.constant 0 : index
    %c28 = arith.constant 28 : index
    %28 = vector.load %arg1[%c0_28, %c28] : memref<8x384xbf16, #tpu.memory_space<vmem>>, vector<8x256xbf16>
    %c0_29 = arith.constant 0 : index
    %c29 = arith.constant 29 : index
    %29 = vector.load %arg1[%c0_29, %c29] : memref<8x384xbf16, #tpu.memory_space<vmem>>, vector<8x256xbf16>
    %c0_30 = arith.constant 0 : index
    %c30 = arith.constant 30 : index
    %30 = vector.load %arg1[%c0_30, %c30] : memref<8x384xbf16, #tpu.memory_space<vmem>>, vector<8x256xbf16>
    %c0_31 = arith.constant 0 : index
    %c31 = arith.constant 31 : index
    %31 = vector.load %arg1[%c0_31, %c31] : memref<8x384xbf16, #tpu.memory_space<vmem>>, vector<8x256xbf16>
    %c0_32 = arith.constant 0 : index
    %c32 = arith.constant 32 : index
    %32 = vector.load %arg1[%c0_32, %c32] : memref<8x384xbf16, #tpu.memory_space<vmem>>, vector<8x256xbf16>
    %c0_33 = arith.constant 0 : index
    %c33 = arith.constant 33 : index
    %33 = vector.load %arg1[%c0_33, %c33] : memref<8x384xbf16, #tpu.memory_space<vmem>>, vector<8x256xbf16>
    %c0_34 = arith.constant 0 : index
    %c34 = arith.constant 34 : index
    %34 = vector.load %arg1[%c0_34, %c34] : memref<8x384xbf16, #tpu.memory_space<vmem>>, vector<8x256xbf16>
    %c0_35 = arith.constant 0 : index
    %c35 = arith.constant 35 : index
    %35 = vector.load %arg1[%c0_35, %c35] : memref<8x384xbf16, #tpu.memory_space<vmem>>, vector<8x256xbf16>
    %c0_36 = arith.constant 0 : index
    %c36 = arith.constant 36 : index
    %36 = vector.load %arg1[%c0_36, %c36] : memref<8x384xbf16, #tpu.memory_space<vmem>>, vector<8x256xbf16>
    %c0_37 = arith.constant 0 : index
    %c37 = arith.constant 37 : index
    %37 = vector.load %arg1[%c0_37, %c37] : memref<8x384xbf16, #tpu.memory_space<vmem>>, vector<8x256xbf16>
    %c0_38 = arith.constant 0 : index
    %c38 = arith.constant 38 : index
    %38 = vector.load %arg1[%c0_38, %c38] : memref<8x384xbf16, #tpu.memory_space<vmem>>, vector<8x256xbf16>
    %c0_39 = arith.constant 0 : index
    %c39 = arith.constant 39 : index
    %39 = vector.load %arg1[%c0_39, %c39] : memref<8x384xbf16, #tpu.memory_space<vmem>>, vector<8x256xbf16>
    %c0_40 = arith.constant 0 : index
    %c40 = arith.constant 40 : index
    %40 = vector.load %arg1[%c0_40, %c40] : memref<8x384xbf16, #tpu.memory_space<vmem>>, vector<8x256xbf16>
    %c0_41 = arith.constant 0 : index
    %c41 = arith.constant 41 : index
    %41 = vector.load %arg1[%c0_41, %c41] : memref<8x384xbf16, #tpu.memory_space<vmem>>, vector<8x256xbf16>
    %c0_42 = arith.constant 0 : index
    %c42 = arith.constant 42 : index
    %42 = vector.load %arg1[%c0_42, %c42] : memref<8x384xbf16, #tpu.memory_space<vmem>>, vector<8x256xbf16>
    %c0_43 = arith.constant 0 : index
    %c43 = arith.constant 43 : index
    %43 = vector.load %arg1[%c0_43, %c43] : memref<8x384xbf16, #tpu.memory_space<vmem>>, vector<8x256xbf16>
    %c0_44 = arith.constant 0 : index
    %c44 = arith.constant 44 : index
    %44 = vector.load %arg1[%c0_44, %c44] : memref<8x384xbf16, #tpu.memory_space<vmem>>, vector<8x256xbf16>
    %c0_45 = arith.constant 0 : index
    %c45 = arith.constant 45 : index
    %45 = vector.load %arg1[%c0_45, %c45] : memref<8x384xbf16, #tpu.memory_space<vmem>>, vector<8x256xbf16>
    %c0_46 = arith.constant 0 : index
    %c46 = arith.constant 46 : index
    %46 = vector.load %arg1[%c0_46, %c46] : memref<8x384xbf16, #tpu.memory_space<vmem>>, vector<8x256xbf16>
    %c0_47 = arith.constant 0 : index
    %c47 = arith.constant 47 : index
    %47 = vector.load %arg1[%c0_47, %c47] : memref<8x384xbf16, #tpu.memory_space<vmem>>, vector<8x256xbf16>
    %c0_48 = arith.constant 0 : index
    %c48 = arith.constant 48 : index
    %48 = vector.load %arg1[%c0_48, %c48] : memref<8x384xbf16, #tpu.memory_space<vmem>>, vector<8x256xbf16>
    %c0_49 = arith.constant 0 : index
    %c49 = arith.constant 49 : index
    %49 = vector.load %arg1[%c0_49, %c49] : memref<8x384xbf16, #tpu.memory_space<vmem>>, vector<8x256xbf16>
    %c0_50 = arith.constant 0 : index
    %c50 = arith.constant 50 : index
    %50 = vector.load %arg1[%c0_50, %c50] : memref<8x384xbf16, #tpu.memory_space<vmem>>, vector<8x256xbf16>
    %c0_51 = arith.constant 0 : index
    %c51 = arith.constant 51 : index
    %51 = vector.load %arg1[%c0_51, %c51] : memref<8x384xbf16, #tpu.memory_space<vmem>>, vector<8x256xbf16>
    %c0_52 = arith.constant 0 : index
    %c52 = arith.constant 52 : index
    %52 = vector.load %arg1[%c0_52, %c52] : memref<8x384xbf16, #tpu.memory_space<vmem>>, vector<8x256xbf16>
    %c0_53 = arith.constant 0 : index
    %c53 = arith.constant 53 : index
    %53 = vector.load %arg1[%c0_53, %c53] : memref<8x384xbf16, #tpu.memory_space<vmem>>, vector<8x256xbf16>
    %c0_54 = arith.constant 0 : index
    %c54 = arith.constant 54 : index
    %54 = vector.load %arg1[%c0_54, %c54] : memref<8x384xbf16, #tpu.memory_space<vmem>>, vector<8x256xbf16>
    %c0_55 = arith.constant 0 : index
    %c55 = arith.constant 55 : index
    %55 = vector.load %arg1[%c0_55, %c55] : memref<8x384xbf16, #tpu.memory_space<vmem>>, vector<8x256xbf16>
    %c0_56 = arith.constant 0 : index
    %c56 = arith.constant 56 : index
    %56 = vector.load %arg1[%c0_56, %c56] : memref<8x384xbf16, #tpu.memory_space<vmem>>, vector<8x256xbf16>
    %c0_57 = arith.constant 0 : index
    %c57 = arith.constant 57 : index
    %57 = vector.load %arg1[%c0_57, %c57] : memref<8x384xbf16, #tpu.memory_space<vmem>>, vector<8x256xbf16>
    %c0_58 = arith.constant 0 : index
    %c58 = arith.constant 58 : index
    %58 = vector.load %arg1[%c0_58, %c58] : memref<8x384xbf16, #tpu.memory_space<vmem>>, vector<8x256xbf16>
    %c0_59 = arith.constant 0 : index
    %c59 = arith.constant 59 : index
    %59 = vector.load %arg1[%c0_59, %c59] : memref<8x384xbf16, #tpu.memory_space<vmem>>, vector<8x256xbf16>
    %c0_60 = arith.constant 0 : index
    %c60 = arith.constant 60 : index
    %60 = vector.load %arg1[%c0_60, %c60] : memref<8x384xbf16, #tpu.memory_space<vmem>>, vector<8x256xbf16>
    %c0_61 = arith.constant 0 : index
    %c61 = arith.constant 61 : index
    %61 = vector.load %arg1[%c0_61, %c61] : memref<8x384xbf16, #tpu.memory_space<vmem>>, vector<8x256xbf16>
    %c0_62 = arith.constant 0 : index
    %c62 = arith.constant 62 : index
    %62 = vector.load %arg1[%c0_62, %c62] : memref<8x384xbf16, #tpu.memory_space<vmem>>, vector<8x256xbf16>
    %c0_63 = arith.constant 0 : index
    %c63 = arith.constant 63 : index
    %63 = vector.load %arg1[%c0_63, %c63] : memref<8x384xbf16, #tpu.memory_space<vmem>>, vector<8x256xbf16>
    %c0_64 = arith.constant 0 : index
    %c64 = arith.constant 64 : index
    %64 = vector.load %arg1[%c0_64, %c64] : memref<8x384xbf16, #tpu.memory_space<vmem>>, vector<8x256xbf16>
    %c0_65 = arith.constant 0 : index
    %c65 = arith.constant 65 : index
    %65 = vector.load %arg1[%c0_65, %c65] : memref<8x384xbf16, #tpu.memory_space<vmem>>, vector<8x256xbf16>
    %c0_66 = arith.constant 0 : index
    %c66 = arith.constant 66 : index
    %66 = vector.load %arg1[%c0_66, %c66] : memref<8x384xbf16, #tpu.memory_space<vmem>>, vector<8x256xbf16>
    %c0_67 = arith.constant 0 : index
    %c67 = arith.constant 67 : index
    %67 = vector.load %arg1[%c0_67, %c67] : memref<8x384xbf16, #tpu.memory_space<vmem>>, vector<8x256xbf16>
    %c0_68 = arith.constant 0 : index
    %c68 = arith.constant 68 : index
    %68 = vector.load %arg1[%c0_68, %c68] : memref<8x384xbf16, #tpu.memory_space<vmem>>, vector<8x256xbf16>
    %c0_69 = arith.constant 0 : index
    %c69 = arith.constant 69 : index
    %69 = vector.load %arg1[%c0_69, %c69] : memref<8x384xbf16, #tpu.memory_space<vmem>>, vector<8x256xbf16>
    %c0_70 = arith.constant 0 : index
    %c70 = arith.constant 70 : index
    %70 = vector.load %arg1[%c0_70, %c70] : memref<8x384xbf16, #tpu.memory_space<vmem>>, vector<8x256xbf16>
    %c0_71 = arith.constant 0 : index
    %c71 = arith.constant 71 : index
    %71 = vector.load %arg1[%c0_71, %c71] : memref<8x384xbf16, #tpu.memory_space<vmem>>, vector<8x256xbf16>
    %c0_72 = arith.constant 0 : index
    %c72 = arith.constant 72 : index
    %72 = vector.load %arg1[%c0_72, %c72] : memref<8x384xbf16, #tpu.memory_space<vmem>>, vector<8x256xbf16>
    %c0_73 = arith.constant 0 : index
    %c73 = arith.constant 73 : index
    %73 = vector.load %arg1[%c0_73, %c73] : memref<8x384xbf16, #tpu.memory_space<vmem>>, vector<8x256xbf16>
    %c0_74 = arith.constant 0 : index
    %c74 = arith.constant 74 : index
    %74 = vector.load %arg1[%c0_74, %c74] : memref<8x384xbf16, #tpu.memory_space<vmem>>, vector<8x256xbf16>
    %c0_75 = arith.constant 0 : index
    %c75 = arith.constant 75 : index
    %75 = vector.load %arg1[%c0_75, %c75] : memref<8x384xbf16, #tpu.memory_space<vmem>>, vector<8x256xbf16>
    %c0_76 = arith.constant 0 : index
    %c76 = arith.constant 76 : index
    %76 = vector.load %arg1[%c0_76, %c76] : memref<8x384xbf16, #tpu.memory_space<vmem>>, vector<8x256xbf16>
    %c0_77 = arith.constant 0 : index
    %c77 = arith.constant 77 : index
    %77 = vector.load %arg1[%c0_77, %c77] : memref<8x384xbf16, #tpu.memory_space<vmem>>, vector<8x256xbf16>
    %c0_78 = arith.constant 0 : index
    %c78 = arith.constant 78 : index
    %78 = vector.load %arg1[%c0_78, %c78] : memref<8x384xbf16, #tpu.memory_space<vmem>>, vector<8x256xbf16>
    %c0_79 = arith.constant 0 : index
    %c79 = arith.constant 79 : index
    %79 = vector.load %arg1[%c0_79, %c79] : memref<8x384xbf16, #tpu.memory_space<vmem>>, vector<8x256xbf16>
    %c0_80 = arith.constant 0 : index
    %c80 = arith.constant 80 : index
    %80 = vector.load %arg1[%c0_80, %c80] : memref<8x384xbf16, #tpu.memory_space<vmem>>, vector<8x256xbf16>
    %c0_81 = arith.constant 0 : index
    %c81 = arith.constant 81 : index
    %81 = vector.load %arg1[%c0_81, %c81] : memref<8x384xbf16, #tpu.memory_space<vmem>>, vector<8x256xbf16>
    %c0_82 = arith.constant 0 : index
    %c82 = arith.constant 82 : index
    %82 = vector.load %arg1[%c0_82, %c82] : memref<8x384xbf16, #tpu.memory_space<vmem>>, vector<8x256xbf16>
    %c0_83 = arith.constant 0 : index
    %c83 = arith.constant 83 : index
    %83 = vector.load %arg1[%c0_83, %c83] : memref<8x384xbf16, #tpu.memory_space<vmem>>, vector<8x256xbf16>
    %c0_84 = arith.constant 0 : index
    %c84 = arith.constant 84 : index
    %84 = vector.load %arg1[%c0_84, %c84] : memref<8x384xbf16, #tpu.memory_space<vmem>>, vector<8x256xbf16>
    %c0_85 = arith.constant 0 : index
    %c85 = arith.constant 85 : index
    %85 = vector.load %arg1[%c0_85, %c85] : memref<8x384xbf16, #tpu.memory_space<vmem>>, vector<8x256xbf16>
    %c0_86 = arith.constant 0 : index
    %c86 = arith.constant 86 : index
    %86 = vector.load %arg1[%c0_86, %c86] : memref<8x384xbf16, #tpu.memory_space<vmem>>, vector<8x256xbf16>
    %c0_87 = arith.constant 0 : index
    %c87 = arith.constant 87 : index
    %87 = vector.load %arg1[%c0_87, %c87] : memref<8x384xbf16, #tpu.memory_space<vmem>>, vector<8x256xbf16>
    %c0_88 = arith.constant 0 : index
    %c88 = arith.constant 88 : index
    %88 = vector.load %arg1[%c0_88, %c88] : memref<8x384xbf16, #tpu.memory_space<vmem>>, vector<8x256xbf16>
    %c0_89 = arith.constant 0 : index
    %c89 = arith.constant 89 : index
    %89 = vector.load %arg1[%c0_89, %c89] : memref<8x384xbf16, #tpu.memory_space<vmem>>, vector<8x256xbf16>
    %c0_90 = arith.constant 0 : index
    %c90 = arith.constant 90 : index
    %90 = vector.load %arg1[%c0_90, %c90] : memref<8x384xbf16, #tpu.memory_space<vmem>>, vector<8x256xbf16>
    %c0_91 = arith.constant 0 : index
    %c91 = arith.constant 91 : index
    %91 = vector.load %arg1[%c0_91, %c91] : memref<8x384xbf16, #tpu.memory_space<vmem>>, vector<8x256xbf16>
    %c0_92 = arith.constant 0 : index
    %c92 = arith.constant 92 : index
    %92 = vector.load %arg1[%c0_92, %c92] : memref<8x384xbf16, #tpu.memory_space<vmem>>, vector<8x256xbf16>
    %c0_93 = arith.constant 0 : index
    %c93 = arith.constant 93 : index
    %93 = vector.load %arg1[%c0_93, %c93] : memref<8x384xbf16, #tpu.memory_space<vmem>>, vector<8x256xbf16>
    %c0_94 = arith.constant 0 : index
    %c94 = arith.constant 94 : index
    %94 = vector.load %arg1[%c0_94, %c94] : memref<8x384xbf16, #tpu.memory_space<vmem>>, vector<8x256xbf16>
    %c0_95 = arith.constant 0 : index
    %c95 = arith.constant 95 : index
    %95 = vector.load %arg1[%c0_95, %c95] : memref<8x384xbf16, #tpu.memory_space<vmem>>, vector<8x256xbf16>
    %c0_96 = arith.constant 0 : index
    %c96 = arith.constant 96 : index
    %96 = vector.load %arg1[%c0_96, %c96] : memref<8x384xbf16, #tpu.memory_space<vmem>>, vector<8x256xbf16>
    %c0_97 = arith.constant 0 : index
    %c97 = arith.constant 97 : index
    %97 = vector.load %arg1[%c0_97, %c97] : memref<8x384xbf16, #tpu.memory_space<vmem>>, vector<8x256xbf16>
    %c0_98 = arith.constant 0 : index
    %c98 = arith.constant 98 : index
    %98 = vector.load %arg1[%c0_98, %c98] : memref<8x384xbf16, #tpu.memory_space<vmem>>, vector<8x256xbf16>
    %c0_99 = arith.constant 0 : index
    %c99 = arith.constant 99 : index
    %99 = vector.load %arg1[%c0_99, %c99] : memref<8x384xbf16, #tpu.memory_space<vmem>>, vector<8x256xbf16>
    %c0_100 = arith.constant 0 : index
    %c100 = arith.constant 100 : index
    %100 = vector.load %arg1[%c0_100, %c100] : memref<8x384xbf16, #tpu.memory_space<vmem>>, vector<8x256xbf16>
    %c0_101 = arith.constant 0 : index
    %c101 = arith.constant 101 : index
    %101 = vector.load %arg1[%c0_101, %c101] : memref<8x384xbf16, #tpu.memory_space<vmem>>, vector<8x256xbf16>
    %c0_102 = arith.constant 0 : index
    %c102 = arith.constant 102 : index
    %102 = vector.load %arg1[%c0_102, %c102] : memref<8x384xbf16, #tpu.memory_space<vmem>>, vector<8x256xbf16>
    %c0_103 = arith.constant 0 : index
    %c103 = arith.constant 103 : index
    %103 = vector.load %arg1[%c0_103, %c103] : memref<8x384xbf16, #tpu.memory_space<vmem>>, vector<8x256xbf16>
    %c0_104 = arith.constant 0 : index
    %c104 = arith.constant 104 : index
    %104 = vector.load %arg1[%c0_104, %c104] : memref<8x384xbf16, #tpu.memory_space<vmem>>, vector<8x256xbf16>
    %c0_105 = arith.constant 0 : index
    %c105 = arith.constant 105 : index
    %105 = vector.load %arg1[%c0_105, %c105] : memref<8x384xbf16, #tpu.memory_space<vmem>>, vector<8x256xbf16>
    %c0_106 = arith.constant 0 : index
    %c106 = arith.constant 106 : index
    %106 = vector.load %arg1[%c0_106, %c106] : memref<8x384xbf16, #tpu.memory_space<vmem>>, vector<8x256xbf16>
    %c0_107 = arith.constant 0 : index
    %c107 = arith.constant 107 : index
    %107 = vector.load %arg1[%c0_107, %c107] : memref<8x384xbf16, #tpu.memory_space<vmem>>, vector<8x256xbf16>
    %c0_108 = arith.constant 0 : index
    %c108 = arith.constant 108 : index
    %108 = vector.load %arg1[%c0_108, %c108] : memref<8x384xbf16, #tpu.memory_space<vmem>>, vector<8x256xbf16>
    %c0_109 = arith.constant 0 : index
    %c109 = arith.constant 109 : index
    %109 = vector.load %arg1[%c0_109, %c109] : memref<8x384xbf16, #tpu.memory_space<vmem>>, vector<8x256xbf16>
    %c0_110 = arith.constant 0 : index
    %c110 = arith.constant 110 : index
    %110 = vector.load %arg1[%c0_110, %c110] : memref<8x384xbf16, #tpu.memory_space<vmem>>, vector<8x256xbf16>
    %c0_111 = arith.constant 0 : index
    %c111 = arith.constant 111 : index
    %111 = vector.load %arg1[%c0_111, %c111] : memref<8x384xbf16, #tpu.memory_space<vmem>>, vector<8x256xbf16>
    %c0_112 = arith.constant 0 : index
    %c112 = arith.constant 112 : index
    %112 = vector.load %arg1[%c0_112, %c112] : memref<8x384xbf16, #tpu.memory_space<vmem>>, vector<8x256xbf16>
    %c0_113 = arith.constant 0 : index
    %c113 = arith.constant 113 : index
    %113 = vector.load %arg1[%c0_113, %c113] : memref<8x384xbf16, #tpu.memory_space<vmem>>, vector<8x256xbf16>
    %c0_114 = arith.constant 0 : index
    %c114 = arith.constant 114 : index
    %114 = vector.load %arg1[%c0_114, %c114] : memref<8x384xbf16, #tpu.memory_space<vmem>>, vector<8x256xbf16>
    %c0_115 = arith.constant 0 : index
    %c115 = arith.constant 115 : index
    %115 = vector.load %arg1[%c0_115, %c115] : memref<8x384xbf16, #tpu.memory_space<vmem>>, vector<8x256xbf16>
    %c0_116 = arith.constant 0 : index
    %c116 = arith.constant 116 : index
    %116 = vector.load %arg1[%c0_116, %c116] : memref<8x384xbf16, #tpu.memory_space<vmem>>, vector<8x256xbf16>
    %c0_117 = arith.constant 0 : index
    %c117 = arith.constant 117 : index
    %117 = vector.load %arg1[%c0_117, %c117] : memref<8x384xbf16, #tpu.memory_space<vmem>>, vector<8x256xbf16>
    %c0_118 = arith.constant 0 : index
    %c118 = arith.constant 118 : index
    %118 = vector.load %arg1[%c0_118, %c118] : memref<8x384xbf16, #tpu.memory_space<vmem>>, vector<8x256xbf16>
    %c0_119 = arith.constant 0 : index
    %c119 = arith.constant 119 : index
    %119 = vector.load %arg1[%c0_119, %c119] : memref<8x384xbf16, #tpu.memory_space<vmem>>, vector<8x256xbf16>
    %c0_120 = arith.constant 0 : index
    %c120 = arith.constant 120 : index
    %120 = vector.load %arg1[%c0_120, %c120] : memref<8x384xbf16, #tpu.memory_space<vmem>>, vector<8x256xbf16>
    %c0_121 = arith.constant 0 : index
    %c121 = arith.constant 121 : index
    %121 = vector.load %arg1[%c0_121, %c121] : memref<8x384xbf16, #tpu.memory_space<vmem>>, vector<8x256xbf16>
    %c0_122 = arith.constant 0 : index
    %c122 = arith.constant 122 : index
    %122 = vector.load %arg1[%c0_122, %c122] : memref<8x384xbf16, #tpu.memory_space<vmem>>, vector<8x256xbf16>
    %c0_123 = arith.constant 0 : index
    %c123 = arith.constant 123 : index
    %123 = vector.load %arg1[%c0_123, %c123] : memref<8x384xbf16, #tpu.memory_space<vmem>>, vector<8x256xbf16>
    %c0_124 = arith.constant 0 : index
    %c124 = arith.constant 124 : index
    %124 = vector.load %arg1[%c0_124, %c124] : memref<8x384xbf16, #tpu.memory_space<vmem>>, vector<8x256xbf16>
    %c0_125 = arith.constant 0 : index
    %c125 = arith.constant 125 : index
    %125 = vector.load %arg1[%c0_125, %c125] : memref<8x384xbf16, #tpu.memory_space<vmem>>, vector<8x256xbf16>
    %c0_126 = arith.constant 0 : index
    %c126 = arith.constant 126 : index
    %126 = vector.load %arg1[%c0_126, %c126] : memref<8x384xbf16, #tpu.memory_space<vmem>>, vector<8x256xbf16>
    %c0_127 = arith.constant 0 : index
    %c127 = arith.constant 127 : index
    %127 = vector.load %arg1[%c0_127, %c127] : memref<8x384xbf16, #tpu.memory_space<vmem>>, vector<8x256xbf16>
    %128 = vector.shape_cast %0 : vector<8x256xbf16> to vector<8x1x256xbf16>
    %129 = vector.shape_cast %1 : vector<8x256xbf16> to vector<8x1x256xbf16>
    %130 = vector.shape_cast %2 : vector<8x256xbf16> to vector<8x1x256xbf16>
    %131 = vector.shape_cast %3 : vector<8x256xbf16> to vector<8x1x256xbf16>
    %132 = vector.shape_cast %4 : vector<8x256xbf16> to vector<8x1x256xbf16>
    %133 = vector.shape_cast %5 : vector<8x256xbf16> to vector<8x1x256xbf16>
    %134 = vector.shape_cast %6 : vector<8x256xbf16> to vector<8x1x256xbf16>
    %135 = vector.shape_cast %7 : vector<8x256xbf16> to vector<8x1x256xbf16>
    %136 = vector.shape_cast %8 : vector<8x256xbf16> to vector<8x1x256xbf16>
    %137 = vector.shape_cast %9 : vector<8x256xbf16> to vector<8x1x256xbf16>
    %138 = vector.shape_cast %10 : vector<8x256xbf16> to vector<8x1x256xbf16>
    %139 = vector.shape_cast %11 : vector<8x256xbf16> to vector<8x1x256xbf16>
    %140 = vector.shape_cast %12 : vector<8x256xbf16> to vector<8x1x256xbf16>
    %141 = vector.shape_cast %13 : vector<8x256xbf16> to vector<8x1x256xbf16>
    %142 = vector.shape_cast %14 : vector<8x256xbf16> to vector<8x1x256xbf16>
    %143 = vector.shape_cast %15 : vector<8x256xbf16> to vector<8x1x256xbf16>
    %144 = vector.shape_cast %16 : vector<8x256xbf16> to vector<8x1x256xbf16>
    %145 = vector.shape_cast %17 : vector<8x256xbf16> to vector<8x1x256xbf16>
    %146 = vector.shape_cast %18 : vector<8x256xbf16> to vector<8x1x256xbf16>
    %147 = vector.shape_cast %19 : vector<8x256xbf16> to vector<8x1x256xbf16>
    %148 = vector.shape_cast %20 : vector<8x256xbf16> to vector<8x1x256xbf16>
    %149 = vector.shape_cast %21 : vector<8x256xbf16> to vector<8x1x256xbf16>
    %150 = vector.shape_cast %22 : vector<8x256xbf16> to vector<8x1x256xbf16>
    %151 = vector.shape_cast %23 : vector<8x256xbf16> to vector<8x1x256xbf16>
    %152 = vector.shape_cast %24 : vector<8x256xbf16> to vector<8x1x256xbf16>
    %153 = vector.shape_cast %25 : vector<8x256xbf16> to vector<8x1x256xbf16>
    %154 = vector.shape_cast %26 : vector<8x256xbf16> to vector<8x1x256xbf16>
    %155 = vector.shape_cast %27 : vector<8x256xbf16> to vector<8x1x256xbf16>
    %156 = vector.shape_cast %28 : vector<8x256xbf16> to vector<8x1x256xbf16>
    %157 = vector.shape_cast %29 : vector<8x256xbf16> to vector<8x1x256xbf16>
    %158 = vector.shape_cast %30 : vector<8x256xbf16> to vector<8x1x256xbf16>
    %159 = vector.shape_cast %31 : vector<8x256xbf16> to vector<8x1x256xbf16>
    %160 = vector.shape_cast %32 : vector<8x256xbf16> to vector<8x1x256xbf16>
    %161 = vector.shape_cast %33 : vector<8x256xbf16> to vector<8x1x256xbf16>
    %162 = vector.shape_cast %34 : vector<8x256xbf16> to vector<8x1x256xbf16>
    %163 = vector.shape_cast %35 : vector<8x256xbf16> to vector<8x1x256xbf16>
    %164 = vector.shape_cast %36 : vector<8x256xbf16> to vector<8x1x256xbf16>
    %165 = vector.shape_cast %37 : vector<8x256xbf16> to vector<8x1x256xbf16>
    %166 = vector.shape_cast %38 : vector<8x256xbf16> to vector<8x1x256xbf16>
    %167 = vector.shape_cast %39 : vector<8x256xbf16> to vector<8x1x256xbf16>
    %168 = vector.shape_cast %40 : vector<8x256xbf16> to vector<8x1x256xbf16>
    %169 = vector.shape_cast %41 : vector<8x256xbf16> to vector<8x1x256xbf16>
    %170 = vector.shape_cast %42 : vector<8x256xbf16> to vector<8x1x256xbf16>
    %171 = vector.shape_cast %43 : vector<8x256xbf16> to vector<8x1x256xbf16>
    %172 = vector.shape_cast %44 : vector<8x256xbf16> to vector<8x1x256xbf16>
    %173 = vector.shape_cast %45 : vector<8x256xbf16> to vector<8x1x256xbf16>
    %174 = vector.shape_cast %46 : vector<8x256xbf16> to vector<8x1x256xbf16>
    %175 = vector.shape_cast %47 : vector<8x256xbf16> to vector<8x1x256xbf16>
    %176 = vector.shape_cast %48 : vector<8x256xbf16> to vector<8x1x256xbf16>
    %177 = vector.shape_cast %49 : vector<8x256xbf16> to vector<8x1x256xbf16>
    %178 = vector.shape_cast %50 : vector<8x256xbf16> to vector<8x1x256xbf16>
    %179 = vector.shape_cast %51 : vector<8x256xbf16> to vector<8x1x256xbf16>
    %180 = vector.shape_cast %52 : vector<8x256xbf16> to vector<8x1x256xbf16>
    %181 = vector.shape_cast %53 : vector<8x256xbf16> to vector<8x1x256xbf16>
    %182 = vector.shape_cast %54 : vector<8x256xbf16> to vector<8x1x256xbf16>
    %183 = vector.shape_cast %55 : vector<8x256xbf16> to vector<8x1x256xbf16>
    %184 = vector.shape_cast %56 : vector<8x256xbf16> to vector<8x1x256xbf16>
    %185 = vector.shape_cast %57 : vector<8x256xbf16> to vector<8x1x256xbf16>
    %186 = vector.shape_cast %58 : vector<8x256xbf16> to vector<8x1x256xbf16>
    %187 = vector.shape_cast %59 : vector<8x256xbf16> to vector<8x1x256xbf16>
    %188 = vector.shape_cast %60 : vector<8x256xbf16> to vector<8x1x256xbf16>
    %189 = vector.shape_cast %61 : vector<8x256xbf16> to vector<8x1x256xbf16>
    %190 = vector.shape_cast %62 : vector<8x256xbf16> to vector<8x1x256xbf16>
    %191 = vector.shape_cast %63 : vector<8x256xbf16> to vector<8x1x256xbf16>
    %192 = vector.shape_cast %64 : vector<8x256xbf16> to vector<8x1x256xbf16>
    %193 = vector.shape_cast %65 : vector<8x256xbf16> to vector<8x1x256xbf16>
    %194 = vector.shape_cast %66 : vector<8x256xbf16> to vector<8x1x256xbf16>
    %195 = vector.shape_cast %67 : vector<8x256xbf16> to vector<8x1x256xbf16>
    %196 = vector.shape_cast %68 : vector<8x256xbf16> to vector<8x1x256xbf16>
    %197 = vector.shape_cast %69 : vector<8x256xbf16> to vector<8x1x256xbf16>
    %198 = vector.shape_cast %70 : vector<8x256xbf16> to vector<8x1x256xbf16>
    %199 = vector.shape_cast %71 : vector<8x256xbf16> to vector<8x1x256xbf16>
    %200 = vector.shape_cast %72 : vector<8x256xbf16> to vector<8x1x256xbf16>
    %201 = vector.shape_cast %73 : vector<8x256xbf16> to vector<8x1x256xbf16>
    %202 = vector.shape_cast %74 : vector<8x256xbf16> to vector<8x1x256xbf16>
    %203 = vector.shape_cast %75 : vector<8x256xbf16> to vector<8x1x256xbf16>
    %204 = vector.shape_cast %76 : vector<8x256xbf16> to vector<8x1x256xbf16>
    %205 = vector.shape_cast %77 : vector<8x256xbf16> to vector<8x1x256xbf16>
    %206 = vector.shape_cast %78 : vector<8x256xbf16> to vector<8x1x256xbf16>
    %207 = vector.shape_cast %79 : vector<8x256xbf16> to vector<8x1x256xbf16>
    %208 = vector.shape_cast %80 : vector<8x256xbf16> to vector<8x1x256xbf16>
    %209 = vector.shape_cast %81 : vector<8x256xbf16> to vector<8x1x256xbf16>
    %210 = vector.shape_cast %82 : vector<8x256xbf16> to vector<8x1x256xbf16>
    %211 = vector.shape_cast %83 : vector<8x256xbf16> to vector<8x1x256xbf16>
    %212 = vector.shape_cast %84 : vector<8x256xbf16> to vector<8x1x256xbf16>
    %213 = vector.shape_cast %85 : vector<8x256xbf16> to vector<8x1x256xbf16>
    %214 = vector.shape_cast %86 : vector<8x256xbf16> to vector<8x1x256xbf16>
    %215 = vector.shape_cast %87 : vector<8x256xbf16> to vector<8x1x256xbf16>
    %216 = vector.shape_cast %88 : vector<8x256xbf16> to vector<8x1x256xbf16>
    %217 = vector.shape_cast %89 : vector<8x256xbf16> to vector<8x1x256xbf16>
    %218 = vector.shape_cast %90 : vector<8x256xbf16> to vector<8x1x256xbf16>
    %219 = vector.shape_cast %91 : vector<8x256xbf16> to vector<8x1x256xbf16>
    %220 = vector.shape_cast %92 : vector<8x256xbf16> to vector<8x1x256xbf16>
    %221 = vector.shape_cast %93 : vector<8x256xbf16> to vector<8x1x256xbf16>
    %222 = vector.shape_cast %94 : vector<8x256xbf16> to vector<8x1x256xbf16>
    %223 = vector.shape_cast %95 : vector<8x256xbf16> to vector<8x1x256xbf16>
    %224 = vector.shape_cast %96 : vector<8x256xbf16> to vector<8x1x256xbf16>
    %225 = vector.shape_cast %97 : vector<8x256xbf16> to vector<8x1x256xbf16>
    %226 = vector.shape_cast %98 : vector<8x256xbf16> to vector<8x1x256xbf16>
    %227 = vector.shape_cast %99 : vector<8x256xbf16> to vector<8x1x256xbf16>
    %228 = vector.shape_cast %100 : vector<8x256xbf16> to vector<8x1x256xbf16>
    %229 = vector.shape_cast %101 : vector<8x256xbf16> to vector<8x1x256xbf16>
    %230 = vector.shape_cast %102 : vector<8x256xbf16> to vector<8x1x256xbf16>
    %231 = vector.shape_cast %103 : vector<8x256xbf16> to vector<8x1x256xbf16>
    %232 = vector.shape_cast %104 : vector<8x256xbf16> to vector<8x1x256xbf16>
    %233 = vector.shape_cast %105 : vector<8x256xbf16> to vector<8x1x256xbf16>
    %234 = vector.shape_cast %106 : vector<8x256xbf16> to vector<8x1x256xbf16>
    %235 = vector.shape_cast %107 : vector<8x256xbf16> to vector<8x1x256xbf16>
    %236 = vector.shape_cast %108 : vector<8x256xbf16> to vector<8x1x256xbf16>
    %237 = vector.shape_cast %109 : vector<8x256xbf16> to vector<8x1x256xbf16>
    %238 = vector.shape_cast %110 : vector<8x256xbf16> to vector<8x1x256xbf16>
    %239 = vector.shape_cast %111 : vector<8x256xbf16> to vector<8x1x256xbf16>
    %240 = vector.shape_cast %112 : vector<8x256xbf16> to vector<8x1x256xbf16>
    %241 = vector.shape_cast %113 : vector<8x256xbf16> to vector<8x1x256xbf16>
    %242 = vector.shape_cast %114 : vector<8x256xbf16> to vector<8x1x256xbf16>
    %243 = vector.shape_cast %115 : vector<8x256xbf16> to vector<8x1x256xbf16>
    %244 = vector.shape_cast %116 : vector<8x256xbf16> to vector<8x1x256xbf16>
    %245 = vector.shape_cast %117 : vector<8x256xbf16> to vector<8x1x256xbf16>
    %246 = vector.shape_cast %118 : vector<8x256xbf16> to vector<8x1x256xbf16>
    %247 = vector.shape_cast %119 : vector<8x256xbf16> to vector<8x1x256xbf16>
    %248 = vector.shape_cast %120 : vector<8x256xbf16> to vector<8x1x256xbf16>
    %249 = vector.shape_cast %121 : vector<8x256xbf16> to vector<8x1x256xbf16>
    %250 = vector.shape_cast %122 : vector<8x256xbf16> to vector<8x1x256xbf16>
    %251 = vector.shape_cast %123 : vector<8x256xbf16> to vector<8x1x256xbf16>
    %252 = vector.shape_cast %124 : vector<8x256xbf16> to vector<8x1x256xbf16>
    %253 = vector.shape_cast %125 : vector<8x256xbf16> to vector<8x1x256xbf16>
    %254 = vector.shape_cast %126 : vector<8x256xbf16> to vector<8x1x256xbf16>
    %255 = vector.shape_cast %127 : vector<8x256xbf16> to vector<8x1x256xbf16>
    %256 = tpu.concatenate %128, %129, %130, %131, %132, %133, %134, %135, %136, %137, %138, %139, %140, %141, %142, %143 in 1 : vector<8x1x256xbf16>, vector<8x1x256xbf16>, vector<8x1x256xbf16>, vector<8x1x256xbf16>, vector<8x1x256xbf16>, vector<8x1x256xbf16>, vector<8x1x256xbf16>, vector<8x1x256xbf16>, vector<8x1x256xbf16>, vector<8x1x256xbf16>, vector<8x1x256xbf16>, vector<8x1x256xbf16>, vector<8x1x256xbf16>, vector<8x1x256xbf16>, vector<8x1x256xbf16>, vector<8x1x256xbf16> -> vector<8x16x256xbf16>
    %257 = tpu.concatenate %144, %145, %146, %147, %148, %149, %150, %151, %152, %153, %154, %155, %156, %157, %158, %159 in 1 : vector<8x1x256xbf16>, vector<8x1x256xbf16>, vector<8x1x256xbf16>, vector<8x1x256xbf16>, vector<8x1x256xbf16>, vector<8x1x256xbf16>, vector<8x1x256xbf16>, vector<8x1x256xbf16>, vector<8x1x256xbf16>, vector<8x1x256xbf16>, vector<8x1x256xbf16>, vector<8x1x256xbf16>, vector<8x1x256xbf16>, vector<8x1x256xbf16>, vector<8x1x256xbf16>, vector<8x1x256xbf16> -> vector<8x16x256xbf16>
    %258 = tpu.concatenate %160, %161, %162, %163, %164, %165, %166, %167, %168, %169, %170, %171, %172, %173, %174, %175 in 1 : vector<8x1x256xbf16>, vector<8x1x256xbf16>, vector<8x1x256xbf16>, vector<8x1x256xbf16>, vector<8x1x256xbf16>, vector<8x1x256xbf16>, vector<8x1x256xbf16>, vector<8x1x256xbf16>, vector<8x1x256xbf16>, vector<8x1x256xbf16>, vector<8x1x256xbf16>, vector<8x1x256xbf16>, vector<8x1x256xbf16>, vector<8x1x256xbf16>, vector<8x1x256xbf16>, vector<8x1x256xbf16> -> vector<8x16x256xbf16>
    %259 = tpu.concatenate %176, %177, %178, %179, %180, %181, %182, %183, %184, %185, %186, %187, %188, %189, %190, %191 in 1 : vector<8x1x256xbf16>, vector<8x1x256xbf16>, vector<8x1x256xbf16>, vector<8x1x256xbf16>, vector<8x1x256xbf16>, vector<8x1x256xbf16>, vector<8x1x256xbf16>, vector<8x1x256xbf16>, vector<8x1x256xbf16>, vector<8x1x256xbf16>, vector<8x1x256xbf16>, vector<8x1x256xbf16>, vector<8x1x256xbf16>, vector<8x1x256xbf16>, vector<8x1x256xbf16>, vector<8x1x256xbf16> -> vector<8x16x256xbf16>
    %260 = tpu.concatenate %192, %193, %194, %195, %196, %197, %198, %199, %200, %201, %202, %203, %204, %205, %206, %207 in 1 : vector<8x1x256xbf16>, vector<8x1x256xbf16>, vector<8x1x256xbf16>, vector<8x1x256xbf16>, vector<8x1x256xbf16>, vector<8x1x256xbf16>, vector<8x1x256xbf16>, vector<8x1x256xbf16>, vector<8x1x256xbf16>, vector<8x1x256xbf16>, vector<8x1x256xbf16>, vector<8x1x256xbf16>, vector<8x1x256xbf16>, vector<8x1x256xbf16>, vector<8x1x256xbf16>, vector<8x1x256xbf16> -> vector<8x16x256xbf16>
    %261 = tpu.concatenate %208, %209, %210, %211, %212, %213, %214, %215, %216, %217, %218, %219, %220, %221, %222, %223 in 1 : vector<8x1x256xbf16>, vector<8x1x256xbf16>, vector<8x1x256xbf16>, vector<8x1x256xbf16>, vector<8x1x256xbf16>, vector<8x1x256xbf16>, vector<8x1x256xbf16>, vector<8x1x256xbf16>, vector<8x1x256xbf16>, vector<8x1x256xbf16>, vector<8x1x256xbf16>, vector<8x1x256xbf16>, vector<8x1x256xbf16>, vector<8x1x256xbf16>, vector<8x1x256xbf16>, vector<8x1x256xbf16> -> vector<8x16x256xbf16>
    %262 = tpu.concatenate %224, %225, %226, %227, %228, %229, %230, %231, %232, %233, %234, %235, %236, %237, %238, %239 in 1 : vector<8x1x256xbf16>, vector<8x1x256xbf16>, vector<8x1x256xbf16>, vector<8x1x256xbf16>, vector<8x1x256xbf16>, vector<8x1x256xbf16>, vector<8x1x256xbf16>, vector<8x1x256xbf16>, vector<8x1x256xbf16>, vector<8x1x256xbf16>, vector<8x1x256xbf16>, vector<8x1x256xbf16>, vector<8x1x256xbf16>, vector<8x1x256xbf16>, vector<8x1x256xbf16>, vector<8x1x256xbf16> -> vector<8x16x256xbf16>
    %263 = tpu.concatenate %240, %241, %242, %243, %244, %245, %246, %247, %248, %249, %250, %251, %252, %253, %254, %255 in 1 : vector<8x1x256xbf16>, vector<8x1x256xbf16>, vector<8x1x256xbf16>, vector<8x1x256xbf16>, vector<8x1x256xbf16>, vector<8x1x256xbf16>, vector<8x1x256xbf16>, vector<8x1x256xbf16>, vector<8x1x256xbf16>, vector<8x1x256xbf16>, vector<8x1x256xbf16>, vector<8x1x256xbf16>, vector<8x1x256xbf16>, vector<8x1x256xbf16>, vector<8x1x256xbf16>, vector<8x1x256xbf16> -> vector<8x16x256xbf16>
    %264 = tpu.concatenate %256, %257, %258, %259, %260, %261, %262, %263 in 1 : vector<8x16x256xbf16>, vector<8x16x256xbf16>, vector<8x16x256xbf16>, vector<8x16x256xbf16>, vector<8x16x256xbf16>, vector<8x16x256xbf16>, vector<8x16x256xbf16>, vector<8x16x256xbf16> -> vector<8x128x256xbf16>
    %c0_128 = arith.constant 0 : index
    %c0_129 = arith.constant 0 : index
    %265 = vector.load %arg2[%c0_128, %c0_129] : memref<16x128xbf16, #tpu.memory_space<vmem>>, vector<16x128xbf16>
    %266 = vector.extract_strided_slice %264 {offsets = [0, 0, 0], sizes = [1, 128, 256], strides = [1, 1, 1]} : vector<8x128x256xbf16> to vector<1x128x256xbf16>
    %267 = vector.shape_cast %266 : vector<1x128x256xbf16> to vector<128x256xbf16>
    %cst = arith.constant dense<0.000000e+00> : vector<16x256xf32>
    %268 = tpu.matmul %265, %267, %cst {dimension_numbers = #tpu.dot_dimension_numbers<[1], [0], [0], [1], [0, 0, 1, 1], [], []>} : vector<16x128xbf16>, vector<128x256xbf16>, vector<16x256xf32> -> vector<16x256xf32>
    %c0_130 = arith.constant 0 : index
    %c0_131 = arith.constant 0 : index
    %c0_132 = arith.constant 0 : index
    %269 = vector.load %arg3[%c0_130, %c0_131, %c0_132] : memref<8x16x256xf32, #tpu.memory_space<vmem>>, vector<1x16x256xf32>
    %270 = vector.shape_cast %269 : vector<1x16x256xf32> to vector<16x256xf32>
    %271 = vector.shape_cast %268 : vector<16x256xf32> to vector<1x16x256xf32>
    tpu.vector_store %arg3[%c0_130, %c0_131, %c0_132], %271 {strides = array<i32>} : memref<8x16x256xf32, #tpu.memory_space<vmem>>, vector<1x16x256xf32>,
    %272 = vector.extract_strided_slice %264 {offsets = [1, 0, 0], sizes = [1, 128, 256], strides = [1, 1, 1]} : vector<8x128x256xbf16> to vector<1x128x256xbf16>
    %273 = vector.shape_cast %272 : vector<1x128x256xbf16> to vector<128x256xbf16>
    %cst_133 = arith.constant dense<0.000000e+00> : vector<16x256xf32>
    %274 = tpu.matmul %265, %273, %cst_133 {dimension_numbers = #tpu.dot_dimension_numbers<[1], [0], [0], [1], [0, 0, 1, 1], [], []>} : vector<16x128xbf16>, vector<128x256xbf16>, vector<16x256xf32> -> vector<16x256xf32>
    %c1_134 = arith.constant 1 : index
    %c0_135 = arith.constant 0 : index
    %c0_136 = arith.constant 0 : index
    %275 = vector.load %arg3[%c1_134, %c0_135, %c0_136] : memref<8x16x256xf32, #tpu.memory_space<vmem>>, vector<1x16x256xf32>
    %276 = vector.shape_cast %275 : vector<1x16x256xf32> to vector<16x256xf32>
    %277 = vector.shape_cast %274 : vector<16x256xf32> to vector<1x16x256xf32>
    tpu.vector_store %arg3[%c1_134, %c0_135, %c0_136], %277 {strides = array<i32>} : memref<8x16x256xf32, #tpu.memory_space<vmem>>, vector<1x16x256xf32>,
    %278 = vector.extract_strided_slice %264 {offsets = [2, 0, 0], sizes = [1, 128, 256], strides = [1, 1, 1]} : vector<8x128x256xbf16> to vector<1x128x256xbf16>
    %279 = vector.shape_cast %278 : vector<1x128x256xbf16> to vector<128x256xbf16>
    %cst_137 = arith.constant dense<0.000000e+00> : vector<16x256xf32>
    %280 = tpu.matmul %265, %279, %cst_137 {dimension_numbers = #tpu.dot_dimension_numbers<[1], [0], [0], [1], [0, 0, 1, 1], [], []>} : vector<16x128xbf16>, vector<128x256xbf16>, vector<16x256xf32> -> vector<16x256xf32>
    %c2_138 = arith.constant 2 : index
    %c0_139 = arith.constant 0 : index
    %c0_140 = arith.constant 0 : index
    %281 = vector.load %arg3[%c2_138, %c0_139, %c0_140] : memref<8x16x256xf32, #tpu.memory_space<vmem>>, vector<1x16x256xf32>
    %282 = vector.shape_cast %281 : vector<1x16x256xf32> to vector<16x256xf32>
    %283 = vector.shape_cast %280 : vector<16x256xf32> to vector<1x16x256xf32>
    tpu.vector_store %arg3[%c2_138, %c0_139, %c0_140], %283 {strides = array<i32>} : memref<8x16x256xf32, #tpu.memory_space<vmem>>, vector<1x16x256xf32>,
    %284 = vector.extract_strided_slice %264 {offsets = [3, 0, 0], sizes = [1, 128, 256], strides = [1, 1, 1]} : vector<8x128x256xbf16> to vector<1x128x256xbf16>
    %285 = vector.shape_cast %284 : vector<1x128x256xbf16> to vector<128x256xbf16>
    %cst_141 = arith.constant dense<0.000000e+00> : vector<16x256xf32>
    %286 = tpu.matmul %265, %285, %cst_141 {dimension_numbers = #tpu.dot_dimension_numbers<[1], [0], [0], [1], [0, 0, 1, 1], [], []>} : vector<16x128xbf16>, vector<128x256xbf16>, vector<16x256xf32> -> vector<16x256xf32>
    %c3_142 = arith.constant 3 : index
    %c0_143 = arith.constant 0 : index
    %c0_144 = arith.constant 0 : index
    %287 = vector.load %arg3[%c3_142, %c0_143, %c0_144] : memref<8x16x256xf32, #tpu.memory_space<vmem>>, vector<1x16x256xf32>
    %288 = vector.shape_cast %287 : vector<1x16x256xf32> to vector<16x256xf32>
    %289 = vector.shape_cast %286 : vector<16x256xf32> to vector<1x16x256xf32>
    tpu.vector_store %arg3[%c3_142, %c0_143, %c0_144], %289 {strides = array<i32>} : memref<8x16x256xf32, #tpu.memory_space<vmem>>, vector<1x16x256xf32>,
    %290 = vector.extract_strided_slice %264 {offsets = [4, 0, 0], sizes = [1, 128, 256], strides = [1, 1, 1]} : vector<8x128x256xbf16> to vector<1x128x256xbf16>
    %291 = vector.shape_cast %290 : vector<1x128x256xbf16> to vector<128x256xbf16>
    %cst_145 = arith.constant dense<0.000000e+00> : vector<16x256xf32>
    %292 = tpu.matmul %265, %291, %cst_145 {dimension_numbers = #tpu.dot_dimension_numbers<[1], [0], [0], [1], [0, 0, 1, 1], [], []>} : vector<16x128xbf16>, vector<128x256xbf16>, vector<16x256xf32> -> vector<16x256xf32>
    %c4_146 = arith.constant 4 : index
    %c0_147 = arith.constant 0 : index
    %c0_148 = arith.constant 0 : index
    %293 = vector.load %arg3[%c4_146, %c0_147, %c0_148] : memref<8x16x256xf32, #tpu.memory_space<vmem>>, vector<1x16x256xf32>
    %294 = vector.shape_cast %293 : vector<1x16x256xf32> to vector<16x256xf32>
    %295 = vector.shape_cast %292 : vector<16x256xf32> to vector<1x16x256xf32>
    tpu.vector_store %arg3[%c4_146, %c0_147, %c0_148], %295 {strides = array<i32>} : memref<8x16x256xf32, #tpu.memory_space<vmem>>, vector<1x16x256xf32>,
    %296 = vector.extract_strided_slice %264 {offsets = [5, 0, 0], sizes = [1, 128, 256], strides = [1, 1, 1]} : vector<8x128x256xbf16> to vector<1x128x256xbf16>
    %297 = vector.shape_cast %296 : vector<1x128x256xbf16> to vector<128x256xbf16>
    %cst_149 = arith.constant dense<0.000000e+00> : vector<16x256xf32>
    %298 = tpu.matmul %265, %297, %cst_149 {dimension_numbers = #tpu.dot_dimension_numbers<[1], [0], [0], [1], [0, 0, 1, 1], [], []>} : vector<16x128xbf16>, vector<128x256xbf16>, vector<16x256xf32> -> vector<16x256xf32>
    %c5_150 = arith.constant 5 : index
    %c0_151 = arith.constant 0 : index
    %c0_152 = arith.constant 0 : index
    %299 = vector.load %arg3[%c5_150, %c0_151, %c0_152] : memref<8x16x256xf32, #tpu.memory_space<vmem>>, vector<1x16x256xf32>
    %300 = vector.shape_cast %299 : vector<1x16x256xf32> to vector<16x256xf32>
    %301 = vector.shape_cast %298 : vector<16x256xf32> to vector<1x16x256xf32>
    tpu.vector_store %arg3[%c5_150, %c0_151, %c0_152], %301 {strides = array<i32>} : memref<8x16x256xf32, #tpu.memory_space<vmem>>, vector<1x16x256xf32>,
    %302 = vector.extract_strided_slice %264 {offsets = [6, 0, 0], sizes = [1, 128, 256], strides = [1, 1, 1]} : vector<8x128x256xbf16> to vector<1x128x256xbf16>
    %303 = vector.shape_cast %302 : vector<1x128x256xbf16> to vector<128x256xbf16>
    %cst_153 = arith.constant dense<0.000000e+00> : vector<16x256xf32>
    %304 = tpu.matmul %265, %303, %cst_153 {dimension_numbers = #tpu.dot_dimension_numbers<[1], [0], [0], [1], [0, 0, 1, 1], [], []>} : vector<16x128xbf16>, vector<128x256xbf16>, vector<16x256xf32> -> vector<16x256xf32>
    %c6_154 = arith.constant 6 : index
    %c0_155 = arith.constant 0 : index
    %c0_156 = arith.constant 0 : index
    %305 = vector.load %arg3[%c6_154, %c0_155, %c0_156] : memref<8x16x256xf32, #tpu.memory_space<vmem>>, vector<1x16x256xf32>
    %306 = vector.shape_cast %305 : vector<1x16x256xf32> to vector<16x256xf32>
    %307 = vector.shape_cast %304 : vector<16x256xf32> to vector<1x16x256xf32>
    tpu.vector_store %arg3[%c6_154, %c0_155, %c0_156], %307 {strides = array<i32>} : memref<8x16x256xf32, #tpu.memory_space<vmem>>, vector<1x16x256xf32>,
    %308 = vector.extract_strided_slice %264 {offsets = [7, 0, 0], sizes = [1, 128, 256], strides = [1, 1, 1]} : vector<8x128x256xbf16> to vector<1x128x256xbf16>
    %309 = vector.shape_cast %308 : vector<1x128x256xbf16> to vector<128x256xbf16>
    %cst_157 = arith.constant dense<0.000000e+00> : vector<16x256xf32>
    %310 = tpu.matmul %265, %309, %cst_157 {dimension_numbers = #tpu.dot_dimension_numbers<[1], [0], [0], [1], [0, 0, 1, 1], [], []>} : vector<16x128xbf16>, vector<128x256xbf16>, vector<16x256xf32> -> vector<16x256xf32>
    %c7_158 = arith.constant 7 : index
    %c0_159 = arith.constant 0 : index
    %c0_160 = arith.constant 0 : index
    %311 = vector.load %arg3[%c7_158, %c0_159, %c0_160] : memref<8x16x256xf32, #tpu.memory_space<vmem>>, vector<1x16x256xf32>
    %312 = vector.shape_cast %311 : vector<1x16x256xf32> to vector<16x256xf32>
    %313 = vector.shape_cast %310 : vector<16x256xf32> to vector<1x16x256xf32>
    tpu.vector_store %arg3[%c7_158, %c0_159, %c0_160], %313 {strides = array<i32>} : memref<8x16x256xf32, #tpu.memory_space<vmem>>, vector<1x16x256xf32>,
    return
  }
  func.func @transform_0(%arg0: i32) -> (i32, i32) {
    %c0_i32 = arith.constant 0 : i32
    %c0_i32_0 = arith.constant 0 : i32
    return %arg0, %c0_i32 : i32, i32
  }
  func.func @transform_1(%arg0: i32) -> (i32, i32) {
    %c0_i32 = arith.constant 0 : i32
    %c0_i32_0 = arith.constant 0 : i32
    %c0_i32_1 = arith.constant 0 : i32
    return %c0_i32, %c0_i32_0 : i32, i32
  }
  func.func @transform_2(%arg0: i32) -> (i32, i32, i32) {
    %c0_i32 = arith.constant 0 : i32
    %c0_i32_0 = arith.constant 0 : i32
    %c0_i32_1 = arith.constant 0 : i32
    return %arg0, %c0_i32, %c0_i32_0 : i32, i32, i32
  }
}

module attributes {stable_mosaic.version = 11 : i64} {
  func.func @kernel(%arg0: i32, %arg1: memref<1x2x8x192xbf16, #tpu.memory_space<vmem>>, %arg2: memref<1x2x6x192xbf16, #tpu.memory_space<vmem>>, %arg3: memref<1x8x6xf32, #tpu.memory_space<vmem>>) attributes {dimension_semantics = [#tpu.dimension_semantics<parallel>], iteration_bounds = array<i64: 4>, scalar_prefetch = 0 : i64, scratch_operands = 0 : i64, tpu.core_type = #tpu.core_type<tc>, window_params = [{transform_indices = @transform_0, window_bounds = array<i64: 1, 2, 8, 192>}, {transform_indices = @transform_1, window_bounds = array<i64: 1, 2, 6, 192>}, {transform_indices = @transform_2, window_bounds = array<i64: 1, 8, 6>}]} {
    %0 = tpu.iota {dimensions = array<i32: 1>} : vector<1x18x1xi32>
    %cst = arith.constant 1.000000e+00 : bf16
    %1 = vector.broadcast %cst : bf16 to vector<1x192xbf16>
    %cst_0 = arith.constant 0.000000e+00 : f32
    %2 = vector.broadcast %cst_0 : f32 to vector<8x6xf32>
    %c0_i32 = arith.constant 0 : i32
    %c2_i32 = arith.constant 2 : i32
    %3 = arith.addi %c0_i32, %c2_i32 : i32
    %c1_i32 = arith.constant 1 : i32
    %4 = scf.for %arg4 = %c0_i32 to %3 step %c1_i32 iter_args(%arg5 = %2) -> (vector<8x6xf32>)  : i32 {
      %c0_5 = arith.constant 0 : index
      %10 = arith.index_cast %arg4 : i32 to index
      %c0_6 = arith.constant 0 : index
      %c0_7 = arith.constant 0 : index
      %11 = vector.load %arg1[%c0_5, %10, %c0_6, %c0_7] : memref<1x2x8x192xbf16, #tpu.memory_space<vmem>>, vector<1x1x8x192xbf16>
      %12 = vector.shape_cast %11 : vector<1x1x8x192xbf16> to vector<8x192xbf16>
      %13 = arith.extf %12 : vector<8x192xbf16> to vector<8x192xf32>
      %c0_8 = arith.constant 0 : index
      %14 = arith.index_cast %arg4 : i32 to index
      %c0_9 = arith.constant 0 : index
      %c0_10 = arith.constant 0 : index
      %15 = vector.load %arg2[%c0_8, %14, %c0_9, %c0_10] : memref<1x2x6x192xbf16, #tpu.memory_space<vmem>>, vector<1x1x6x192xbf16>
      %16 = vector.shape_cast %15 : vector<1x1x6x192xbf16> to vector<6x192xbf16>
      %cst_11 = arith.constant 3.14159274 : f32
      %17 = vector.broadcast %cst_11 : f32 to vector<8x192xf32>
      %18 = arith.addf %13, %17 : vector<8x192xf32>
      %cst_12 = arith.constant 2.86478901 : f32
      %19 = vector.broadcast %cst_12 : f32 to vector<8x192xf32>
      %20 = arith.mulf %18, %19 : vector<8x192xf32>
      %21 = math.floor %20 : vector<8x192xf32>
      %cst_13 = arith.constant 0.000000e+00 : f32
      %c17_i32 = arith.constant 17 : i32
      %22 = vector.broadcast %cst_13 : f32 to vector<8x192xf32>
      %23 = arith.maximumf %22, %21 : vector<8x192xf32>
      %24 = arith.sitofp %c17_i32 : i32 to f32
      %25 = vector.broadcast %24 : f32 to vector<8x192xf32>
      %26 = arith.minimumf %25, %23 : vector<8x192xf32>
      %27 = arith.fptosi %26 : vector<8x192xf32> to vector<8x192xi32>
      %28 = vector.shape_cast %27 : vector<8x192xi32> to vector<8x1x192xi32>
      %29 = vector.broadcast %28 : vector<8x1x192xi32> to vector<8x18x192xi32>
      %30 = vector.broadcast %0 : vector<1x18x1xi32> to vector<8x18x192xi32>
      %31 = arith.cmpi eq, %29, %30 : vector<8x18x192xi32>
      %32 = arith.extui %31 : vector<8x18x192xi1> to vector<8x18x192xi32>
      %33 = arith.sitofp %32 : vector<8x18x192xi32> to vector<8x18x192xf32>
      %34 = vector.shape_cast %33 : vector<8x18x192xf32> to vector<144x192xf32>
      %35 = arith.truncf %34 : vector<144x192xf32> to vector<144x192xbf16>
      %36 = tpu.concatenate %16, %1 in 0 : vector<6x192xbf16>, vector<1x192xbf16> -> vector<7x192xbf16>
      %cst_14 = arith.constant dense<0.000000e+00> : vector<144x7xf32>
      %37 = tpu.matmul %35, %36, %cst_14 {dimension_numbers = #tpu.dot_dimension_numbers<[1], [1], [0], [0], [0, 0, 1, 0], [], []>} : vector<144x192xbf16>, vector<7x192xbf16>, vector<144x7xf32> -> vector<144x7xf32>
      %38 = vector.shape_cast %37 : vector<144x7xf32> to vector<8x18x7xf32>
      %39 = vector.extract_strided_slice %38 {offsets = [0, 0, 0], sizes = [8, 18, 6], strides = [1, 1, 1]} : vector<8x18x7xf32> to vector<8x18x6xf32>
      %40 = vector.extract_strided_slice %38 {offsets = [0, 0, 6], sizes = [8, 18, 1], strides = [1, 1, 1]} : vector<8x18x7xf32> to vector<8x18x1xf32>
      %cst_15 = arith.constant 9.99999971E-10 : f32
      %41 = vector.broadcast %cst_15 : f32 to vector<8x18x1xf32>
      %42 = arith.addf %40, %41 : vector<8x18x1xf32>
      %43 = tpu.reciprocal %42 {approx = true} : vector<8x18x1xf32> -> vector<8x18x1xf32>
      %44 = vector.broadcast %43 : vector<8x18x1xf32> to vector<8x18x6xf32>
      %45 = arith.mulf %39, %44 : vector<8x18x6xf32>
      %cst_16 = arith.constant dense<0.000000e+00> : vector<8x6xf32>
      %46 = vector.multi_reduction <add>, %45, %cst_16 [1] : vector<8x18x6xf32> to vector<8x6xf32>
      %47 = vector.shape_cast %46 : vector<8x6xf32> to vector<8x1x6xf32>
      %cst_17 = arith.constant 9.99999971E-10 : f32
      %48 = vector.broadcast %cst_17 : f32 to vector<8x1x6xf32>
      %49 = arith.addf %47, %48 : vector<8x1x6xf32>
      %50 = tpu.reciprocal %49 {approx = true} : vector<8x1x6xf32> -> vector<8x1x6xf32>
      %51 = vector.broadcast %50 : vector<8x1x6xf32> to vector<8x18x6xf32>
      %52 = arith.mulf %45, %51 : vector<8x18x6xf32>
      %cst_18 = arith.constant 9.99999971E-10 : f32
      %53 = vector.broadcast %cst_18 : f32 to vector<8x18x6xf32>
      %54 = arith.addf %52, %53 : vector<8x18x6xf32>
      %55 = math.log %54 : vector<8x18x6xf32>
      %56 = arith.mulf %52, %55 : vector<8x18x6xf32>
      %cst_19 = arith.constant dense<0.000000e+00> : vector<8x6xf32>
      %57 = vector.multi_reduction <add>, %56, %cst_19 [1] : vector<8x18x6xf32> to vector<8x6xf32>
      %cst_20 = arith.constant 2.8903718 : f32
      %58 = vector.broadcast %cst_20 : f32 to vector<8x6xf32>
      %59 = arith.addf %58, %57 : vector<8x6xf32>
      %cst_21 = arith.constant 2.8903718 : f32
      %60 = vector.broadcast %cst_21 : f32 to vector<8x6xf32>
      %61 = arith.divf %59, %60 : vector<8x6xf32>
      %62 = arith.addf %arg5, %61 : vector<8x6xf32>
      scf.yield %62 : vector<8x6xf32>
    }
    %c2_i32_1 = arith.constant 2 : i32
    %cst_2 = arith.constant 5.000000e-01 : f32
    %5 = vector.broadcast %cst_2 : f32 to vector<8x6xf32>
    %6 = arith.mulf %4, %5 : vector<8x6xf32>
    %c0 = arith.constant 0 : index
    %c0_3 = arith.constant 0 : index
    %c0_4 = arith.constant 0 : index
    %7 = vector.load %arg3[%c0, %c0_3, %c0_4] : memref<1x8x6xf32, #tpu.memory_space<vmem>>, vector<1x8x6xf32>
    %8 = vector.shape_cast %7 : vector<1x8x6xf32> to vector<8x6xf32>
    %9 = vector.shape_cast %6 : vector<8x6xf32> to vector<1x8x6xf32>
    tpu.vector_store %arg3[%c0, %c0_3, %c0_4], %9 {strides = array<i32>} : memref<1x8x6xf32, #tpu.memory_space<vmem>>, vector<1x8x6xf32>,
    return
  }
  func.func @transform_0(%arg0: i32) -> (i32, i32, i32, i32) {
    %c0_i32 = arith.constant 0 : i32
    %c0_i32_0 = arith.constant 0 : i32
    %c0_i32_1 = arith.constant 0 : i32
    %c0_i32_2 = arith.constant 0 : i32
    return %arg0, %c0_i32, %c0_i32_0, %c0_i32_1 : i32, i32, i32, i32
  }
  func.func @transform_1(%arg0: i32) -> (i32, i32, i32, i32) {
    %c0_i32 = arith.constant 0 : i32
    %c0_i32_0 = arith.constant 0 : i32
    %c0_i32_1 = arith.constant 0 : i32
    %c0_i32_2 = arith.constant 0 : i32
    return %arg0, %c0_i32, %c0_i32_0, %c0_i32_1 : i32, i32, i32, i32
  }
  func.func @transform_2(%arg0: i32) -> (i32, i32, i32) {
    %c0_i32 = arith.constant 0 : i32
    %c0_i32_0 = arith.constant 0 : i32
    %c0_i32_1 = arith.constant 0 : i32
    return %arg0, %c0_i32, %c0_i32_0 : i32, i32, i32
  }
}

</mosaic_0001>

<bundles_post_ra>
// kernel: forward.2
= control target key start
LH: loop header
LB: loop body
LE: loop exit
PB: predicated region body
PF: predicated region fallthrough
CT: control target
= control target key end

     0   :  { %v27_v0 = vlaneseq  ;;  %v3883_v2 = vmov 1966171168   ;;  %s3885_s13 = smov 126   ;;  %s3886_s14 = smov 125   ;;  %vm1385_vm0 = vcmask 1040384   ;;  %vm330_vm2 = vcmask 1039360   ;;  %s9530_s0 = inlined_call_operand.vmem [shape: bf16[8,384], index: 0, kind: input, shape index: {}]   ;;  %s9531_s1 = inlined_call_operand.vmem [shape: bf16[16,128], index: 1, kind: input, shape index: {}]   ;;  %s9532_s2 = inlined_call_operand.vmem [shape: f32[8,16,256], index: 2, kind: output, shape index: {}]  }
   0x1   :  { %v3819_v1 = vld.sshfl [vmem:[%s9530_s0] sm:$0xff pattern:$0x75316420]  ;;  %v25_v3 = vunpack.c.l.s4 %v3883_v2  ;;  %vm1386_vm1 = vsmask.f32 256  ;;  %s3887_s15 = smov 124  }
   0x2   :  { %v3820_v4 = vld.sshfl [vmem:[%s9530_s0 + $0x8] sm:$0x33 pattern:$0x75316420]  ;;  %v28_v5 = vshrl.u32 %v27_v0, 7  ;;  %v23_v9 = vcombine.high %v3819_v1, %v3819_v1  ;;  %s3884_s0 = smov 127   ;;  %vm4160_vm3 = vmand %vm1385_vm0, %vm1386_vm1 }
   0x3   :  { %v26_v6 = vunpack.c.0.s8 %v25_v3  ;;  %v64_v7 = vcombine.low %v3819_v1, %v3820_v4  ;;  %v65_v8 = vcombine.high %v3819_v1, %v3820_v4  ;;  %vm411_vm4 = vcmask 1031168   ;;  %s3888_s16 = smov 123   ;;  %s3889_s17 = smov 122  }
   0x4   :  { %v3928_v11 = vsub.s32 0, %v28_v5  ;;  %v3930_v12 = vsub.s32 2, %v28_v5  ;;  %v3934_v17 = vsub.s32 1, %v28_v5  ;;  %vm1469_vm5 = vcmask 1041408   ;;  %s3890_s18 = smov 121   ;;  %s3891_s19 = smov 120  }
   0x5   :  { %v29_v10 = vsub.s32 %v26_v6, %v28_v5  ;;  %vm1470_vm6 = vsmask.f32 1280  ;;  %vm476_vm7 = vcmask 1022976   ;;  %vm557_vm9 = vcmask 1014784   ;;  %s3892_s20 = smov 119   ;;  %s3893_s21 = smov 118  }
   0x6   :  { %vm4715_vm8 = vmand %vm1469_vm5, %vm1470_vm6  ;;  %vm1553_vm10 = vcmask 1042432   ;;  %vm1554_vm11 = vsmask.f32 2304  ;;  %vm622_vm12 = vcmask 1006592   ;;  %vm703_vm14 = vcmask 998400   ;;  %s3894_s22 = smov 117  }
   0x7   :  { %v72_v13 = vrot.slane %v64_v7, %v29_v10  ;;  %v3932_v14 = vrot.slane %v65_v8, %v29_v10  ;;  %v30_v15 = vrot.slane %v3819_v1, %v29_v10  ;;  %v37_v16 = vrot.slane %v23_v9, %v29_v10  ;;  %vm5348_vm13 = vmand %vm1553_vm10, %vm1554_vm11  ;;  %s3895_s23 = smov 116   ;;  %s3896_s24 = smov 115  }
   0x8   :  { %vm1637_vm15 = vcmask 1043456   ;;  %vm1638_vm1 = vsmask.f32 3328  ;;  %vm849_vm6 = vcmask 982016   ;;  %vm914_vm11 = vcmask 973824   ;;  %s3897_s25 = smov 114  }
   0x9   :  { %v3825_v18 = vpack.i.b16 %v72_v13, %v72_v13  ;;  %v3826_v19 = vpack.i.b16 %v3932_v14, %v3932_v14  ;;  %v83_v20 = vunpack.i.h.s16 %v72_v13  ;;  %v3944_v23 = vpack.i.b16 %v30_v15, %v30_v15  ;;  %s3898_s26 = smov 113   ;;  %s3899_s27 = smov 16  }
   0xa   :  { %v3956_v27 = vpack.i.b16 %v37_v16, %v37_v16  ;;  %v85_v28 = vunpack.i.h.s16 %v3932_v14  ;;  %v41_v32 = vunpack.i.h.s16 %v30_v15  ;;  %v43_v37 = vunpack.i.h.s16 %v37_v16  ;;  %s3900_s28 = smov 32   ;;  %s3901_s29 = smov 48  }
   0xb   :  { %v3939_v21 = vrot.slane %v3825_v18, %v3930_v12  ;;  %v3942_v22 = vrot.slane %v3825_v18, %v3928_v11  ;;  %v3951_v24 = vrot.slane %v3826_v19, %v3934_v17  ;;  %v3954_v25 = vrot.slane %v3825_v18, %v3934_v17  ;;  %s3902_s30 = smov 64   ;;  %s3903_s3 = smov 80  }
   0xc   :  { %v179_v26 = vpack.i.b16 %v83_v20, %v83_v20  ;;  %v3964_v29 = vrot.slane %v3826_v19, %v3928_v11  ;;  %v101_v31 = vrot.slane %v3944_v23, %v3928_v11  ;;  %v105_v33 = vrot.slane %v3944_v23, %v3934_v17  ;;  %s3904_s4 = smov 96   ;;  %s3905_s5 = smov 112  }
   0xd   :  { %9787 = vst [vmem:[#allocation2_spill] sm:$0xff] %v3942_v22  ;;  %286 = vrot.lane.b32.xlu1 %v3939_v21, %s3884_s0  ;;  %282 = vrot.lane.b32.xlu0 %v3942_v22, %s3884_s0  ;;  %9788 = vst [vmem:[#allocation3_spill] sm:$0xff] %v3951_v24  ;;  %v117_v34 = vrot.slane %v3956_v27, %v3928_v11  ;;  %v3975_v35 = vpack.i.b16 %v41_v32, %v41_v32 }
   0xe   :  { %9789 = vst [vmem:[#allocation4_spill] sm:$0xff] %v3954_v25  ;;  %v3967_v30 = vrot.slane %v179_v26, %v3928_v11  ;;  %v121_v36 = vrot.slane %v3956_v27, %v3934_v17  ;;  %v38_v38 = vcombine.high %v30_v15, %v30_v15  ;;  %v3984_v39 = vrot.slane %v179_v26, %v3934_v17 }
   0xf   :  { %v3987_v40 = vrot.slane %v179_v26, %v3930_v12  ;;  %v181_v41 = vpack.i.b16 %v85_v28, %v85_v28  ;;  %v109_v42 = vrot.slane %v3975_v35, %v3928_v11  ;;  %v113_v43 = vrot.slane %v3975_v35, %v3934_v17 }
  0x10   :  { %9790 = vst [vmem:[#allocation5_spill] sm:$0xff] %v3967_v30  ;;  %9791 = vst [vmem:[#allocation6_spill] sm:$0xff] %v3984_v39  ;;  %v3993_v44 = vpack.i.b16 %v43_v37, %v43_v37  ;;  %v3995_v45 = vpack.i.b16 %v38_v38, %v38_v38  ;;  %v4008_v49 = vrot.slane %v3826_v19, %v3930_v12  ;;  %v45_v53 = vunpack.i.h.s16 %v38_v38 }
  0x11   :  { %296 = vrot.lane.b32.xlu1 %v3951_v24, %s3884_s0  ;;  %284 = vrot.lane.b32.xlu0 %v3954_v25, %s3884_s0  ;;  %9792 = vst [vmem:[#allocation7_spill] sm:$0xff] %v3987_v40  ;;  %v4011_v50 = vrot.slane %v181_v41, %v3928_v11  ;;  %v80_v51 = vcombine.high %v72_v13, %v72_v13 }
  0x12   :  { %v125_v46 = vrot.slane %v3993_v44, %v3928_v11  ;;  %v129_v47 = vrot.slane %v3993_v44, %v3934_v17  ;;  %v133_v48 = vrot.slane %v3995_v45, %v3928_v11  ;;  %v137_v52 = vrot.slane %v3995_v45, %v3934_v17 }
  0x13   :  { %9793 = vst [vmem:[#allocation8_spill] sm:$0xff] %v4011_v50  ;;  %v4020_v54 = vrot.slane %v181_v41, %v3934_v17  ;;  %v4023_v55 = vrot.slane %v181_v41, %v3930_v12  ;;  %v3827_v56 = vpack.i.b16 %v80_v51, %v80_v51  ;;  %v87_v57 = vunpack.i.h.s16 %v80_v51 }
  0x14   :  { %v4025_v58 = vpack.i.b16 %v45_v53, %v45_v53  ;;  %v39_v61 = vcombine.high %v37_v16, %v37_v16  ;;  %v81_v5 = vcombine.high %v3932_v14, %v3932_v14  ;;  %v9809_v41 = vmov 0 }
  0x15   :  { %294 = vrot.lane.b32.xlu0 %v3964_v29, %s3884_s0  ;;  %288 = vrot.lane.b32.xlu1 %v3967_v30, %s3884_s0  ;;  %9794 = vst [vmem:[#allocation9_spill] sm:$0xff] %v4020_v54  ;;  %9795 = vst [vmem:[#allocation10_spill] sm:$0xff] %v4023_v55  ;;  %v4036_v62 = vrot.slane %v3827_v56, %v3934_v17  ;;  %v4039_v63 = vrot.slane %v3827_v56, %v3928_v11  ;;  %v9810_v41 = vsel %vm4160_vm3, 4294967295, %v9809_v41 }
  0x16   :  { %v141_v59 = vrot.slane %v4025_v58, %v3928_v11  ;;  %v145_v60 = vrot.slane %v4025_v58, %v3934_v17  ;;  %v183_v0 = vpack.i.b16 %v87_v57, %v87_v57  ;;  %v4041_v1 = vpack.i.b16 %v39_v61, %v39_v61  ;;  %9811 = vst [vmem:[#allocation24_spill] sm:$0xff] %v9810_v41 }
  0x17   :  { %9796 = vst [vmem:[#allocation11_spill] sm:$0xff] %v4036_v62  ;;  %9797 = vst [vmem:[#allocation12_spill] sm:$0xff] %v4039_v63  ;;  %v4050_v3 = vrot.slane %v3827_v56, %v3930_v12  ;;  %v47_v7 = vunpack.i.h.s16 %v39_v61  ;;  %v3828_v10 = vpack.i.b16 %v81_v5, %v81_v5  ;;  %v89_v13 = vunpack.i.h.s16 %v81_v5 }
  0x18   :  { %v4053_v4 = vrot.slane %v183_v0, %v3928_v11  ;;  %v4064_v8 = vrot.slane %v183_v0, %v3934_v17  ;;  %v4067_v9 = vrot.slane %v183_v0, %v3930_v12  ;;  %v9820_v58 = vrot.slane %v4041_v1, %v3928_v11 }
  0x19   :  { %290 = vrot.lane.b32.xlu0 %v3984_v39, %s3884_s0  ;;  %292 = vrot.lane.b32.xlu1 %v3987_v40, %s3884_s0  ;;  %9798 = vst [vmem:[#allocation13_spill] sm:$0xff] %v4050_v3  ;;  %v4069_v15 = vpack.i.b16 %v47_v7, %v47_v7  ;;  %v4080_v18 = vrot.slane %v3828_v10, %v3928_v11 }
  0x1a   :  { %9799 = vst [vmem:[#allocation14_spill] sm:$0xff] %v4053_v4  ;;  %9800 = vst [vmem:[#allocation15_spill] sm:$0xff] %v4064_v8  ;;  %v4083_v19 = vrot.slane %v3828_v10, %v3934_v17  ;;  %v185_v20 = vpack.i.b16 %v89_v13, %v89_v13  ;;  %v4090_v26 = vrot.slane %v3828_v10, %v3930_v12 }
  0x1b   :  { %9801 = vst [vmem:[#allocation16_spill] sm:$0xff] %v4067_v9  ;;  %9802 = vst [vmem:[#allocation17_spill] sm:$0xff] %v4080_v18 }
  0x1c   :  { %9803 = vst [vmem:[#allocation18_spill] sm:$0xff] %v4083_v19  ;;  %9804 = vst [vmem:[#allocation19_spill] sm:$0xff] %v4090_v26  ;;  %v4093_v28 = vrot.slane %v185_v20, %v3928_v11  ;;  %v4100_v32 = vrot.slane %v185_v20, %v3934_v17  ;;  %v4103_v37 = vrot.slane %v185_v20, %v3930_v12 }
  0x1d   :  { %298 = vrot.lane.b32.xlu0 %v4008_v49, %s3884_s0  ;;  %300 = vrot.lane.b32.xlu1 %v4011_v50, %s3884_s0 }
  0x1e   :  { %9805 = vst [vmem:[#allocation20_spill] sm:$0xff] %v4093_v28  ;;  %9806 = vst [vmem:[#allocation21_spill] sm:$0xff] %v4100_v32 }
  0x1f   :  { %9807 = vst [vmem:[#allocation22_spill] sm:$0xff] %v4103_v37 }
  0x21   :  { %302 = vrot.lane.b32.xlu0 %v4020_v54, %s3884_s0  ;;  %304 = vrot.lane.b32.xlu1 %v4023_v55, %s3884_s0 }
  0x25   :  { %308 = vrot.lane.b32.xlu1 %v4036_v62, %s3884_s0  ;;  %306 = vrot.lane.b32.xlu0 %v4039_v63, %s3884_s0 }
  0x29   :  { %310 = vrot.lane.b32.xlu0 %v4050_v3, %s3884_s0  ;;  %312 = vrot.lane.b32.xlu1 %v4053_v4, %s3884_s0 }
  0x2d   :  { %314 = vrot.lane.b32.xlu0 %v4064_v8, %s3884_s0  ;;  %316 = vrot.lane.b32.xlu1 %v4067_v9, %s3884_s0 }
  0x31   :  { %318 = vrot.lane.b32.xlu0 %v4080_v18, %s3884_s0  ;;  %320 = vrot.lane.b32.xlu1 %v4083_v19, %s3884_s0 }
  0x35   :  { %322 = vrot.lane.b32.xlu0 %v4090_v26, %s3884_s0  ;;  %324 = vrot.lane.b32.xlu1 %v4093_v28, %s3884_s0 }
  0x39   :  { %326 = vrot.lane.b32.xlu0 %v4100_v32, %s3884_s0  ;;  %328 = vrot.lane.b32.xlu1 %v4103_v37, %s3884_s0 }
  0x3d   :  { %363 = vrot.lane.b32.xlu0 %v3942_v22, %s3885_s13  ;;  %365 = vrot.lane.b32.xlu1 %v3954_v25, %s3885_s13 }
  0x41   :  { %367 = vrot.lane.b32.xlu0 %v3939_v21, %s3885_s13  ;;  %369 = vrot.lane.b32.xlu1 %v3967_v30, %s3885_s13 }
  0x45   :  { %371 = vrot.lane.b32.xlu0 %v3984_v39, %s3885_s13  ;;  %373 = vrot.lane.b32.xlu1 %v3987_v40, %s3885_s13 }
  0x49   :  { %375 = vrot.lane.b32.xlu0 %v3964_v29, %s3885_s13  ;;  %377 = vrot.lane.b32.xlu1 %v3951_v24, %s3885_s13 }
  0x4d   :  { %379 = vrot.lane.b32.xlu0 %v4008_v49, %s3885_s13  ;;  %381 = vrot.lane.b32.xlu1 %v4011_v50, %s3885_s13 }
  0x51   :  { %383 = vrot.lane.b32.xlu0 %v4020_v54, %s3885_s13  ;;  %385 = vrot.lane.b32.xlu1 %v4023_v55, %s3885_s13 }
  0x55   :  { %387 = vrot.lane.b32.xlu0 %v4039_v63, %s3885_s13  ;;  %389 = vrot.lane.b32.xlu1 %v4036_v62, %s3885_s13 }
  0x59   :  { %391 = vrot.lane.b32.xlu0 %v4050_v3, %s3885_s13  ;;  %393 = vrot.lane.b32.xlu1 %v4053_v4, %s3885_s13 }
  0x5d   :  { %395 = vrot.lane.b32.xlu0 %v4064_v8, %s3885_s13  ;;  %397 = vrot.lane.b32.xlu1 %v4067_v9, %s3885_s13 }
  0x61   :  { %399 = vrot.lane.b32.xlu0 %v4080_v18, %s3885_s13  ;;  %401 = vrot.lane.b32.xlu1 %v4083_v19, %s3885_s13 }
  0x65   :  { %403 = vrot.lane.b32.xlu0 %v4090_v26, %s3885_s13  ;;  %405 = vrot.lane.b32.xlu1 %v4093_v28, %s3885_s13 }
  0x69   :  { %407 = vrot.lane.b32.xlu0 %v4100_v32, %s3885_s13  ;;  %409 = vrot.lane.b32.xlu1 %v4103_v37, %s3885_s13 }
  0x6d   :  { %428 = vrot.lane.b32.xlu0 %v3942_v22, %s3886_s14  ;;  %430 = vrot.lane.b32.xlu1 %v3954_v25, %s3886_s14 }
  0x71   :  { %432 = vrot.lane.b32.xlu0 %v3939_v21, %s3886_s14  ;;  %434 = vrot.lane.b32.xlu1 %v3967_v30, %s3886_s14 }
  0x75   :  { %436 = vrot.lane.b32.xlu0 %v3984_v39, %s3886_s14  ;;  %438 = vrot.lane.b32.xlu1 %v3987_v40, %s3886_s14 }
  0x79   :  { %440 = vrot.lane.b32.xlu0 %v3964_v29, %s3886_s14  ;;  %442 = vrot.lane.b32.xlu1 %v3951_v24, %s3886_s14 }
  0x7d   :  { %444 = vrot.lane.b32.xlu0 %v4008_v49, %s3886_s14  ;;  %446 = vrot.lane.b32.xlu1 %v4011_v50, %s3886_s14 }
  0x7f   :  { %v4153_v12 = vpop.permute.xlu1 %286  ;;  %v283_v38 = vpop.permute.xlu0 %282 }
  0x80   :  { %9808 = vst [vmem:[#allocation23_spill] sm:$0xff] %v4153_v12 }
  0x81   :  { %448 = vrot.lane.b32.xlu0 %v4020_v54, %s3886_s14  ;;  %450 = vrot.lane.b32.xlu1 %v4023_v55, %s3886_s14 }
  0x83   :  { %v297_v51 = vpop.permute.xlu1 %296  ;;  %v285_v53 = vpop.permute.xlu0 %284 }
  0x84   :  { %v4165_v56 = vsel %vm330_vm2, %v283_v38, %v285_v53  ;;  %v4169_v57 = vsel %vm330_vm2, %v285_v53, %v4153_v12 }
  0x85   :  { %9812 = vst [vmem:[#allocation25_spill] sm:$0xff] %v4165_v56  ;;  %9813 = vst [vmem:[#allocation26_spill] sm:$0xff] %v4169_v57  ;;  %v4177_v61 = vsel %vm4160_vm3, %v101_v31, %v4165_v56  ;;  %v4185_v0 = vsel %vm4160_vm3, %v105_v33, %v4169_v57  ;;  %452 = vrot.lane.b32.xlu0 %v4039_v63, %s3886_s14  ;;  %454 = vrot.lane.b32.xlu1 %v4036_v62, %s3886_s14 }
  0x86   :  { %v9824_v57 = vrot.slane %v4069_v15, %v3928_v11 }
  0x87   :  { %v295_v5 = vpop.permute.xlu0 %294  ;;  %v289_v7 = vpop.permute.xlu1 %288 }
  0x88   :  { %v4192_v10 = vsel %vm330_vm2, %v295_v5, %v297_v51 }
  0x89   :  { %v4200_v23 = vsel %vm4160_vm3, %v117_v34, %v4192_v10  ;;  %456 = vrot.lane.b32.xlu0 %v4050_v3, %s3886_s14  ;;  %458 = vrot.lane.b32.xlu1 %v4053_v4, %s3886_s14 }
  0x8b   :  { %v291_v33 = vpop.permute.xlu0 %290  ;;  %v4210_v13 = vpop.permute.xlu1 %292 }
  0x8c   :  { %9814 = vst [vmem:[#allocation27_spill] sm:$0xff] %v4210_v13  ;;  %v4213_v20 = vsel %vm330_vm2, %v289_v7, %v291_v33  ;;  %v4217_v34 = vsel %vm330_vm2, %v291_v33, %v4210_v13 }
  0x8d   :  { %9815 = vst [vmem:[#allocation28_spill] sm:$0xff] %v4213_v20  ;;  %9816 = vst [vmem:[#allocation29_spill] sm:$0xff] %v4217_v34  ;;  %v4225_v38 = vsel %vm4160_vm3, %v109_v42, %v4213_v20  ;;  %v4233_v53 = vsel %vm4160_vm3, %v113_v43, %v4217_v34  ;;  %460 = vrot.lane.b32.xlu0 %v4064_v8, %s3886_s14  ;;  %462 = vrot.lane.b32.xlu1 %v4067_v9, %s3886_s14 }
  0x8f   :  { %v4239_v5 = vpop.permute.xlu0 %298  ;;  %v301_v7 = vpop.permute.xlu1 %300 }
  0x90   :  { %v4243_v42 = vsel %vm330_vm2, %v297_v51, %v4239_v5 }
  0x91   :  { %v4251_v35 = vsel %vm4160_vm3, %v121_v36, %v4243_v42  ;;  %464 = vrot.lane.b32.xlu0 %v4080_v18, %s3886_s14  ;;  %466 = vrot.lane.b32.xlu1 %v4083_v19, %s3886_s14 }
  0x93   :  { %v303_v51 = vpop.permute.xlu0 %302  ;;  %v4261_v33 = vpop.permute.xlu1 %304 }
  0x94   :  { %9817 = vst [vmem:[#allocation30_spill] sm:$0xff] %v4261_v33  ;;  %v4264_v27 = vsel %vm330_vm2, %v301_v7, %v303_v51  ;;  %v4268_v36 = vsel %vm330_vm2, %v303_v51, %v4261_v33 }
  0x95   :  { %v4276_v43 = vsel %vm4160_vm3, %v125_v46, %v4264_v27  ;;  %v4288_v7 = vsel %vm4160_vm3, %v129_v47, %v4268_v36  ;;  %468 = vrot.lane.b32.xlu0 %v4090_v26, %s3886_s14  ;;  %470 = vrot.lane.b32.xlu1 %v4093_v28, %s3886_s14 }
  0x97   :  { %v309_v46 = vpop.permute.xlu1 %308  ;;  %v307_v31 = vpop.permute.xlu0 %306 }
  0x98   :  { %v4299_v16 = vsel %vm330_vm2, %v307_v31, %v309_v46 }
  0x99   :  { %v4307_v44 = vsel %vm4160_vm3, %v133_v48, %v4299_v16  ;;  %472 = vrot.lane.b32.xlu0 %v4100_v32, %s3886_s14  ;;  %474 = vrot.lane.b32.xlu1 %v4103_v37, %s3886_s14 }
  0x9b   :  { %v4317_v31 = vpop.permute.xlu0 %310  ;;  %v313_v51 = vpop.permute.xlu1 %312 }
  0x9c   :  { %9818 = vst [vmem:[#allocation31_spill] sm:$0xff] %v4317_v31  ;;  %v4321_v14 = vsel %vm330_vm2, %v309_v46, %v4317_v31 }
  0x9d   :  { %v4329_v48 = vsel %vm4160_vm3, %v137_v52, %v4321_v14  ;;  %509 = vrot.lane.b32.xlu0 %v3942_v22, %s3887_s15  ;;  %511 = vrot.lane.b32.xlu1 %v3954_v25, %s3887_s15 }
  0x9f   :  { %v315_v46 = vpop.permute.xlu0 %314  ;;  %v4339_v6 = vpop.permute.xlu1 %316 }
  0xa0   :  { %9819 = vst [vmem:[#allocation32_spill] sm:$0xff] %v4339_v6  ;;  %v4342_v45 = vsel %vm330_vm2, %v313_v51, %v315_v46  ;;  %v4346_v52 = vsel %vm330_vm2, %v315_v46, %v4339_v6 }
  0xa1   :  { %v4354_v47 = vsel %vm4160_vm3, %v141_v59, %v4342_v45  ;;  %v4366_v51 = vsel %vm4160_vm3, %v145_v60, %v4346_v52  ;;  %513 = vrot.lane.b32.xlu0 %v3939_v21, %s3887_s15  ;;  %515 = vrot.lane.b32.xlu1 %v3967_v30, %s3887_s15 }
  0xa3   :  { %v319_v59 = vpop.permute.xlu0 %318  ;;  %v321_v2 = vpop.permute.xlu1 %320 }
  0xa4   :  { %v4377_v34 = vsel %vm330_vm2, %v319_v59, %v321_v2 }
  0xa5   :  { %v4385_v60 = vsel %vm4160_vm3, %v9820_v58, %v4377_v34  ;;  %517 = vrot.lane.b32.xlu0 %v3984_v39, %s3887_s15  ;;  %519 = vrot.lane.b32.xlu1 %v3987_v40, %s3887_s15  ;;  %v9822_v58 = vrot.slane %v4041_v1, %v3934_v17 }
  0xa7   :  { %v4395_v59 = vpop.permute.xlu0 %322  ;;  %v325_v13 = vpop.permute.xlu1 %324 }
  0xa8   :  { %9821 = vst [vmem:[#allocation33_spill] sm:$0xff] %v4395_v59  ;;  %v4399_v20 = vsel %vm330_vm2, %v321_v2, %v4395_v59 }
  0xa9   :  { %v4407_v46 = vsel %vm4160_vm3, %v9822_v58, %v4399_v20  ;;  %521 = vrot.lane.b32.xlu0 %v3964_v29, %s3887_s15  ;;  %523 = vrot.lane.b32.xlu1 %v3951_v24, %s3887_s15 }
  0xab   :  { %v327_v2 = vpop.permute.xlu0 %326  ;;  %v4417_v56 = vpop.permute.xlu1 %328 }
  0xac   :  { %9823 = vst [vmem:[#allocation34_spill] sm:$0xff] %v4417_v56  ;;  %v4420_v1 = vsel %vm330_vm2, %v325_v13, %v327_v2  ;;  %v4424_v58 = vsel %vm330_vm2, %v327_v2, %v4417_v56  ;;  %v9825_v13 = vrot.slane %v4069_v15, %v3934_v17  ;;  %vm768_vm2 = vcmask 990208  }
  0xad   :  { %v4432_v12 = vsel %vm4160_vm3, %v9824_v57, %v4420_v1  ;;  %525 = vrot.lane.b32.xlu0 %v4008_v49, %s3887_s15  ;;  %527 = vrot.lane.b32.xlu1 %v4011_v50, %s3887_s15 }
  0xae   :  { %v4444_v2 = vsel %vm4160_vm3, %v9825_v13, %v4424_v58 }
  0xaf   :  { %v364_v57 = vpop.permute.xlu0 %363  ;;  %v366_v59 = vpop.permute.xlu1 %365 }
  0xb0   :  { %v4455_v56 = vsel %vm411_vm4, %v364_v57, %v366_v59 }
  0xb1   :  { %9826 = vst [vmem:[#allocation35_spill] sm:$0xff] %v4455_v56  ;;  %v4460_v17 = vsel %vm1385_vm0, %v4177_v61, %v4455_v56  ;;  %529 = vrot.lane.b32.xlu0 %v4020_v54, %s3887_s15  ;;  %531 = vrot.lane.b32.xlu1 %v4023_v55, %s3887_s15 }
  0xb2   :  { %9827 = vst [vmem:[#allocation36_spill] sm:$0xff] %v4460_v17 }
  0xb3   :  { %v4466_v15 = vpop.permute.xlu0 %367  ;;  %v370_v13 = vpop.permute.xlu1 %369 }
  0xb4   :  { %9828 = vst [vmem:[#allocation37_spill] sm:$0xff] %v4466_v15  ;;  %v4470_v11 = vsel %vm411_vm4, %v366_v59, %v4466_v15 }
  0xb5   :  { %9829 = vst [vmem:[#allocation38_spill] sm:$0xff] %v4470_v11  ;;  %v4475_v57 = vsel %vm1385_vm0, %v4185_v0, %v4470_v11  ;;  %533 = vrot.lane.b32.xlu0 %v4039_v63, %s3887_s15  ;;  %535 = vrot.lane.b32.xlu1 %v4036_v62, %s3887_s15 }
  0xb7   :  { %v372_v61 = vpop.permute.xlu0 %371  ;;  %v4481_v56 = vpop.permute.xlu1 %373 }
  0xb8   :  { %9830 = vst [vmem:[#allocation39_spill] sm:$0xff] %v4481_v56  ;;  %v4484_v6 = vsel %vm411_vm4, %v370_v13, %v372_v61  ;;  %v4488_v59 = vsel %vm411_vm4, %v372_v61, %v4481_v56 }
  0xb9   :  { %9831 = vst [vmem:[#allocation40_spill] sm:$0xff] %v4484_v6  ;;  %9832 = vst [vmem:[#allocation41_spill] sm:$0xff] %v4488_v59  ;;  %v4493_v0 = vsel %vm1385_vm0, %v4225_v38, %v4484_v6  ;;  %v4498_v15 = vsel %vm1385_vm0, %v4233_v53, %v4488_v59  ;;  %537 = vrot.lane.b32.xlu0 %v4050_v3, %s3887_s15  ;;  %539 = vrot.lane.b32.xlu1 %v4053_v4, %s3887_s15 }
  0xba   :  { %v9834_v38 = vsel %vm4160_vm3, %v3964_v29, %v4192_v10  ;;  %v9836_v10 = vsel %vm4160_vm3, %v3951_v24, %v4243_v42 }
  0xbb   :  { %v376_v13 = vpop.permute.xlu0 %375  ;;  %v378_v11 = vpop.permute.xlu1 %377 }
  0xbc   :  { %v416_v61 = vsel %vm411_vm4, %v376_v13, %v378_v11 }
  0xbd   :  { %v4507_v56 = vsel %vm1385_vm0, %v4200_v23, %v416_v61  ;;  %v4515_v53 = vsel %vm1385_vm0, %v9834_v38, %v416_v61  ;;  %541 = vrot.lane.b32.xlu0 %v4064_v8, %s3887_s15  ;;  %543 = vrot.lane.b32.xlu1 %v4067_v9, %s3887_s15 }
  0xbe   :  { %9833 = vst [vmem:[#allocation42_spill] sm:$0xff] %v4507_v56  ;;  %9835 = vst [vmem:[#allocation43_spill] sm:$0xff] %v4515_v53 }
  0xbf   :  { %v4521_v59 = vpop.permute.xlu0 %379  ;;  %v382_v13 = vpop.permute.xlu1 %381 }
  0xc0   :  { %v417_v23 = vsel %vm411_vm4, %v378_v11, %v4521_v59 }
  0xc1   :  { %v4527_v6 = vsel %vm1385_vm0, %v4251_v35, %v417_v23  ;;  %v4535_v61 = vsel %vm1385_vm0, %v9836_v10, %v417_v23  ;;  %545 = vrot.lane.b32.xlu0 %v4080_v18, %s3887_s15  ;;  %547 = vrot.lane.b32.xlu1 %v4083_v19, %s3887_s15  ;;  %v9837_v23 = vsel %vm4160_vm3, %v4011_v50, %v4264_v27 }
  0xc3   :  { %v384_v38 = vpop.permute.xlu0 %383  ;;  %v4541_v11 = vpop.permute.xlu1 %385 }
  0xc4   :  { %v418_v35 = vsel %vm411_vm4, %v382_v13, %v384_v38  ;;  %v419_v31 = vsel %vm411_vm4, %v384_v38, %v4541_v11  ;;  %v9838_v13 = vsel %vm4160_vm3, %v4020_v54, %v4268_v36  ;;  %v9840_v36 = vsel %vm4160_vm3, %v4039_v63, %v4299_v16 }
  0xc5   :  { %v4548_v42 = vsel %vm1385_vm0, %v4276_v43, %v418_v35  ;;  %v4556_v10 = vsel %vm1385_vm0, %v9837_v23, %v418_v35  ;;  %v4560_v33 = vsel %vm1385_vm0, %v4288_v7, %v419_v31  ;;  %v4568_v43 = vsel %vm1385_vm0, %v9838_v13, %v419_v31  ;;  %549 = vrot.lane.b32.xlu0 %v4090_v26, %s3887_s15 }
  0xc6   :  { %551 = vrot.lane.b32.xlu1 %v4093_v28, %s3887_s15  ;;  %v9843_v16 = vsel %vm4160_vm3, %v4036_v62, %v4321_v14 }
  0xc7   :  { %v388_v27 = vpop.permute.xlu0 %387  ;;  %v390_v38 = vpop.permute.xlu1 %389 }
  0xc8   :  { %v420_v35 = vsel %vm411_vm4, %v388_v27, %v390_v38 }
  0xc9   :  { %v4577_v7 = vsel %vm1385_vm0, %v4307_v44, %v420_v35  ;;  %v4585_v31 = vsel %vm1385_vm0, %v9840_v36, %v420_v35  ;;  %553 = vrot.lane.b32.xlu0 %v4100_v32, %s3887_s15 }
  0xca   :  { %9839 = vst [vmem:[#allocation44_spill] sm:$0xff] %v4577_v7  ;;  %9841 = vst [vmem:[#allocation45_spill] sm:$0xff] %v4585_v31  ;;  %555 = vrot.lane.b32.xlu1 %v4103_v37, %s3887_s15 }
  0xcb   :  { %v4591_v23 = vpop.permute.xlu0 %391  ;;  %v394_v13 = vpop.permute.xlu1 %393 }
  0xcc   :  { %v421_v44 = vsel %vm411_vm4, %v390_v38, %v4591_v23 }
  0xcd   :  { %v4597_v27 = vsel %vm1385_vm0, %v4329_v48, %v421_v44  ;;  %v4605_v35 = vsel %vm1385_vm0, %v9843_v16, %v421_v44  ;;  %574 = vrot.lane.b32.xlu0 %v3942_v22, %s3888_s16  ;;  %v9844_v44 = vsel %vm4160_vm3, %v4053_v4, %v4342_v45 }
  0xce   :  { %9842 = vst [vmem:[#allocation46_spill] sm:$0xff] %v4597_v27  ;;  %576 = vrot.lane.b32.xlu1 %v3954_v25, %s3888_s16 }
  0xcf   :  { %v396_v38 = vpop.permute.xlu0 %395  ;;  %v4611_v36 = vpop.permute.xlu1 %397 }
  0xd0   :  { %v422_v48 = vsel %vm411_vm4, %v394_v13, %v396_v38  ;;  %v423_v27 = vsel %vm411_vm4, %v396_v38, %v4611_v36  ;;  %v9845_v13 = vsel %vm4160_vm3, %v4064_v8, %v4346_v52  ;;  %v9847_v52 = vsel %vm4160_vm3, %v4080_v18, %v4377_v34 }
  0xd1   :  { %v4618_v14 = vsel %vm1385_vm0, %v4354_v47, %v422_v48  ;;  %v4626_v16 = vsel %vm1385_vm0, %v9844_v44, %v422_v48  ;;  %v4630_v25 = vsel %vm1385_vm0, %v4366_v51, %v423_v27  ;;  %v4638_v47 = vsel %vm1385_vm0, %v9845_v13, %v423_v27  ;;  %578 = vrot.lane.b32.xlu0 %v3939_v21, %s3888_s16 }
  0xd2   :  { %580 = vrot.lane.b32.xlu1 %v3967_v30, %s3888_s16  ;;  %v9849_v34 = vsel %vm4160_vm3, %v4083_v19, %v4399_v20 }
  0xd3   :  { %v400_v45 = vpop.permute.xlu0 %399  ;;  %v402_v38 = vpop.permute.xlu1 %401 }
  0xd4   :  { %v424_v48 = vsel %vm411_vm4, %v400_v45, %v402_v38 }
  0xd5   :  { %v4647_v51 = vsel %vm1385_vm0, %v4385_v60, %v424_v48  ;;  %v4655_v27 = vsel %vm1385_vm0, %v9847_v52, %v424_v48  ;;  %582 = vrot.lane.b32.xlu0 %v3984_v39, %s3888_s16 }
  0xd6   :  { %9846 = vst [vmem:[#allocation47_spill] sm:$0xff] %v4647_v51  ;;  %584 = vrot.lane.b32.xlu1 %v3987_v40, %s3888_s16 }
  0xd7   :  { %v4661_v44 = vpop.permute.xlu0 %403  ;;  %v406_v13 = vpop.permute.xlu1 %405 }
  0xd8   :  { %v425_v60 = vsel %vm411_vm4, %v402_v38, %v4661_v44 }
  0xd9   :  { %v4667_v45 = vsel %vm1385_vm0, %v4407_v46, %v425_v60  ;;  %v4675_v48 = vsel %vm1385_vm0, %v9849_v34, %v425_v60  ;;  %586 = vrot.lane.b32.xlu0 %v3964_v29, %s3888_s16  ;;  %v9850_v60 = vsel %vm4160_vm3, %v4093_v28, %v4420_v1  ;;  %v9852_v1 = vmov 0 }
  0xda   :  { %9848 = vst [vmem:[#allocation48_spill] sm:$0xff] %v4667_v45  ;;  %588 = vrot.lane.b32.xlu1 %v3951_v24, %s3888_s16  ;;  %v9853_v1 = vsel %vm4715_vm8, 4294967295, %v9852_v1 }
  0xdb   :  { %v408_v52 = vpop.permute.xlu0 %407  ;;  %v4681_v38 = vpop.permute.xlu1 %409  ;;  %9854 = vst [vmem:[#allocation49_spill] sm:$0xff] %v9853_v1 }
  0xdc   :  { %v426_v46 = vsel %vm411_vm4, %v406_v13, %v408_v52  ;;  %v427_v45 = vsel %vm411_vm4, %v408_v52, %v4681_v38  ;;  %v9851_v13 = vsel %vm4160_vm3, %v4100_v32, %v4424_v58  ;;  %vm5987_vm4 = vmand %vm1637_vm15, %vm1638_vm1  ;;  %vm1805_vm1 = vcmask 1045504  }
  0xdd   :  { %v4688_v20 = vsel %vm1385_vm0, %v4432_v12, %v426_v46  ;;  %v4696_v34 = vsel %vm1385_vm0, %v9850_v60, %v426_v46  ;;  %v4700_v24 = vsel %vm1385_vm0, %v4444_v2, %v427_v45  ;;  %v4708_v12 = vsel %vm1385_vm0, %v9851_v13, %v427_v45  ;;  %590 = vrot.lane.b32.xlu0 %v4008_v49, %s3888_s16 }
  0xde   :  { %592 = vrot.lane.b32.xlu1 %v4011_v50, %s3888_s16 }
  0xdf   :  { %v429_v2 = vpop.permute.xlu0 %428  ;;  %v431_v52 = vpop.permute.xlu1 %430 }
  0xe0   :  { %v4720_v46 = vsel %vm476_vm7, %v429_v2, %v431_v52 }
  0xe1   :  { %9855 = vst [vmem:[#allocation50_spill] sm:$0xff] %v4720_v46  ;;  %594 = vrot.lane.b32.xlu0 %v4020_v54, %s3888_s16 }
  0xe2   :  { %596 = vrot.lane.b32.xlu1 %v4023_v55, %s3888_s16 }
  0xe3   :  { %v4730_v45 = vpop.permute.xlu0 %432  ;;  %v435_v60 = vpop.permute.xlu1 %434 }
  0xe4   :  { %9856 = vst [vmem:[#allocation51_spill] sm:$0xff] %v4730_v45  ;;  %v4734_v13 = vsel %vm476_vm7, %v431_v52, %v4730_v45 }
  0xe5   :  { %9857 = vst [vmem:[#allocation52_spill] sm:$0xff] %v4734_v13  ;;  %598 = vrot.lane.b32.xlu0 %v4039_v63, %s3888_s16 }
  0xe6   :  { %600 = vrot.lane.b32.xlu1 %v4036_v62, %s3888_s16 }
  0xe7   :  { %v437_v58 = vpop.permute.xlu0 %436  ;;  %v4744_v46 = vpop.permute.xlu1 %438 }
  0xe8   :  { %9858 = vst [vmem:[#allocation53_spill] sm:$0xff] %v4744_v46  ;;  %v4747_v17 = vsel %vm476_vm7, %v435_v60, %v437_v58  ;;  %v4751_v52 = vsel %vm476_vm7, %v437_v58, %v4744_v46  ;;  %v2088_v46 = vsel %vm4160_vm3, %v4008_v49, %v4239_v5 }
  0xe9   :  { %9859 = vst [vmem:[#allocation54_spill] sm:$0xff] %v4747_v17  ;;  %9860 = vst [vmem:[#allocation55_spill] sm:$0xff] %v4751_v52  ;;  %602 = vrot.lane.b32.xlu0 %v4050_v3, %s3888_s16 }
  0xea   :  { %604 = vrot.lane.b32.xlu1 %v4053_v4, %s3888_s16 }
  0xeb   :  { %v441_v60 = vpop.permute.xlu0 %440  ;;  %v443_v62 = vpop.permute.xlu1 %442 }
  0xec   :  { %v4766_v58 = vsel %vm476_vm7, %v441_v60, %v443_v62  ;;  %v4786_v60 = vsel %vm1385_vm0, %v2088_v46, %v4521_v59 }
  0xed   :  { %606 = vrot.lane.b32.xlu0 %v4064_v8, %s3888_s16  ;;  %9861 = vst [vmem:[#allocation56_spill] sm:$0xff] %v4786_v60 }
  0xee   :  { %608 = vrot.lane.b32.xlu1 %v4067_v9, %s3888_s16 }
  0xef   :  { %v4788_v2 = vpop.permute.xlu0 %444  ;;  %v447_v56 = vpop.permute.xlu1 %446 }
  0xf0   :  { %9862 = vst [vmem:[#allocation57_spill] sm:$0xff] %v4788_v2  ;;  %v4792_v45 = vsel %vm476_vm7, %v443_v62, %v4788_v2  ;;  %v9863_v62 = vld [vmem:[#allocation30_spill] sm:$0xff] }
  0xf1   :  { %610 = vrot.lane.b32.xlu0 %v4080_v18, %s3888_s16  ;;  %v2091_v46 = vsel %vm4160_vm3, %v4023_v55, %v9863_v62 }
  0xf2   :  { %612 = vrot.lane.b32.xlu1 %v4083_v19, %s3888_s16  ;;  %v4816_v53 = vsel %vm1385_vm0, %v2091_v46, %v4541_v11 }
  0xf3   :  { %9864 = vst [vmem:[#allocation30_spill] sm:$0xff] %v4816_v53  ;;  %v449_v5 = vpop.permute.xlu0 %448  ;;  %v4818_v2 = vpop.permute.xlu1 %450  ;;  %v9869_v53 = vld [vmem:[#allocation46_spill] sm:$0xff] }
  0xf4   :  { %9865 = vst [vmem:[#allocation58_spill] sm:$0xff] %v4818_v2  ;;  %v4821_v59 = vsel %vm476_vm7, %v447_v56, %v449_v5  ;;  %v4825_v60 = vsel %vm476_vm7, %v449_v5, %v4818_v2  ;;  %v9866_v5 = vld [vmem:[#allocation31_spill] sm:$0xff] }
  0xf5   :  { %614 = vrot.lane.b32.xlu0 %v4090_v26, %s3888_s16  ;;  %v2094_v2 = vsel %vm4160_vm3, %v4050_v3, %v9866_v5 }
  0xf6   :  { %616 = vrot.lane.b32.xlu1 %v4093_v28, %s3888_s16 }
  0xf7   :  { %v453_v62 = vpop.permute.xlu0 %452  ;;  %v455_v11 = vpop.permute.xlu1 %454 }
  0xf8   :  { %v4852_v56 = vsel %vm476_vm7, %v453_v62, %v455_v11  ;;  %v4872_v62 = vsel %vm1385_vm0, %v2094_v2, %v4591_v23  ;;  %v9870_v2 = vld [vmem:[#allocation4_spill] sm:$0xff] }
  0xf9   :  { %618 = vrot.lane.b32.xlu0 %v4100_v32, %s3888_s16  ;;  %9867 = vst [vmem:[#allocation31_spill] sm:$0xff] %v4872_v62 }
  0xfa   :  { %620 = vrot.lane.b32.xlu1 %v4103_v37, %s3888_s16 }
  0xfb   :  { %v4874_v32 = vpop.permute.xlu0 %456  ;;  %v459_v7 = vpop.permute.xlu1 %458 }
  0xfc   :  { %9868 = vst [vmem:[#allocation59_spill] sm:$0xff] %v4874_v32  ;;  %v4878_v5 = vsel %vm476_vm7, %v455_v11, %v4874_v32  ;;  %v9871_v11 = vld [vmem:[#allocation32_spill] sm:$0xff] }
  0xfd   :  { %655 = vrot.lane.b32.xlu0 %v3942_v22, %s3889_s17  ;;  %v2097_v46 = vsel %vm4160_vm3, %v4067_v9, %v9871_v11 }
  0xfe   :  { %657 = vrot.lane.b32.xlu1 %v9870_v2, %s3889_s17  ;;  %v4902_v31 = vsel %vm1385_vm0, %v2097_v46, %v4611_v36  ;;  %v9874_v2 = vld [vmem:[#allocation33_spill] sm:$0xff] }
  0xff   :  { %v461_v32 = vpop.permute.xlu0 %460  ;;  %9872 = vst [vmem:[#allocation46_spill] sm:$0xff] %v4902_v31  ;;  %v4907_v23 = vpop.permute.xlu1 %462  ;;  %v2100_v36 = vsel %vm4160_vm3, %v4090_v26, %v9874_v2 }
 0x100   :  { %v4905_v62 = vsel %vm476_vm7, %v459_v7, %v461_v32  ;;  %9873 = vst [vmem:[#allocation32_spill] sm:$0xff] %v4907_v23  ;;  %v4919_v22 = vsel %vm476_vm7, %v461_v32, %v4907_v23  ;;  %v9877_v23 = vld [vmem:[#allocation48_spill] sm:$0xff] }
 0x101   :  { %659 = vrot.lane.b32.xlu0 %v3939_v21, %s3889_s17 }
 0x102   :  { %661 = vrot.lane.b32.xlu1 %v3967_v30, %s3889_s17 }
 0x103   :  { %v465_v32 = vpop.permute.xlu0 %464  ;;  %v467_v11 = vpop.permute.xlu1 %466 }
 0x104   :  { %v4938_v7 = vsel %vm476_vm7, %v465_v32, %v467_v11  ;;  %v4958_v32 = vsel %vm1385_vm0, %v2100_v36, %v4661_v44  ;;  %v9879_v36 = vld [vmem:[#allocation34_spill] sm:$0xff] }
 0x105   :  { %663 = vrot.lane.b32.xlu0 %v3984_v39, %s3889_s17  ;;  %9875 = vst [vmem:[#allocation33_spill] sm:$0xff] %v4958_v32  ;;  %v2103_v46 = vsel %vm4160_vm3, %v4103_v37, %v9879_v36 }
 0x106   :  { %665 = vrot.lane.b32.xlu1 %v3987_v40, %s3889_s17  ;;  %v4988_v40 = vsel %vm1385_vm0, %v2103_v46, %v4681_v38  ;;  %v9883_v38 = vld [vmem:[#allocation36_spill] sm:$0xff] }
 0x107   :  { %v4960_v31 = vpop.permute.xlu0 %468  ;;  %v471_v51 = vpop.permute.xlu1 %470  ;;  %9880 = vst [vmem:[#allocation48_spill] sm:$0xff] %v4988_v40 }
 0x108   :  { %9876 = vst [vmem:[#allocation60_spill] sm:$0xff] %v4960_v31  ;;  %v4964_v2 = vsel %vm476_vm7, %v467_v11, %v4960_v31  ;;  %v9878_v11 = vld [vmem:[#allocation3_spill] sm:$0xff] }
 0x109   :  { %667 = vrot.lane.b32.xlu0 %v3964_v29, %s3889_s17 }
 0x10a   :  { %669 = vrot.lane.b32.xlu1 %v9878_v11, %s3889_s17  ;;  %v9884_v11 = vld [vmem:[#allocation50_spill] sm:$0xff] }
 0x10b   :  { %v473_v31 = vpop.permute.xlu0 %472  ;;  %v4993_v44 = vpop.permute.xlu1 %474 }
 0x10c   :  { %v4991_v32 = vsel %vm476_vm7, %v471_v51, %v473_v31  ;;  %9881 = vst [vmem:[#allocation34_spill] sm:$0xff] %v4993_v44  ;;  %v5005_v41 = vsel %vm476_vm7, %v473_v31, %v4993_v44  ;;  %v9885_v44 = vsel %vm4715_vm8, %v9883_v38, %v9884_v11  ;;  %vm1721_vm7 = vcmask 1044480  }
 0x10d   :  { %671 = vrot.lane.b32.xlu0 %v4008_v49, %s3889_s17 }
 0x10e   :  { %673 = vrot.lane.b32.xlu1 %v4011_v50, %s3889_s17 }
 0x10f   :  { %v510_v31 = vpop.permute.xlu0 %509  ;;  %v512_v36 = vpop.permute.xlu1 %511 }
 0x110   :  { %v5024_v51 = vsel %vm557_vm9, %v510_v31, %v512_v36 }
 0x111   :  { %9882 = vst [vmem:[#allocation61_spill] sm:$0xff] %v5024_v51  ;;  %675 = vrot.lane.b32.xlu0 %v4020_v54, %s3889_s17  ;;  %v5035_v46 = vsel %vm1469_vm5, %v9885_v44, %v5024_v51  ;;  %v9888_v54 = vsel %vm4715_vm8, %v4475_v57, %v4734_v13  ;;  %v9889_v44 = vld [vmem:[#allocation11_spill] sm:$0xff]  ;;  %v9892_v57 = vsel %vm4715_vm8, %v4493_v0, %v4747_v17 }
 0x112   :  { %677 = vrot.lane.b32.xlu1 %v4023_v55, %s3889_s17 }
 0x113   :  { %v5039_v40 = vpop.permute.xlu0 %513  ;;  %v516_v50 = vpop.permute.xlu1 %515 }
 0x114   :  { %9886 = vst [vmem:[#allocation36_spill] sm:$0xff] %v5039_v40  ;;  %v5043_v31 = vsel %vm557_vm9, %v512_v36, %v5039_v40 }
 0x115   :  { %9887 = vst [vmem:[#allocation62_spill] sm:$0xff] %v5043_v31  ;;  %v5052_v38 = vsel %vm1469_vm5, %v9888_v54, %v5043_v31  ;;  %679 = vrot.lane.b32.xlu0 %v4039_v63, %s3889_s17 }
 0x116   :  { %681 = vrot.lane.b32.xlu1 %v9889_v44, %s3889_s17 }
 0x117   :  { %v518_v51 = vpop.permute.xlu0 %517  ;;  %v5061_v40 = vpop.permute.xlu1 %519 }
 0x118   :  { %v5059_v36 = vsel %vm557_vm9, %v516_v50, %v518_v51  ;;  %9891 = vst [vmem:[#allocation64_spill] sm:$0xff] %v5061_v40  ;;  %v5074_v31 = vsel %vm557_vm9, %v518_v51, %v5061_v40  ;;  %v9894_v50 = vsel %vm4715_vm8, %v4498_v15, %v4751_v52  ;;  %v9895_v40 = vld [vmem:[#allocation42_spill] sm:$0xff] }
 0x119   :  { %9890 = vst [vmem:[#allocation63_spill] sm:$0xff] %v5059_v36  ;;  %v5070_v54 = vsel %vm1469_vm5, %v9892_v57, %v5059_v36  ;;  %9893 = vst [vmem:[#allocation65_spill] sm:$0xff] %v5074_v31  ;;  %683 = vrot.lane.b32.xlu0 %v4050_v3, %s3889_s17  ;;  %v5085_v13 = vsel %vm1469_vm5, %v9894_v50, %v5074_v31  ;;  %v9896_v36 = vsel %vm4715_vm8, %v9895_v40, %v4766_v58  ;;  %v9897_v50 = vld [vmem:[#allocation43_spill] sm:$0xff] }
 0x11a   :  { %685 = vrot.lane.b32.xlu1 %v4053_v4, %s3889_s17  ;;  %v9898_v31 = vsel %vm4715_vm8, %v9897_v50, %v4766_v58  ;;  %v9900_v58 = vsel %vm4715_vm8, %v4535_v61, %v4792_v45  ;;  %v9901_v50 = vsel %vm4715_vm8, %v4548_v42, %v4821_v59  ;;  %v9903_v42 = vsel %vm4715_vm8, %v4560_v33, %v4825_v60  ;;  %v9905_v33 = vld [vmem:[#allocation21_spill] sm:$0xff] }
 0x11b   :  { %v522_v0 = vpop.permute.xlu0 %521  ;;  %v524_v57 = vpop.permute.xlu1 %523 }
 0x11c   :  { %v562_v51 = vsel %vm557_vm9, %v522_v0, %v524_v57 }
 0x11d   :  { %687 = vrot.lane.b32.xlu0 %v4064_v8, %s3889_s17  ;;  %v5098_v15 = vsel %vm1469_vm5, %v9896_v36, %v562_v51  ;;  %v5106_v52 = vsel %vm1469_vm5, %v9898_v31, %v562_v51  ;;  %v9899_v36 = vsel %vm4715_vm8, %v4527_v6, %v4792_v45 }
 0x11e   :  { %689 = vrot.lane.b32.xlu1 %v4067_v9, %s3889_s17 }
 0x11f   :  { %v5110_v0 = vpop.permute.xlu0 %525  ;;  %v528_v40 = vpop.permute.xlu1 %527 }
 0x120   :  { %v563_v17 = vsel %vm557_vm9, %v524_v57, %v5110_v0 }
 0x121   :  { %v5120_v11 = vsel %vm1469_vm5, %v9899_v36, %v563_v17  ;;  %v5128_v31 = vsel %vm1469_vm5, %v9900_v58, %v563_v17  ;;  %691 = vrot.lane.b32.xlu0 %v4080_v18, %s3889_s17  ;;  %v9902_v17 = vsel %vm4715_vm8, %v4556_v10, %v4821_v59  ;;  %v9904_v10 = vsel %vm4715_vm8, %v4568_v43, %v4825_v60  ;;  %v9909_v60 = vld [vmem:[#allocation45_spill] sm:$0xff] }
 0x122   :  { %693 = vrot.lane.b32.xlu1 %v4083_v19, %s3889_s17 }
 0x123   :  { %v530_v57 = vpop.permute.xlu0 %529  ;;  %v5135_v51 = vpop.permute.xlu1 %531 }
 0x124   :  { %v564_v6 = vsel %vm557_vm9, %v528_v40, %v530_v57  ;;  %v565_v40 = vsel %vm557_vm9, %v530_v57, %v5135_v51 }
 0x125   :  { %v5143_v61 = vsel %vm1469_vm5, %v9901_v50, %v564_v6  ;;  %v5151_v45 = vsel %vm1469_vm5, %v9902_v17, %v564_v6  ;;  %695 = vrot.lane.b32.xlu0 %v4090_v26, %s3889_s17  ;;  %v5163_v36 = vsel %vm1469_vm5, %v9903_v42, %v565_v40  ;;  %v5171_v59 = vsel %vm1469_vm5, %v9904_v10, %v565_v40  ;;  %v9906_v50 = vld [vmem:[#allocation44_spill] sm:$0xff] }
 0x126   :  { %697 = vrot.lane.b32.xlu1 %v4093_v28, %s3889_s17  ;;  %v9907_v17 = vsel %vm4715_vm8, %v9906_v50, %v4852_v56  ;;  %v9910_v40 = vsel %vm4715_vm8, %v9909_v60, %v4852_v56  ;;  %v9912_v56 = vsel %vm4715_vm8, %v4605_v35, %v4878_v5  ;;  %v9914_v60 = vld [vmem:[#allocation4_spill] sm:$0xff]  ;;  %v9915_v35 = vsel %vm4715_vm8, %v4618_v14, %v4905_v62 }
 0x127   :  { %v534_v58 = vpop.permute.xlu0 %533  ;;  %v536_v57 = vpop.permute.xlu1 %535  ;;  %v9917_v14 = vsel %vm4715_vm8, %v4630_v25, %v4919_v22  ;;  %v9919_v25 = vld [vmem:[#allocation47_spill] sm:$0xff] }
 0x128   :  { %v566_v6 = vsel %vm557_vm9, %v534_v58, %v536_v57 }
 0x129   :  { %699 = vrot.lane.b32.xlu0 %v9905_v33, %s3889_s17  ;;  %v5184_v43 = vsel %vm1469_vm5, %v9907_v17, %v566_v6  ;;  %v5192_v42 = vsel %vm1469_vm5, %v9910_v40, %v566_v6  ;;  %v9911_v17 = vsel %vm4715_vm8, %v9869_v53, %v4878_v5 }
 0x12a   :  { %9908 = vst [vmem:[#allocation42_spill] sm:$0xff] %v5184_v43  ;;  %701 = vrot.lane.b32.xlu1 %v4103_v37, %s3889_s17 }
 0x12b   :  { %v5196_v10 = vpop.permute.xlu0 %537  ;;  %v540_v50 = vpop.permute.xlu1 %539 }
 0x12c   :  { %v567_v58 = vsel %vm557_vm9, %v536_v57, %v5196_v10  ;;  %v9913_v57 = vld [vmem:[#allocation2_spill] sm:$0xff] }
 0x12d   :  { %v5206_v43 = vsel %vm1469_vm5, %v9911_v17, %v567_v58  ;;  %v5214_v6 = vsel %vm1469_vm5, %v9912_v56, %v567_v58  ;;  %720 = vrot.lane.b32.xlu0 %v9913_v57, %s3890_s18  ;;  %v9916_v58 = vsel %vm4715_vm8, %v4626_v16, %v4905_v62  ;;  %v9918_v16 = vsel %vm4715_vm8, %v4638_v47, %v4919_v22 }
 0x12e   :  { %722 = vrot.lane.b32.xlu1 %v9914_v60, %s3890_s18  ;;  %v9922_v47 = vsel %vm4715_vm8, %v4655_v27, %v4938_v7  ;;  %v9925_v27 = vsel %vm4715_vm8, %v4675_v48, %v4964_v2  ;;  %v9927_v48 = vsel %vm4715_vm8, %v4688_v20, %v4991_v32  ;;  %v9929_v20 = vsel %vm4715_vm8, %v4700_v24, %v5005_v41 }
 0x12f   :  { %v542_v40 = vpop.permute.xlu0 %541  ;;  %v5221_v17 = vpop.permute.xlu1 %543 }
 0x130   :  { %v568_v53 = vsel %vm557_vm9, %v540_v50, %v542_v40  ;;  %v569_v50 = vsel %vm557_vm9, %v542_v40, %v5221_v17 }
 0x131   :  { %v5229_v5 = vsel %vm1469_vm5, %v9915_v35, %v568_v53  ;;  %v5237_v56 = vsel %vm1469_vm5, %v9916_v58, %v568_v53  ;;  %724 = vrot.lane.b32.xlu0 %v3939_v21, %s3890_s18  ;;  %v5249_v35 = vsel %vm1469_vm5, %v9917_v14, %v569_v50  ;;  %v5257_v62 = vsel %vm1469_vm5, %v9918_v16, %v569_v50  ;;  %v9923_v16 = vld [vmem:[#allocation7_spill] sm:$0xff] }
 0x132   :  { %726 = vrot.lane.b32.xlu1 %v3967_v30, %s3890_s18  ;;  %v9920_v14 = vsel %vm4715_vm8, %v9919_v25, %v4938_v7 }
 0x133   :  { %v546_v40 = vpop.permute.xlu0 %545  ;;  %v548_v53 = vpop.permute.xlu1 %547 }
 0x134   :  { %v570_v58 = vsel %vm557_vm9, %v546_v40, %v548_v53 }
 0x135   :  { %728 = vrot.lane.b32.xlu0 %v3984_v39, %s3890_s18  ;;  %v5270_v22 = vsel %vm1469_vm5, %v9920_v14, %v570_v58  ;;  %v5278_v50 = vsel %vm1469_vm5, %v9922_v47, %v570_v58  ;;  %v9924_v14 = vsel %vm4715_vm8, %v9877_v23, %v4964_v2  ;;  %v9928_v2 = vsel %vm4715_vm8, %v4696_v34, %v4991_v32 }
 0x136   :  { %9921 = vst [vmem:[#allocation43_spill] sm:$0xff] %v5270_v22  ;;  %730 = vrot.lane.b32.xlu1 %v9923_v16, %s3890_s18  ;;  %v9930_v34 = vsel %vm4715_vm8, %v4708_v12, %v5005_v41 }
 0x137   :  { %v5282_v40 = vpop.permute.xlu0 %549 }
 0x138   :  { %v571_v39 = vsel %vm557_vm9, %v548_v53, %v5282_v40  ;;  %v552_v25 = vpop.permute.xlu1 %551  ;;  %v9926_v53 = vld [vmem:[#allocation3_spill] sm:$0xff] }
 0x139   :  { %v5292_v22 = vsel %vm1469_vm5, %v9924_v14, %v571_v39  ;;  %v5300_v7 = vsel %vm1469_vm5, %v9925_v27, %v571_v39  ;;  %732 = vrot.lane.b32.xlu0 %v3964_v29, %s3890_s18 }
 0x13a   :  { %734 = vrot.lane.b32.xlu1 %v9926_v53, %s3890_s18 }
 0x13b   :  { %v554_v58 = vpop.permute.xlu0 %553 }
 0x13c   :  { %v572_v23 = vsel %vm557_vm9, %v552_v25, %v554_v58  ;;  %v5307_v47 = vpop.permute.xlu1 %555 }
 0x13d   :  { %v5315_v39 = vsel %vm1469_vm5, %v9927_v48, %v572_v23  ;;  %v5323_v14 = vsel %vm1469_vm5, %v9928_v2, %v572_v23  ;;  %v573_v25 = vsel %vm557_vm9, %v554_v58, %v5307_v47  ;;  %736 = vrot.lane.b32.xlu0 %v4008_v49, %s3890_s18  ;;  %v9931_v58 = vld [vmem:[#allocation8_spill] sm:$0xff]  ;;  %v9932_v48 = vmov 0 }
 0x13e   :  { %v5335_v27 = vsel %vm1469_vm5, %v9929_v20, %v573_v25  ;;  %v5343_v32 = vsel %vm1469_vm5, %v9930_v34, %v573_v25  ;;  %738 = vrot.lane.b32.xlu1 %v9931_v58, %s3890_s18  ;;  %v9933_v48 = vsel %vm5348_vm13, 4294967295, %v9932_v48  ;;  %v9936_v20 = vld [vmem:[#allocation9_spill] sm:$0xff]  ;;  %vm1722_vm9 = vsmask.f32 4352 }
 0x13f   :  { %v575_v23 = vpop.permute.xlu0 %574  ;;  %9934 = vst [vmem:[#allocation44_spill] sm:$0xff] %v9933_v48 }
 0x140   :  { %v577_v24 = vpop.permute.xlu1 %576 }
 0x141   :  { %v5353_v2 = vsel %vm622_vm12, %v575_v23, %v577_v24  ;;  %740 = vrot.lane.b32.xlu0 %v9936_v20, %s3890_s18 }
 0x142   :  { %9935 = vst [vmem:[#allocation45_spill] sm:$0xff] %v5353_v2  ;;  %742 = vrot.lane.b32.xlu1 %v4023_v55, %s3890_s18 }
 0x143   :  { %v5363_v12 = vpop.permute.xlu0 %578 }
 0x144   :  { %9937 = vst [vmem:[#allocation2_spill] sm:$0xff] %v5363_v12  ;;  %v5367_v25 = vsel %vm622_vm12, %v577_v24, %v5363_v12  ;;  %v581_v34 = vpop.permute.xlu1 %580  ;;  %v9943_v24 = vld [vmem:[#allocation57_spill] sm:$0xff] }
 0x145   :  { %9938 = vst [vmem:[#allocation47_spill] sm:$0xff] %v5367_v25  ;;  %744 = vrot.lane.b32.xlu0 %v4039_v63, %s3890_s18 }
 0x146   :  { %746 = vrot.lane.b32.xlu1 %v9889_v44, %s3890_s18 }
 0x147   :  { %v583_v41 = vpop.permute.xlu0 %582 }
 0x148   :  { %v5378_v55 = vsel %vm622_vm12, %v581_v34, %v583_v41  ;;  %v5380_v2 = vpop.permute.xlu1 %584 }
 0x149   :  { %9939 = vst [vmem:[#allocation3_spill] sm:$0xff] %v5378_v55  ;;  %9940 = vst [vmem:[#allocation8_spill] sm:$0xff] %v5380_v2  ;;  %v5388_v23 = vsel %vm622_vm12, %v583_v41, %v5380_v2  ;;  %748 = vrot.lane.b32.xlu0 %v4050_v3, %s3890_s18 }
 0x14a   :  { %9941 = vst [vmem:[#allocation66_spill] sm:$0xff] %v5388_v23  ;;  %750 = vrot.lane.b32.xlu1 %v4053_v4, %s3890_s18 }
 0x14b   :  { %v587_v12 = vpop.permute.xlu0 %586 }
 0x14c   :  { %v589_v44 = vpop.permute.xlu1 %588 }
 0x14d   :  { %v5399_v63 = vsel %vm622_vm12, %v587_v12, %v589_v44  ;;  %752 = vrot.lane.b32.xlu0 %v4064_v8, %s3890_s18  ;;  %v9942_v12 = vld [vmem:[#allocation56_spill] sm:$0xff] }
 0x14e   :  { %754 = vrot.lane.b32.xlu1 %v4067_v9, %s3890_s18  ;;  %v9944_v2 = vsel %vm4715_vm8, %v9942_v12, %v9943_v24  ;;  %v9948_v12 = vld [vmem:[#allocation58_spill] sm:$0xff] }
 0x14f   :  { %v5420_v8 = vsel %vm1469_vm5, %v9944_v2, %v5110_v0  ;;  %v5422_v4 = vpop.permute.xlu0 %590  ;;  %v9947_v2 = vld [vmem:[#allocation30_spill] sm:$0xff] }
 0x150   :  { %9945 = vst [vmem:[#allocation56_spill] sm:$0xff] %v5420_v8  ;;  %9946 = vst [vmem:[#allocation57_spill] sm:$0xff] %v5422_v4  ;;  %v5426_v41 = vsel %vm622_vm12, %v589_v44, %v5422_v4  ;;  %v593_v9 = vpop.permute.xlu1 %592  ;;  %v9949_v34 = vsel %vm4715_vm8, %v9947_v2, %v9948_v12  ;;  %v9954_v8 = vld [vmem:[#allocation59_spill] sm:$0xff] }
 0x151   :  { %756 = vrot.lane.b32.xlu0 %v4080_v18, %s3890_s18  ;;  %v5451_v24 = vsel %vm1469_vm5, %v9949_v34, %v5135_v51 }
 0x152   :  { %758 = vrot.lane.b32.xlu1 %v4083_v19, %s3890_s18  ;;  %9950 = vst [vmem:[#allocation30_spill] sm:$0xff] %v5451_v24  ;;  %v9952_v19 = vld [vmem:[#allocation42_spill] sm:$0xff] }
 0x153   :  { %v595_v44 = vpop.permute.xlu0 %594 }
 0x154   :  { %v5454_v4 = vsel %vm622_vm12, %v593_v9, %v595_v44  ;;  %v5456_v0 = vpop.permute.xlu1 %596 }
 0x155   :  { %9951 = vst [vmem:[#allocation58_spill] sm:$0xff] %v5456_v0  ;;  %v5468_v2 = vsel %vm622_vm12, %v595_v44, %v5456_v0  ;;  %760 = vrot.lane.b32.xlu0 %v4090_v26, %s3890_s18 }
 0x156   :  { %762 = vrot.lane.b32.xlu1 %v4093_v28, %s3890_s18 }
 0x157   :  { %v599_v44 = vpop.permute.xlu0 %598 }
 0x158   :  { %v601_v12 = vpop.permute.xlu1 %600 }
 0x159   :  { %v5487_v9 = vsel %vm622_vm12, %v599_v44, %v601_v12  ;;  %764 = vrot.lane.b32.xlu0 %v9905_v33, %s3890_s18  ;;  %v9953_v44 = vld [vmem:[#allocation31_spill] sm:$0xff] }
 0x15a   :  { %766 = vrot.lane.b32.xlu1 %v4103_v37, %s3890_s18  ;;  %v9955_v0 = vsel %vm4715_vm8, %v9953_v44, %v9954_v8  ;;  %v9959_v44 = vld [vmem:[#allocation32_spill] sm:$0xff] }
 0x15b   :  { %v5508_v24 = vsel %vm1469_vm5, %v9955_v0, %v5196_v10  ;;  %v5510_v33 = vpop.permute.xlu0 %602 }
 0x15c   :  { %9956 = vst [vmem:[#allocation42_spill] sm:$0xff] %v5508_v24  ;;  %9957 = vst [vmem:[#allocation31_spill] sm:$0xff] %v5510_v33  ;;  %v5514_v51 = vsel %vm622_vm12, %v601_v12, %v5510_v33  ;;  %v605_v37 = vpop.permute.xlu1 %604  ;;  %v9958_v12 = vld [vmem:[#allocation46_spill] sm:$0xff]  ;;  %v9964_v24 = vld [vmem:[#allocation43_spill] sm:$0xff] }
 0x15d   :  { %801 = vrot.lane.b32.xlu0 %v9913_v57, %s3891_s19  ;;  %v9960_v34 = vsel %vm4715_vm8, %v9958_v12, %v9959_v44 }
 0x15e   :  { %803 = vrot.lane.b32.xlu1 %v9914_v60, %s3891_s19  ;;  %v5539_v8 = vsel %vm1469_vm5, %v9960_v34, %v5221_v17  ;;  %v9963_v60 = vld [vmem:[#allocation6_spill] sm:$0xff] }
 0x15f   :  { %v607_v0 = vpop.permute.xlu0 %606  ;;  %9961 = vst [vmem:[#allocation59_spill] sm:$0xff] %v5539_v8 }
 0x160   :  { %v5542_v33 = vsel %vm622_vm12, %v605_v37, %v607_v0  ;;  %v5544_v10 = vpop.permute.xlu1 %608 }
 0x161   :  { %9962 = vst [vmem:[#allocation46_spill] sm:$0xff] %v5544_v10  ;;  %v5556_v12 = vsel %vm622_vm12, %v607_v0, %v5544_v10  ;;  %805 = vrot.lane.b32.xlu0 %v3939_v21, %s3891_s19  ;;  %v9966_v10 = vld [vmem:[#allocation60_spill] sm:$0xff] }
 0x162   :  { %807 = vrot.lane.b32.xlu1 %v3967_v30, %s3891_s19 }
 0x163   :  { %v611_v0 = vpop.permute.xlu0 %610 }
 0x164   :  { %v613_v44 = vpop.permute.xlu1 %612 }
 0x165   :  { %v5575_v37 = vsel %vm622_vm12, %v611_v0, %v613_v44  ;;  %809 = vrot.lane.b32.xlu0 %v9963_v60, %s3891_s19  ;;  %v9965_v0 = vld [vmem:[#allocation33_spill] sm:$0xff] }
 0x166   :  { %811 = vrot.lane.b32.xlu1 %v9923_v16, %s3891_s19  ;;  %v9967_v8 = vsel %vm4715_vm8, %v9965_v0, %v9966_v10  ;;  %v9971_v0 = vld [vmem:[#allocation34_spill] sm:$0xff] }
 0x167   :  { %v5596_v60 = vsel %vm1469_vm5, %v9967_v8, %v5282_v40  ;;  %v5598_v30 = vpop.permute.xlu0 %614 }
 0x168   :  { %9968 = vst [vmem:[#allocation32_spill] sm:$0xff] %v5596_v60  ;;  %9969 = vst [vmem:[#allocation43_spill] sm:$0xff] %v5598_v30  ;;  %v5602_v17 = vsel %vm622_vm12, %v613_v44, %v5598_v30  ;;  %v617_v16 = vpop.permute.xlu1 %616  ;;  %v9970_v44 = vld [vmem:[#allocation48_spill] sm:$0xff]  ;;  %v9978_v60 = vld [vmem:[#allocation10_spill] sm:$0xff] }
 0x169   :  { %813 = vrot.lane.b32.xlu0 %v3964_v29, %s3891_s19  ;;  %v9972_v34 = vsel %vm4715_vm8, %v9970_v44, %v9971_v0 }
 0x16a   :  { %815 = vrot.lane.b32.xlu1 %v9926_v53, %s3891_s19  ;;  %v5627_v10 = vsel %vm1469_vm5, %v9972_v34, %v5307_v47  ;;  %v9976_v47 = vld [vmem:[#allocation45_spill] sm:$0xff] }
 0x16b   :  { %v619_v8 = vpop.permute.xlu0 %618  ;;  %9973 = vst [vmem:[#allocation33_spill] sm:$0xff] %v5627_v10  ;;  %v9977_v1 = vsel %vm5348_vm13, %v5035_v46, %v9976_v47 }
 0x16c   :  { %v5630_v30 = vsel %vm622_vm12, %v617_v16, %v619_v8  ;;  %v5632_v40 = vpop.permute.xlu1 %620 }
 0x16d   :  { %9974 = vst [vmem:[#allocation60_spill] sm:$0xff] %v5632_v40  ;;  %v5644_v44 = vsel %vm622_vm12, %v619_v8, %v5632_v40  ;;  %817 = vrot.lane.b32.xlu0 %v4008_v49, %s3891_s19  ;;  %vm6626_vm12 = vmand %vm1721_vm7, %vm1722_vm9 }
 0x16e   :  { %819 = vrot.lane.b32.xlu1 %v9931_v58, %s3891_s19 }
 0x16f   :  { %v656_v8 = vpop.permute.xlu0 %655 }
 0x170   :  { %v658_v0 = vpop.permute.xlu1 %657 }
 0x171   :  { %v5663_v16 = vsel %vm703_vm14, %v656_v8, %v658_v0  ;;  %821 = vrot.lane.b32.xlu0 %v9936_v20, %s3891_s19  ;;  %v9981_v20 = vsel %vm5348_vm13, %v5052_v38, %v5367_v25  ;;  %v9986_v38 = vsel %vm5348_vm13, %v5070_v54, %v5378_v55  ;;  %v9990_v54 = vld [vmem:[#allocation14_spill] sm:$0xff]  ;;  %v9992_v55 = vsel %vm5348_vm13, %v5098_v15, %v5399_v63 }
 0x172   :  { %9975 = vst [vmem:[#allocation48_spill] sm:$0xff] %v5663_v16  ;;  %v5674_v34 = vsel %vm1553_vm10, %v9977_v1, %v5663_v16  ;;  %823 = vrot.lane.b32.xlu1 %v9978_v60, %s3891_s19  ;;  %v9982_v1 = vld [vmem:[#allocation12_spill] sm:$0xff]  ;;  %v9983_v16 = vld [vmem:[#allocation11_spill] sm:$0xff] }
 0x173   :  { %v5678_v40 = vpop.permute.xlu0 %659 }
 0x174   :  { %9979 = vst [vmem:[#allocation34_spill] sm:$0xff] %v5678_v40  ;;  %v5682_v8 = vsel %vm703_vm14, %v658_v0, %v5678_v40  ;;  %v662_v10 = vpop.permute.xlu1 %661 }
 0x175   :  { %9980 = vst [vmem:[#allocation10_spill] sm:$0xff] %v5682_v8  ;;  %v5691_v46 = vsel %vm1553_vm10, %v9981_v20, %v5682_v8  ;;  %825 = vrot.lane.b32.xlu0 %v9982_v1, %s3891_s19 }
 0x176   :  { %827 = vrot.lane.b32.xlu1 %v9983_v16, %s3891_s19 }
 0x177   :  { %v664_v47 = vpop.permute.xlu0 %663 }
 0x178   :  { %v5698_v0 = vsel %vm703_vm14, %v662_v10, %v664_v47  ;;  %v5700_v40 = vpop.permute.xlu1 %665  ;;  %v9988_v10 = vsel %vm5348_vm13, %v5085_v13, %v5388_v23 }
 0x179   :  { %9984 = vst [vmem:[#allocation67_spill] sm:$0xff] %v5698_v0  ;;  %9985 = vst [vmem:[#allocation68_spill] sm:$0xff] %v5700_v40  ;;  %v5709_v20 = vsel %vm1553_vm10, %v9986_v38, %v5698_v0  ;;  %v5713_v8 = vsel %vm703_vm14, %v664_v47, %v5700_v40  ;;  %829 = vrot.lane.b32.xlu0 %v4050_v3, %s3891_s19  ;;  %v9991_v40 = vld [vmem:[#allocation15_spill] sm:$0xff] }
 0x17a   :  { %9987 = vst [vmem:[#allocation69_spill] sm:$0xff] %v5713_v8  ;;  %v5724_v25 = vsel %vm1553_vm10, %v9988_v10, %v5713_v8  ;;  %831 = vrot.lane.b32.xlu1 %v9990_v54, %s3891_s19  ;;  %v9994_v10 = vsel %vm5348_vm13, %v5106_v52, %v5399_v63  ;;  %v9997_v63 = vsel %vm5348_vm13, %v5128_v31, %v5426_v41 }
 0x17b   :  { %9989 = vst [vmem:[#allocation70_spill] sm:$0xff] %v5724_v25  ;;  %v668_v38 = vpop.permute.xlu0 %667 }
 0x17c   :  { %v670_v0 = vpop.permute.xlu1 %669 }
 0x17d   :  { %v708_v47 = vsel %vm703_vm14, %v668_v38, %v670_v0  ;;  %833 = vrot.lane.b32.xlu0 %v9991_v40, %s3891_s19  ;;  %v9995_v38 = vld [vmem:[#allocation16_spill] sm:$0xff] }
 0x17e   :  { %v5737_v13 = vsel %vm1553_vm10, %v9992_v55, %v708_v47  ;;  %v5745_v8 = vsel %vm1553_vm10, %v9994_v10, %v708_v47  ;;  %835 = vrot.lane.b32.xlu1 %v9995_v38, %s3891_s19  ;;  %v9996_v55 = vsel %vm5348_vm13, %v5120_v11, %v5426_v41  ;;  %v10000_v41 = vsel %vm5348_vm13, %v5151_v45, %v5454_v4 }
 0x17f   :  { %9993 = vst [vmem:[#allocation71_spill] sm:$0xff] %v5737_v13  ;;  %v5749_v23 = vpop.permute.xlu0 %671 }
 0x180   :  { %v709_v40 = vsel %vm703_vm14, %v670_v0, %v5749_v23  ;;  %v674_v15 = vpop.permute.xlu1 %673  ;;  %v9998_v0 = vld [vmem:[#allocation18_spill] sm:$0xff] }
 0x181   :  { %v5759_v13 = vsel %vm1553_vm10, %v9996_v55, %v709_v40  ;;  %v5767_v52 = vsel %vm1553_vm10, %v9997_v63, %v709_v40  ;;  %837 = vrot.lane.b32.xlu0 %v4080_v18, %s3891_s19  ;;  %v9999_v55 = vsel %vm5348_vm13, %v5143_v61, %v5454_v4  ;;  %v10001_v61 = vsel %vm5348_vm13, %v5163_v36, %v5468_v2  ;;  %v10003_v36 = vld [vmem:[#allocation21_spill] sm:$0xff] }
 0x182   :  { %839 = vrot.lane.b32.xlu1 %v9998_v0, %s3891_s19  ;;  %v10002_v4 = vsel %vm5348_vm13, %v5171_v59, %v5468_v2  ;;  %v10006_v2 = vsel %vm5348_vm13, %v5192_v42, %v5487_v9  ;;  %v10009_v42 = vsel %vm5348_vm13, %v5214_v6, %v5514_v51  ;;  %v10011_v6 = vsel %vm5348_vm13, %v5229_v5, %v5542_v33 }
 0x183   :  { %v676_v47 = vpop.permute.xlu0 %675  ;;  %v10013_v5 = vsel %vm5348_vm13, %v5249_v35, %v5556_v12  ;;  %v10016_v35 = vld [vmem:[#allocation6_spill] sm:$0xff] }
 0x184   :  { %v710_v11 = vsel %vm703_vm14, %v674_v15, %v676_v47  ;;  %v5774_v10 = vpop.permute.xlu1 %677 }
 0x185   :  { %v5782_v31 = vsel %vm1553_vm10, %v9999_v55, %v710_v11  ;;  %v5790_v40 = vsel %vm1553_vm10, %v10000_v41, %v710_v11  ;;  %v711_v15 = vsel %vm703_vm14, %v676_v47, %v5774_v10  ;;  %841 = vrot.lane.b32.xlu0 %v4090_v26, %s3891_s19  ;;  %v10004_v41 = vsel %vm5348_vm13, %v9952_v19, %v5487_v9 }
 0x186   :  { %v5802_v63 = vsel %vm1553_vm10, %v10001_v61, %v711_v15  ;;  %v5810_v45 = vsel %vm1553_vm10, %v10002_v4, %v711_v15  ;;  %843 = vrot.lane.b32.xlu1 %v4093_v28, %s3891_s19  ;;  %v10007_v61 = vld [vmem:[#allocation22_spill] sm:$0xff] }
 0x187   :  { %v680_v47 = vpop.permute.xlu0 %679 }
 0x188   :  { %v682_v11 = vpop.permute.xlu1 %681 }
 0x189   :  { %v712_v55 = vsel %vm703_vm14, %v680_v47, %v682_v11  ;;  %845 = vrot.lane.b32.xlu0 %v10003_v36, %s3891_s19 }
 0x18a   :  { %v5823_v59 = vsel %vm1553_vm10, %v10004_v41, %v712_v55  ;;  %v5831_v15 = vsel %vm1553_vm10, %v10006_v2, %v712_v55  ;;  %847 = vrot.lane.b32.xlu1 %v10007_v61, %s3891_s19  ;;  %v10008_v41 = vsel %vm5348_vm13, %v5206_v43, %v5514_v51 }
 0x18b   :  { %10005 = vst [vmem:[#allocation72_spill] sm:$0xff] %v5823_v59  ;;  %v5835_v4 = vpop.permute.xlu0 %683 }
 0x18c   :  { %v713_v47 = vsel %vm703_vm14, %v682_v11, %v5835_v4  ;;  %v686_v19 = vpop.permute.xlu1 %685  ;;  %v10010_v11 = vld [vmem:[#allocation4_spill] sm:$0xff] }
 0x18d   :  { %v5845_v59 = vsel %vm1553_vm10, %v10008_v41, %v713_v47  ;;  %v5853_v9 = vsel %vm1553_vm10, %v10009_v42, %v713_v47  ;;  %866 = vrot.lane.b32.xlu0 %v9913_v57, %s3892_s20  ;;  %v10012_v47 = vsel %vm5348_vm13, %v5237_v56, %v5542_v33  ;;  %v10014_v33 = vsel %vm5348_vm13, %v5257_v62, %v5556_v12 }
 0x18e   :  { %868 = vrot.lane.b32.xlu1 %v10010_v11, %s3892_s20  ;;  %v10019_v12 = vsel %vm5348_vm13, %v5278_v50, %v5575_v37  ;;  %v10022_v50 = vsel %vm5348_vm13, %v5300_v7, %v5602_v17  ;;  %v10023_v7 = vsel %vm5348_vm13, %v5315_v39, %v5630_v30  ;;  %v10025_v39 = vsel %vm5348_vm13, %v5335_v27, %v5644_v44 }
 0x18f   :  { %v688_v55 = vpop.permute.xlu0 %687 }
 0x190   :  { %v714_v43 = vsel %vm703_vm14, %v686_v19, %v688_v55  ;;  %v5860_v2 = vpop.permute.xlu1 %689 }
 0x191   :  { %v5868_v51 = vsel %vm1553_vm10, %v10011_v6, %v714_v43  ;;  %v5876_v41 = vsel %vm1553_vm10, %v10012_v47, %v714_v43  ;;  %v715_v19 = vsel %vm703_vm14, %v688_v55, %v5860_v2  ;;  %870 = vrot.lane.b32.xlu0 %v3939_v21, %s3892_s20  ;;  %v10015_v55 = vld [vmem:[#allocation5_spill] sm:$0xff] }
 0x192   :  { %v5888_v42 = vsel %vm1553_vm10, %v10013_v5, %v715_v19  ;;  %v5896_v56 = vsel %vm1553_vm10, %v10014_v33, %v715_v19  ;;  %872 = vrot.lane.b32.xlu1 %v10015_v55, %s3892_s20  ;;  %v10017_v5 = vsel %vm5348_vm13, %v9964_v24, %v5575_v37  ;;  %v10020_v33 = vld [vmem:[#allocation7_spill] sm:$0xff] }
 0x193   :  { %v692_v43 = vpop.permute.xlu0 %691 }
 0x194   :  { %v694_v6 = vpop.permute.xlu1 %693 }
 0x195   :  { %v716_v47 = vsel %vm703_vm14, %v692_v43, %v694_v6  ;;  %874 = vrot.lane.b32.xlu0 %v10016_v35, %s3892_s20 }
 0x196   :  { %v5909_v62 = vsel %vm1553_vm10, %v10017_v5, %v716_v47  ;;  %v5917_v19 = vsel %vm1553_vm10, %v10019_v12, %v716_v47  ;;  %876 = vrot.lane.b32.xlu1 %v10020_v33, %s3892_s20  ;;  %v10021_v5 = vsel %vm5348_vm13, %v5292_v22, %v5602_v17 }
 0x197   :  { %10018 = vst [vmem:[#allocation73_spill] sm:$0xff] %v5909_v62  ;;  %v5921_v43 = vpop.permute.xlu0 %695 }
 0x198   :  { %v717_v35 = vsel %vm703_vm14, %v694_v6, %v5921_v43  ;;  %v698_v24 = vpop.permute.xlu1 %697 }
 0x199   :  { %v5931_v62 = vsel %vm1553_vm10, %v10021_v5, %v717_v35  ;;  %v5939_v37 = vsel %vm1553_vm10, %v10022_v50, %v717_v35  ;;  %878 = vrot.lane.b32.xlu0 %v3964_v29, %s3892_s20  ;;  %v10024_v35 = vsel %vm5348_vm13, %v5323_v14, %v5630_v30  ;;  %v10026_v30 = vsel %vm5348_vm13, %v5343_v32, %v5644_v44 }
 0x19a   :  { %880 = vrot.lane.b32.xlu1 %v9926_v53, %s3892_s20 }
 0x19b   :  { %v700_v6 = vpop.permute.xlu0 %699 }
 0x19c   :  { %v718_v22 = vsel %vm703_vm14, %v698_v24, %v700_v6  ;;  %v5946_v47 = vpop.permute.xlu1 %701 }
 0x19d   :  { %v5954_v17 = vsel %vm1553_vm10, %v10023_v7, %v718_v22  ;;  %v5962_v12 = vsel %vm1553_vm10, %v10024_v35, %v718_v22  ;;  %v719_v24 = vsel %vm703_vm14, %v700_v6, %v5946_v47  ;;  %882 = vrot.lane.b32.xlu0 %v4008_v49, %s3892_s20  ;;  %v10027_v6 = vmov 0  ;;  %v10031_v7 = vld [vmem:[#allocation9_spill] sm:$0xff] }
 0x19e   :  { %v5974_v5 = vsel %vm1553_vm10, %v10025_v39, %v719_v24  ;;  %v5982_v14 = vsel %vm1553_vm10, %v10026_v30, %v719_v24  ;;  %884 = vrot.lane.b32.xlu1 %v9931_v58, %s3892_s20  ;;  %v10028_v6 = vsel %vm5987_vm4, 4294967295, %v10027_v6  ;;  %vm995_vm14 = vcmask 965632  }
 0x19f   :  { %v721_v50 = vpop.permute.xlu0 %720  ;;  %10029 = vst [vmem:[#allocation74_spill] sm:$0xff] %v10028_v6 }
 0x1a0   :  { %v723_v27 = vpop.permute.xlu1 %722 }
 0x1a1   :  { %v5992_v22 = vsel %vm768_vm2, %v721_v50, %v723_v27  ;;  %886 = vrot.lane.b32.xlu0 %v10031_v7, %s3892_s20 }
 0x1a2   :  { %10030 = vst [vmem:[#allocation75_spill] sm:$0xff] %v5992_v22  ;;  %888 = vrot.lane.b32.xlu1 %v9978_v60, %s3892_s20 }
 0x1a3   :  { %v6002_v44 = vpop.permute.xlu0 %724 }
 0x1a4   :  { %10032 = vst [vmem:[#allocation9_spill] sm:$0xff] %v6002_v44  ;;  %v6006_v35 = vsel %vm768_vm2, %v723_v27, %v6002_v44  ;;  %v727_v24 = vpop.permute.xlu1 %726  ;;  %v10037_v27 = vld [vmem:[#allocation15_spill] sm:$0xff] }
 0x1a5   :  { %10033 = vst [vmem:[#allocation76_spill] sm:$0xff] %v6006_v35  ;;  %890 = vrot.lane.b32.xlu0 %v9982_v1, %s3892_s20 }
 0x1a6   :  { %892 = vrot.lane.b32.xlu1 %v9983_v16, %s3892_s20 }
 0x1a7   :  { %v729_v30 = vpop.permute.xlu0 %728 }
 0x1a8   :  { %v6017_v50 = vsel %vm768_vm2, %v727_v24, %v729_v30  ;;  %v6019_v32 = vpop.permute.xlu1 %730 }
 0x1a9   :  { %10034 = vst [vmem:[#allocation77_spill] sm:$0xff] %v6017_v50  ;;  %10035 = vst [vmem:[#allocation78_spill] sm:$0xff] %v6019_v32  ;;  %v6027_v39 = vsel %vm768_vm2, %v729_v30, %v6019_v32  ;;  %894 = vrot.lane.b32.xlu0 %v4050_v3, %s3892_s20  ;;  %v10038_v30 = vld [vmem:[#allocation71_spill] sm:$0xff] }
 0x1aa   :  { %10036 = vst [vmem:[#allocation79_spill] sm:$0xff] %v6027_v39  ;;  %896 = vrot.lane.b32.xlu1 %v9990_v54, %s3892_s20  ;;  %v10040_v54 = vld [vmem:[#allocation57_spill] sm:$0xff] }
 0x1ab   :  { %v733_v44 = vpop.permute.xlu0 %732 }
 0x1ac   :  { %v735_v16 = vpop.permute.xlu1 %734 }
 0x1ad   :  { %v6038_v1 = vsel %vm768_vm2, %v733_v44, %v735_v16  ;;  %898 = vrot.lane.b32.xlu0 %v10037_v27, %s3892_s20  ;;  %v10039_v44 = vld [vmem:[#allocation56_spill] sm:$0xff] }
 0x1ae   :  { %900 = vrot.lane.b32.xlu1 %v9995_v38, %s3892_s20  ;;  %v10041_v39 = vsel %vm5348_vm13, %v10039_v44, %v10040_v54  ;;  %v10045_v44 = vld [vmem:[#allocation58_spill] sm:$0xff] }
 0x1af   :  { %v6059_v27 = vsel %vm1553_vm10, %v10041_v39, %v5749_v23  ;;  %v6061_v25 = vpop.permute.xlu0 %736  ;;  %v10044_v39 = vld [vmem:[#allocation30_spill] sm:$0xff] }
 0x1b0   :  { %10042 = vst [vmem:[#allocation71_spill] sm:$0xff] %v6059_v27  ;;  %10043 = vst [vmem:[#allocation56_spill] sm:$0xff] %v6061_v25  ;;  %v6065_v32 = vsel %vm768_vm2, %v735_v16, %v6061_v25  ;;  %v739_v38 = vpop.permute.xlu1 %738  ;;  %v10046_v24 = vsel %vm5348_vm13, %v10044_v39, %v10045_v44  ;;  %v10051_v27 = vld [vmem:[#allocation31_spill] sm:$0xff] }
 0x1b1   :  { %902 = vrot.lane.b32.xlu0 %v4080_v18, %s3892_s20  ;;  %v6090_v54 = vsel %vm1553_vm10, %v10046_v24, %v5774_v10 }
 0x1b2   :  { %904 = vrot.lane.b32.xlu1 %v9998_v0, %s3892_s20  ;;  %10047 = vst [vmem:[#allocation57_spill] sm:$0xff] %v6090_v54  ;;  %v10049_v0 = vld [vmem:[#allocation72_spill] sm:$0xff] }
 0x1b3   :  { %v741_v16 = vpop.permute.xlu0 %740 }
 0x1b4   :  { %v6093_v25 = vsel %vm768_vm2, %v739_v38, %v741_v16  ;;  %v6095_v23 = vpop.permute.xlu1 %742 }
 0x1b5   :  { %10048 = vst [vmem:[#allocation30_spill] sm:$0xff] %v6095_v23  ;;  %v6107_v39 = vsel %vm768_vm2, %v741_v16, %v6095_v23  ;;  %906 = vrot.lane.b32.xlu0 %v4090_v26, %s3892_s20 }
 0x1b6   :  { %908 = vrot.lane.b32.xlu1 %v4093_v28, %s3892_s20 }
 0x1b7   :  { %v745_v16 = vpop.permute.xlu0 %744 }
 0x1b8   :  { %v747_v44 = vpop.permute.xlu1 %746 }
 0x1b9   :  { %v6126_v38 = vsel %vm768_vm2, %v745_v16, %v747_v44  ;;  %910 = vrot.lane.b32.xlu0 %v10003_v36, %s3892_s20  ;;  %v10050_v16 = vld [vmem:[#allocation42_spill] sm:$0xff] }
 0x1ba   :  { %912 = vrot.lane.b32.xlu1 %v10007_v61, %s3892_s20  ;;  %v10052_v23 = vsel %vm5348_vm13, %v10050_v16, %v10051_v27  ;;  %v10056_v16 = vld [vmem:[#allocation46_spill] sm:$0xff] }
 0x1bb   :  { %v6147_v54 = vsel %vm1553_vm10, %v10052_v23, %v5835_v4  ;;  %v6149_v36 = vpop.permute.xlu0 %748 }
 0x1bc   :  { %10053 = vst [vmem:[#allocation58_spill] sm:$0xff] %v6147_v54  ;;  %10054 = vst [vmem:[#allocation72_spill] sm:$0xff] %v6149_v36  ;;  %v6153_v10 = vsel %vm768_vm2, %v747_v44, %v6149_v36  ;;  %v751_v61 = vpop.permute.xlu1 %750  ;;  %v10055_v44 = vld [vmem:[#allocation59_spill] sm:$0xff]  ;;  %v10061_v54 = vld [vmem:[#allocation73_spill] sm:$0xff] }
 0x1bd   :  { %947 = vrot.lane.b32.xlu0 %v9913_v57, %s3893_s21  ;;  %v10057_v24 = vsel %vm5348_vm13, %v10055_v44, %v10056_v16 }
 0x1be   :  { %949 = vrot.lane.b32.xlu1 %v10010_v11, %s3893_s21  ;;  %v6178_v27 = vsel %vm1553_vm10, %v10057_v24, %v5860_v2  ;;  %v10060_v11 = vld [vmem:[#allocation6_spill] sm:$0xff] }
 0x1bf   :  { %v753_v23 = vpop.permute.xlu0 %752  ;;  %10058 = vst [vmem:[#allocation42_spill] sm:$0xff] %v6178_v27 }
 0x1c0   :  { %v6181_v36 = vsel %vm768_vm2, %v751_v61, %v753_v23  ;;  %v6183_v4 = vpop.permute.xlu1 %754 }
 0x1c1   :  { %10059 = vst [vmem:[#allocation31_spill] sm:$0xff] %v6183_v4  ;;  %v6195_v44 = vsel %vm768_vm2, %v753_v23, %v6183_v4  ;;  %951 = vrot.lane.b32.xlu0 %v3939_v21, %s3893_s21  ;;  %v10063_v4 = vld [vmem:[#allocation43_spill] sm:$0xff] }
 0x1c2   :  { %953 = vrot.lane.b32.xlu1 %v10015_v55, %s3893_s21 }
 0x1c3   :  { %v757_v23 = vpop.permute.xlu0 %756 }
 0x1c4   :  { %v759_v16 = vpop.permute.xlu1 %758 }
 0x1c5   :  { %v6214_v61 = vsel %vm768_vm2, %v757_v23, %v759_v16  ;;  %955 = vrot.lane.b32.xlu0 %v10060_v11, %s3893_s21  ;;  %v10062_v23 = vld [vmem:[#allocation32_spill] sm:$0xff] }
 0x1c6   :  { %957 = vrot.lane.b32.xlu1 %v10020_v33, %s3893_s21  ;;  %v10064_v27 = vsel %vm5348_vm13, %v10062_v23, %v10063_v4  ;;  %v10068_v23 = vld [vmem:[#allocation60_spill] sm:$0xff] }
 0x1c7   :  { %v6235_v11 = vsel %vm1553_vm10, %v10064_v27, %v5921_v43  ;;  %v6237_v55 = vpop.permute.xlu0 %760 }
 0x1c8   :  { %10065 = vst [vmem:[#allocation59_spill] sm:$0xff] %v6235_v11  ;;  %10066 = vst [vmem:[#allocation46_spill] sm:$0xff] %v6237_v55  ;;  %v6241_v2 = vsel %vm768_vm2, %v759_v16, %v6237_v55  ;;  %v763_v33 = vpop.permute.xlu1 %762  ;;  %v10067_v16 = vld [vmem:[#allocation33_spill] sm:$0xff] }
 0x1c9   :  { %959 = vrot.lane.b32.xlu0 %v3964_v29, %s3893_s21  ;;  %v10069_v24 = vsel %vm5348_vm13, %v10067_v16, %v10068_v23 }
 0x1ca   :  { %961 = vrot.lane.b32.xlu1 %v9926_v53, %s3893_s21  ;;  %v6266_v4 = vsel %vm1553_vm10, %v10069_v24, %v5946_v47  ;;  %v10073_v47 = vsel %vm5987_vm4, %v5674_v34, %v5992_v22 }
 0x1cb   :  { %v765_v27 = vpop.permute.xlu0 %764  ;;  %10070 = vst [vmem:[#allocation73_spill] sm:$0xff] %v6266_v4 }
 0x1cc   :  { %v6269_v55 = vsel %vm768_vm2, %v763_v33, %v765_v27  ;;  %v6271_v43 = vpop.permute.xlu1 %766 }
 0x1cd   :  { %10071 = vst [vmem:[#allocation32_spill] sm:$0xff] %v6271_v43  ;;  %v6283_v16 = vsel %vm768_vm2, %v765_v27, %v6271_v43  ;;  %963 = vrot.lane.b32.xlu0 %v4008_v49, %s3893_s21  ;;  %v10076_v43 = vsel %vm5987_vm4, %v5691_v46, %v6006_v35  ;;  %v10081_v46 = vsel %vm5987_vm4, %v5709_v20, %v6017_v50  ;;  %v10084_v35 = vld [vmem:[#allocation79_spill] sm:$0xff]  ;;  %v10087_v20 = vld [vmem:[#allocation14_spill] sm:$0xff]  ;;  %vm1806_vm2 = vsmask.f32 5376 }
 0x1ce   :  { %965 = vrot.lane.b32.xlu1 %v9931_v58, %s3893_s21  ;;  %v10089_v50 = vsel %vm5987_vm4, %v10038_v30, %v6038_v1  ;;  %vm7265_vm9 = vmand %vm1805_vm1, %vm1806_vm2  ;;  %vm1890_vm2 = vsmask.f32 6400 }
 0x1cf   :  { %v802_v27 = vpop.permute.xlu0 %801 }
 0x1d0   :  { %v804_v23 = vpop.permute.xlu1 %803 }
 0x1d1   :  { %v6302_v33 = vsel %vm849_vm6, %v802_v27, %v804_v23  ;;  %967 = vrot.lane.b32.xlu0 %v10031_v7, %s3893_s21 }
 0x1d2   :  { %10072 = vst [vmem:[#allocation43_spill] sm:$0xff] %v6302_v33  ;;  %v6313_v24 = vsel %vm1637_vm15, %v10073_v47, %v6302_v33  ;;  %969 = vrot.lane.b32.xlu1 %v9978_v60, %s3893_s21  ;;  %v10077_v47 = vld [vmem:[#allocation12_spill] sm:$0xff]  ;;  %v10078_v33 = vld [vmem:[#allocation11_spill] sm:$0xff] }
 0x1d3   :  { %v6317_v48 = vpop.permute.xlu0 %805 }
 0x1d4   :  { %10074 = vst [vmem:[#allocation33_spill] sm:$0xff] %v6317_v48  ;;  %v6321_v27 = vsel %vm849_vm6, %v804_v23, %v6317_v48  ;;  %v808_v11 = vpop.permute.xlu1 %807 }
 0x1d5   :  { %10075 = vst [vmem:[#allocation60_spill] sm:$0xff] %v6321_v27  ;;  %v6330_v34 = vsel %vm1637_vm15, %v10076_v43, %v6321_v27  ;;  %971 = vrot.lane.b32.xlu0 %v10077_v47, %s3893_s21 }
 0x1d6   :  { %973 = vrot.lane.b32.xlu1 %v10078_v33, %s3893_s21 }
 0x1d7   :  { %v810_v22 = vpop.permute.xlu0 %809 }
 0x1d8   :  { %v6337_v23 = vsel %vm849_vm6, %v808_v11, %v810_v22  ;;  %v6339_v48 = vpop.permute.xlu1 %811  ;;  %v10083_v11 = vld [vmem:[#allocation70_spill] sm:$0xff] }
 0x1d9   :  { %10079 = vst [vmem:[#allocation80_spill] sm:$0xff] %v6337_v23  ;;  %10080 = vst [vmem:[#allocation81_spill] sm:$0xff] %v6339_v48  ;;  %v6348_v43 = vsel %vm1637_vm15, %v10081_v46, %v6337_v23  ;;  %v6352_v27 = vsel %vm849_vm6, %v810_v22, %v6339_v48  ;;  %975 = vrot.lane.b32.xlu0 %v4050_v3, %s3893_s21  ;;  %v10085_v4 = vsel %vm5987_vm4, %v10083_v11, %v10084_v35  ;;  %v10088_v48 = vld [vmem:[#allocation15_spill] sm:$0xff] }
 0x1da   :  { %10082 = vst [vmem:[#allocation82_spill] sm:$0xff] %v6352_v27  ;;  %v6363_v33 = vsel %vm1637_vm15, %v10085_v4, %v6352_v27  ;;  %977 = vrot.lane.b32.xlu1 %v10087_v20, %s3893_s21  ;;  %v10091_v4 = vsel %vm5987_vm4, %v5745_v8, %v6038_v1  ;;  %v10094_v8 = vsel %vm5987_vm4, %v5767_v52, %v6065_v32 }
 0x1db   :  { %10086 = vst [vmem:[#allocation70_spill] sm:$0xff] %v6363_v33  ;;  %v814_v46 = vpop.permute.xlu0 %813 }
 0x1dc   :  { %v816_v23 = vpop.permute.xlu1 %815 }
 0x1dd   :  { %v854_v22 = vsel %vm849_vm6, %v814_v46, %v816_v23  ;;  %979 = vrot.lane.b32.xlu0 %v10088_v48, %s3893_s21  ;;  %v10092_v46 = vld [vmem:[#allocation16_spill] sm:$0xff] }
 0x1de   :  { %v6376_v11 = vsel %vm1637_vm15, %v10089_v50, %v854_v22  ;;  %v6384_v27 = vsel %vm1637_vm15, %v10091_v4, %v854_v22  ;;  %981 = vrot.lane.b32.xlu1 %v10092_v46, %s3893_s21  ;;  %v10093_v50 = vsel %vm5987_vm4, %v5759_v13, %v6065_v32 }
 0x1df   :  { %10090 = vst [vmem:[#allocation83_spill] sm:$0xff] %v6376_v11  ;;  %v6388_v35 = vpop.permute.xlu0 %817 }
 0x1e0   :  { %v855_v48 = vsel %vm849_vm6, %v816_v23, %v6388_v35  ;;  %v820_v30 = vpop.permute.xlu1 %819  ;;  %v10095_v23 = vld [vmem:[#allocation18_spill] sm:$0xff] }
 0x1e1   :  { %v6398_v11 = vsel %vm1637_vm15, %v10093_v50, %v855_v48  ;;  %v6406_v1 = vsel %vm1637_vm15, %v10094_v8, %v855_v48  ;;  %983 = vrot.lane.b32.xlu0 %v4080_v18, %s3893_s21  ;;  %v10096_v50 = vsel %vm5987_vm4, %v5782_v31, %v6093_v25  ;;  %v10097_v48 = vsel %vm5987_vm4, %v5790_v40, %v6093_v25 }
 0x1e2   :  { %985 = vrot.lane.b32.xlu1 %v10095_v23, %s3893_s21  ;;  %v10098_v31 = vsel %vm5987_vm4, %v5802_v63, %v6107_v39  ;;  %v10099_v25 = vsel %vm5987_vm4, %v5810_v45, %v6107_v39  ;;  %v10100_v63 = vld [vmem:[#allocation21_spill] sm:$0xff]  ;;  %v10103_v39 = vsel %vm5987_vm4, %v5831_v15, %v6126_v38  ;;  %v10106_v15 = vsel %vm5987_vm4, %v5853_v9, %v6153_v10 }
 0x1e3   :  { %v822_v22 = vpop.permute.xlu0 %821  ;;  %v10108_v9 = vsel %vm5987_vm4, %v5868_v51, %v6181_v36  ;;  %v10110_v51 = vsel %vm5987_vm4, %v5888_v42, %v6195_v44  ;;  %v10113_v42 = vld [vmem:[#allocation6_spill] sm:$0xff] }
 0x1e4   :  { %v856_v13 = vsel %vm849_vm6, %v820_v30, %v822_v22  ;;  %v6413_v4 = vpop.permute.xlu1 %823 }
 0x1e5   :  { %v6421_v52 = vsel %vm1637_vm15, %v10096_v50, %v856_v13  ;;  %v6429_v32 = vsel %vm1637_vm15, %v10097_v48, %v856_v13  ;;  %v857_v30 = vsel %vm849_vm6, %v822_v22, %v6413_v4  ;;  %987 = vrot.lane.b32.xlu0 %v4090_v26, %s3893_s21  ;;  %v10101_v48 = vsel %vm5987_vm4, %v10049_v0, %v6126_v38 }
 0x1e6   :  { %v6441_v8 = vsel %vm1637_vm15, %v10098_v31, %v857_v30  ;;  %v6449_v40 = vsel %vm1637_vm15, %v10099_v25, %v857_v30  ;;  %989 = vrot.lane.b32.xlu1 %v4093_v28, %s3893_s21  ;;  %v10104_v31 = vld [vmem:[#allocation22_spill] sm:$0xff] }
 0x1e7   :  { %v826_v22 = vpop.permute.xlu0 %825 }
 0x1e8   :  { %v828_v13 = vpop.permute.xlu1 %827 }
 0x1e9   :  { %v858_v50 = vsel %vm849_vm6, %v826_v22, %v828_v13  ;;  %991 = vrot.lane.b32.xlu0 %v10100_v63, %s3893_s21 }
 0x1ea   :  { %v6462_v45 = vsel %vm1637_vm15, %v10101_v48, %v858_v50  ;;  %v6470_v30 = vsel %vm1637_vm15, %v10103_v39, %v858_v50  ;;  %993 = vrot.lane.b32.xlu1 %v10104_v31, %s3893_s21  ;;  %v10105_v48 = vsel %vm5987_vm4, %v5845_v59, %v6153_v10 }
 0x1eb   :  { %10102 = vst [vmem:[#allocation84_spill] sm:$0xff] %v6462_v45  ;;  %v6474_v25 = vpop.permute.xlu0 %829 }
 0x1ec   :  { %v859_v22 = vsel %vm849_vm6, %v828_v13, %v6474_v25  ;;  %v832_v0 = vpop.permute.xlu1 %831  ;;  %v10107_v13 = vld [vmem:[#allocation4_spill] sm:$0xff] }
 0x1ed   :  { %v6484_v45 = vsel %vm1637_vm15, %v10105_v48, %v859_v22  ;;  %v6492_v38 = vsel %vm1637_vm15, %v10106_v15, %v859_v22  ;;  %1012 = vrot.lane.b32.xlu0 %v9913_v57, %s3894_s22  ;;  %v10109_v22 = vsel %vm5987_vm4, %v5876_v41, %v6181_v36  ;;  %v10111_v36 = vsel %vm5987_vm4, %v5896_v56, %v6195_v44 }
 0x1ee   :  { %1014 = vrot.lane.b32.xlu1 %v10107_v13, %s3894_s22  ;;  %v10116_v44 = vsel %vm5987_vm4, %v5917_v19, %v6214_v61  ;;  %v10119_v19 = vsel %vm5987_vm4, %v5939_v37, %v6241_v2  ;;  %v10120_v37 = vsel %vm5987_vm4, %v5954_v17, %v6269_v55  ;;  %v10122_v17 = vsel %vm5987_vm4, %v5974_v5, %v6283_v16 }
 0x1ef   :  { %v834_v50 = vpop.permute.xlu0 %833 }
 0x1f0   :  { %v860_v59 = vsel %vm849_vm6, %v832_v0, %v834_v50  ;;  %v6499_v39 = vpop.permute.xlu1 %835 }
 0x1f1   :  { %v6507_v10 = vsel %vm1637_vm15, %v10108_v9, %v860_v59  ;;  %v6515_v48 = vsel %vm1637_vm15, %v10109_v22, %v860_v59  ;;  %v861_v0 = vsel %vm849_vm6, %v834_v50, %v6499_v39  ;;  %1016 = vrot.lane.b32.xlu0 %v3939_v21, %s3894_s22  ;;  %v10112_v50 = vld [vmem:[#allocation5_spill] sm:$0xff] }
 0x1f2   :  { %v6527_v15 = vsel %vm1637_vm15, %v10110_v51, %v861_v0  ;;  %v6535_v41 = vsel %vm1637_vm15, %v10111_v36, %v861_v0  ;;  %1018 = vrot.lane.b32.xlu1 %v10112_v50, %s3894_s22  ;;  %v10114_v51 = vsel %vm5987_vm4, %v10061_v54, %v6214_v61  ;;  %v10117_v36 = vld [vmem:[#allocation7_spill] sm:$0xff] }
 0x1f3   :  { %v838_v59 = vpop.permute.xlu0 %837 }
 0x1f4   :  { %v840_v9 = vpop.permute.xlu1 %839 }
 0x1f5   :  { %v862_v22 = vsel %vm849_vm6, %v838_v59, %v840_v9  ;;  %1020 = vrot.lane.b32.xlu0 %v10113_v42, %s3894_s22 }
 0x1f6   :  { %v6548_v56 = vsel %vm1637_vm15, %v10114_v51, %v862_v22  ;;  %v6556_v0 = vsel %vm1637_vm15, %v10116_v44, %v862_v22  ;;  %1022 = vrot.lane.b32.xlu1 %v10117_v36, %s3894_s22  ;;  %v10118_v51 = vsel %vm5987_vm4, %v5931_v62, %v6241_v2 }
 0x1f7   :  { %10115 = vst [vmem:[#allocation85_spill] sm:$0xff] %v6548_v56  ;;  %v6560_v59 = vpop.permute.xlu0 %841 }
 0x1f8   :  { %v863_v42 = vsel %vm849_vm6, %v840_v9, %v6560_v59  ;;  %v844_v54 = vpop.permute.xlu1 %843 }
 0x1f9   :  { %v6570_v56 = vsel %vm1637_vm15, %v10118_v51, %v863_v42  ;;  %v6578_v61 = vsel %vm1637_vm15, %v10119_v19, %v863_v42  ;;  %1024 = vrot.lane.b32.xlu0 %v3964_v29, %s3894_s22  ;;  %v10121_v42 = vsel %vm5987_vm4, %v5962_v12, %v6269_v55  ;;  %v10123_v55 = vsel %vm5987_vm4, %v5982_v14, %v6283_v16 }
 0x1fa   :  { %1026 = vrot.lane.b32.xlu1 %v9926_v53, %s3894_s22 }
 0x1fb   :  { %v846_v9 = vpop.permute.xlu0 %845 }
 0x1fc   :  { %v864_v62 = vsel %vm849_vm6, %v844_v54, %v846_v9  ;;  %v6585_v22 = vpop.permute.xlu1 %847 }
 0x1fd   :  { %v6593_v2 = vsel %vm1637_vm15, %v10120_v37, %v864_v62  ;;  %v6601_v44 = vsel %vm1637_vm15, %v10121_v42, %v864_v62  ;;  %v865_v54 = vsel %vm849_vm6, %v846_v9, %v6585_v22  ;;  %1028 = vrot.lane.b32.xlu0 %v4008_v49, %s3894_s22  ;;  %vm1060_vm6 = vcmask 957440  }
 0x1fe   :  { %v6613_v51 = vsel %vm1637_vm15, %v10122_v17, %v865_v54  ;;  %v6621_v12 = vsel %vm1637_vm15, %v10123_v55, %v865_v54  ;;  %1030 = vrot.lane.b32.xlu1 %v9931_v58, %s3894_s22  ;;  %v10129_v17 = vld [vmem:[#allocation11_spill] sm:$0xff] }
 0x1ff   :  { %v867_v19 = vpop.permute.xlu0 %866 }
 0x200   :  { %v869_v5 = vpop.permute.xlu1 %868 }
 0x201   :  { %v6631_v62 = vsel %vm914_vm11, %v867_v19, %v869_v5  ;;  %1032 = vrot.lane.b32.xlu0 %v10031_v7, %s3894_s22 }
 0x202   :  { %10126 = vst [vmem:[#allocation86_spill] sm:$0xff] %v6631_v62  ;;  %1034 = vrot.lane.b32.xlu1 %v9978_v60, %s3894_s22 }
 0x203   :  { %v6641_v16 = vpop.permute.xlu0 %870 }
 0x204   :  { %10127 = vst [vmem:[#allocation87_spill] sm:$0xff] %v6641_v16  ;;  %v6645_v37 = vsel %vm914_vm11, %v869_v5, %v6641_v16  ;;  %v873_v42 = vpop.permute.xlu1 %872  ;;  %v10133_v5 = vld [vmem:[#allocation15_spill] sm:$0xff] }
 0x205   :  { %10128 = vst [vmem:[#allocation88_spill] sm:$0xff] %v6645_v37  ;;  %1036 = vrot.lane.b32.xlu0 %v10077_v47, %s3894_s22 }
 0x206   :  { %1038 = vrot.lane.b32.xlu1 %v10129_v17, %s3894_s22 }
 0x207   :  { %v875_v55 = vpop.permute.xlu0 %874 }
 0x208   :  { %v6656_v19 = vsel %vm914_vm11, %v873_v42, %v875_v55  ;;  %v6658_v14 = vpop.permute.xlu1 %876 }
 0x209   :  { %10130 = vst [vmem:[#allocation89_spill] sm:$0xff] %v6656_v19  ;;  %10131 = vst [vmem:[#allocation90_spill] sm:$0xff] %v6658_v14  ;;  %v6666_v54 = vsel %vm914_vm11, %v875_v55, %v6658_v14  ;;  %1040 = vrot.lane.b32.xlu0 %v4050_v3, %s3894_s22  ;;  %v10134_v55 = vld [vmem:[#allocation83_spill] sm:$0xff] }
 0x20a   :  { %10132 = vst [vmem:[#allocation91_spill] sm:$0xff] %v6666_v54  ;;  %1042 = vrot.lane.b32.xlu1 %v10087_v20, %s3894_s22  ;;  %v10136_v20 = vld [vmem:[#allocation56_spill] sm:$0xff] }
 0x20b   :  { %v879_v16 = vpop.permute.xlu0 %878 }
 0x20c   :  { %v881_v17 = vpop.permute.xlu1 %880 }
 0x20d   :  { %v6677_v47 = vsel %vm914_vm11, %v879_v16, %v881_v17  ;;  %1044 = vrot.lane.b32.xlu0 %v10133_v5, %s3894_s22  ;;  %v10135_v16 = vld [vmem:[#allocation71_spill] sm:$0xff] }
 0x20e   :  { %1046 = vrot.lane.b32.xlu1 %v10092_v46, %s3894_s22  ;;  %v10137_v54 = vsel %vm5987_vm4, %v10135_v16, %v10136_v20  ;;  %v10141_v16 = vld [vmem:[#allocation30_spill] sm:$0xff] }
 0x20f   :  { %v6698_v5 = vsel %vm1637_vm15, %v10137_v54, %v6388_v35  ;;  %v6700_v33 = vpop.permute.xlu0 %882 }
 0x210   :  { %10138 = vst [vmem:[#allocation83_spill] sm:$0xff] %v6698_v5  ;;  %10139 = vst [vmem:[#allocation71_spill] sm:$0xff] %v6700_v33  ;;  %v6704_v14 = vsel %vm914_vm11, %v881_v17, %v6700_v33  ;;  %v885_v46 = vpop.permute.xlu1 %884  ;;  %v10140_v17 = vld [vmem:[#allocation57_spill] sm:$0xff]  ;;  %v10147_v5 = vld [vmem:[#allocation72_spill] sm:$0xff] }
 0x211   :  { %1048 = vrot.lane.b32.xlu0 %v4080_v18, %s3894_s22  ;;  %v10142_v42 = vsel %vm5987_vm4, %v10140_v17, %v10141_v16 }
 0x212   :  { %1050 = vrot.lane.b32.xlu1 %v10095_v23, %s3894_s22  ;;  %v6729_v20 = vsel %vm1637_vm15, %v10142_v42, %v6413_v4  ;;  %v10145_v23 = vld [vmem:[#allocation84_spill] sm:$0xff] }
 0x213   :  { %v887_v54 = vpop.permute.xlu0 %886  ;;  %10143 = vst [vmem:[#allocation56_spill] sm:$0xff] %v6729_v20 }
 0x214   :  { %v6732_v33 = vsel %vm914_vm11, %v885_v46, %v887_v54  ;;  %v6734_v35 = vpop.permute.xlu1 %888 }
 0x215   :  { %10144 = vst [vmem:[#allocation57_spill] sm:$0xff] %v6734_v35  ;;  %v6746_v17 = vsel %vm914_vm11, %v887_v54, %v6734_v35  ;;  %1052 = vrot.lane.b32.xlu0 %v4090_v26, %s3894_s22 }
 0x216   :  { %1054 = vrot.lane.b32.xlu1 %v4093_v28, %s3894_s22 }
 0x217   :  { %v891_v54 = vpop.permute.xlu0 %890 }
 0x218   :  { %v893_v16 = vpop.permute.xlu1 %892 }
 0x219   :  { %v6765_v46 = vsel %vm914_vm11, %v891_v54, %v893_v16  ;;  %1056 = vrot.lane.b32.xlu0 %v10100_v63, %s3894_s22  ;;  %v10146_v54 = vld [vmem:[#allocation58_spill] sm:$0xff] }
 0x21a   :  { %1058 = vrot.lane.b32.xlu1 %v10104_v31, %s3894_s22  ;;  %v10148_v35 = vsel %vm5987_vm4, %v10146_v54, %v10147_v5  ;;  %v10152_v54 = vld [vmem:[#allocation31_spill] sm:$0xff] }
 0x21b   :  { %v6786_v20 = vsel %vm1637_vm15, %v10148_v35, %v6474_v25  ;;  %v6788_v63 = vpop.permute.xlu0 %894 }
 0x21c   :  { %10149 = vst [vmem:[#allocation30_spill] sm:$0xff] %v6786_v20  ;;  %10150 = vst [vmem:[#allocation84_spill] sm:$0xff] %v6788_v63  ;;  %v6792_v4 = vsel %vm914_vm11, %v893_v16, %v6788_v63  ;;  %v897_v31 = vpop.permute.xlu1 %896  ;;  %v10151_v16 = vld [vmem:[#allocation42_spill] sm:$0xff]  ;;  %v10157_v20 = vld [vmem:[#allocation85_spill] sm:$0xff] }
 0x21d   :  { %1093 = vrot.lane.b32.xlu0 %v9913_v57, %s3895_s23  ;;  %v10153_v42 = vsel %vm5987_vm4, %v10151_v16, %v10152_v54 }
 0x21e   :  { %1095 = vrot.lane.b32.xlu1 %v10107_v13, %s3895_s23  ;;  %v6817_v5 = vsel %vm1637_vm15, %v10153_v42, %v6499_v39  ;;  %v10156_v13 = vld [vmem:[#allocation6_spill] sm:$0xff] }
 0x21f   :  { %v899_v35 = vpop.permute.xlu0 %898  ;;  %10154 = vst [vmem:[#allocation58_spill] sm:$0xff] %v6817_v5 }
 0x220   :  { %v6820_v63 = vsel %vm914_vm11, %v897_v31, %v899_v35  ;;  %v6822_v25 = vpop.permute.xlu1 %900 }
 0x221   :  { %10155 = vst [vmem:[#allocation72_spill] sm:$0xff] %v6822_v25  ;;  %v6834_v16 = vsel %vm914_vm11, %v899_v35, %v6822_v25  ;;  %1097 = vrot.lane.b32.xlu0 %v3939_v21, %s3895_s23  ;;  %v10159_v25 = vld [vmem:[#allocation46_spill] sm:$0xff] }
 0x222   :  { %1099 = vrot.lane.b32.xlu1 %v10112_v50, %s3895_s23 }
 0x223   :  { %v903_v35 = vpop.permute.xlu0 %902 }
 0x224   :  { %v905_v54 = vpop.permute.xlu1 %904 }
 0x225   :  { %v6853_v31 = vsel %vm914_vm11, %v903_v35, %v905_v54  ;;  %1101 = vrot.lane.b32.xlu0 %v10156_v13, %s3895_s23  ;;  %v10158_v35 = vld [vmem:[#allocation59_spill] sm:$0xff] }
 0x226   :  { %1103 = vrot.lane.b32.xlu1 %v10117_v36, %s3895_s23  ;;  %v10160_v5 = vsel %vm5987_vm4, %v10158_v35, %v10159_v25  ;;  %v10164_v35 = vld [vmem:[#allocation32_spill] sm:$0xff] }
 0x227   :  { %v6874_v13 = vsel %vm1637_vm15, %v10160_v5, %v6560_v59  ;;  %v6876_v50 = vpop.permute.xlu0 %906 }
 0x228   :  { %10161 = vst [vmem:[#allocation42_spill] sm:$0xff] %v6874_v13  ;;  %10162 = vst [vmem:[#allocation31_spill] sm:$0xff] %v6876_v50  ;;  %v6880_v39 = vsel %vm914_vm11, %v905_v54, %v6876_v50  ;;  %v909_v36 = vpop.permute.xlu1 %908  ;;  %v10163_v54 = vld [vmem:[#allocation73_spill] sm:$0xff] }
 0x229   :  { %1105 = vrot.lane.b32.xlu0 %v3964_v29, %s3895_s23  ;;  %v10165_v42 = vsel %vm5987_vm4, %v10163_v54, %v10164_v35 }
 0x22a   :  { %1107 = vrot.lane.b32.xlu1 %v9926_v53, %s3895_s23  ;;  %v6905_v25 = vsel %vm1637_vm15, %v10165_v42, %v6585_v22  ;;  %v10169_v22 = vsel %vm6626_vm12, %v6313_v24, %v6631_v62 }
 0x22b   :  { %v911_v5 = vpop.permute.xlu0 %910  ;;  %10166 = vst [vmem:[#allocation85_spill] sm:$0xff] %v6905_v25 }
 0x22c   :  { %v6908_v50 = vsel %vm914_vm11, %v909_v36, %v911_v5  ;;  %v6910_v59 = vpop.permute.xlu1 %912 }
 0x22d   :  { %10167 = vst [vmem:[#allocation59_spill] sm:$0xff] %v6910_v59  ;;  %v6922_v54 = vsel %vm914_vm11, %v911_v5, %v6910_v59  ;;  %1109 = vrot.lane.b32.xlu0 %v4008_v49, %s3895_s23  ;;  %v10172_v59 = vsel %vm6626_vm12, %v6330_v34, %v6645_v37  ;;  %v10177_v34 = vsel %vm6626_vm12, %v6348_v43, %v6656_v19  ;;  %v10180_v37 = vld [vmem:[#allocation91_spill] sm:$0xff]  ;;  %v10182_v43 = vld [vmem:[#allocation14_spill] sm:$0xff]  ;;  %vm1141_vm11 = vcmask 949248  }
 0x22e   :  { %1111 = vrot.lane.b32.xlu1 %v9931_v58, %s3895_s23  ;;  %v10183_v19 = vld [vmem:[#allocation15_spill] sm:$0xff] }
 0x22f   :  { %v948_v5 = vpop.permute.xlu0 %947 }
 0x230   :  { %v950_v35 = vpop.permute.xlu1 %949 }
 0x231   :  { %v6941_v36 = vsel %vm995_vm14, %v948_v5, %v950_v35  ;;  %1113 = vrot.lane.b32.xlu0 %v10031_v7, %s3895_s23 }
 0x232   :  { %10168 = vst [vmem:[#allocation46_spill] sm:$0xff] %v6941_v36  ;;  %v6952_v42 = vsel %vm1721_vm7, %v10169_v22, %v6941_v36  ;;  %1115 = vrot.lane.b32.xlu1 %v9978_v60, %s3895_s23  ;;  %v10173_v22 = vld [vmem:[#allocation12_spill] sm:$0xff]  ;;  %v10174_v36 = vld [vmem:[#allocation11_spill] sm:$0xff] }
 0x233   :  { %v6956_v6 = vpop.permute.xlu0 %951 }
 0x234   :  { %10170 = vst [vmem:[#allocation73_spill] sm:$0xff] %v6956_v6  ;;  %v6960_v5 = vsel %vm995_vm14, %v950_v35, %v6956_v6  ;;  %v954_v13 = vpop.permute.xlu1 %953 }
 0x235   :  { %10171 = vst [vmem:[#allocation32_spill] sm:$0xff] %v6960_v5  ;;  %v6969_v24 = vsel %vm1721_vm7, %v10172_v59, %v6960_v5  ;;  %1117 = vrot.lane.b32.xlu0 %v10173_v22, %s3895_s23 }
 0x236   :  { %1119 = vrot.lane.b32.xlu1 %v10174_v36, %s3895_s23 }
 0x237   :  { %v956_v62 = vpop.permute.xlu0 %955 }
 0x238   :  { %v6976_v35 = vsel %vm995_vm14, %v954_v13, %v956_v62  ;;  %v6978_v6 = vpop.permute.xlu1 %957  ;;  %v10179_v13 = vld [vmem:[#allocation70_spill] sm:$0xff] }
 0x239   :  { %10175 = vst [vmem:[#allocation92_spill] sm:$0xff] %v6976_v35  ;;  %10176 = vst [vmem:[#allocation93_spill] sm:$0xff] %v6978_v6  ;;  %v6987_v59 = vsel %vm1721_vm7, %v10177_v34, %v6976_v35  ;;  %v6991_v5 = vsel %vm995_vm14, %v956_v62, %v6978_v6  ;;  %1121 = vrot.lane.b32.xlu0 %v4050_v3, %s3895_s23  ;;  %v10181_v25 = vsel %vm6626_vm12, %v10179_v13, %v10180_v37 }
 0x23a   :  { %10178 = vst [vmem:[#allocation94_spill] sm:$0xff] %v6991_v5  ;;  %v7002_v36 = vsel %vm1721_vm7, %v10181_v25, %v6991_v5  ;;  %1123 = vrot.lane.b32.xlu1 %v10182_v43, %s3895_s23  ;;  %v10184_v6 = vsel %vm6626_vm12, %v10134_v55, %v6677_v47  ;;  %v10186_v25 = vsel %vm6626_vm12, %v6384_v27, %v6677_v47 }
 0x23b   :  { %v960_v34 = vpop.permute.xlu0 %959  ;;  %v10190_v27 = vsel %vm6626_vm12, %v6406_v1, %v6704_v14 }
 0x23c   :  { %v962_v35 = vpop.permute.xlu1 %961 }
 0x23d   :  { %v1000_v62 = vsel %vm995_vm14, %v960_v34, %v962_v35  ;;  %1125 = vrot.lane.b32.xlu0 %v10183_v19, %s3895_s23  ;;  %v10188_v34 = vld [vmem:[#allocation16_spill] sm:$0xff] }
 0x23e   :  { %v7015_v13 = vsel %vm1721_vm7, %v10184_v6, %v1000_v62  ;;  %v7023_v5 = vsel %vm1721_vm7, %v10186_v25, %v1000_v62  ;;  %1127 = vrot.lane.b32.xlu1 %v10188_v34, %s3895_s23  ;;  %v10189_v6 = vsel %vm6626_vm12, %v6398_v11, %v6704_v14  ;;  %v10194_v14 = vsel %vm6626_vm12, %v6429_v32, %v6732_v33 }
 0x23f   :  { %10185 = vst [vmem:[#allocation70_spill] sm:$0xff] %v7015_v13  ;;  %10187 = vst [vmem:[#allocation95_spill] sm:$0xff] %v7023_v5  ;;  %v7027_v37 = vpop.permute.xlu0 %963 }
 0x240   :  { %v1001_v19 = vsel %vm995_vm14, %v962_v35, %v7027_v37  ;;  %v966_v55 = vpop.permute.xlu1 %965  ;;  %v10192_v35 = vld [vmem:[#allocation18_spill] sm:$0xff] }
 0x241   :  { %v7037_v13 = vsel %vm1721_vm7, %v10189_v6, %v1001_v19  ;;  %v7045_v47 = vsel %vm1721_vm7, %v10190_v27, %v1001_v19  ;;  %1129 = vrot.lane.b32.xlu0 %v4080_v18, %s3895_s23  ;;  %v10193_v6 = vsel %vm6626_vm12, %v6421_v52, %v6732_v33  ;;  %v10195_v52 = vsel %vm6626_vm12, %v6441_v8, %v6746_v17  ;;  %v10197_v8 = vld [vmem:[#allocation21_spill] sm:$0xff] }
 0x242   :  { %10191 = vst [vmem:[#allocation96_spill] sm:$0xff] %v7045_v47  ;;  %1131 = vrot.lane.b32.xlu1 %v10192_v35, %s3895_s23  ;;  %v10196_v33 = vsel %vm6626_vm12, %v6449_v40, %v6746_v17  ;;  %v10199_v17 = vsel %vm6626_vm12, %v6470_v30, %v6765_v46  ;;  %v10202_v30 = vsel %vm6626_vm12, %v6492_v38, %v6792_v4  ;;  %v10240_v47 = vld [vmem:[#allocation84_spill] sm:$0xff] }
 0x243   :  { %v968_v62 = vpop.permute.xlu0 %967  ;;  %v10204_v38 = vsel %vm6626_vm12, %v6507_v10, %v6820_v63  ;;  %v10206_v10 = vsel %vm6626_vm12, %v6527_v15, %v6834_v16  ;;  %v10209_v15 = vld [vmem:[#allocation6_spill] sm:$0xff] }
 0x244   :  { %v1002_v11 = vsel %vm995_vm14, %v966_v55, %v968_v62  ;;  %v7052_v25 = vpop.permute.xlu1 %969 }
 0x245   :  { %v7060_v1 = vsel %vm1721_vm7, %v10193_v6, %v1002_v11  ;;  %v7068_v19 = vsel %vm1721_vm7, %v10194_v14, %v1002_v11  ;;  %v1003_v55 = vsel %vm995_vm14, %v968_v62, %v7052_v25  ;;  %1133 = vrot.lane.b32.xlu0 %v4090_v26, %s3895_s23  ;;  %v10198_v14 = vsel %vm6626_vm12, %v10145_v23, %v6765_v46 }
 0x246   :  { %v7080_v27 = vsel %vm1721_vm7, %v10195_v52, %v1003_v55  ;;  %v7088_v32 = vsel %vm1721_vm7, %v10196_v33, %v1003_v55  ;;  %1135 = vrot.lane.b32.xlu1 %v4093_v28, %s3895_s23  ;;  %v10200_v52 = vld [vmem:[#allocation22_spill] sm:$0xff] }
 0x247   :  { %v972_v62 = vpop.permute.xlu0 %971 }
 0x248   :  { %v974_v11 = vpop.permute.xlu1 %973 }
 0x249   :  { %v1004_v6 = vsel %vm995_vm14, %v972_v62, %v974_v11  ;;  %1137 = vrot.lane.b32.xlu0 %v10197_v8, %s3895_s23 }
 0x24a   :  { %v7101_v40 = vsel %vm1721_vm7, %v10198_v14, %v1004_v6  ;;  %v7109_v55 = vsel %vm1721_vm7, %v10199_v17, %v1004_v6  ;;  %1139 = vrot.lane.b32.xlu1 %v10200_v52, %s3895_s23  ;;  %v10201_v14 = vsel %vm6626_vm12, %v6484_v45, %v6792_v4 }
 0x24b   :  { %v7113_v33 = vpop.permute.xlu0 %975 }
 0x24c   :  { %v1005_v62 = vsel %vm995_vm14, %v974_v11, %v7113_v33  ;;  %v978_v23 = vpop.permute.xlu1 %977  ;;  %v10203_v11 = vld [vmem:[#allocation4_spill] sm:$0xff] }
 0x24d   :  { %v7123_v8 = vsel %vm1721_vm7, %v10201_v14, %v1005_v62  ;;  %v7131_v46 = vsel %vm1721_vm7, %v10202_v30, %v1005_v62  ;;  %1158 = vrot.lane.b32.xlu0 %v9913_v57, %s3896_s24  ;;  %v10205_v62 = vsel %vm6626_vm12, %v6515_v48, %v6820_v63  ;;  %v10207_v63 = vsel %vm6626_vm12, %v6535_v41, %v6834_v16 }
 0x24e   :  { %1160 = vrot.lane.b32.xlu1 %v10203_v11, %s3896_s24  ;;  %v10211_v16 = vsel %vm6626_vm12, %v6556_v0, %v6853_v31  ;;  %v10214_v0 = vsel %vm6626_vm12, %v6578_v61, %v6880_v39  ;;  %v10215_v61 = vsel %vm6626_vm12, %v6593_v2, %v6908_v50  ;;  %v10217_v2 = vsel %vm6626_vm12, %v6613_v51, %v6922_v54 }
 0x24f   :  { %v980_v6 = vpop.permute.xlu0 %979 }
 0x250   :  { %v1006_v45 = vsel %vm995_vm14, %v978_v23, %v980_v6  ;;  %v7138_v17 = vpop.permute.xlu1 %981 }
 0x251   :  { %v7146_v4 = vsel %vm1721_vm7, %v10204_v38, %v1006_v45  ;;  %v7154_v14 = vsel %vm1721_vm7, %v10205_v62, %v1006_v45  ;;  %v1007_v23 = vsel %vm995_vm14, %v980_v6, %v7138_v17  ;;  %1162 = vrot.lane.b32.xlu0 %v3939_v21, %s3896_s24  ;;  %v10208_v6 = vld [vmem:[#allocation5_spill] sm:$0xff] }
 0x252   :  { %v7166_v30 = vsel %vm1721_vm7, %v10206_v10, %v1007_v23  ;;  %v7174_v48 = vsel %vm1721_vm7, %v10207_v63, %v1007_v23  ;;  %1164 = vrot.lane.b32.xlu1 %v10208_v6, %s3896_s24  ;;  %v10210_v10 = vsel %vm6626_vm12, %v10157_v20, %v6853_v31  ;;  %v10212_v63 = vld [vmem:[#allocation7_spill] sm:$0xff] }
 0x253   :  { %v984_v45 = vpop.permute.xlu0 %983 }
 0x254   :  { %v986_v38 = vpop.permute.xlu1 %985 }
 0x255   :  { %v1008_v62 = vsel %vm995_vm14, %v984_v45, %v986_v38  ;;  %1166 = vrot.lane.b32.xlu0 %v10209_v15, %s3896_s24 }
 0x256   :  { %v7187_v41 = vsel %vm1721_vm7, %v10210_v10, %v1008_v62  ;;  %v7195_v23 = vsel %vm1721_vm7, %v10211_v16, %v1008_v62  ;;  %1168 = vrot.lane.b32.xlu1 %v10212_v63, %s3896_s24  ;;  %v10213_v10 = vsel %vm6626_vm12, %v6570_v56, %v6880_v39 }
 0x257   :  { %v7199_v45 = vpop.permute.xlu0 %987 }
 0x258   :  { %v1009_v52 = vsel %vm995_vm14, %v986_v38, %v7199_v45  ;;  %v990_v20 = vpop.permute.xlu1 %989 }
 0x259   :  { %v7209_v28 = vsel %vm1721_vm7, %v10213_v10, %v1009_v52  ;;  %v7217_v31 = vsel %vm1721_vm7, %v10214_v0, %v1009_v52  ;;  %1170 = vrot.lane.b32.xlu0 %v3964_v29, %s3896_s24  ;;  %v10216_v52 = vsel %vm6626_vm12, %v6601_v44, %v6908_v50  ;;  %v10218_v50 = vsel %vm6626_vm12, %v6621_v12, %v6922_v54 }
 0x25a   :  { %1172 = vrot.lane.b32.xlu1 %v9926_v53, %s3896_s24 }
 0x25b   :  { %v992_v38 = vpop.permute.xlu0 %991 }
 0x25c   :  { %v1010_v56 = vsel %vm995_vm14, %v990_v20, %v992_v38  ;;  %v7224_v62 = vpop.permute.xlu1 %993 }
 0x25d   :  { %v7232_v39 = vsel %vm1721_vm7, %v10215_v61, %v1010_v56  ;;  %v7240_v16 = vsel %vm1721_vm7, %v10216_v52, %v1010_v56  ;;  %v1011_v20 = vsel %vm995_vm14, %v992_v38, %v7224_v62  ;;  %1174 = vrot.lane.b32.xlu0 %v4008_v49, %s3896_s24  ;;  %vm1889_vm14 = vcmask 1046528  }
 0x25e   :  { %v7252_v10 = vsel %vm1721_vm7, %v10217_v2, %v1011_v20  ;;  %v7260_v44 = vsel %vm1721_vm7, %v10218_v50, %v1011_v20  ;;  %1176 = vrot.lane.b32.xlu1 %v9931_v58, %s3896_s24  ;;  %v10223_v2 = vld [vmem:[#allocation11_spill] sm:$0xff] }
 0x25f   :  { %v1013_v0 = vpop.permute.xlu0 %1012 }
 0x260   :  { %v1015_v51 = vpop.permute.xlu1 %1014 }
 0x261   :  { %v7270_v56 = vsel %vm1060_vm6, %v1013_v0, %v1015_v51  ;;  %1178 = vrot.lane.b32.xlu0 %v10031_v7, %s3896_s24 }
 0x262   :  { %10221 = vst [vmem:[#allocation5_spill] sm:$0xff] %v7270_v56  ;;  %1180 = vrot.lane.b32.xlu1 %v9978_v60, %s3896_s24 }
 0x263   :  { %v7280_v54 = vpop.permute.xlu0 %1016 }
 0x264   :  { %10222 = vst [vmem:[#allocation7_spill] sm:$0xff] %v7280_v54  ;;  %v7284_v61 = vsel %vm1060_vm6, %v1015_v51, %v7280_v54  ;;  %v1019_v52 = vpop.permute.xlu1 %1018  ;;  %v10227_v51 = vld [vmem:[#allocation15_spill] sm:$0xff] }
 0x265   :  { %1182 = vrot.lane.b32.xlu0 %v10173_v22, %s3896_s24 }
 0x266   :  { %1184 = vrot.lane.b32.xlu1 %v10223_v2, %s3896_s24 }
 0x267   :  { %v1021_v50 = vpop.permute.xlu0 %1020 }
 0x268   :  { %v7295_v0 = vsel %vm1060_vm6, %v1019_v52, %v1021_v50  ;;  %v7297_v12 = vpop.permute.xlu1 %1022 }
 0x269   :  { %10224 = vst [vmem:[#allocation97_spill] sm:$0xff] %v7295_v0  ;;  %10225 = vst [vmem:[#allocation98_spill] sm:$0xff] %v7297_v12  ;;  %v7305_v20 = vsel %vm1060_vm6, %v1021_v50, %v7297_v12  ;;  %1186 = vrot.lane.b32.xlu0 %v4050_v3, %s3896_s24  ;;  %v10228_v50 = vld [vmem:[#allocation70_spill] sm:$0xff] }
 0x26a   :  { %10226 = vst [vmem:[#allocation99_spill] sm:$0xff] %v7305_v20  ;;  %1188 = vrot.lane.b32.xlu1 %v10182_v43, %s3896_s24  ;;  %v10230_v43 = vld [vmem:[#allocation71_spill] sm:$0xff] }
 0x26b   :  { %v1025_v22 = vpop.permute.xlu0 %1024 }
 0x26c   :  { %v1027_v2 = vpop.permute.xlu1 %1026 }
 0x26d   :  { %v7316_v54 = vsel %vm1060_vm6, %v1025_v22, %v1027_v2  ;;  %1190 = vrot.lane.b32.xlu0 %v10227_v51, %s3896_s24  ;;  %v10229_v22 = vld [vmem:[#allocation83_spill] sm:$0xff] }
 0x26e   :  { %1241 = vrot.lane.b32.xlu1 %v10203_v11, %s3897_s25  ;;  %v10231_v51 = vsel %vm6626_vm12, %v10229_v22, %v10230_v43  ;;  %v10235_v22 = vld [vmem:[#allocation57_spill] sm:$0xff] }
 0x26f   :  { %v7337_v12 = vsel %vm1721_vm7, %v10231_v51, %v7027_v37  ;;  %v7339_v20 = vpop.permute.xlu0 %1028  ;;  %v10234_v51 = vld [vmem:[#allocation56_spill] sm:$0xff] }
 0x270   :  { %10232 = vst [vmem:[#allocation70_spill] sm:$0xff] %v7337_v12  ;;  %10233 = vst [vmem:[#allocation83_spill] sm:$0xff] %v7339_v20  ;;  %v7343_v3 = vsel %vm1060_vm6, %v1027_v2, %v7339_v20  ;;  %v1031_v5 = vpop.permute.xlu1 %1030  ;;  %v10236_v52 = vsel %vm6626_vm12, %v10234_v51, %v10235_v22 }
 0x271   :  { %1243 = vrot.lane.b32.xlu0 %v3939_v21, %s3897_s25  ;;  %v7368_v43 = vsel %vm1721_vm7, %v10236_v52, %v7052_v25 }
 0x272   :  { %1247 = vrot.lane.b32.xlu1 %v10209_v15, %s3897_s25  ;;  %10237 = vst [vmem:[#allocation71_spill] sm:$0xff] %v7368_v43 }
 0x273   :  { %v1033_v2 = vpop.permute.xlu0 %1032 }
 0x274   :  { %v7371_v20 = vsel %vm1060_vm6, %v1031_v5, %v1033_v2  ;;  %v7373_v37 = vpop.permute.xlu1 %1034 }
 0x275   :  { %10238 = vst [vmem:[#allocation56_spill] sm:$0xff] %v7373_v37  ;;  %v7385_v51 = vsel %vm1060_vm6, %v1033_v2, %v7373_v37  ;;  %1249 = vrot.lane.b32.xlu0 %v10212_v63, %s3897_s25 }
 0x276   :  { %1239 = vrot.lane.b32.xlu1 %v9913_v57, %s3897_s25 }
 0x277   :  { %v1037_v2 = vpop.permute.xlu0 %1036 }
 0x278   :  { %v1039_v22 = vpop.permute.xlu1 %1038 }
 0x279   :  { %v7404_v5 = vsel %vm1060_vm6, %v1037_v2, %v1039_v22  ;;  %1245 = vrot.lane.b32.xlu0 %v10208_v6, %s3897_s25  ;;  %v10239_v2 = vld [vmem:[#allocation30_spill] sm:$0xff] }
 0x27a   :  { %1306 = vrot.lane.b32.xlu1 %v10203_v11, %s3898_s26  ;;  %v10241_v12 = vsel %vm6626_vm12, %v10239_v2, %v10240_v47  ;;  %v10245_v2 = vld [vmem:[#allocation72_spill] sm:$0xff] }
 0x27b   :  { %v7425_v37 = vsel %vm1721_vm7, %v10241_v12, %v7113_v33  ;;  %v7427_v43 = vpop.permute.xlu0 %1040 }
 0x27c   :  { %10242 = vst [vmem:[#allocation57_spill] sm:$0xff] %v7425_v37  ;;  %10243 = vst [vmem:[#allocation30_spill] sm:$0xff] %v7427_v43  ;;  %v7431_v25 = vsel %vm1060_vm6, %v1039_v22, %v7427_v43  ;;  %v1043_v11 = vpop.permute.xlu1 %1042  ;;  %v10244_v22 = vld [vmem:[#allocation58_spill] sm:$0xff] }
 0x27d   :  { %1308 = vrot.lane.b32.xlu0 %v3939_v21, %s3898_s26  ;;  %v10246_v52 = vsel %vm6626_vm12, %v10244_v22, %v10245_v2 }
 0x27e   :  { %1312 = vrot.lane.b32.xlu1 %v10209_v15, %s3898_s26  ;;  %v7456_v47 = vsel %vm1721_vm7, %v10246_v52, %v7138_v17  ;;  %v10250_v15 = vld [vmem:[#allocation31_spill] sm:$0xff] }
 0x27f   :  { %v1045_v12 = vpop.permute.xlu0 %1044  ;;  %10247 = vst [vmem:[#allocation84_spill] sm:$0xff] %v7456_v47 }
 0x280   :  { %v7459_v43 = vsel %vm1060_vm6, %v1043_v11, %v1045_v12  ;;  %v7461_v33 = vpop.permute.xlu1 %1046 }
 0x281   :  { %10248 = vst [vmem:[#allocation58_spill] sm:$0xff] %v7461_v33  ;;  %v7473_v22 = vsel %vm1060_vm6, %v1045_v12, %v7461_v33  ;;  %1314 = vrot.lane.b32.xlu0 %v10212_v63, %s3898_s26 }
 0x282   :  { %1304 = vrot.lane.b32.xlu1 %v9913_v57, %s3898_s26 }
 0x283   :  { %v1049_v12 = vpop.permute.xlu0 %1048 }
 0x284   :  { %v1051_v2 = vpop.permute.xlu1 %1050 }
 0x285   :  { %v7492_v11 = vsel %vm1060_vm6, %v1049_v12, %v1051_v2  ;;  %1310 = vrot.lane.b32.xlu0 %v10208_v6, %s3898_s26  ;;  %v10249_v12 = vld [vmem:[#allocation42_spill] sm:$0xff] }
 0x286   :  { %1192 = vrot.lane.b32.xlu1 %v10188_v34, %s3896_s24  ;;  %v10251_v37 = vsel %vm6626_vm12, %v10249_v12, %v10250_v15  ;;  %v10255_v12 = vld [vmem:[#allocation59_spill] sm:$0xff] }
 0x287   :  { %v7513_v33 = vsel %vm1721_vm7, %v10251_v37, %v7199_v45  ;;  %v7515_v47 = vpop.permute.xlu0 %1052 }
 0x288   :  { %10252 = vst [vmem:[#allocation72_spill] sm:$0xff] %v7513_v33  ;;  %10253 = vst [vmem:[#allocation42_spill] sm:$0xff] %v7515_v47  ;;  %v7519_v17 = vsel %vm1060_vm6, %v1051_v2, %v7515_v47  ;;  %v1055_v34 = vpop.permute.xlu1 %1054  ;;  %v10254_v2 = vld [vmem:[#allocation85_spill] sm:$0xff] }
 0x289   :  { %1194 = vrot.lane.b32.xlu0 %v4080_v18, %s3896_s24  ;;  %v10256_v52 = vsel %vm6626_vm12, %v10254_v2, %v10255_v12 }
 0x28a   :  { %1196 = vrot.lane.b32.xlu1 %v10192_v35, %s3896_s24  ;;  %v7544_v15 = vsel %vm1721_vm7, %v10256_v52, %v7224_v62  ;;  %v10260_v62 = vsel %vm7265_vm9, %v6952_v42, %v7270_v56 }
 0x28b   :  { %v1057_v37 = vpop.permute.xlu0 %1056  ;;  %10257 = vst [vmem:[#allocation31_spill] sm:$0xff] %v7544_v15 }
 0x28c   :  { %v7547_v47 = vsel %vm1060_vm6, %v1055_v34, %v1057_v37  ;;  %v7549_v45 = vpop.permute.xlu1 %1058 }
 0x28d   :  { %10258 = vst [vmem:[#allocation85_spill] sm:$0xff] %v7549_v45  ;;  %v7561_v2 = vsel %vm1060_vm6, %v1057_v37, %v7549_v45  ;;  %1198 = vrot.lane.b32.xlu0 %v4090_v26, %s3896_s24  ;;  %v10261_v45 = vsel %vm7265_vm9, %v6969_v24, %v7284_v61  ;;  %v10263_v24 = vsel %vm7265_vm9, %v6987_v59, %v7295_v0  ;;  %vm1206_vm6 = vcmask 941056  }
 0x28e   :  { %1253 = vrot.lane.b32.xlu1 %v9926_v53, %s3897_s25 }
 0x28f   :  { %v1094_v37 = vpop.permute.xlu0 %1093 }
 0x290   :  { %v1096_v12 = vpop.permute.xlu1 %1095 }
 0x291   :  { %v7580_v34 = vsel %vm1141_vm11, %v1094_v37, %v1096_v12  ;;  %1255 = vrot.lane.b32.xlu0 %v4008_v49, %s3897_s25 }
 0x292   :  { %10259 = vst [vmem:[#allocation59_spill] sm:$0xff] %v7580_v34  ;;  %v7591_v52 = vsel %vm1805_vm1, %v10260_v62, %v7580_v34  ;;  %1259 = vrot.lane.b32.xlu1 %v10031_v7, %s3897_s25 }
 0x293   :  { %v7595_v18 = vpop.permute.xlu0 %1097 }
 0x294   :  { %v7599_v37 = vsel %vm1141_vm11, %v1096_v12, %v7595_v18  ;;  %v1100_v33 = vpop.permute.xlu1 %1099 }
 0x295   :  { %v7608_v42 = vsel %vm1805_vm1, %v10261_v45, %v7599_v37  ;;  %1261 = vrot.lane.b32.xlu0 %v9978_v60, %s3897_s25 }
 0x296   :  { %1251 = vrot.lane.b32.xlu1 %v3964_v29, %s3897_s25 }
 0x297   :  { %v1102_v62 = vpop.permute.xlu0 %1101 }
 0x298   :  { %v7615_v12 = vsel %vm1141_vm11, %v1100_v33, %v1102_v62  ;;  %v7617_v15 = vpop.permute.xlu1 %1103  ;;  %v10264_v33 = vld [vmem:[#allocation99_spill] sm:$0xff] }
 0x299   :  { %10262 = vst [vmem:[#allocation100_spill] sm:$0xff] %v7615_v12  ;;  %v7626_v45 = vsel %vm1805_vm1, %v10263_v24, %v7615_v12  ;;  %v7630_v26 = vsel %vm1141_vm11, %v1102_v62, %v7617_v15  ;;  %1257 = vrot.lane.b32.xlu0 %v9931_v58, %s3897_s25  ;;  %v10265_v35 = vsel %vm7265_vm9, %v7002_v36, %v10264_v33 }
 0x29a   :  { %v7641_v34 = vsel %vm1805_vm1, %v10265_v35, %v7630_v26  ;;  %1318 = vrot.lane.b32.xlu1 %v9926_v53, %s3898_s26  ;;  %v10266_v12 = vsel %vm7265_vm9, %v10228_v50, %v7316_v54  ;;  %v10267_v35 = vld [vmem:[#allocation95_spill] sm:$0xff] }
 0x29b   :  { %v1106_v59 = vpop.permute.xlu0 %1105  ;;  %v10268_v53 = vsel %vm7265_vm9, %v10267_v35, %v7316_v54  ;;  %v10271_v54 = vld [vmem:[#allocation96_spill] sm:$0xff] }
 0x29c   :  { %v1108_v24 = vpop.permute.xlu1 %1107 }
 0x29d   :  { %v1146_v62 = vsel %vm1141_vm11, %v1106_v59, %v1108_v24  ;;  %1320 = vrot.lane.b32.xlu0 %v4008_v49, %s3898_s26 }
 0x29e   :  { %v7654_v36 = vsel %vm1805_vm1, %v10266_v12, %v1146_v62  ;;  %v7662_v0 = vsel %vm1805_vm1, %v10268_v53, %v1146_v62  ;;  %1324 = vrot.lane.b32.xlu1 %v10031_v7, %s3898_s26  ;;  %v10270_v12 = vsel %vm7265_vm9, %v7037_v13, %v7343_v3  ;;  %v10272_v62 = vsel %vm7265_vm9, %v10271_v54, %v7343_v3 }
 0x29f   :  { %10269 = vst [vmem:[#allocation99_spill] sm:$0xff] %v7662_v0  ;;  %v7666_v49 = vpop.permute.xlu0 %1109  ;;  %v10273_v53 = vsel %vm7265_vm9, %v7060_v1, %v7371_v20  ;;  %v10276_v1 = vsel %vm7265_vm9, %v7080_v27, %v7385_v51  ;;  %v10279_v27 = vld [vmem:[#allocation21_spill] sm:$0xff]  ;;  %v10379_v0 = vld [vmem:[#allocation7_spill] sm:$0xff] }
 0x2a0   :  { %v1147_v59 = vsel %vm1141_vm11, %v1108_v24, %v7666_v49  ;;  %v1112_v50 = vpop.permute.xlu1 %1111 }
 0x2a1   :  { %v7676_v56 = vsel %vm1805_vm1, %v10270_v12, %v1147_v59  ;;  %v7684_v7 = vsel %vm1805_vm1, %v10272_v62, %v1147_v59  ;;  %1326 = vrot.lane.b32.xlu0 %v9978_v60, %s3898_s26  ;;  %v10274_v60 = vsel %vm7265_vm9, %v7068_v19, %v7371_v20  ;;  %v10277_v19 = vsel %vm7265_vm9, %v7088_v32, %v7385_v51  ;;  %v10278_v12 = vld [vmem:[#allocation20_spill] sm:$0xff] }
 0x2a2   :  { %1316 = vrot.lane.b32.xlu1 %v3964_v29, %s3898_s26  ;;  %v10282_v51 = vsel %vm7265_vm9, %v7109_v55, %v7404_v5  ;;  %v10287_v55 = vsel %vm7265_vm9, %v7131_v46, %v7431_v25  ;;  %v10292_v46 = vsel %vm7265_vm9, %v7154_v14, %v7459_v43 }
 0x2a3   :  { %v1114_v24 = vpop.permute.xlu0 %1113 }
 0x2a4   :  { %v1148_v13 = vsel %vm1141_vm11, %v1112_v50, %v1114_v24  ;;  %v7691_v35 = vpop.permute.xlu1 %1115 }
 0x2a5   :  { %v7699_v3 = vsel %vm1805_vm1, %v10273_v53, %v1148_v13  ;;  %v7707_v29 = vsel %vm1805_vm1, %v10274_v60, %v1148_v13  ;;  %v1149_v59 = vsel %vm1141_vm11, %v1114_v24, %v7691_v35  ;;  %1322 = vrot.lane.b32.xlu0 %v9931_v58, %s3898_s26  ;;  %v10280_v24 = vsel %vm7265_vm9, %v7101_v40, %v7404_v5 }
 0x2a6   :  { %10275 = vst [vmem:[#allocation95_spill] sm:$0xff] %v7707_v29  ;;  %v7719_v50 = vsel %vm1805_vm1, %v10276_v1, %v1149_v59  ;;  %v7727_v20 = vsel %vm1805_vm1, %v10277_v19, %v1149_v59  ;;  %1200 = vrot.lane.b32.xlu1 %v10278_v12, %s3896_s24  ;;  %v10285_v40 = vsel %vm7265_vm9, %v7123_v8, %v7431_v25  ;;  %v10331_v12 = vld [vmem:[#allocation39_spill] sm:$0xff]  ;;  %v10369_v29 = vld [vmem:[#allocation33_spill] sm:$0xff] }
 0x2a7   :  { %v1118_v58 = vpop.permute.xlu0 %1117  ;;  %v10290_v8 = vsel %vm7265_vm9, %v7146_v4, %v7459_v43 }
 0x2a8   :  { %v1120_v54 = vpop.permute.xlu1 %1119 }
 0x2a9   :  { %v1150_v62 = vsel %vm1141_vm11, %v1118_v58, %v1120_v54  ;;  %1202 = vrot.lane.b32.xlu0 %v10279_v27, %s3896_s24  ;;  %v10363_v27 = vld [vmem:[#allocation9_spill] sm:$0xff] }
 0x2aa   :  { %v7740_v32 = vsel %vm1805_vm1, %v10280_v24, %v1150_v62  ;;  %v7748_v13 = vsel %vm1805_vm1, %v10282_v51, %v1150_v62  ;;  %v10294_v51 = vsel %vm7265_vm9, %v7166_v30, %v7473_v22  ;;  %v10297_v30 = vsel %vm7265_vm9, %v7187_v41, %v7492_v11 }
 0x2ab   :  { %10281 = vst [vmem:[#allocation96_spill] sm:$0xff] %v7740_v32  ;;  %10283 = vst [vmem:[#allocation101_spill] sm:$0xff] %v7748_v13  ;;  %v7750_v53 = vpop.permute.xlu0 %1121  ;;  %v10301_v41 = vsel %vm7265_vm9, %v7209_v28, %v7519_v17  ;;  %v10305_v28 = vsel %vm7265_vm9, %v7232_v39, %v7547_v47  ;;  %v10320_v13 = vld [vmem:[#allocation26_spill] sm:$0xff]  ;;  %v10330_v32 = vld [vmem:[#allocation41_spill] sm:$0xff] }
 0x2ac   :  { %10284 = vst [vmem:[#allocation102_spill] sm:$0xff] %v7750_v53  ;;  %v1151_v60 = vsel %vm1141_vm11, %v1120_v54, %v7750_v53  ;;  %v1124_v59 = vpop.permute.xlu1 %1123 }
 0x2ad   :  { %v7760_v1 = vsel %vm1805_vm1, %v10285_v40, %v1151_v60  ;;  %v7768_v5 = vsel %vm1805_vm1, %v10287_v55, %v1151_v60  ;;  %v10295_v60 = vsel %vm7265_vm9, %v7174_v48, %v7473_v22  ;;  %v10298_v48 = vsel %vm7265_vm9, %v7195_v23, %v7492_v11 }
 0x2ae   :  { %10286 = vst [vmem:[#allocation103_spill] sm:$0xff] %v7760_v1  ;;  %10288 = vst [vmem:[#allocation104_spill] sm:$0xff] %v7768_v5  ;;  %v10302_v23 = vsel %vm7265_vm9, %v7217_v31, %v7519_v17  ;;  %v10306_v31 = vsel %vm7265_vm9, %v7240_v16, %v7547_v47  ;;  %v10327_v5 = vld [vmem:[#allocation38_spill] sm:$0xff] }
 0x2af   :  { %v1126_v19 = vpop.permute.xlu0 %1125 }
 0x2b0   :  { %v1152_v58 = vsel %vm1141_vm11, %v1124_v59, %v1126_v19  ;;  %v7771_v54 = vpop.permute.xlu1 %1127 }
 0x2b1   :  { %10289 = vst [vmem:[#allocation105_spill] sm:$0xff] %v7771_v54  ;;  %v7779_v62 = vsel %vm1805_vm1, %v10290_v8, %v1152_v58  ;;  %v7787_v25 = vsel %vm1805_vm1, %v10292_v46, %v1152_v58  ;;  %v1153_v24 = vsel %vm1141_vm11, %v1126_v19, %v7771_v54  ;;  %v10321_v54 = vld [vmem:[#allocation4_spill] sm:$0xff] }
 0x2b2   :  { %10291 = vst [vmem:[#allocation106_spill] sm:$0xff] %v7779_v62  ;;  %10293 = vst [vmem:[#allocation107_spill] sm:$0xff] %v7787_v25  ;;  %v7797_v4 = vsel %vm1805_vm1, %v10294_v51, %v1153_v24  ;;  %v7805_v14 = vsel %vm1805_vm1, %v10295_v60, %v1153_v24 }
 0x2b3   :  { %10296 = vst [vmem:[#allocation108_spill] sm:$0xff] %v7805_v14  ;;  %v1130_v43 = vpop.permute.xlu0 %1129  ;;  %v10322_v14 = vld [vmem:[#allocation28_spill] sm:$0xff] }
 0x2b4   :  { %v1132_v59 = vpop.permute.xlu1 %1131 }
 0x2b5   :  { %v1154_v40 = vsel %vm1141_vm11, %v1130_v43, %v1132_v59 }
 0x2b6   :  { %v7814_v55 = vsel %vm1805_vm1, %v10297_v30, %v1154_v40  ;;  %v7822_v22 = vsel %vm1805_vm1, %v10298_v48, %v1154_v40  ;;  %v10308_v40 = vsel %vm7265_vm9, %v7252_v10, %v7561_v2  ;;  %v10310_v30 = vsel %vm7265_vm9, %v7260_v44, %v7561_v2 }
 0x2b7   :  { %10299 = vst [vmem:[#allocation109_spill] sm:$0xff] %v7822_v22  ;;  %v7824_v19 = vpop.permute.xlu0 %1133 }
 0x2b8   :  { %10300 = vst [vmem:[#allocation110_spill] sm:$0xff] %v7824_v19  ;;  %v1155_v58 = vsel %vm1141_vm11, %v1132_v59, %v7824_v19  ;;  %v1136_v8 = vpop.permute.xlu1 %1135  ;;  %v10316_v19 = vld [vmem:[#allocation23_spill] sm:$0xff] }
 0x2b9   :  { %v7834_v46 = vsel %vm1805_vm1, %v10301_v41, %v1155_v58  ;;  %v7842_v11 = vsel %vm1805_vm1, %v10302_v23, %v1155_v58 }
 0x2ba   :  { %10303 = vst [vmem:[#allocation111_spill] sm:$0xff] %v7842_v11  ;;  %v2082_v11 = vsel %vm4160_vm3, %v3939_v21, %v10316_v19  ;;  %v2083_v21 = vsel %vm4160_vm3, %v10208_v6, %v10322_v14  ;;  %v10323_v19 = vld [vmem:[#allocation27_spill] sm:$0xff]  ;;  %v10328_v14 = vld [vmem:[#allocation37_spill] sm:$0xff] }
 0x2bb   :  { %v1138_v24 = vpop.permute.xlu0 %1137 }
 0x2bc   :  { %v1156_v51 = vsel %vm1141_vm11, %v1136_v8, %v1138_v24  ;;  %v7845_v60 = vpop.permute.xlu1 %1139 }
 0x2bd   :  { %10304 = vst [vmem:[#allocation112_spill] sm:$0xff] %v7845_v60  ;;  %v7853_v43 = vsel %vm1805_vm1, %v10305_v28, %v1156_v51  ;;  %v7861_v17 = vsel %vm1805_vm1, %v10306_v31, %v1156_v51  ;;  %v1157_v59 = vsel %vm1141_vm11, %v1138_v24, %v7845_v60  ;;  %vm7882_vm11 = vmand %vm1889_vm14, %vm1890_vm2  ;;  %vm2985_vm2 = vcmask 785408  }
 0x2be   :  { %10307 = vst [vmem:[#allocation113_spill] sm:$0xff] %v7861_v17  ;;  %v7871_v39 = vsel %vm1805_vm1, %v10308_v40, %v1157_v59  ;;  %v7879_v16 = vsel %vm1805_vm1, %v10310_v30, %v1157_v59 }
 0x2bf   :  { %10309 = vst [vmem:[#allocation114_spill] sm:$0xff] %v7871_v39  ;;  %10311 = vst [vmem:[#allocation115_spill] sm:$0xff] %v7879_v16  ;;  %v1159_v47 = vpop.permute.xlu0 %1158  ;;  %v10318_v39 = vld [vmem:[#allocation25_spill] sm:$0xff]  ;;  %v2081_v16 = vsel %vm4160_vm3, %v10321_v54, %v10320_v13  ;;  %v10326_v54 = vld [vmem:[#allocation35_spill] sm:$0xff] }
 0x2c0   :  { %v1161_v58 = vpop.permute.xlu1 %1160  ;;  %v2080_v40 = vsel %vm4160_vm3, %v9913_v57, %v10318_v39  ;;  %v2085_v57 = vsel %vm4160_vm3, %v10212_v63, %v10323_v19  ;;  %v10324_v39 = vld [vmem:[#allocation29_spill] sm:$0xff]  ;;  %v2108_v6 = vsel %vm1385_vm0, %v2081_v16, %v10327_v5  ;;  %v10329_v63 = vld [vmem:[#allocation40_spill] sm:$0xff] }
 0x2c1   :  { %v7887_v10 = vsel %vm1206_vm6, %v1159_v47, %v1161_v58  ;;  %v2105_v53 = vsel %vm1385_vm0, %v2080_v40, %v10326_v54  ;;  %v2115_v19 = vsel %vm1385_vm0, %v2083_v21, %v10329_v63  ;;  %v10334_v54 = vld [vmem:[#allocation52_spill] sm:$0xff]  ;;  %v10336_v21 = vld [vmem:[#allocation53_spill] sm:$0xff] }
 0x2c2   :  { %v2185_v5 = vsel %vm4715_vm8, %v2108_v6, %v10334_v54  ;;  %v10342_v54 = vld [vmem:[#allocation36_spill] sm:$0xff] }
 0x2c3   :  { %v7893_v44 = vpop.permute.xlu0 %1162 }
 0x2c4   :  { %v7897_v2 = vsel %vm1206_vm6, %v1161_v58, %v7893_v44  ;;  %v1165_v41 = vpop.permute.xlu1 %1164 }
 0x2c7   :  { %v1167_v24 = vpop.permute.xlu0 %1166 }
 0x2c8   :  { %v7904_v51 = vsel %vm1206_vm6, %v1165_v41, %v1167_v24  ;;  %v7906_v28 = vpop.permute.xlu1 %1168 }
 0x2c9   :  { %v7914_v59 = vsel %vm1206_vm6, %v1167_v24, %v7906_v28 }
 0x2cb   :  { %v1171_v30 = vpop.permute.xlu0 %1170 }
 0x2cc   :  { %v1173_v47 = vpop.permute.xlu1 %1172 }
 0x2cd   :  { %v7921_v58 = vsel %vm1206_vm6, %v1171_v30, %v1173_v47 }
 0x2cf   :  { %v7927_v31 = vpop.permute.xlu0 %1174 }
 0x2d0   :  { %v7931_v24 = vsel %vm1206_vm6, %v1173_v47, %v7927_v31  ;;  %v1177_v8 = vpop.permute.xlu1 %1176 }
 0x2d3   :  { %v1179_v23 = vpop.permute.xlu0 %1178 }
 0x2d4   :  { %v7938_v30 = vsel %vm1206_vm6, %v1177_v8, %v1179_v23  ;;  %v7940_v17 = vpop.permute.xlu1 %1180 }
 0x2d5   :  { %v7948_v47 = vsel %vm1206_vm6, %v1179_v23, %v7940_v17  ;;  %v10332_v23 = vld [vmem:[#allocation50_spill] sm:$0xff] }
 0x2d7   :  { %v1183_v22 = vpop.permute.xlu0 %1182 }
 0x2d8   :  { %v1185_v60 = vpop.permute.xlu1 %1184 }
 0x2d9   :  { %v7955_v8 = vsel %vm1206_vm6, %v1183_v22, %v1185_v60 }
 0x2da   :  { %10314 = vst [vmem:[#allocation116_spill] sm:$0xff] %v7955_v8  ;;  %v2112_v8 = vsel %vm1385_vm0, %v2082_v11, %v10328_v14  ;;  %v10335_v11 = vld [vmem:[#allocation51_spill] sm:$0xff] }
 0x2db   :  { %v7961_v41 = vpop.permute.xlu0 %1186  ;;  %v2186_v16 = vsel %vm4715_vm8, %v2112_v8, %v10335_v11  ;;  %v10339_v14 = vld [vmem:[#allocation55_spill] sm:$0xff]  ;;  %v10346_v8 = vld [vmem:[#allocation45_spill] sm:$0xff] }
 0x2dc   :  { %10315 = vst [vmem:[#allocation117_spill] sm:$0xff] %v7961_v41  ;;  %v7973_v22 = vsel %vm1206_vm6, %v1185_v60, %v7961_v41  ;;  %v1189_v25 = vpop.permute.xlu1 %1188  ;;  %v10325_v41 = vld [vmem:[#allocation6_spill] sm:$0xff]  ;;  %v2216_v11 = vsel %vm1469_vm5, %v2186_v16, %v10342_v54  ;;  %v10351_v54 = vld [vmem:[#allocation8_spill] sm:$0xff] }
 0x2dd   :  { %10319 = vst [vmem:[#allocation23_spill] sm:$0xff] %v7973_v22  ;;  %v2084_v13 = vsel %vm4160_vm3, %v10325_v41, %v10324_v39  ;;  %v2122_v22 = vsel %vm1385_vm0, %v2085_v57, %v10331_v12  ;;  %v2184_v39 = vsel %vm4715_vm8, %v2105_v53, %v10332_v23  ;;  %v10338_v53 = vld [vmem:[#allocation54_spill] sm:$0xff]  ;;  %v10344_v41 = vld [vmem:[#allocation65_spill] sm:$0xff]  ;;  %vm1973_vm3 = vcmask 1047552  }
 0x2de   :  { %v2118_v60 = vsel %vm1385_vm0, %v2084_v13, %v10330_v32  ;;  %v2189_v32 = vsel %vm4715_vm8, %v2122_v22, %v10336_v21  ;;  %v2187_v13 = vsel %vm4715_vm8, %v2115_v19, %v10338_v53  ;;  %vm1287_vm0 = vcmask 932864   ;;  %v10340_v22 = vld [vmem:[#allocation61_spill] sm:$0xff]  ;;  %v10343_v19 = vld [vmem:[#allocation63_spill] sm:$0xff]  ;;  %v10345_v53 = vld [vmem:[#allocation64_spill] sm:$0xff] }
 0x2df   :  { %v8010_v40 = vpop.permute.xlu0 %1190  ;;  %v2188_v6 = vsel %vm4715_vm8, %v2118_v60, %v10339_v14  ;;  %v2209_v63 = vsel %vm1469_vm5, %v2184_v39, %v10340_v22  ;;  %v2219_v21 = vsel %vm1469_vm5, %v2187_v13, %v10343_v19  ;;  %v2226_v14 = vsel %vm1469_vm5, %v2189_v32, %v10345_v53  ;;  %v10348_v39 = vld [vmem:[#allocation2_spill] sm:$0xff]  ;;  %v10350_v13 = vld [vmem:[#allocation3_spill] sm:$0xff] }
 0x2e0   :  { %v8023_v12 = vsel %vm1206_vm6, %v1189_v25, %v8010_v40  ;;  %v1242_v57 = vpop.permute.xlu1 %1241  ;;  %v10341_v25 = vld [vmem:[#allocation62_spill] sm:$0xff]  ;;  %v2222_v60 = vsel %vm1469_vm5, %v2188_v6, %v10344_v41  ;;  %v2288_v62 = vsel %vm5348_vm13, %v2209_v63, %v10346_v8  ;;  %v2291_v6 = vsel %vm5348_vm13, %v2219_v21, %v10350_v13  ;;  %v10353_v41 = vld [vmem:[#allocation48_spill] sm:$0xff] }
 0x2e1   :  { %10337 = vst [vmem:[#allocation24_spill] sm:$0xff] %v8023_v12  ;;  %v2212_v23 = vsel %vm1469_vm5, %v2185_v5, %v10341_v25  ;;  %v2290_v5 = vsel %vm5348_vm13, %v2216_v11, %v10348_v39  ;;  %v10349_v25 = vld [vmem:[#allocation47_spill] sm:$0xff]  ;;  %v2293_v32 = vsel %vm5348_vm13, %v2226_v14, %v10351_v54  ;;  %v10352_v63 = vld [vmem:[#allocation66_spill] sm:$0xff]  ;;  %v2313_v53 = vsel %vm1553_vm10, %v2288_v62, %v10353_v41 }
 0x2e2   :  { %v2289_v16 = vsel %vm5348_vm13, %v2212_v23, %v10349_v25  ;;  %v2292_v11 = vsel %vm5348_vm13, %v2222_v60, %v10352_v63  ;;  %v10354_v39 = vld [vmem:[#allocation34_spill] sm:$0xff]  ;;  %v10355_v21 = vsel %vm7882_vm11, %v7608_v42, %v7897_v2  ;;  %v10357_v54 = vld [vmem:[#allocation67_spill] sm:$0xff]  ;;  %v10358_v60 = vld [vmem:[#allocation69_spill] sm:$0xff]  ;;  %vm1974_vm5 = vsmask.f32 7424 }
 0x2e3   :  { %v1244_v22 = vpop.permute.xlu0 %1243  ;;  %v2320_v23 = vsel %vm1553_vm10, %v2290_v5, %v10354_v39  ;;  %v10356_v25 = vld [vmem:[#allocation10_spill] sm:$0xff]  ;;  %v2323_v12 = vsel %vm1553_vm10, %v2291_v6, %v10357_v54  ;;  %v2326_v62 = vsel %vm1553_vm10, %v2292_v11, %v10358_v60  ;;  %v10359_v63 = vld [vmem:[#allocation68_spill] sm:$0xff]  ;;  %v10360_v41 = vld [vmem:[#allocation75_spill] sm:$0xff]  ;;  %vm1352_vm8 = vcmask 924672  }
 0x2e4   :  { %v1289_v19 = vsel %vm1287_vm0, %v1242_v57, %v1244_v22  ;;  %v1248_v8 = vpop.permute.xlu1 %1247  ;;  %v2316_v13 = vsel %vm1553_vm10, %v2289_v16, %v10356_v25  ;;  %v2330_v5 = vsel %vm1553_vm10, %v2293_v32, %v10359_v63  ;;  %v2392_v1 = vsel %vm5987_vm4, %v2313_v53, %v10360_v41  ;;  %v10362_v42 = vld [vmem:[#allocation76_spill] sm:$0xff]  ;;  %v10364_v25 = vld [vmem:[#allocation77_spill] sm:$0xff]  ;;  %v10365_v54 = vld [vmem:[#allocation79_spill] sm:$0xff] }
 0x2e5   :  { %v8076_v14 = vsel %vm1889_vm14, %v10355_v21, %v1289_v19  ;;  %v2393_v21 = vsel %vm5987_vm4, %v2316_v13, %v10362_v42  ;;  %v2394_v16 = vsel %vm5987_vm4, %v2320_v23, %v10363_v27  ;;  %v2395_v6 = vsel %vm5987_vm4, %v2323_v12, %v10364_v25  ;;  %v10366_v60 = vld [vmem:[#allocation78_spill] sm:$0xff]  ;;  %v10367_v63 = vld [vmem:[#allocation43_spill] sm:$0xff]  ;;  %v10368_v27 = vld [vmem:[#allocation60_spill] sm:$0xff] }
 0x2e6   :  { %v2396_v32 = vsel %vm5987_vm4, %v2326_v62, %v10365_v54  ;;  %v2397_v53 = vsel %vm5987_vm4, %v2330_v5, %v10366_v60  ;;  %v2417_v13 = vsel %vm1637_vm15, %v2392_v1, %v10367_v63  ;;  %v2420_v23 = vsel %vm1637_vm15, %v2393_v21, %v10368_v27  ;;  %v10371_v1 = vld [vmem:[#allocation87_spill] sm:$0xff]  ;;  %v10373_v21 = vld [vmem:[#allocation80_spill] sm:$0xff]  ;;  %vm8158_vm10 = vmand %vm1973_vm3, %vm1974_vm5 }
 0x2e7   :  { %v1250_v11 = vpop.permute.xlu0 %1249  ;;  %v2424_v12 = vsel %vm1637_vm15, %v2394_v16, %v10369_v29  ;;  %v10370_v62 = vsel %vm7882_vm11, %v7641_v34, %v7914_v59  ;;  %v10372_v29 = vsel %vm7882_vm11, %v7591_v52, %v7887_v10  ;;  %v2427_v34 = vsel %vm1637_vm15, %v2395_v6, %v10373_v21  ;;  %v10374_v16 = vld [vmem:[#allocation81_spill] sm:$0xff]  ;;  %v10375_v60 = vld [vmem:[#allocation88_spill] sm:$0xff] }
 0x2e8   :  { %v1291_v41 = vsel %vm1287_vm0, %v1248_v8, %v1250_v11  ;;  %v1240_v42 = vpop.permute.xlu1 %1239  ;;  %v2498_v39 = vsel %vm6626_vm12, %v2424_v12, %v10371_v1  ;;  %v2434_v54 = vsel %vm1637_vm15, %v2397_v53, %v10374_v16  ;;  %v2497_v63 = vsel %vm6626_vm12, %v2420_v23, %v10375_v60  ;;  %v10378_v1 = vld [vmem:[#allocation32_spill] sm:$0xff]  ;;  %v10383_v16 = vld [vmem:[#allocation91_spill] sm:$0xff] }
 0x2e9   :  { %v8112_v25 = vsel %vm1287_vm0, %v1240_v42, %v1242_v57  ;;  %v8120_v5 = vsel %vm1889_vm14, %v10370_v62, %v1291_v41  ;;  %v10376_v42 = vld [vmem:[#allocation73_spill] sm:$0xff]  ;;  %v10377_v62 = vld [vmem:[#allocation82_spill] sm:$0xff]  ;;  %vm3390_vm13 = vcmask 130048   ;;  %vm3228_vm4 = vcmask 392192  }
 0x2ea   :  { %v8132_v57 = vsel %vm1889_vm14, %v10372_v29, %v8112_v25  ;;  %v2528_v27 = vsel %vm1721_vm7, %v2498_v39, %v10376_v42  ;;  %v2430_v52 = vsel %vm1637_vm15, %v2396_v32, %v10377_v62  ;;  %v2524_v29 = vsel %vm1721_vm7, %v2497_v63, %v10378_v1 }
 0x2eb   :  { %v1246_v12 = vpop.permute.xlu0 %1245  ;;  %v2602_v6 = vsel %vm7265_vm9, %v2528_v27, %v10379_v0  ;;  %v2601_v23 = vsel %vm7265_vm9, %v2524_v29, %v7284_v61  ;;  %v10382_v0 = vsel %vm7882_vm11, %v7626_v45, %v7904_v51  ;;  %v2500_v61 = vsel %vm6626_vm12, %v2430_v52, %v10383_v16  ;;  %v10385_v27 = vld [vmem:[#allocation94_spill] sm:$0xff] }
 0x2ec   :  { %v1290_v53 = vsel %vm1287_vm0, %v1246_v12, %v1248_v8  ;;  %v1307_v21 = vpop.permute.xlu1 %1306  ;;  %v2632_v39 = vsel %vm1805_vm1, %v2602_v6, %v7595_v18  ;;  %v10384_v18 = vld [vmem:[#allocation90_spill] sm:$0xff]  ;;  %v2628_v63 = vsel %vm1805_vm1, %v2601_v23, %v7599_v37  ;;  %v2534_v45 = vsel %vm1721_vm7, %v2500_v61, %v10385_v27  ;;  %v10386_v12 = vld [vmem:[#allocation93_spill] sm:$0xff]  ;;  %v10391_v27 = vld [vmem:[#allocation92_spill] sm:$0xff] }
 0x2ed   :  { %v8168_v8 = vsel %vm1889_vm14, %v10382_v0, %v1290_v53  ;;  %v2501_v60 = vsel %vm6626_vm12, %v2434_v54, %v10384_v18  ;;  %v2706_v42 = vsel %vm7882_vm11, %v2632_v39, %v7893_v44  ;;  %v2705_v52 = vsel %vm7882_vm11, %v2628_v63, %v7897_v2  ;;  %v10387_v29 = vld [vmem:[#allocation98_spill] sm:$0xff]  ;;  %v10389_v61 = vld [vmem:[#allocation89_spill] sm:$0xff] }
 0x2ee   :  { %v2538_v62 = vsel %vm1721_vm7, %v2501_v60, %v10386_v12  ;;  %v2736_v1 = vsel %vm1889_vm14, %v2706_v42, %v1244_v22  ;;  %v2732_v6 = vsel %vm1889_vm14, %v2705_v52, %v1289_v19  ;;  %v2604_v2 = vsel %vm7265_vm9, %v2534_v45, %v10264_v33  ;;  %v10388_v16 = vld [vmem:[#allocation86_spill] sm:$0xff]  ;;  %v10392_v45 = vld [vmem:[#allocation5_spill] sm:$0xff] }
 0x2ef   :  { %v1309_v54 = vpop.permute.xlu0 %1308  ;;  %v2605_v37 = vsel %vm7265_vm9, %v2538_v62, %v10387_v29  ;;  %v2496_v33 = vsel %vm6626_vm12, %v2417_v13, %v10388_v16  ;;  %v2638_v18 = vsel %vm1805_vm1, %v2604_v2, %v7630_v26  ;;  %v10390_v63 = vld [vmem:[#allocation46_spill] sm:$0xff]  ;;  %v10395_v2 = vld [vmem:[#allocation100_spill] sm:$0xff]  ;;  %vm3309_vm15 = vcmask 261120  }
 0x2f0   :  { %v8194_v44 = vsel %vm1352_vm8, %v1307_v21, %v1309_v54  ;;  %v8198_v23 = vsel %vm8158_vm10, %v2736_v1, %v1309_v54  ;;  %v1313_v39 = vpop.permute.xlu1 %1312  ;;  %v2642_v22 = vsel %vm1805_vm1, %v2605_v37, %v7617_v15  ;;  %v2499_v15 = vsel %vm6626_vm12, %v2427_v34, %v10389_v61  ;;  %v10393_v54 = vld [vmem:[#allocation97_spill] sm:$0xff]  ;;  %v10394_v37 = vld [vmem:[#allocation59_spill] sm:$0xff] }
 0x2f1   :  { %v8208_v0 = vsel %vm8158_vm10, %v2732_v6, %v8194_v44  ;;  %3346 = vrot.lane.b32.xlu0 %v8198_v23, %s3899_s27  ;;  %v2709_v60 = vsel %vm7882_vm11, %v2642_v22, %v7906_v28  ;;  %v2521_v42 = vsel %vm1721_vm7, %v2496_v33, %v10390_v63  ;;  %v2531_v13 = vsel %vm1721_vm7, %v2499_v15, %v10391_v27 }
 0x2f2   :  { %3344 = vrot.lane.b32.xlu1 %v8208_v0, %s3899_s27  ;;  %v2708_v9 = vsel %vm7882_vm11, %v2638_v18, %v7914_v59  ;;  %v2746_v34 = vsel %vm1889_vm14, %v2709_v60, %v1250_v11  ;;  %v2600_v28 = vsel %vm7265_vm9, %v2521_v42, %v10392_v45  ;;  %v2603_v59 = vsel %vm7265_vm9, %v2531_v13, %v10393_v54  ;;  %v10399_v54 = vld [vmem:[#allocation15_spill] sm:$0xff] }
 0x2f3   :  { %v1315_v26 = vpop.permute.xlu0 %1314  ;;  %v2742_v12 = vsel %vm1889_vm14, %v2708_v9, %v1291_v41  ;;  %v2625_v6 = vsel %vm1805_vm1, %v2600_v28, %v10394_v37  ;;  %v2635_v22 = vsel %vm1805_vm1, %v2603_v59, %v10395_v2  ;;  %v10396_v9 = vld [vmem:[#allocation13_spill] sm:$0xff]  ;;  %v10400_v2 = vsel %vm7882_vm11, %v7676_v56, %v7931_v24 }
 0x2f4   :  { %v8242_v62 = vsel %vm1352_vm8, %v1313_v39, %v1315_v26  ;;  %v8246_v52 = vsel %vm8158_vm10, %v2746_v34, %v1315_v26  ;;  %v1305_v1 = vpop.permute.xlu1 %1304  ;;  %v2704_v16 = vsel %vm7882_vm11, %v2625_v6, %v7887_v10  ;;  %v2707_v33 = vsel %vm7882_vm11, %v2635_v22, %v7904_v51  ;;  %v10397_v34 = vld [vmem:[#allocation11_spill] sm:$0xff] }
 0x2f5   :  { %v8254_v11 = vsel %vm8158_vm10, %v2742_v12, %v8242_v62  ;;  %v8257_v29 = vsel %vm1352_vm8, %v1305_v1, %v1307_v21  ;;  %3352 = vrot.lane.b32.xlu0 %v8246_v52, %s3899_s27  ;;  %v2729_v15 = vsel %vm1889_vm14, %v2704_v16, %v8112_v25  ;;  %v2739_v18 = vsel %vm1889_vm14, %v2707_v33, %v1290_v53  ;;  %v10398_v1 = vld [vmem:[#allocation16_spill] sm:$0xff]  ;;  %v10401_v16 = vld [vmem:[#allocation14_spill] sm:$0xff] }
 0x2f6   :  { %3350 = vrot.lane.b32.xlu1 %v8254_v11, %s3899_s27  ;;  %v8292_v42 = vsel %vm8158_vm10, %v2729_v15, %v8257_v29  ;;  %v10402_v33 = vld [vmem:[#allocation12_spill] sm:$0xff]  ;;  %v10403_v56 = vsel %vm7882_vm11, %v7719_v50, %v7948_v47  ;;  %vm3147_vm7 = vcmask 523264   ;;  %vm3066_vm12 = vcmask 654336  }
 0x2f7   :  { %v1311_v61 = vpop.permute.xlu0 %1310  ;;  %vm2904_vm3 = vcmask 916480  }
 0x2f8   :  { %v8285_v60 = vsel %vm1352_vm8, %v1311_v61, %v1313_v39  ;;  %v8287_v63 = vpop.permute.xlu1 %1192 }
 0x2f9   :  { %v8297_v10 = vsel %vm8158_vm10, %v2739_v18, %v8285_v60  ;;  %v8302_v51 = vsel %vm1206_vm6, %v8010_v40, %v8287_v63 }
 0x2fa   :  { %v1903_v53 = vsel %vm7882_vm11, %v7797_v4, %v8302_v51  ;;  %3348 = vrot.lane.b32.xlu0 %v8297_v10, %s3899_s27  ;;  %3342 = vrot.lane.b32.xlu1 %v8292_v42, %s3899_s27  ;;  %v10426_v4 = vld [vmem:[#allocation96_spill] sm:$0xff] }
 0x2fb   :  { %v1195_v39 = vpop.permute.xlu0 %1194 }
 0x2fc   :  { %v1197_v27 = vpop.permute.xlu1 %1196 }
 0x2fd   :  { %v8317_v40 = vsel %vm1206_vm6, %v1195_v39, %v1197_v27 }
 0x2fe   :  { %1267 = vrot.lane.b32.xlu0 %v10396_v9, %s3897_s25  ;;  %1265 = vrot.lane.b32.xlu1 %v10397_v34, %s3897_s25 }
 0x2ff   :  { %v8327_v26 = vpop.permute.xlu0 %1198 }
 0x300   :  { %v8331_v45 = vsel %vm1206_vm6, %v1197_v27, %v8327_v26  ;;  %v1254_v28 = vpop.permute.xlu1 %1253 }
 0x302   :  { %1273 = vrot.lane.b32.xlu0 %v10398_v1, %s3897_s25  ;;  %1271 = vrot.lane.b32.xlu1 %v10399_v54, %s3897_s25 }
 0x303   :  { %v8341_v59 = vpop.permute.xlu0 %1255 }
 0x304   :  { %v8345_v37 = vsel %vm1287_vm0, %v1254_v28, %v8341_v59  ;;  %v1260_v6 = vpop.permute.xlu1 %1259 }
 0x305   :  { %v8354_v22 = vsel %vm1889_vm14, %v10400_v2, %v8345_v37  ;;  %v10404_v2 = vsel %vm7882_vm11, %v7654_v36, %v7921_v58  ;;  %v10405_v36 = vsel %vm7882_vm11, %v7699_v3, %v7938_v30 }
 0x306   :  { %1269 = vrot.lane.b32.xlu0 %v10401_v16, %s3897_s25  ;;  %1263 = vrot.lane.b32.xlu1 %v10402_v33, %s3897_s25 }
 0x307   :  { %v8360_v61 = vpop.permute.xlu0 %1261 }
 0x308   :  { %v8364_v15 = vsel %vm1287_vm0, %v1260_v6, %v8360_v61  ;;  %v1252_v18 = vpop.permute.xlu1 %1251 }
 0x309   :  { %v8367_v39 = vsel %vm1287_vm0, %v1252_v18, %v1254_v28  ;;  %v8376_v27 = vsel %vm1889_vm14, %v10403_v56, %v8364_v15 }
 0x30a   :  { %v8385_v13 = vsel %vm1889_vm14, %v10404_v2, %v8367_v39  ;;  %1332 = vrot.lane.b32.xlu0 %v10396_v9, %s3898_s26  ;;  %1330 = vrot.lane.b32.xlu1 %v10397_v34, %s3898_s26 }
 0x30b   :  { %v1258_v28 = vpop.permute.xlu0 %1257 }
 0x30c   :  { %v8392_v50 = vsel %vm1287_vm0, %v1258_v28, %v1260_v6  ;;  %v1319_v18 = vpop.permute.xlu1 %1318 }
 0x30d   :  { %v8401_v56 = vsel %vm1889_vm14, %v10405_v36, %v8392_v50 }
 0x30e   :  { %1338 = vrot.lane.b32.xlu0 %v10398_v1, %s3898_s26  ;;  %1336 = vrot.lane.b32.xlu1 %v10399_v54, %s3898_s26 }
 0x30f   :  { %v8407_v9 = vpop.permute.xlu0 %1320 }
 0x310   :  { %v8411_v34 = vsel %vm1352_vm8, %v1319_v18, %v8407_v9  ;;  %v1325_v6 = vpop.permute.xlu1 %1324 }
 0x312   :  { %3265 = vrot.lane.b32.xlu0 %v8198_v23, %s3900_s28  ;;  %3263 = vrot.lane.b32.xlu1 %v8208_v0, %s3900_s28 }
 0x313   :  { %v8421_v1 = vpop.permute.xlu0 %1326 }
 0x314   :  { %v8425_v54 = vsel %vm1352_vm8, %v1325_v6, %v8421_v1  ;;  %v1317_v2 = vpop.permute.xlu1 %1316 }
 0x315   :  { %v8428_v28 = vsel %vm1352_vm8, %v1317_v2, %v1319_v18 }
 0x316   :  { %3271 = vrot.lane.b32.xlu0 %v8246_v52, %s3900_s28  ;;  %3269 = vrot.lane.b32.xlu1 %v8254_v11, %s3900_s28 }
 0x317   :  { %v1323_v12 = vpop.permute.xlu0 %1322 }
 0x318   :  { %v8443_v18 = vsel %vm1352_vm8, %v1323_v12, %v1325_v6  ;;  %v1201_v2 = vpop.permute.xlu1 %1200 }
 0x31a   :  { %1334 = vrot.lane.b32.xlu0 %v10401_v16, %s3898_s26  ;;  %1328 = vrot.lane.b32.xlu1 %v10402_v33, %s3898_s26  ;;  %v10406_v16 = vld [vmem:[#allocation70_spill] sm:$0xff]  ;;  %v10407_v33 = vld [vmem:[#allocation83_spill] sm:$0xff] }
 0x31b   :  { %v8453_v25 = vpop.permute.xlu0 %1202  ;;  %v10408_v6 = vsel %vm7265_vm9, %v10406_v16, %v10407_v33 }
 0x31c   :  { %v8457_v3 = vsel %vm1206_vm6, %v1201_v2, %v8453_v25  ;;  %v2652_v2 = vsel %vm1805_vm1, %v10408_v6, %v7666_v49 }
 0x31e   :  { %3267 = vrot.lane.b32.xlu0 %v8297_v10, %s3900_s28  ;;  %3261 = vrot.lane.b32.xlu1 %v8292_v42, %s3900_s28 }
 0x322   :  { %3184 = vrot.lane.b32.xlu0 %v8198_v23, %s3901_s29  ;;  %3182 = vrot.lane.b32.xlu1 %v8208_v0, %s3901_s29 }
 0x326   :  { %3190 = vrot.lane.b32.xlu0 %v8246_v52, %s3901_s29  ;;  %3188 = vrot.lane.b32.xlu1 %v8254_v11, %s3901_s29 }
 0x32a   :  { %3186 = vrot.lane.b32.xlu0 %v8297_v10, %s3901_s29  ;;  %3180 = vrot.lane.b32.xlu1 %v8292_v42, %s3901_s29 }
 0x32e   :  { %3103 = vrot.lane.b32.xlu0 %v8198_v23, %s3902_s30  ;;  %3101 = vrot.lane.b32.xlu1 %v8208_v0, %s3902_s30 }
 0x332   :  { %3109 = vrot.lane.b32.xlu0 %v8246_v52, %s3902_s30  ;;  %3107 = vrot.lane.b32.xlu1 %v8254_v11, %s3902_s30 }
 0x336   :  { %3105 = vrot.lane.b32.xlu0 %v8297_v10, %s3902_s30  ;;  %3099 = vrot.lane.b32.xlu1 %v8292_v42, %s3902_s30 }
 0x33a   :  { %3022 = vrot.lane.b32.xlu0 %v8198_v23, %s3903_s3  ;;  %3020 = vrot.lane.b32.xlu1 %v8208_v0, %s3903_s3 }
 0x33e   :  { %3028 = vrot.lane.b32.xlu0 %v8246_v52, %s3903_s3  ;;  %3026 = vrot.lane.b32.xlu1 %v8254_v11, %s3903_s3 }
 0x342   :  { %3024 = vrot.lane.b32.xlu0 %v8297_v10, %s3903_s3  ;;  %3018 = vrot.lane.b32.xlu1 %v8292_v42, %s3903_s3 }
 0x346   :  { %2941 = vrot.lane.b32.xlu0 %v8198_v23, %s3904_s4  ;;  %2939 = vrot.lane.b32.xlu1 %v8208_v0, %s3904_s4 }
 0x34a   :  { %2947 = vrot.lane.b32.xlu0 %v8246_v52, %s3904_s4  ;;  %2945 = vrot.lane.b32.xlu1 %v8254_v11, %s3904_s4 }
 0x34e   :  { %2943 = vrot.lane.b32.xlu0 %v8297_v10, %s3904_s4  ;;  %2937 = vrot.lane.b32.xlu1 %v8292_v42, %s3904_s4 }
 0x352   :  { %2860 = vrot.lane.b32.xlu0 %v8198_v23, %s3905_s5  ;;  %2858 = vrot.lane.b32.xlu1 %v8208_v0, %s3905_s5  ;;  %v2711_v23 = vsel %vm7882_vm11, %v7684_v7, %v7931_v24  ;;  %v2712_v0 = vsel %vm7882_vm11, %v2652_v2, %v7927_v31  ;;  %v10409_v31 = vld [vmem:[#allocation71_spill] sm:$0xff]  ;;  %v10410_v24 = vld [vmem:[#allocation56_spill] sm:$0xff] }
 0x353   :  { %v2752_v49 = vsel %vm1889_vm14, %v2711_v23, %v8345_v37 }
 0x356   :  { %2866 = vrot.lane.b32.xlu0 %v8246_v52, %s3905_s5  ;;  %2864 = vrot.lane.b32.xlu1 %v8254_v11, %s3905_s5  ;;  %v9785_v52 = vmov 0   ;;  %v2756_v11 = vsel %vm1889_vm14, %v2712_v0, %v8341_v59  ;;  %v2714_v59 = vsel %vm7882_vm11, %v7727_v20, %v7948_v47  ;;  %v10412_v20 = vld [vmem:[#allocation99_spill] sm:$0xff] }
 0x357   :  { %3463 = vmatprep.mubr.bf16.mxu0 %v9785_v52  ;;  %3510 = vmatprep.mubr.bf16.mxu1 %v9785_v52  ;;  %v8555_v7 = vsel %vm8158_vm10, %v2756_v11, %v8407_v9  ;;  %v2762_v16 = vsel %vm1889_vm14, %v2714_v59, %v8364_v15  ;;  %v10413_v47 = vld [vmem:[#allocation95_spill] sm:$0xff]  ;;  %v10414_v11 = vld [vmem:[#allocation18_spill] sm:$0xff] }
 0x358   :  { %v8582_v33 = vsel %vm8158_vm10, %v2762_v16, %v8425_v54  ;;  %v10417_v16 = vld [vmem:[#allocation19_spill] sm:$0xff] }
 0x35a   :  { %2862 = vrot.lane.b32.xlu0 %v8297_v10, %s3905_s5  ;;  %2856 = vrot.lane.b32.xlu1 %v8292_v42, %s3905_s5  ;;  %v8550_v42 = vsel %vm8158_vm10, %v2752_v49, %v8411_v34  ;;  %v10411_v10 = vsel %vm7265_vm9, %v10409_v31, %v10410_v24  ;;  %v10415_v31 = vld [vmem:[#allocation22_spill] sm:$0xff] }
 0x35b   :  { %v2662_v37 = vsel %vm1805_vm1, %v10411_v10, %v7691_v35 }
 0x35c   :  { %v2715_v9 = vsel %vm7882_vm11, %v2662_v37, %v7940_v17  ;;  %v2710_v17 = vsel %vm7882_vm11, %v10412_v20, %v7921_v58 }
 0x35d   :  { %v2766_v35 = vsel %vm1889_vm14, %v2715_v9, %v8360_v61  ;;  %v2713_v61 = vsel %vm7882_vm11, %v10413_v47, %v7938_v30  ;;  %v10416_v9 = vld [vmem:[#allocation21_spill] sm:$0xff] }
 0x35e   :  { %3358 = vrot.lane.b32.xlu0 %v8555_v7, %s3899_s27  ;;  %3356 = vrot.lane.b32.xlu1 %v8550_v42, %s3899_s27  ;;  %v8587_v6 = vsel %vm8158_vm10, %v2766_v35, %v8421_v1  ;;  %v2749_v1 = vsel %vm1889_vm14, %v2710_v17, %v8367_v39  ;;  %v2759_v2 = vsel %vm1889_vm14, %v2713_v61, %v8392_v50  ;;  %v10418_v47 = vld [vmem:[#allocation17_spill] sm:$0xff]  ;;  %v10419_v61 = vld [vmem:[#allocation103_spill] sm:$0xff] }
 0x35f   :  { %v8608_v0 = vsel %vm8158_vm10, %v2749_v1, %v8428_v28  ;;  %v8613_v58 = vsel %vm8158_vm10, %v2759_v2, %v8443_v18 }
 0x362   :  { %3364 = vrot.lane.b32.xlu0 %v8587_v6, %s3899_s27  ;;  %3362 = vrot.lane.b32.xlu1 %v8582_v33, %s3899_s27 }
 0x363   :  { %v3347_v15 = vpop.permute.xlu0 %3346 }
 0x364   :  { %v3345_v23 = vpop.permute.xlu1 %3344 }
 0x365   :  { %v3392_v30 = vsel %vm3390_vm13, %v3345_v23, %v3347_v15  ;;  %v10420_v15 = vld [vmem:[#allocation23_spill] sm:$0xff] }
 0x366   :  { %3360 = vrot.lane.b32.xlu0 %v8613_v58, %s3899_s27  ;;  %3354 = vrot.lane.b32.xlu1 %v8608_v0, %s3899_s27  ;;  %v10421_v1 = vsel %vm7882_vm11, %v10419_v61, %v10420_v15  ;;  %v10424_v61 = vld [vmem:[#allocation24_spill] sm:$0xff] }
 0x367   :  { %3431 = vmatprep.subr.bf16.mxu0 %v3392_v30  ;;  %v3353_v39 = vpop.permute.xlu0 %3352 }
 0x368   :  { %v3351_v50 = vpop.permute.xlu1 %3350 }
 0x369   :  { %v3394_v49 = vsel %vm3390_vm13, %v3351_v50, %v3353_v39 }
 0x36a   :  { %1277 = vrot.lane.b32.xlu0 %v10414_v11, %s3897_s25  ;;  %1204 = vrot.lane.b32.xlu1 %v10415_v31, %s3896_s24 }
 0x36b   :  { %3478 = vmatprep.subr.bf16.mxu1 %v3394_v49 }
 0x36c   :  { %v3349_v24 = vpop.permute.xlu0 %3348  ;;  %v3343_v10 = vpop.permute.xlu1 %3342 }
 0x36d   :  { %v3391_v37 = vsel %vm3390_vm13, %v3343_v10, %v3345_v23  ;;  %v3393_v59 = vsel %vm3390_vm13, %v3349_v24, %v3351_v50  ;;  %v10422_v50 = vld [vmem:[#allocation20_spill] sm:$0xff] }
 0x36e   :  { %1283 = vrot.lane.b32.xlu0 %v10416_v9, %s3897_s25  ;;  %1279 = vrot.lane.b32.xlu1 %v10417_v16, %s3897_s25 }
 0x36f   :  { %3432 = vmatpush1.bf16.msra.mxu0 %v3391_v37  ;;  %3479 = vmatpush1.bf16.msra.mxu1 %v3393_v59 }
 0x370   :  { %v8631_v35 = vpop.permute.xlu0 %1267  ;;  %v1266_v20 = vpop.permute.xlu1 %1265 }
 0x371   :  { %v8635_v17 = vsel %vm1287_vm0, %v1266_v20, %v8631_v35 }
 0x372   :  { %1275 = vrot.lane.b32.xlu0 %v10418_v47, %s3897_s25  ;;  %1285 = vrot.lane.b32.xlu1 %v10415_v31, %s3897_s25  ;;  %v8648_v2 = vsel %vm1889_vm14, %v10421_v1, %v8635_v17 }
 0x374   :  { %v8650_v23 = vpop.permute.xlu0 %1273  ;;  %v1272_v30 = vpop.permute.xlu1 %1271 }
 0x375   :  { %v8654_v39 = vsel %vm1287_vm0, %v1272_v30, %v8650_v23 }
 0x376   :  { %1342 = vrot.lane.b32.xlu0 %v10414_v11, %s3898_s26  ;;  %1281 = vrot.lane.b32.xlu1 %v10422_v50, %s3897_s25  ;;  %v8667_v49 = vsel %vm1889_vm14, %v1903_v53, %v8654_v39  ;;  %v10423_v11 = vld [vmem:[#allocation106_spill] sm:$0xff]  ;;  %v10427_v53 = vld [vmem:[#allocation116_spill] sm:$0xff] }
 0x377   :  { %v10425_v1 = vsel %vm7882_vm11, %v10423_v11, %v10424_v61  ;;  %v10428_v12 = vsel %vm7882_vm11, %v10426_v4, %v10427_v53 }
 0x378   :  { %v1270_v24 = vpop.permute.xlu0 %1269  ;;  %v1264_v10 = vpop.permute.xlu1 %1263 }
 0x379   :  { %v8670_v37 = vsel %vm1287_vm0, %v1270_v24, %v1272_v30  ;;  %v8673_v59 = vsel %vm1287_vm0, %v1264_v10, %v1266_v20 }
 0x37a   :  { %v8682_v36 = vsel %vm1889_vm14, %v10425_v1, %v8670_v37  ;;  %v8691_v30 = vsel %vm1889_vm14, %v10428_v12, %v8673_v59  ;;  %1348 = vrot.lane.b32.xlu0 %v10416_v9, %s3898_s26  ;;  %1344 = vrot.lane.b32.xlu1 %v10417_v16, %s3898_s26 }
 0x37c   :  { %v8697_v20 = vpop.permute.xlu0 %1332  ;;  %v1331_v24 = vpop.permute.xlu1 %1330 }
 0x37d   :  { %v8701_v10 = vsel %vm1352_vm8, %v1331_v24, %v8697_v20 }
 0x37e   :  { %3275 = vrot.lane.b32.xlu0 %v8550_v42, %s3900_s28  ;;  %1350 = vrot.lane.b32.xlu1 %v10415_v31, %s3898_s26 }
 0x380   :  { %v8711_v9 = vpop.permute.xlu0 %1338  ;;  %v1337_v16 = vpop.permute.xlu1 %1336 }
 0x381   :  { %v8715_v11 = vsel %vm1352_vm8, %v1337_v16, %v8711_v9 }
 0x382   :  { %3281 = vrot.lane.b32.xlu0 %v8582_v33, %s3900_s28  ;;  %3277 = vrot.lane.b32.xlu1 %v8555_v7, %s3900_s28 }
 0x384   :  { %v3266_v31 = vpop.permute.xlu0 %3265  ;;  %v3264_v4 = vpop.permute.xlu1 %3263 }
 0x385   :  { %v3311_v12 = vsel %vm3309_vm15, %v3264_v4, %v3266_v31 }
 0x386   :  { %1340 = vrot.lane.b32.xlu0 %v10418_v47, %s3898_s26  ;;  %3433 = vmatprep.subr.bf16.mxu0 %v3311_v12 }
 0x387   :  { %3283 = vrot.lane.b32.xlu1 %v8587_v6, %s3900_s28 }
 0x388   :  { %v3272_v52 = vpop.permute.xlu0 %3271  ;;  %v3270_v21 = vpop.permute.xlu1 %3269 }
 0x389   :  { %v3313_v41 = vsel %vm3309_vm15, %v3270_v21, %v3272_v52 }
 0x38a   :  { %3273 = vrot.lane.b32.xlu0 %v8608_v0, %s3900_s28  ;;  %3480 = vmatprep.subr.bf16.mxu1 %v3313_v41 }
 0x38b   :  { %1346 = vrot.lane.b32.xlu1 %v10422_v50, %s3898_s26 }
 0x38c   :  { %v1335_v1 = vpop.permute.xlu0 %1334  ;;  %v1329_v31 = vpop.permute.xlu1 %1328 }
 0x38d   :  { %v8736_v19 = vsel %vm1352_vm8, %v1335_v1, %v1337_v16  ;;  %v8739_v47 = vsel %vm1352_vm8, %v1329_v31, %v1331_v24 }
 0x38e   :  { %3194 = vrot.lane.b32.xlu0 %v8550_v42, %s3901_s29  ;;  %v1984_v52 = vsel %vm8158_vm10, %v8691_v30, %v8739_v47  ;;  %v10469_v30 = vsel %vm8158_vm10, %v8682_v36, %v8736_v19 }
 0x38f   :  { %3279 = vrot.lane.b32.xlu1 %v8613_v58, %s3900_s28 }
 0x390   :  { %v3268_v50 = vpop.permute.xlu0 %3267  ;;  %v3262_v12 = vpop.permute.xlu1 %3261 }
 0x391   :  { %v3310_v24 = vsel %vm3309_vm15, %v3262_v12, %v3264_v4  ;;  %v3312_v16 = vsel %vm3309_vm15, %v3268_v50, %v3270_v21 }
 0x392   :  { %3200 = vrot.lane.b32.xlu0 %v8582_v33, %s3901_s29  ;;  %3434 = vmatpush1.bf16.msra.mxu0 %v3310_v24 }
 0x393   :  { %3196 = vrot.lane.b32.xlu1 %v8555_v7, %s3901_s29  ;;  %3481 = vmatpush1.bf16.msra.mxu1 %v3312_v16 }
 0x394   :  { %v3185_v1 = vpop.permute.xlu0 %3184  ;;  %v3183_v31 = vpop.permute.xlu1 %3182 }
 0x395   :  { %v3230_v41 = vsel %vm3228_vm4, %v3183_v31, %v3185_v1 }
 0x396   :  { %3192 = vrot.lane.b32.xlu0 %v8608_v0, %s3901_s29  ;;  %3435 = vmatprep.subr.bf16.mxu0 %v3230_v41 }
 0x397   :  { %3202 = vrot.lane.b32.xlu1 %v8587_v6, %s3901_s29 }
 0x398   :  { %v3191_v21 = vpop.permute.xlu0 %3190  ;;  %v3189_v4 = vpop.permute.xlu1 %3188 }
 0x399   :  { %v3232_v50 = vsel %vm3228_vm4, %v3189_v4, %v3191_v21 }
 0x39a   :  { %3113 = vrot.lane.b32.xlu0 %v8550_v42, %s3902_s30  ;;  %3482 = vmatprep.subr.bf16.mxu1 %v3232_v50 }
 0x39b   :  { %3198 = vrot.lane.b32.xlu1 %v8613_v58, %s3901_s29 }
 0x39c   :  { %v3187_v12 = vpop.permute.xlu0 %3186  ;;  %v3181_v24 = vpop.permute.xlu1 %3180 }
 0x39d   :  { %v3229_v16 = vsel %vm3228_vm4, %v3181_v24, %v3183_v31  ;;  %v3231_v41 = vsel %vm3228_vm4, %v3187_v12, %v3189_v4 }
 0x39e   :  { %3119 = vrot.lane.b32.xlu0 %v8582_v33, %s3902_s30  ;;  %3436 = vmatpush1.bf16.msra.mxu0 %v3229_v16 }
 0x39f   :  { %3115 = vrot.lane.b32.xlu1 %v8555_v7, %s3902_s30  ;;  %3483 = vmatpush1.bf16.msra.mxu1 %v3231_v41 }
 0x3a0   :  { %v3104_v1 = vpop.permute.xlu0 %3103  ;;  %v3102_v21 = vpop.permute.xlu1 %3101 }
 0x3a1   :  { %v3149_v50 = vsel %vm3147_vm7, %v3102_v21, %v3104_v1 }
 0x3a2   :  { %3111 = vrot.lane.b32.xlu0 %v8608_v0, %s3902_s30  ;;  %3437 = vmatprep.subr.bf16.mxu0 %v3149_v50 }
 0x3a3   :  { %3121 = vrot.lane.b32.xlu1 %v8587_v6, %s3902_s30 }
 0x3a4   :  { %v3110_v31 = vpop.permute.xlu0 %3109  ;;  %v3108_v4 = vpop.permute.xlu1 %3107 }
 0x3a5   :  { %v3151_v12 = vsel %vm3147_vm7, %v3108_v4, %v3110_v31 }
 0x3a6   :  { %3032 = vrot.lane.b32.xlu0 %v8550_v42, %s3903_s3  ;;  %3484 = vmatprep.subr.bf16.mxu1 %v3151_v12 }
 0x3a7   :  { %3117 = vrot.lane.b32.xlu1 %v8613_v58, %s3902_s30 }
 0x3a8   :  { %v3106_v24 = vpop.permute.xlu0 %3105  ;;  %v3100_v16 = vpop.permute.xlu1 %3099 }
 0x3a9   :  { %v3148_v41 = vsel %vm3147_vm7, %v3100_v16, %v3102_v21  ;;  %v3150_v1 = vsel %vm3147_vm7, %v3106_v24, %v3108_v4 }
 0x3aa   :  { %3038 = vrot.lane.b32.xlu0 %v8582_v33, %s3903_s3  ;;  %3438 = vmatpush1.bf16.msra.mxu0 %v3148_v41 }
 0x3ab   :  { %3034 = vrot.lane.b32.xlu1 %v8555_v7, %s3903_s3  ;;  %3485 = vmatpush1.bf16.msra.mxu1 %v3150_v1 }
 0x3ac   :  { %v3023_v50 = vpop.permute.xlu0 %3022  ;;  %v3021_v31 = vpop.permute.xlu1 %3020 }
 0x3ad   :  { %v3068_v12 = vsel %vm3066_vm12, %v3021_v31, %v3023_v50 }
 0x3ae   :  { %3030 = vrot.lane.b32.xlu0 %v8608_v0, %s3903_s3  ;;  %3439 = vmatprep.subr.bf16.mxu0 %v3068_v12 }
 0x3af   :  { %3040 = vrot.lane.b32.xlu1 %v8587_v6, %s3903_s3 }
 0x3b0   :  { %v3029_v21 = vpop.permute.xlu0 %3028  ;;  %v3027_v4 = vpop.permute.xlu1 %3026 }
 0x3b1   :  { %v3070_v24 = vsel %vm3066_vm12, %v3027_v4, %v3029_v21 }
 0x3b2   :  { %2951 = vrot.lane.b32.xlu0 %v8550_v42, %s3904_s4  ;;  %3486 = vmatprep.subr.bf16.mxu1 %v3070_v24 }
 0x3b3   :  { %3036 = vrot.lane.b32.xlu1 %v8613_v58, %s3903_s3 }
 0x3b4   :  { %v3025_v16 = vpop.permute.xlu0 %3024  ;;  %v3019_v41 = vpop.permute.xlu1 %3018 }
 0x3b5   :  { %v3067_v1 = vsel %vm3066_vm12, %v3019_v41, %v3021_v31  ;;  %v3069_v50 = vsel %vm3066_vm12, %v3025_v16, %v3027_v4 }
 0x3b6   :  { %2957 = vrot.lane.b32.xlu0 %v8582_v33, %s3904_s4  ;;  %3440 = vmatpush1.bf16.msra.mxu0 %v3067_v1 }
 0x3b7   :  { %2953 = vrot.lane.b32.xlu1 %v8555_v7, %s3904_s4  ;;  %3487 = vmatpush1.bf16.msra.mxu1 %v3069_v50 }
 0x3b8   :  { %v2942_v12 = vpop.permute.xlu0 %2941  ;;  %v2940_v21 = vpop.permute.xlu1 %2939 }
 0x3b9   :  { %v2987_v24 = vsel %vm2985_vm2, %v2940_v21, %v2942_v12 }
 0x3ba   :  { %2949 = vrot.lane.b32.xlu0 %v8608_v0, %s3904_s4  ;;  %3441 = vmatprep.subr.bf16.mxu0 %v2987_v24 }
 0x3bb   :  { %2959 = vrot.lane.b32.xlu1 %v8587_v6, %s3904_s4 }
 0x3bc   :  { %v2948_v31 = vpop.permute.xlu0 %2947  ;;  %v2946_v4 = vpop.permute.xlu1 %2945 }
 0x3bd   :  { %v2989_v16 = vsel %vm2985_vm2, %v2946_v4, %v2948_v31 }
 0x3be   :  { %2870 = vrot.lane.b32.xlu0 %v8550_v42, %s3905_s5  ;;  %3488 = vmatprep.subr.bf16.mxu1 %v2989_v16 }
 0x3bf   :  { %2955 = vrot.lane.b32.xlu1 %v8613_v58, %s3904_s4 }
 0x3c0   :  { %v2944_v41 = vpop.permute.xlu0 %2943  ;;  %v2938_v1 = vpop.permute.xlu1 %2937 }
 0x3c1   :  { %v2986_v50 = vsel %vm2985_vm2, %v2938_v1, %v2940_v21  ;;  %v2988_v12 = vsel %vm2985_vm2, %v2944_v41, %v2946_v4  ;;  %v10429_v21 = vld [vmem:[#allocation104_spill] sm:$0xff]  ;;  %v10432_v1 = vld [vmem:[#allocation30_spill] sm:$0xff] }
 0x3c2   :  { %2876 = vrot.lane.b32.xlu0 %v8582_v33, %s3905_s5  ;;  %3442 = vmatpush1.bf16.msra.mxu0 %v2986_v50  ;;  %v2717_v4 = vsel %vm7882_vm11, %v10429_v21, %v10420_v15  ;;  %v10430_v15 = vld [vmem:[#allocation102_spill] sm:$0xff] }
 0x3c3   :  { %2872 = vrot.lane.b32.xlu1 %v8555_v7, %s3905_s5  ;;  %3489 = vmatpush1.bf16.msra.mxu1 %v2988_v12  ;;  %v2772_v7 = vsel %vm1889_vm14, %v2717_v4, %v8635_v17  ;;  %v10434_v12 = vld [vmem:[#allocation108_spill] sm:$0xff] }
 0x3c4   :  { %v2861_v42 = vpop.permute.xlu0 %2860  ;;  %v2859_v24 = vpop.permute.xlu1 %2858  ;;  %v8837_v41 = vsel %vm8158_vm10, %v2772_v7, %v8701_v10 }
 0x3c5   :  { %v2906_v31 = vsel %vm2904_vm3, %v2859_v24, %v2861_v42  ;;  %v2720_v42 = vsel %vm7882_vm11, %v10434_v12, %v8302_v51 }
 0x3c6   :  { %2868 = vrot.lane.b32.xlu0 %v8608_v0, %s3905_s5  ;;  %3443 = vmatprep.subr.bf16.mxu0 %v2906_v31  ;;  %v10435_v31 = vld [vmem:[#allocation117_spill] sm:$0xff]  ;;  %v2782_v4 = vsel %vm1889_vm14, %v2720_v42, %v8654_v39  ;;  %v10441_v42 = vsel %vm8158_vm10, %v8076_v14, %v8194_v44  ;;  %v8915_v14 = vld [vmem:[%s9531_s1] sm:$0xff]   ;;  %v10443_v44 = vsel %vm8158_vm10, %v8132_v57, %v8257_v29 }
 0x3c7   :  { %2878 = vrot.lane.b32.xlu1 %v8587_v6, %s3905_s5  ;;  %v10431_v6 = vld [vmem:[#allocation57_spill] sm:$0xff] }
 0x3c8   :  { %v2867_v33 = vpop.permute.xlu0 %2866  ;;  %v2865_v16 = vpop.permute.xlu1 %2864  ;;  %v10433_v50 = vsel %vm7265_vm9, %v10431_v6, %v10432_v1  ;;  %v10436_v39 = vld [vmem:[#allocation105_spill] sm:$0xff]  ;;  %v10438_v1 = vld [vmem:[#allocation58_spill] sm:$0xff] }
 0x3c9   :  { %v2908_v0 = vsel %vm2904_vm3, %v2865_v16, %v2867_v33  ;;  %v2672_v17 = vsel %vm1805_vm1, %v10433_v50, %v10430_v15  ;;  %v8865_v15 = vsel %vm8158_vm10, %v2782_v4, %v8715_v11 }
 0x3ca   :  { %3368 = vrot.lane.b32.xlu0 %v8837_v41, %s3899_s27  ;;  %3490 = vmatprep.subr.bf16.mxu1 %v2908_v0  ;;  %v2718_v21 = vsel %vm7882_vm11, %v2672_v17, %v10435_v31 }
 0x3cb   :  { %2874 = vrot.lane.b32.xlu1 %v8613_v58, %s3905_s5  ;;  %v2776_v0 = vsel %vm1889_vm14, %v2718_v21, %v8631_v35  ;;  %v10437_v35 = vld [vmem:[#allocation84_spill] sm:$0xff] }
 0x3cc   :  { %v2863_v7 = vpop.permute.xlu0 %2862  ;;  %v2857_v33 = vpop.permute.xlu1 %2856  ;;  %v8872_v6 = vsel %vm8158_vm10, %v2776_v0, %v8697_v20  ;;  %v10439_v50 = vsel %vm7265_vm9, %v10437_v35, %v10438_v1  ;;  %v10447_v1 = vld [vmem:[#allocation114_spill] sm:$0xff] }
 0x3cd   :  { %v2905_v51 = vsel %vm2904_vm3, %v2857_v33, %v2859_v24  ;;  %v2907_v58 = vsel %vm2904_vm3, %v2863_v7, %v2865_v16  ;;  %v2682_v17 = vsel %vm1805_vm1, %v10439_v50, %v10436_v39  ;;  %v10440_v24 = vld [vmem:[#allocation101_spill] sm:$0xff] }
 0x3ce   :  { %3374 = vrot.lane.b32.xlu0 %v8865_v15, %s3899_s27  ;;  %3444 = vmatpush1.bf16.msra.mxu0 %v2905_v51  ;;  %v2716_v16 = vsel %vm7882_vm11, %v10440_v24, %v10427_v53  ;;  %v2721_v20 = vsel %vm7882_vm11, %v2682_v17, %v8287_v63  ;;  %v10442_v53 = vsel %vm8158_vm10, %v8120_v5, %v8242_v62 }
 0x3cf   :  { %3370 = vrot.lane.b32.xlu1 %v8872_v6, %s3899_s27  ;;  %3491 = vmatpush1.bf16.msra.mxu1 %v2907_v58  ;;  %v2769_v12 = vsel %vm1889_vm14, %v2716_v16, %v8673_v59  ;;  %v2786_v63 = vsel %vm1889_vm14, %v2721_v20, %v8650_v23  ;;  %v10444_v62 = vsel %vm8158_vm10, %v8168_v8, %v8285_v60  ;;  %v10445_v23 = vld [vmem:[#allocation107_spill] sm:$0xff] }
 0x3d0   :  { %3445 = vmatprep.subr.bf16.mxu0 %v10441_v42  ;;  %3492 = vmatprep.subr.bf16.mxu1 %v10442_v53  ;;  %v3359_v31 = vpop.permute.xlu0 %3358  ;;  %v3357_v21 = vpop.permute.xlu1 %3356  ;;  %v8909_v59 = vsel %vm8158_vm10, %v2769_v12, %v8739_v47  ;;  %v8920_v5 = vsel %vm8158_vm10, %v2786_v63, %v8711_v9  ;;  %v2719_v9 = vsel %vm7882_vm11, %v10445_v23, %v10424_v61  ;;  %v10446_v61 = vmov 0  }
 0x3d1   :  { %v3396_v4 = vsel %vm3390_vm13, %v3357_v21, %v3359_v31  ;;  %v2779_v57 = vsel %vm1889_vm14, %v2719_v9, %v8670_v37 }
 0x3d2   :  { %3366 = vrot.lane.b32.xlu0 %v8909_v59, %s3899_s27  ;;  %3446 = vmatpush1.bf16.msra.mxu0 %v10443_v44  ;;  %v8947_v8 = vsel %vm8158_vm10, %v2779_v57, %v8736_v19 }
 0x3d3   :  { %3376 = vrot.lane.b32.xlu1 %v8920_v5, %s3899_s27  ;;  %3493 = vmatpush1.bf16.msra.mxu1 %v10444_v62 }
 0x3d4   :  { %3526 = vmatprep.subr.bf16.mxu0 %v3396_v4  ;;  %v3365_v7 = vpop.permute.xlu0 %3364  ;;  %v3363_v33 = vpop.permute.xlu1 %3362 }
 0x3d5   :  { %v3398_v29 = vsel %vm3390_vm13, %v3363_v33, %v3365_v7  ;;  %3464 = vmatmul.mubr.bf16.vlgmr.msra.gmra.mxu0 %v8915_v14 }
 0x3d6   :  { %3287 = vrot.lane.b32.xlu0 %v8837_v41, %s3900_s28  ;;  %3574 = vmatprep.subr.bf16.mxu1 %v3398_v29 }
 0x3d7   :  { %3372 = vrot.lane.b32.xlu1 %v8947_v8, %s3899_s27  ;;  %3511 = vmatmul.mubr.bf16.vlgmr.msra.gmra.mxu1 %v8915_v14 }
 0x3d8   :  { %v3361_v60 = vpop.permute.xlu0 %3360  ;;  %v3355_v37 = vpop.permute.xlu1 %3354  ;;  %3558 = vmatprep.mubr.bf16.mxu0 %v10446_v61  ;;  %3606 = vmatprep.mubr.bf16.mxu1 %v10446_v61 }
 0x3d9   :  { %v3397_v0 = vsel %vm3390_vm13, %v3361_v60, %v3363_v33  ;;  %v3395_v51 = vsel %vm3390_vm13, %v3355_v37, %v3357_v21 }
 0x3da   :  { %3293 = vrot.lane.b32.xlu0 %v8865_v15, %s3900_s28  ;;  %3527 = vmatpush1.bf16.msra.mxu0 %v3395_v51 }
 0x3db   :  { %3289 = vrot.lane.b32.xlu1 %v8872_v6, %s3900_s28  ;;  %3575 = vmatpush1.bf16.msra.mxu1 %v3397_v0 }
 0x3dc   :  { %v1278_v58 = vpop.permute.xlu0 %1277  ;;  %v8962_v39 = vpop.permute.xlu1 %1204 }
 0x3dd   :  { %v8967_v35 = vsel %vm1206_vm6, %v8453_v25, %v8962_v39  ;;  %v10448_v25 = vsel %vm7882_vm11, %v7834_v46, %v8331_v45  ;;  %v10449_v46 = vsel %vm7882_vm11, %v7814_v55, %v8317_v40  ;;  %v10450_v55 = vsel %vm7882_vm11, %v7853_v43, %v8457_v3 }
 0x3de   :  { %v1907_v50 = vsel %vm7882_vm11, %v10447_v1, %v8967_v35  ;;  %3285 = vrot.lane.b32.xlu0 %v8909_v59, %s3900_s28 }
 0x3df   :  { %3295 = vrot.lane.b32.xlu1 %v8920_v5, %s3900_s28 }
 0x3e0   :  { %v1284_v17 = vpop.permute.xlu0 %1283  ;;  %v8977_v24 = vpop.permute.xlu1 %1279 }
 0x3e1   :  { %v8981_v16 = vsel %vm1287_vm0, %v1278_v58, %v8977_v24 }
 0x3e2   :  { %3206 = vrot.lane.b32.xlu0 %v8837_v41, %s3901_s29  ;;  %v8992_v20 = vsel %vm1889_vm14, %v10448_v25, %v8981_v16 }
 0x3e3   :  { %3291 = vrot.lane.b32.xlu1 %v8947_v8, %s3900_s28 }
 0x3e4   :  { %v1276_v12 = vpop.permute.xlu0 %1275  ;;  %v8996_v42 = vpop.permute.xlu1 %1285 }
 0x3e5   :  { %v8999_v53 = vsel %vm1287_vm0, %v1276_v12, %v1278_v58  ;;  %v9003_v31 = vsel %vm1287_vm0, %v1284_v17, %v8996_v42 }
 0x3e6   :  { %v9012_v21 = vsel %vm1889_vm14, %v10449_v46, %v8999_v53  ;;  %3212 = vrot.lane.b32.xlu0 %v8865_v15, %s3901_s29  ;;  %v9018_v63 = vsel %vm1889_vm14, %v1907_v50, %v9003_v31 }
 0x3e7   :  { %3208 = vrot.lane.b32.xlu1 %v8872_v6, %s3901_s29 }
 0x3e8   :  { %v1343_v4 = vpop.permute.xlu0 %1342  ;;  %v1282_v44 = vpop.permute.xlu1 %1281 }
 0x3e9   :  { %v9023_v62 = vsel %vm1287_vm0, %v1282_v44, %v1284_v17 }
 0x3ea   :  { %v9032_v23 = vsel %vm1889_vm14, %v10450_v55, %v9023_v62  ;;  %3204 = vrot.lane.b32.xlu0 %v8909_v59, %s3901_s29 }
 0x3eb   :  { %3214 = vrot.lane.b32.xlu1 %v8920_v5, %s3901_s29 }
 0x3ec   :  { %v1349_v9 = vpop.permute.xlu0 %1348  ;;  %v9038_v7 = vpop.permute.xlu1 %1344 }
 0x3ed   :  { %v9042_v33 = vsel %vm1352_vm8, %v1343_v4, %v9038_v7 }
 0x3ee   :  { %3125 = vrot.lane.b32.xlu0 %v8837_v41, %s3902_s30  ;;  %v1989_v43 = vsel %vm8158_vm10, %v8992_v20, %v9042_v33 }
 0x3ef   :  { %3210 = vrot.lane.b32.xlu1 %v8947_v8, %s3901_s29 }
 0x3f0   :  { %v3276_v57 = vpop.permute.xlu0 %3275  ;;  %v9052_v29 = vpop.permute.xlu1 %1350 }
 0x3f1   :  { %v9056_v60 = vsel %vm1352_vm8, %v1349_v9, %v9052_v29 }
 0x3f2   :  { %3131 = vrot.lane.b32.xlu0 %v8865_v15, %s3902_s30  ;;  %v1991_v37 = vsel %vm8158_vm10, %v9018_v63, %v9056_v60 }
 0x3f3   :  { %3127 = vrot.lane.b32.xlu1 %v8872_v6, %s3902_s30 }
 0x3f4   :  { %v3282_v0 = vpop.permute.xlu0 %3281  ;;  %v3278_v51 = vpop.permute.xlu1 %3277 }
 0x3f5   :  { %v3315_v58 = vsel %vm3309_vm15, %v3276_v57, %v3278_v51 }
 0x3f6   :  { %3123 = vrot.lane.b32.xlu0 %v8909_v59, %s3902_s30  ;;  %3528 = vmatprep.subr.bf16.mxu0 %v3315_v58 }
 0x3f7   :  { %3133 = vrot.lane.b32.xlu1 %v8920_v5, %s3902_s30 }
 0x3f8   :  { %v1341_v1 = vpop.permute.xlu0 %1340 }
 0x3f9   :  { %v9072_v50 = vsel %vm1352_vm8, %v1341_v1, %v1343_v4  ;;  %v3284_v17 = vpop.permute.xlu1 %3283 }
 0x3fa   :  { %3044 = vrot.lane.b32.xlu0 %v8837_v41, %s3903_s3  ;;  %v3317_v25 = vsel %vm3309_vm15, %v3282_v0, %v3284_v17  ;;  %v1988_v12 = vsel %vm8158_vm10, %v9012_v21, %v9072_v50 }
 0x3fb   :  { %3129 = vrot.lane.b32.xlu1 %v8947_v8, %s3902_s30  ;;  %3576 = vmatprep.subr.bf16.mxu1 %v3317_v25 }
 0x3fc   :  { %v3274_v46 = vpop.permute.xlu0 %3273 }
 0x3fd   :  { %v3314_v44 = vsel %vm3309_vm15, %v3274_v46, %v3276_v57  ;;  %v1347_v4 = vpop.permute.xlu1 %1346 }
 0x3fe   :  { %v9085_v55 = vsel %vm1352_vm8, %v1347_v4, %v1349_v9  ;;  %3050 = vrot.lane.b32.xlu0 %v8865_v15, %s3903_s3  ;;  %3529 = vmatpush1.bf16.msra.mxu0 %v3314_v44 }
 0x3ff   :  { %3046 = vrot.lane.b32.xlu1 %v8872_v6, %s3903_s3  ;;  %v1990_v51 = vsel %vm8158_vm10, %v9032_v23, %v9085_v55 }
 0x400   :  { %v3195_v58 = vpop.permute.xlu0 %3194 }
 0x401   :  { %v3280_v1 = vpop.permute.xlu1 %3279 }
 0x402   :  { %v3316_v57 = vsel %vm3309_vm15, %v3280_v1, %v3282_v0  ;;  %3042 = vrot.lane.b32.xlu0 %v8909_v59, %s3903_s3 }
 0x403   :  { %3052 = vrot.lane.b32.xlu1 %v8920_v5, %s3903_s3  ;;  %3577 = vmatpush1.bf16.msra.mxu1 %v3316_v57 }
 0x404   :  { %v3201_v9 = vpop.permute.xlu0 %3200 }
 0x405   :  { %v3197_v17 = vpop.permute.xlu1 %3196 }
 0x406   :  { %2963 = vrot.lane.b32.xlu0 %v8837_v41, %s3904_s4  ;;  %v3234_v25 = vsel %vm3228_vm4, %v3195_v58, %v3197_v17 }
 0x407   :  { %3048 = vrot.lane.b32.xlu1 %v8947_v8, %s3903_s3  ;;  %3530 = vmatprep.subr.bf16.mxu0 %v3234_v25 }
 0x408   :  { %v3193_v46 = vpop.permute.xlu0 %3192 }
 0x409   :  { %v3233_v0 = vsel %vm3228_vm4, %v3193_v46, %v3195_v58  ;;  %v3203_v44 = vpop.permute.xlu1 %3202 }
 0x40a   :  { %2969 = vrot.lane.b32.xlu0 %v8865_v15, %s3904_s4  ;;  %3531 = vmatpush1.bf16.msra.mxu0 %v3233_v0  ;;  %v3236_v4 = vsel %vm3228_vm4, %v3201_v9, %v3203_v44 }
 0x40b   :  { %2965 = vrot.lane.b32.xlu1 %v8872_v6, %s3904_s4  ;;  %3578 = vmatprep.subr.bf16.mxu1 %v3236_v4 }
 0x40c   :  { %v3114_v1 = vpop.permute.xlu0 %3113 }
 0x40d   :  { %v3199_v57 = vpop.permute.xlu1 %3198 }
 0x40e   :  { %v3235_v17 = vsel %vm3228_vm4, %v3199_v57, %v3201_v9  ;;  %2961 = vrot.lane.b32.xlu0 %v8909_v59, %s3904_s4 }
 0x40f   :  { %2971 = vrot.lane.b32.xlu1 %v8920_v5, %s3904_s4  ;;  %3579 = vmatpush1.bf16.msra.mxu1 %v3235_v17 }
 0x410   :  { %v3120_v58 = vpop.permute.xlu0 %3119 }
 0x411   :  { %v3116_v25 = vpop.permute.xlu1 %3115 }
 0x412   :  { %2882 = vrot.lane.b32.xlu0 %v8837_v41, %s3905_s5  ;;  %v3153_v46 = vsel %vm3147_vm7, %v3114_v1, %v3116_v25 }
 0x413   :  { %2967 = vrot.lane.b32.xlu1 %v8947_v8, %s3904_s4  ;;  %3532 = vmatprep.subr.bf16.mxu0 %v3153_v46 }
 0x414   :  { %v3112_v0 = vpop.permute.xlu0 %3111 }
 0x415   :  { %v3152_v9 = vsel %vm3147_vm7, %v3112_v0, %v3114_v1  ;;  %v3122_v44 = vpop.permute.xlu1 %3121  ;;  %v10451_v1 = vld [vmem:[#allocation111_spill] sm:$0xff]  ;;  %v10454_v0 = vld [vmem:[#allocation42_spill] sm:$0xff] }
 0x416   :  { %2888 = vrot.lane.b32.xlu0 %v8865_v15, %s3905_s5  ;;  %3533 = vmatpush1.bf16.msra.mxu0 %v3152_v9  ;;  %v3155_v4 = vsel %vm3147_vm7, %v3120_v58, %v3122_v44  ;;  %v2723_v25 = vsel %vm7882_vm11, %v10451_v1, %v8331_v45  ;;  %v10452_v45 = vld [vmem:[#allocation110_spill] sm:$0xff]  ;;  %v10456_v44 = vld [vmem:[#allocation115_spill] sm:$0xff] }
 0x417   :  { %2884 = vrot.lane.b32.xlu1 %v8872_v6, %s3905_s5  ;;  %3580 = vmatprep.subr.bf16.mxu1 %v3155_v4  ;;  %v2792_v15 = vsel %vm1889_vm14, %v2723_v25, %v8981_v16  ;;  %v2726_v4 = vsel %vm7882_vm11, %v10456_v44, %v8967_v35 }
 0x418   :  { %v3033_v41 = vpop.permute.xlu0 %3032 }
 0x419   :  { %v3118_v57 = vpop.permute.xlu1 %3117 }
 0x41a   :  { %v3154_v17 = vsel %vm3147_vm7, %v3118_v57, %v3120_v58  ;;  %2880 = vrot.lane.b32.xlu0 %v8909_v59, %s3905_s5  ;;  %v9141_v58 = vsel %vm8158_vm10, %v2792_v15, %v9042_v33 }
 0x41b   :  { %2890 = vrot.lane.b32.xlu1 %v8920_v5, %s3905_s5  ;;  %3581 = vmatpush1.bf16.msra.mxu1 %v3154_v17  ;;  %v10453_v5 = vld [vmem:[#allocation72_spill] sm:$0xff]  ;;  %v2802_v17 = vsel %vm1889_vm14, %v2726_v4, %v9003_v31  ;;  %v10458_v31 = vld [vmem:[#allocation31_spill] sm:$0xff] }
 0x41c   :  { %v3039_v6 = vpop.permute.xlu0 %3038  ;;  %v10455_v9 = vsel %vm7265_vm9, %v10453_v5, %v10454_v0  ;;  %v9169_v15 = vsel %vm8158_vm10, %v2802_v17, %v9056_v60  ;;  %v10461_v5 = vld [vmem:[#allocation109_spill] sm:$0xff] }
 0x41d   :  { %v3035_v46 = vpop.permute.xlu1 %3034  ;;  %v2692_v16 = vsel %vm1805_vm1, %v10455_v9, %v10452_v45 }
 0x41e   :  { %3380 = vrot.lane.b32.xlu0 %v9141_v58, %s3899_s27  ;;  %v3072_v59 = vsel %vm3066_vm12, %v3033_v41, %v3035_v46  ;;  %v2724_v57 = vsel %vm7882_vm11, %v2692_v16, %v8327_v26 }
 0x41f   :  { %2886 = vrot.lane.b32.xlu1 %v8947_v8, %s3905_s5  ;;  %3534 = vmatprep.subr.bf16.mxu0 %v3072_v59  ;;  %v2796_v25 = vsel %vm1889_vm14, %v2724_v57, %v8977_v24  ;;  %v10457_v24 = vld [vmem:[#allocation112_spill] sm:$0xff]  ;;  %v10459_v59 = vld [vmem:[#allocation85_spill] sm:$0xff] }
 0x420   :  { %v3031_v1 = vpop.permute.xlu0 %3030  ;;  %v9175_v46 = vsel %vm8158_vm10, %v2796_v25, %v9038_v7  ;;  %v10460_v45 = vsel %vm7265_vm9, %v10458_v31, %v10459_v59  ;;  %v2722_v7 = vsel %vm7882_vm11, %v10461_v5, %v8317_v40 }
 0x421   :  { %v3071_v35 = vsel %vm3066_vm12, %v3031_v1, %v3033_v41  ;;  %v3041_v8 = vpop.permute.xlu1 %3040  ;;  %v2702_v41 = vsel %vm1805_vm1, %v10460_v45, %v10457_v24  ;;  %v2789_v38 = vsel %vm1889_vm14, %v2722_v7, %v8999_v53 }
 0x422   :  { %3386 = vrot.lane.b32.xlu0 %v9169_v15, %s3899_s27  ;;  %3535 = vmatpush1.bf16.msra.mxu0 %v3071_v35  ;;  %v3074_v26 = vsel %vm3066_vm12, %v3039_v6, %v3041_v8  ;;  %v2727_v0 = vsel %vm7882_vm11, %v2702_v41, %v8962_v39  ;;  %v9203_v44 = vsel %vm8158_vm10, %v2789_v38, %v9072_v50 }
 0x423   :  { %3382 = vrot.lane.b32.xlu1 %v9175_v46, %s3899_s27  ;;  %3582 = vmatprep.subr.bf16.mxu1 %v3074_v26  ;;  %v2806_v16 = vsel %vm1889_vm14, %v2727_v0, %v8996_v42  ;;  %v10462_v42 = vld [vmem:[#allocation113_spill] sm:$0xff]  ;;  %v10463_v0 = vsel %vm8158_vm10, %v8354_v22, %v8411_v34  ;;  %v10465_v22 = vsel %vm8158_vm10, %v8376_v27, %v8425_v54 }
 0x424   :  { %v2952_v9 = vpop.permute.xlu0 %2951  ;;  %v9208_v4 = vsel %vm8158_vm10, %v2806_v16, %v9052_v29  ;;  %v2725_v53 = vsel %vm7882_vm11, %v10462_v42, %v8457_v3  ;;  %v10466_v27 = vsel %vm8158_vm10, %v8401_v56, %v8443_v18 }
 0x425   :  { %v3037_v40 = vpop.permute.xlu1 %3036  ;;  %v2799_v17 = vsel %vm1889_vm14, %v2725_v53, %v9023_v62 }
 0x426   :  { %v3073_v39 = vsel %vm3066_vm12, %v3037_v40, %v3039_v6  ;;  %3378 = vrot.lane.b32.xlu0 %v9203_v44, %s3899_s27  ;;  %v9224_v6 = vsel %vm8158_vm10, %v2799_v17, %v9085_v55  ;;  %v10464_v40 = vsel %vm8158_vm10, %v8385_v13, %v8428_v28 }
 0x427   :  { %3388 = vrot.lane.b32.xlu1 %v9208_v4, %s3899_s27  ;;  %3583 = vmatpush1.bf16.msra.mxu1 %v3073_v39 }
 0x428   :  { %v2958_v57 = vpop.permute.xlu0 %2957 }
 0x429   :  { %v2954_v29 = vpop.permute.xlu1 %2953 }
 0x42a   :  { %3299 = vrot.lane.b32.xlu0 %v9141_v58, %s3900_s28  ;;  %v2991_v1 = vsel %vm2985_vm2, %v2952_v9, %v2954_v29 }
 0x42b   :  { %3384 = vrot.lane.b32.xlu1 %v9224_v6, %s3899_s27  ;;  %3536 = vmatprep.subr.bf16.mxu0 %v2991_v1 }
 0x42c   :  { %v2950_v48 = vpop.permute.xlu0 %2949 }
 0x42d   :  { %v2990_v3 = vsel %vm2985_vm2, %v2950_v48, %v2952_v9  ;;  %v2960_v25 = vpop.permute.xlu1 %2959 }
 0x42e   :  { %3305 = vrot.lane.b32.xlu0 %v9169_v15, %s3900_s28  ;;  %3537 = vmatpush1.bf16.msra.mxu0 %v2990_v3  ;;  %v2993_v62 = vsel %vm2985_vm2, %v2958_v57, %v2960_v25 }
 0x42f   :  { %3301 = vrot.lane.b32.xlu1 %v9175_v46, %s3900_s28  ;;  %3584 = vmatprep.subr.bf16.mxu1 %v2993_v62 }
 0x430   :  { %v2871_v35 = vpop.permute.xlu0 %2870 }
 0x431   :  { %v2956_v8 = vpop.permute.xlu1 %2955 }
 0x432   :  { %v2992_v26 = vsel %vm2985_vm2, %v2956_v8, %v2958_v57  ;;  %3297 = vrot.lane.b32.xlu0 %v9203_v44, %s3900_s28 }
 0x433   :  { %3307 = vrot.lane.b32.xlu1 %v9208_v4, %s3900_s28  ;;  %3585 = vmatpush1.bf16.msra.mxu1 %v2992_v26 }
 0x434   :  { %v2877_v24 = vpop.permute.xlu0 %2876 }
 0x435   :  { %v2873_v31 = vpop.permute.xlu1 %2872 }
 0x436   :  { %3218 = vrot.lane.b32.xlu0 %v9141_v58, %s3901_s29  ;;  %v2910_v59 = vsel %vm2904_vm3, %v2871_v35, %v2873_v31 }
 0x437   :  { %3303 = vrot.lane.b32.xlu1 %v9224_v6, %s3900_s28  ;;  %3538 = vmatprep.subr.bf16.mxu0 %v2910_v59 }
 0x438   :  { %v2869_v45 = vpop.permute.xlu0 %2868 }
 0x439   :  { %v2909_v41 = vsel %vm2904_vm3, %v2869_v45, %v2871_v35  ;;  %v2879_v5 = vpop.permute.xlu1 %2878 }
 0x43a   :  { %3224 = vrot.lane.b32.xlu0 %v9169_v15, %s3901_s29  ;;  %3539 = vmatpush1.bf16.msra.mxu0 %v2909_v41  ;;  %v2912_v7 = vsel %vm2904_vm3, %v2877_v24, %v2879_v5 }
 0x43b   :  { %3220 = vrot.lane.b32.xlu1 %v9175_v46, %s3901_s29  ;;  %3586 = vmatprep.subr.bf16.mxu1 %v2912_v7 }
 0x43c   :  { %3540 = vmatprep.subr.bf16.mxu0 %v10463_v0  ;;  %v3369_v38 = vpop.permute.xlu0 %3368 }
 0x43d   :  { %v2875_v9 = vpop.permute.xlu1 %2874 }
 0x43e   :  { %v2911_v16 = vsel %vm2904_vm3, %v2875_v9, %v2877_v24  ;;  %3216 = vrot.lane.b32.xlu0 %v9203_v44, %s3901_s29  ;;  %3541 = vmatpush1.bf16.msra.mxu0 %v10464_v40 }
 0x43f   :  { %3226 = vrot.lane.b32.xlu1 %v9208_v4, %s3901_s29  ;;  %3587 = vmatpush1.bf16.msra.mxu1 %v2911_v16 }
 0x440   :  { %3588 = vmatprep.subr.bf16.mxu1 %v10465_v22  ;;  %v3375_v34 = vpop.permute.xlu0 %3374 }
 0x441   :  { %v3371_v39 = vpop.permute.xlu1 %3370  ;;  %3559 = vmatmul.mubr.bf16.vlgmr.msra.gmra.mxu0 %v8915_v14 }
 0x442   :  { %3137 = vrot.lane.b32.xlu0 %v9141_v58, %s3902_s30  ;;  %v3400_v13 = vsel %vm3390_vm13, %v3369_v38, %v3371_v39  ;;  %3654 = vmatprep.mubr.bf16.mxu0 %v10446_v61 }
 0x443   :  { %3222 = vrot.lane.b32.xlu1 %v9224_v6, %s3901_s29  ;;  %3589 = vmatpush1.bf16.msra.mxu1 %v10466_v27 }
 0x444   :  { %3622 = vmatprep.subr.bf16.mxu0 %v3400_v13  ;;  %v3367_v54 = vpop.permute.xlu0 %3366 }
 0x445   :  { %v3399_v28 = vsel %vm3390_vm13, %v3367_v54, %v3369_v38  ;;  %v3377_v42 = vpop.permute.xlu1 %3376 }
 0x446   :  { %3143 = vrot.lane.b32.xlu0 %v9169_v15, %s3902_s30  ;;  %3623 = vmatpush1.bf16.msra.mxu0 %v3399_v28  ;;  %v3402_v53 = vsel %vm3390_vm13, %v3375_v34, %v3377_v42 }
 0x447   :  { %3139 = vrot.lane.b32.xlu1 %v9175_v46, %s3902_s30  ;;  %3670 = vmatprep.subr.bf16.mxu1 %v3402_v53 }
 0x448   :  { %v3288_v57 = vpop.permute.xlu0 %3287  ;;  %3607 = vmatmul.mubr.bf16.vlgmr.msra.gmra.mxu1 %v8915_v14 }
 0x449   :  { %v3373_v56 = vpop.permute.xlu1 %3372  ;;  %3702 = vmatprep.mubr.bf16.mxu1 %v10446_v61 }
 0x44a   :  { %v3401_v18 = vsel %vm3390_vm13, %v3373_v56, %v3375_v34  ;;  %3135 = vrot.lane.b32.xlu0 %v9203_v44, %s3902_s30 }
 0x44b   :  { %3145 = vrot.lane.b32.xlu1 %v9208_v4, %s3902_s30  ;;  %3671 = vmatpush1.bf16.msra.mxu1 %v3401_v18 }
 0x44c   :  { %v3294_v17 = vpop.permute.xlu0 %3293 }
 0x44d   :  { %v3290_v29 = vpop.permute.xlu1 %3289 }
 0x44e   :  { %3056 = vrot.lane.b32.xlu0 %v9141_v58, %s3903_s3  ;;  %v3319_v1 = vsel %vm3309_vm15, %v3288_v57, %v3290_v29 }
 0x44f   :  { %3141 = vrot.lane.b32.xlu1 %v9224_v6, %s3902_s30  ;;  %3624 = vmatprep.subr.bf16.mxu0 %v3319_v1 }
 0x450   :  { %v3286_v48 = vpop.permute.xlu0 %3285 }
 0x451   :  { %v3318_v3 = vsel %vm3309_vm15, %v3286_v48, %v3288_v57  ;;  %v3296_v25 = vpop.permute.xlu1 %3295 }
 0x452   :  { %3062 = vrot.lane.b32.xlu0 %v9169_v15, %s3903_s3  ;;  %3625 = vmatpush1.bf16.msra.mxu0 %v3318_v3  ;;  %v3321_v62 = vsel %vm3309_vm15, %v3294_v17, %v3296_v25 }
 0x453   :  { %3058 = vrot.lane.b32.xlu1 %v9175_v46, %s3903_s3  ;;  %3672 = vmatprep.subr.bf16.mxu1 %v3321_v62 }
 0x454   :  { %v3207_v35 = vpop.permute.xlu0 %3206 }
 0x455   :  { %v3292_v8 = vpop.permute.xlu1 %3291 }
 0x456   :  { %v3320_v26 = vsel %vm3309_vm15, %v3292_v8, %v3294_v17  ;;  %3054 = vrot.lane.b32.xlu0 %v9203_v44, %s3903_s3 }
 0x457   :  { %3064 = vrot.lane.b32.xlu1 %v9208_v4, %s3903_s3  ;;  %3673 = vmatpush1.bf16.msra.mxu1 %v3320_v26 }
 0x458   :  { %v3213_v24 = vpop.permute.xlu0 %3212 }
 0x459   :  { %v3209_v31 = vpop.permute.xlu1 %3208 }
 0x45a   :  { %2975 = vrot.lane.b32.xlu0 %v9141_v58, %s3904_s4  ;;  %v3238_v59 = vsel %vm3228_vm4, %v3207_v35, %v3209_v31 }
 0x45b   :  { %3060 = vrot.lane.b32.xlu1 %v9224_v6, %s3903_s3  ;;  %3626 = vmatprep.subr.bf16.mxu0 %v3238_v59 }
 0x45c   :  { %v3205_v45 = vpop.permute.xlu0 %3204 }
 0x45d   :  { %v3237_v41 = vsel %vm3228_vm4, %v3205_v45, %v3207_v35  ;;  %v3215_v5 = vpop.permute.xlu1 %3214 }
 0x45e   :  { %2981 = vrot.lane.b32.xlu0 %v9169_v15, %s3904_s4  ;;  %3627 = vmatpush1.bf16.msra.mxu0 %v3237_v41  ;;  %v3240_v7 = vsel %vm3228_vm4, %v3213_v24, %v3215_v5 }
 0x45f   :  { %2977 = vrot.lane.b32.xlu1 %v9175_v46, %s3904_s4  ;;  %3674 = vmatprep.subr.bf16.mxu1 %v3240_v7 }
 0x460   :  { %v3126_v0 = vpop.permute.xlu0 %3125 }
 0x461   :  { %v3211_v38 = vpop.permute.xlu1 %3210 }
 0x462   :  { %v3239_v9 = vsel %vm3228_vm4, %v3211_v38, %v3213_v24  ;;  %2973 = vrot.lane.b32.xlu0 %v9203_v44, %s3904_s4 }
 0x463   :  { %2983 = vrot.lane.b32.xlu1 %v9208_v4, %s3904_s4  ;;  %3675 = vmatpush1.bf16.msra.mxu1 %v3239_v9 }
 0x464   :  { %v3132_v16 = vpop.permute.xlu0 %3131 }
 0x465   :  { %v3128_v40 = vpop.permute.xlu1 %3127 }
 0x466   :  { %2894 = vrot.lane.b32.xlu0 %v9141_v58, %s3905_s5  ;;  %v3157_v22 = vsel %vm3147_vm7, %v3126_v0, %v3128_v40  ;;  %v10468_v40 = vsel %vm8158_vm10, %v8667_v49, %v8715_v11 }
 0x467   :  { %2979 = vrot.lane.b32.xlu1 %v9224_v6, %s3904_s4  ;;  %3628 = vmatprep.subr.bf16.mxu0 %v3157_v22 }
 0x468   :  { %v3124_v34 = vpop.permute.xlu0 %3123 }
 0x469   :  { %v3156_v39 = vsel %vm3147_vm7, %v3124_v34, %v3126_v0  ;;  %v3134_v13 = vpop.permute.xlu1 %3133  ;;  %v10467_v0 = vsel %vm8158_vm10, %v8648_v2, %v8701_v10 }
 0x46a   :  { %2900 = vrot.lane.b32.xlu0 %v9169_v15, %s3905_s5  ;;  %3629 = vmatpush1.bf16.msra.mxu0 %v3156_v39  ;;  %v3159_v27 = vsel %vm3147_vm7, %v3132_v16, %v3134_v13 }
 0x46b   :  { %2896 = vrot.lane.b32.xlu1 %v9175_v46, %s3905_s5  ;;  %3676 = vmatprep.subr.bf16.mxu1 %v3159_v27 }
 0x46c   :  { %v3045_v58 = vpop.permute.xlu0 %3044 }
 0x46d   :  { %v3130_v54 = vpop.permute.xlu1 %3129 }
 0x46e   :  { %v3158_v28 = vsel %vm3147_vm7, %v3130_v54, %v3132_v16  ;;  %2892 = vrot.lane.b32.xlu0 %v9203_v44, %s3905_s5 }
 0x46f   :  { %2902 = vrot.lane.b32.xlu1 %v9208_v4, %s3905_s5  ;;  %3677 = vmatpush1.bf16.msra.mxu1 %v3158_v28 }
 0x470   :  { %v3051_v42 = vpop.permute.xlu0 %3050 }
 0x471   :  { %v3047_v15 = vpop.permute.xlu1 %3046 }
 0x472   :  { %v3076_v53 = vsel %vm3066_vm12, %v3045_v58, %v3047_v15 }
 0x473   :  { %2898 = vrot.lane.b32.xlu1 %v9224_v6, %s3905_s5  ;;  %3630 = vmatprep.subr.bf16.mxu0 %v3076_v53 }
 0x474   :  { %v3043_v46 = vpop.permute.xlu0 %3042 }
 0x475   :  { %v3075_v57 = vsel %vm3066_vm12, %v3043_v46, %v3045_v58  ;;  %v3053_v56 = vpop.permute.xlu1 %3052 }
 0x476   :  { %3631 = vmatpush1.bf16.msra.mxu0 %v3075_v57  ;;  %v3078_v18 = vsel %vm3066_vm12, %v3051_v42, %v3053_v56 }
 0x477   :  { %3678 = vmatprep.subr.bf16.mxu1 %v3078_v18 }
 0x478   :  { %v2964_v44 = vpop.permute.xlu0 %2963 }
 0x479   :  { %v3049_v17 = vpop.permute.xlu1 %3048 }
 0x47a   :  { %v3077_v4 = vsel %vm3066_vm12, %v3049_v17, %v3051_v42 }
 0x47b   :  { %3679 = vmatpush1.bf16.msra.mxu1 %v3077_v4 }
 0x47c   :  { %v2970_v29 = vpop.permute.xlu0 %2969 }
 0x47d   :  { %v2966_v1 = vpop.permute.xlu1 %2965 }
 0x47e   :  { %v2995_v48 = vsel %vm2985_vm2, %v2964_v44, %v2966_v1 }
 0x47f   :  { %3632 = vmatprep.subr.bf16.mxu0 %v2995_v48 }
 0x480   :  { %v2962_v6 = vpop.permute.xlu0 %2961 }
 0x481   :  { %v2994_v3 = vsel %vm2985_vm2, %v2962_v6, %v2964_v44  ;;  %v2972_v25 = vpop.permute.xlu1 %2971 }
 0x482   :  { %3633 = vmatpush1.bf16.msra.mxu0 %v2994_v3  ;;  %v2997_v62 = vsel %vm2985_vm2, %v2970_v29, %v2972_v25 }
 0x483   :  { %3680 = vmatprep.subr.bf16.mxu1 %v2997_v62 }
 0x484   :  { %v2883_v35 = vpop.permute.xlu0 %2882 }
 0x485   :  { %v2968_v8 = vpop.permute.xlu1 %2967 }
 0x486   :  { %v2996_v26 = vsel %vm2985_vm2, %v2968_v8, %v2970_v29 }
 0x487   :  { %3681 = vmatpush1.bf16.msra.mxu1 %v2996_v26 }
 0x488   :  { %v2889_v24 = vpop.permute.xlu0 %2888 }
 0x489   :  { %v2885_v31 = vpop.permute.xlu1 %2884 }
 0x48a   :  { %v2914_v59 = vsel %vm2904_vm3, %v2883_v35, %v2885_v31 }
 0x48b   :  { %3634 = vmatprep.subr.bf16.mxu0 %v2914_v59 }
 0x48c   :  { %v2881_v45 = vpop.permute.xlu0 %2880 }
 0x48d   :  { %v2913_v41 = vsel %vm2904_vm3, %v2881_v45, %v2883_v35  ;;  %v2891_v5 = vpop.permute.xlu1 %2890 }
 0x48e   :  { %3635 = vmatpush1.bf16.msra.mxu0 %v2913_v41  ;;  %v2916_v7 = vsel %vm2904_vm3, %v2889_v24, %v2891_v5 }
 0x48f   :  { %3682 = vmatprep.subr.bf16.mxu1 %v2916_v7  ;;  %3636 = vmatprep.subr.bf16.mxu0 %v10467_v0 }
 0x490   :  { %v3381_v38 = vpop.permute.xlu0 %3380 }
 0x491   :  { %v2887_v9 = vpop.permute.xlu1 %2886 }
 0x492   :  { %v2915_v16 = vsel %vm2904_vm3, %v2887_v9, %v2889_v24  ;;  %3637 = vmatpush1.bf16.msra.mxu0 %v1984_v52 }
 0x493   :  { %3683 = vmatpush1.bf16.msra.mxu1 %v2915_v16 }
 0x494   :  { %3684 = vmatprep.subr.bf16.mxu1 %v10468_v40  ;;  %v3387_v22 = vpop.permute.xlu0 %3386 }
 0x495   :  { %v3383_v2 = vpop.permute.xlu1 %3382  ;;  %3655 = vmatmul.mubr.bf16.vlgmr.msra.gmra.mxu0 %v8915_v14  ;;  %v3465_v10 = vpop.f32.mrf.mxu0 }
 0x496   :  { %v3404_v34 = vsel %vm3390_vm13, %v3381_v38, %v3383_v2  ;;  %3750 = vmatprep.mubr.bf16.mxu0 %v10446_v61  ;;  %3474 = vst [vmem:[%s9532_s2] sm:$0xff] %v3465_v10 }
 0x497   :  { %3685 = vmatpush1.bf16.msra.mxu1 %v10469_v30  ;;  %3718 = vmatprep.subr.bf16.mxu0 %v3404_v34  ;;  %v3512_v49 = vpop.f32.mrf.mxu1  ;;  %v3467_v11 = vpop.f32.mrf.mxu0 }
 0x498   :  { %v3379_v47 = vpop.permute.xlu0 %3378  ;;  %3830 = vst [vmem:[%s9532_s2 + $0x20] sm:$0xff] %v3512_v49  ;;  %3475 = vst [vmem:[%s9532_s2 + $0x8] sm:$0xff] %v3467_v11 }
 0x499   :  { %v3403_v52 = vsel %vm3390_vm13, %v3379_v47, %v3381_v38  ;;  %v3389_v39 = vpop.permute.xlu1 %3388  ;;  %v3514_v13 = vpop.f32.mrf.mxu1 }
 0x49a   :  { %3719 = vmatpush1.bf16.msra.mxu0 %v3403_v52  ;;  %v3406_v19 = vsel %vm3390_vm13, %v3387_v22, %v3389_v39  ;;  %3703 = vmatmul.mubr.bf16.vlgmr.msra.gmra.mxu1 %v8915_v14  ;;  %3831 = vst [vmem:[%s9532_s2 + $0x28] sm:$0xff] %v3514_v13  ;;  %v3469_v36 = vpop.f32.mrf.mxu0 }
 0x49b   :  { %3766 = vmatprep.subr.bf16.mxu1 %v3406_v19  ;;  %3798 = vmatprep.mubr.bf16.mxu1 %v10446_v61  ;;  %3476 = vst [vmem:[%s9532_s2 + $0x10] sm:$0xff] %v3469_v36  ;;  %v3516_v27 = vpop.f32.mrf.mxu1 }
 0x49c   :  { %v3300_v58 = vpop.permute.xlu0 %3299  ;;  %3832 = vst [vmem:[%s9532_s2 + $0x30] sm:$0xff] %v3516_v27  ;;  %v3471_v54 = vpop.f32.mrf.mxu0 }
 0x49d   :  { %v3385_v28 = vpop.permute.xlu1 %3384  ;;  %3477 = vst [vmem:[%s9532_s2 + $0x18] sm:$0xff] %v3471_v54  ;;  %v3518_v42 = vpop.f32.mrf.mxu1 }
 0x49e   :  { %v3405_v15 = vsel %vm3390_vm13, %v3385_v28, %v3387_v22  ;;  %3833 = vst [vmem:[%s9532_s2 + $0x38] sm:$0xff] %v3518_v42 }
 0x49f   :  { %3767 = vmatpush1.bf16.msra.mxu1 %v3405_v15 }
 0x4a0   :  { %v3306_v61 = vpop.permute.xlu0 %3305 }
 0x4a1   :  { %v3302_v53 = vpop.permute.xlu1 %3301 }
 0x4a2   :  { %v3323_v46 = vsel %vm3309_vm15, %v3300_v58, %v3302_v53 }
 0x4a3   :  { %3720 = vmatprep.subr.bf16.mxu0 %v3323_v46 }
 0x4a4   :  { %v3298_v57 = vpop.permute.xlu0 %3297 }
 0x4a5   :  { %v3322_v56 = vsel %vm3309_vm15, %v3298_v57, %v3300_v58  ;;  %v3308_v18 = vpop.permute.xlu1 %3307 }
 0x4a6   :  { %3721 = vmatpush1.bf16.msra.mxu0 %v3322_v56  ;;  %v3325_v44 = vsel %vm3309_vm15, %v3306_v61, %v3308_v18 }
 0x4a7   :  { %3768 = vmatprep.subr.bf16.mxu1 %v3325_v44 }
 0x4a8   :  { %v3219_v17 = vpop.permute.xlu0 %3218 }
 0x4a9   :  { %v3304_v4 = vpop.permute.xlu1 %3303 }
 0x4aa   :  { %v3324_v29 = vsel %vm3309_vm15, %v3304_v4, %v3306_v61 }
 0x4ab   :  { %3769 = vmatpush1.bf16.msra.mxu1 %v3324_v29 }
 0x4ac   :  { %v3225_v1 = vpop.permute.xlu0 %3224 }
 0x4ad   :  { %v3221_v48 = vpop.permute.xlu1 %3220 }
 0x4ae   :  { %v3242_v6 = vsel %vm3228_vm4, %v3219_v17, %v3221_v48 }
 0x4af   :  { %3722 = vmatprep.subr.bf16.mxu0 %v3242_v6 }
 0x4b0   :  { %v3217_v3 = vpop.permute.xlu0 %3216 }
 0x4b1   :  { %v3241_v25 = vsel %vm3228_vm4, %v3217_v3, %v3219_v17  ;;  %v3227_v62 = vpop.permute.xlu1 %3226 }
 0x4b2   :  { %3723 = vmatpush1.bf16.msra.mxu0 %v3241_v25  ;;  %v3244_v35 = vsel %vm3228_vm4, %v3225_v1, %v3227_v62 }
 0x4b3   :  { %3770 = vmatprep.subr.bf16.mxu1 %v3244_v35 }
 0x4b4   :  { %v3138_v8 = vpop.permute.xlu0 %3137 }
 0x4b5   :  { %v3223_v26 = vpop.permute.xlu1 %3222 }
 0x4b6   :  { %v3243_v24 = vsel %vm3228_vm4, %v3223_v26, %v3225_v1 }
 0x4b7   :  { %3771 = vmatpush1.bf16.msra.mxu1 %v3243_v24 }
 0x4b8   :  { %v3144_v31 = vpop.permute.xlu0 %3143 }
 0x4b9   :  { %v3140_v59 = vpop.permute.xlu1 %3139 }
 0x4ba   :  { %v3161_v45 = vsel %vm3147_vm7, %v3138_v8, %v3140_v59 }
 0x4bb   :  { %3724 = vmatprep.subr.bf16.mxu0 %v3161_v45 }
 0x4bc   :  { %v3136_v41 = vpop.permute.xlu0 %3135 }
 0x4bd   :  { %v3160_v5 = vsel %vm3147_vm7, %v3136_v41, %v3138_v8  ;;  %v3146_v7 = vpop.permute.xlu1 %3145 }
 0x4be   :  { %3725 = vmatpush1.bf16.msra.mxu0 %v3160_v5  ;;  %v3163_v0 = vsel %vm3147_vm7, %v3144_v31, %v3146_v7 }
 0x4bf   :  { %3772 = vmatprep.subr.bf16.mxu1 %v3163_v0 }
 0x4c0   :  { %v3057_v38 = vpop.permute.xlu0 %3056 }
 0x4c1   :  { %v3142_v9 = vpop.permute.xlu1 %3141 }
 0x4c2   :  { %v3162_v16 = vsel %vm3147_vm7, %v3142_v9, %v3144_v31 }
 0x4c3   :  { %3773 = vmatpush1.bf16.msra.mxu1 %v3162_v16 }
 0x4c4   :  { %v3063_v40 = vpop.permute.xlu0 %3062 }
 0x4c5   :  { %v3059_v22 = vpop.permute.xlu1 %3058 }
 0x4c6   :  { %v3080_v2 = vsel %vm3066_vm12, %v3057_v38, %v3059_v22 }
 0x4c7   :  { %3726 = vmatprep.subr.bf16.mxu0 %v3080_v2 }
 0x4c8   :  { %v3055_v10 = vpop.permute.xlu0 %3054 }
 0x4c9   :  { %v3079_v34 = vsel %vm3066_vm12, %v3055_v10, %v3057_v38  ;;  %v3065_v30 = vpop.permute.xlu1 %3064 }
 0x4ca   :  { %3727 = vmatpush1.bf16.msra.mxu0 %v3079_v34  ;;  %v3082_v49 = vsel %vm3066_vm12, %v3063_v40, %v3065_v30 }
 0x4cb   :  { %3774 = vmatprep.subr.bf16.mxu1 %v3082_v49 }
 0x4cc   :  { %v2976_v11 = vpop.permute.xlu0 %2975 }
 0x4cd   :  { %v3061_v47 = vpop.permute.xlu1 %3060 }
 0x4ce   :  { %v3081_v52 = vsel %vm3066_vm12, %v3061_v47, %v3063_v40 }
 0x4cf   :  { %3775 = vmatpush1.bf16.msra.mxu1 %v3081_v52 }
 0x4d0   :  { %v2982_v39 = vpop.permute.xlu0 %2981 }
 0x4d1   :  { %v2978_v13 = vpop.permute.xlu1 %2977 }
 0x4d2   :  { %v2999_v19 = vsel %vm2985_vm2, %v2976_v11, %v2978_v13 }
 0x4d3   :  { %3728 = vmatprep.subr.bf16.mxu0 %v2999_v19 }
 0x4d4   :  { %v2974_v36 = vpop.permute.xlu0 %2973 }
 0x4d5   :  { %v2998_v27 = vsel %vm2985_vm2, %v2974_v36, %v2976_v11  ;;  %v2984_v58 = vpop.permute.xlu1 %2983 }
 0x4d6   :  { %3729 = vmatpush1.bf16.msra.mxu0 %v2998_v27  ;;  %v3001_v54 = vsel %vm2985_vm2, %v2982_v39, %v2984_v58 }
 0x4d7   :  { %3776 = vmatprep.subr.bf16.mxu1 %v3001_v54 }
 0x4d8   :  { %v2895_v28 = vpop.permute.xlu0 %2894 }
 0x4d9   :  { %v2980_v42 = vpop.permute.xlu1 %2979 }
 0x4da   :  { %v3000_v15 = vsel %vm2985_vm2, %v2980_v42, %v2982_v39 }
 0x4db   :  { %3777 = vmatpush1.bf16.msra.mxu1 %v3000_v15 }
 0x4dc   :  { %v2901_v61 = vpop.permute.xlu0 %2900 }
 0x4dd   :  { %v2897_v53 = vpop.permute.xlu1 %2896 }
 0x4de   :  { %v2918_v46 = vsel %vm2904_vm3, %v2895_v28, %v2897_v53 }
 0x4df   :  { %3730 = vmatprep.subr.bf16.mxu0 %v2918_v46 }
 0x4e0   :  { %v2893_v57 = vpop.permute.xlu0 %2892 }
 0x4e1   :  { %v2917_v56 = vsel %vm2904_vm3, %v2893_v57, %v2895_v28  ;;  %v2903_v18 = vpop.permute.xlu1 %2902 }
 0x4e2   :  { %3731 = vmatpush1.bf16.msra.mxu0 %v2917_v56  ;;  %v2920_v44 = vsel %vm2904_vm3, %v2901_v61, %v2903_v18 }
 0x4e3   :  { %3778 = vmatprep.subr.bf16.mxu1 %v2920_v44  ;;  %3732 = vmatprep.subr.bf16.mxu0 %v1989_v43 }
 0x4e5   :  { %v2899_v17 = vpop.permute.xlu1 %2898 }
 0x4e6   :  { %v2919_v4 = vsel %vm2904_vm3, %v2899_v17, %v2901_v61  ;;  %3733 = vmatpush1.bf16.msra.mxu0 %v1988_v12 }
 0x4e7   :  { %3779 = vmatpush1.bf16.msra.mxu1 %v2919_v4 }
 0x4e8   :  { %3780 = vmatprep.subr.bf16.mxu1 %v1991_v37 }
 0x4e9   :  { %3751 = vmatmul.mubr.bf16.vlgmr.msra.gmra.mxu0 %v8915_v14 }
 0x4eb   :  { %3781 = vmatpush1.bf16.msra.mxu1 %v1990_v51 }
 0x4ee   :  { %3799 = vmatmul.mubr.bf16.vlgmr.msra.gmra.mxu1 %v8915_v14 }
 0x501   :  { %v3560_v20 = vpop.f32.mrf.mxu0 }
 0x502   :  { %3834 = vst [vmem:[%s9532_s2 + $0x40] sm:$0xff] %v3560_v20 }
 0x503   :  { %v3562_v21 = vpop.f32.mrf.mxu0 }
 0x504   :  { %3835 = vst [vmem:[%s9532_s2 + $0x48] sm:$0xff] %v3562_v21 }
 0x505   :  { %v3564_v63 = vpop.f32.mrf.mxu0 }
 0x506   :  { %3836 = vst [vmem:[%s9532_s2 + $0x50] sm:$0xff] %v3564_v63 }
 0x507   :  { %v3566_v32 = vpop.f32.mrf.mxu0 }
 0x508   :  { %v3608_v23 = vpop.f32.mrf.mxu1  ;;  %3837 = vst [vmem:[%s9532_s2 + $0x58] sm:$0xff] %v3566_v32 }
 0x509   :  { %3838 = vst [vmem:[%s9532_s2 + $0x60] sm:$0xff] %v3608_v23 }
 0x50a   :  { %v3610_v14 = vpop.f32.mrf.mxu1 }
 0x50b   :  { %3839 = vst [vmem:[%s9532_s2 + $0x68] sm:$0xff] %v3610_v14 }
 0x50c   :  { %v3612_v33 = vpop.f32.mrf.mxu1 }
 0x50d   :  { %3840 = vst [vmem:[%s9532_s2 + $0x70] sm:$0xff] %v3612_v33 }
 0x50e   :  { %v3614_v43 = vpop.f32.mrf.mxu1 }
 0x50f   :  { %3841 = vst [vmem:[%s9532_s2 + $0x78] sm:$0xff] %v3614_v43 }
 0x555   :  { %v3656_v60 = vpop.f32.mrf.mxu0 }
 0x556   :  { %3842 = vst [vmem:[%s9532_s2 + $0x80] sm:$0xff] %v3656_v60 }
 0x557   :  { %v3658_v37 = vpop.f32.mrf.mxu0 }
 0x558   :  { %3843 = vst [vmem:[%s9532_s2 + $0x88] sm:$0xff] %v3658_v37 }
 0x559   :  { %v3660_v50 = vpop.f32.mrf.mxu0 }
 0x55a   :  { %v3704_v12 = vpop.f32.mrf.mxu1  ;;  %3844 = vst [vmem:[%s9532_s2 + $0x90] sm:$0xff] %v3660_v50 }
 0x55b   :  { %3846 = vst [vmem:[%s9532_s2 + $0xa0] sm:$0xff] %v3704_v12  ;;  %v3662_v55 = vpop.f32.mrf.mxu0 }
 0x55c   :  { %v3706_v51 = vpop.f32.mrf.mxu1  ;;  %3845 = vst [vmem:[%s9532_s2 + $0x98] sm:$0xff] %v3662_v55 }
 0x55d   :  { %3847 = vst [vmem:[%s9532_s2 + $0xa8] sm:$0xff] %v3706_v51 }
 0x55e   :  { %v3708_v29 = vpop.f32.mrf.mxu1 }
 0x55f   :  { %3848 = vst [vmem:[%s9532_s2 + $0xb0] sm:$0xff] %v3708_v29 }
 0x560   :  { %v3710_v1 = vpop.f32.mrf.mxu1 }
 0x561   :  { %3849 = vst [vmem:[%s9532_s2 + $0xb8] sm:$0xff] %v3710_v1 }
 0x5a9   :  { %v3752_v48 = vpop.f32.mrf.mxu0 }
 0x5aa   :  { %3850 = vst [vmem:[%s9532_s2 + $0xc0] sm:$0xff] %v3752_v48 }
 0x5ab   :  { %v3754_v6 = vpop.f32.mrf.mxu0 }
 0x5ac   :  { %3851 = vst [vmem:[%s9532_s2 + $0xc8] sm:$0xff] %v3754_v6 }
 0x5ad   :  { %v3756_v3 = vpop.f32.mrf.mxu0 }
 0x5ae   :  { %3852 = vst [vmem:[%s9532_s2 + $0xd0] sm:$0xff] %v3756_v3  ;;  %v3800_v25 = vpop.f32.mrf.mxu1 }
 0x5af   :  { %3854 = vst [vmem:[%s9532_s2 + $0xe0] sm:$0xff] %v3800_v25  ;;  %v3758_v62 = vpop.f32.mrf.mxu0 }
 0x5b0   :  { %3853 = vst [vmem:[%s9532_s2 + $0xd8] sm:$0xff] %v3758_v62  ;;  %v3802_v35 = vpop.f32.mrf.mxu1 }
 0x5b1   :  { %3855 = vst [vmem:[%s9532_s2 + $0xe8] sm:$0xff] %v3802_v35 }
 0x5b2   :  { %v3804_v8 = vpop.f32.mrf.mxu1 }
 0x5b3   :  { %3856 = vst [vmem:[%s9532_s2 + $0xf0] sm:$0xff] %v3804_v8 }
 0x5b4   :  { %v3806_v26 = vpop.f32.mrf.mxu1 }
 0x5b5   :  { %3857 = vst [vmem:[%s9532_s2 + $0xf8] sm:$0xff] %v3806_v26 }

// kernel: forward.3
= control target key start
LH: loop header
LB: loop body
LE: loop exit
PB: predicated region body
PF: predicated region fallthrough
CT: control target
= control target key end

     0   :  { %s5174_s9 = smov 0   ;;  %s7027_s0 = inlined_call_operand.vmem [shape: bf16[4,2,8,192], index: 0, kind: input, shape index: {}]   ;;  %s7028_s1 = inlined_call_operand.vmem [shape: bf16[4,2,6,192], index: 1, kind: input, shape index: {}]   ;;  %s7029_s2 = inlined_call_operand.vmem [shape: f32[4,8,6], index: 2, kind: output, shape index: {}]  }
   0x1 LB: > { %s4596_s10 = sadd.s32 4294967295, %s5116_s9   ;;  %p4600_p0 = scmp.ge.s32.totalorder %s5116_s9, 1  ;;  %s5116_s9 = sphi %s5174_s9, %s12_s9  }
   0x2   : > { %p122_p1 = scmp.lt.s32.totalorder %s5116_s9, 5 }
   0x4   : > { %p123_p2 = pnand %p4600_p0, %p122_p1 }
   0x6   : > { %126 = sbr.rel (%p123_p2) target bundleno = 720 (0x2d0), region = 28 }
   0xb   : > { %p148_p3 = scmp.lt.s32.totalorder %s4596_s10, 3  ;;  %v164_v0 = vlaneseq  ;;  %v5205_v4 = vmov 0.0   ;;  %v5207_v5 = vmov 0.0   ;;  %v5209_v6 = vmov 0.0   ;;  %s5221_s22 = smov 0  }
   0xc   : > { %v5211_v7 = vmov 0.0   ;;  %v5213_v8 = vmov 0.0   ;;  %v5215_v9 = vmov 0.0   ;;  %v5217_v10 = vmov 0.0  }
   0xd   : > { %s7223_s10 = smov (!%p148_p3, %s4596_s10), 3  ;;  %v5182_v1 = vshrl.u32 %v164_v0, 7  ;;  %v5219_v11 = vmov 0.0  }
   0xe   : > { %s4671_s11 = sshll.u32 %s7223_s10, 4  ;;  %s4605_s12 = sshll.u32 %s7223_s10, 3 }
   0xf   : > { %7083 = vst [vmem:[#allocation2_spill] sm:$0xff] %v5182_v1  ;;  %v5185_v2 = vadd.s32 8, %v5182_v1  ;;  %v5188_v3 = vadd.s32 16, %v5182_v1  ;;  %s5193_s15 = scalar_lea.vmem %s7027_s0, %s4671_s11  ;;  %s5198_s18 = scalar_lea.vmem %s7028_s1, %s4671_s11 }
  0x10   : > { %s5203_s21 = scalar_lea.vmem %s7029_s2, %s4605_s12 }
  0x11   : > { %7084 = vst [vmem:[#allocation3_spill] sm:$0xff] %v5185_v2  ;;  %7085 = vst [vmem:[#allocation4_spill] sm:$0xff] %v5188_v3 }
  0x12 LB: >> { %7089 = vst [vmem:[#allocation5_spill] sm:$0xff] %v5120_v4  ;;  %7090 = vst [vmem:[#allocation6_spill] sm:$0xff] %v5124_v5  ;;  %s4673_s23 = sshll.u32 %s5152_s22, 3  ;;  %vm1244_vm0 = vcmask 1042432   ;;  %vm1251_vm1 = vcmask 523264   ;;  %s173_s22 = sadd.s32 1, %s5152_s22   ;;  %v5128_v6 = vphi %v5209_v6, %v7215_v6   ;;  %v5124_v5 = vphi %v5207_v5, %v7214_v5   ;;  %v5120_v4 = vphi %v5205_v4, %v7213_v4   ;;  %s5152_s22 = sphi %s5221_s22, %s173_s22   ;;  %v5148_v11 = vphi %v5219_v11, %v7220_v11   ;;  %v5144_v10 = vphi %v5217_v10, %v7219_v10   ;;  %v5140_v9 = vphi %v5215_v9, %v7218_v9   ;;  %v5136_v8 = vphi %v5213_v8, %v7217_v8   ;;  %v5132_v7 = vphi %v5211_v7, %v7216_v7  }
  0x13   : >> { %7091 = vst [vmem:[#allocation7_spill] sm:$0xff] %v5128_v6  ;;  %7092 = vst [vmem:[#allocation8_spill] sm:$0xff] %v5132_v7  ;;  %s184_s24 = scalar_lea.vmem %s5193_s15, %s4673_s23  ;;  %s189_s25 = scalar_lea.vmem %s5198_s18, %s4673_s23  ;;  %v5154_v26 = vmov 1966171168   ;;  %v5155_v35 = vmov 1983009808  }
  0x14   : >> { %7093 = vst [vmem:[#allocation9_spill] sm:$0xff] %v5136_v8  ;;  %7094 = vst [vmem:[#allocation10_spill] sm:$0xff] %v5140_v9  ;;  %v185_v12 = vld [vmem:[%s184_s24] sm:$0xff]  ;;  %v206_v27 = vunpack.c.l.s4 %v5154_v26  ;;  %v512_v36 = vunpack.c.l.s4 %v5155_v35  ;;  %p170_p4 = scmp.ge.s32.totalorder %s173_s22, 2  }
  0x15   : >> { %7095 = vst [vmem:[#allocation11_spill] sm:$0xff] %v5144_v10  ;;  %7096 = vst [vmem:[#allocation12_spill] sm:$0xff] %v5148_v11  ;;  %v190_v13 = vld [vmem:[%s189_s25] sm:$0x77]  ;;  %v186_v14 = vunpack.c.l.bf16 %v185_v12  ;;  %v187_v15 = vunpack.c.h.bf16 %v185_v12 }
  0x16   : >> { %v7086_v1 = vld [vmem:[#allocation2_spill] sm:$0xff]  ;;  %v4658_v16 = vcombine.high %v190_v13, %v190_v13  ;;  %v4657_v17 = vcombine.low %v190_v13, %v190_v13  ;;  %v207_v32 = vunpack.c.0.s8 %v206_v27  ;;  %v513_v42 = vunpack.c.0.s8 %v512_v36 }
  0x17   : >> { %v191_v18 = vadd.f32 3.1415927, %v186_v14  ;;  %v192_v19 = vadd.f32 3.1415927, %v187_v15  ;;  %v5257_v45 = vsub.s32 0, %v7086_v1  ;;  %v5260_v46 = vsub.s32 1, %v7086_v1 }
  0x18   : >> { %v7087_v3 = vld [vmem:[#allocation4_spill] sm:$0xff]  ;;  %v7088_v2 = vld [vmem:[#allocation3_spill] sm:$0xff]  ;;  %v1250_v20 = vsel %vm1244_vm0, %v4658_v16, 1065369472  ;;  %v1247_v21 = vsel %vm1244_vm0, %v4657_v17, 1065369472  ;;  %v210_v39 = vsub.s32 %v207_v32, %v7086_v1  ;;  %v5263_v51 = vsub.s32 %v513_v42, %v7086_v1 }
  0x19   : >> { %4659 = vmatprep.subr.msk.bf16.mxu0 %vm1251_vm1, %v1250_v20  ;;  %4675 = vmatprep.subr.msk.bf16.mxu1 %vm1251_vm1, %v1250_v20  ;;  %v193_v22 = vmul.f32 2.864789, %v191_v18  ;;  %v194_v23 = vmul.f32 2.864789, %v192_v19  ;;  %v5156_v15 = vmov 0.0  }
  0x1a   : >> { %1296 = vmatpush1.bf16.xpose.msra.mxu0 %v1247_v21  ;;  %4676 = vmatpush1.bf16.xpose.msra.mxu1 %v1247_v21 }
  0x1b   : >> { %v195_v24 = vfloor.f32 %v193_v22  ;;  %v196_v25 = vfloor.f32 %v194_v23 }
  0x1d   : >> { %v197_v28 = vmax.f32 %v195_v24, 0.0  ;;  %v198_v29 = vmax.f32 %v196_v25, 0.0 }
  0x1f   : >> { %v199_v30 = vmin.f32 %v197_v28, 17.0  ;;  %v200_v31 = vmin.f32 %v198_v29, 17.0 }
  0x21   : >> { %v4677_v33 = vtrunc.f32 %v199_v30  ;;  %v4679_v34 = vtrunc.f32 %v200_v31 }
  0x23   : >> { %v4678_v37 = vcvt.f32.s32 %v4677_v33  ;;  %v4680_v38 = vcvt.f32.s32 %v4679_v34 }
  0x25   : >> { %v203_v40 = vcombine.low %v4678_v37, %v4680_v38  ;;  %v204_v41 = vcombine.high %v4678_v37, %v4680_v38 }
  0x27   : >> { %v211_v43 = vrot.slane %v203_v40, %v210_v39  ;;  %v218_v44 = vrot.slane %v204_v41, %v210_v39 }
  0x29   : >> { %v219_v47 = vcombine.high %v211_v43, %v211_v43  ;;  %v220_v48 = vcombine.high %v218_v44, %v218_v44  ;;  %v227_v49 = vrot.slane %v211_v43, %v210_v39  ;;  %v234_v50 = vrot.slane %v218_v44, %v210_v39 }
  0x2b   : >> { %v241_v52 = vrot.slane %v219_v47, %v210_v39  ;;  %v248_v53 = vrot.slane %v220_v48, %v210_v39  ;;  %v249_v54 = vcombine.high %v227_v49, %v227_v49  ;;  %v250_v55 = vcombine.high %v234_v50, %v234_v50 }
  0x2c   : >> { %v5266_v56 = vrot.slane %v227_v49, %v5257_v45  ;;  %v5269_v57 = vrot.slane %v227_v49, %v5260_v46  ;;  %v5272_v58 = vrot.slane %v234_v50, %v5257_v45  ;;  %v5275_v59 = vrot.slane %v234_v50, %v5260_v46 }
  0x2d   : >> { %v5277_v60 = vcombine.high %v241_v52, %v241_v52  ;;  %v5279_v61 = vcombine.high %v248_v53, %v248_v53  ;;  %v5282_v62 = vrot.slane %v241_v52, %v5257_v45  ;;  %v5285_v63 = vrot.slane %v241_v52, %v5260_v46 }
  0x2e   : >> { %v5288_v0 = vrot.slane %v249_v54, %v5257_v45  ;;  %v5291_v12 = vrot.slane %v249_v54, %v5260_v46  ;;  %v5294_v13 = vrot.slane %v250_v55, %v5257_v45  ;;  %v5297_v14 = vrot.slane %v250_v55, %v5260_v46 }
  0x2f   : >> { %vm317_vm2 = vcmp.eq.s32.totalorder %v5266_v56, %v7086_v1  ;;  %vm318_vm3 = vcmp.eq.s32.totalorder %v5269_v57, %v7086_v1  ;;  %vm319_vm4 = vcmp.eq.s32.totalorder %v5266_v56, %v7088_v2  ;;  %vm320_vm5 = vcmp.eq.s32.totalorder %v5269_v57, %v7088_v2 }
  0x30   : >> { %v4609_v16 = vsel %vm317_vm2, 1.0, %v5156_v15  ;;  %v4610_v17 = vsel %vm318_vm3, 1.0, %v5156_v15  ;;  %v4611_v18 = vsel %vm319_vm4, 1.0, %v5156_v15  ;;  %v4612_v19 = vsel %vm320_vm5, 1.0, %v5156_v15 }
  0x31   : >> { %v509_v20 = vcombine.low %v4609_v16, %v4610_v17  ;;  %v510_v21 = vcombine.high %v4609_v16, %v4610_v17  ;;  %v527_v22 = vcombine.low %v4611_v18, %v4612_v19  ;;  %v528_v23 = vcombine.high %v4611_v18, %v4612_v19 }
  0x32   : >> { %v5312_v24 = vrot.slane %v248_v53, %v5257_v45  ;;  %v5315_v25 = vrot.slane %v248_v53, %v5260_v46  ;;  %vm343_vm6 = vcmp.eq.s32.totalorder %v5272_v58, %v7088_v2  ;;  %vm344_vm7 = vcmp.eq.s32.totalorder %v5275_v59, %v7088_v2 }
  0x33   : >> { %v517_v26 = vrot.slane %v509_v20, %v5263_v51  ;;  %v524_v27 = vrot.slane %v510_v21, %v5263_v51  ;;  %v535_v28 = vrot.slane %v527_v22, %v5263_v51  ;;  %v542_v29 = vrot.slane %v528_v23, %v5263_v51 }
  0x34   : >> { %vm345_vm8 = vcmp.eq.s32.totalorder %v5272_v58, %v7087_v3  ;;  %vm346_vm9 = vcmp.eq.s32.totalorder %v5275_v59, %v7087_v3  ;;  %vm347_vm10 = vcmp.eq.s32.totalorder %v5312_v24, %v7086_v1  ;;  %vm348_vm11 = vcmp.eq.s32.totalorder %v5315_v25, %v7086_v1 }
  0x35   : >> { %v525_v30 = vcombine.high %v517_v26, %v517_v26  ;;  %v526_v31 = vcombine.high %v524_v27, %v524_v27  ;;  %v543_v32 = vcombine.high %v535_v28, %v535_v28  ;;  %v544_v33 = vcombine.high %v542_v29, %v542_v29 }
  0x36   : >> { %v4635_v34 = vsel %vm343_vm6, 1.0, %v5156_v15  ;;  %v4636_v35 = vsel %vm344_vm7, 1.0, %v5156_v15  ;;  %v4637_v36 = vsel %vm345_vm8, 1.0, %v5156_v15  ;;  %v4638_v37 = vsel %vm346_vm9, 1.0, %v5156_v15 }
  0x37   : >> { %v861_v38 = vcombine.low %v517_v26, %v525_v30  ;;  %v862_v39 = vcombine.low %v524_v27, %v526_v31  ;;  %v879_v40 = vcombine.low %v535_v28, %v543_v32  ;;  %v880_v41 = vcombine.low %v542_v29, %v544_v33 }
  0x38   : >> { %v4639_v42 = vsel %vm347_vm10, 1.0, %v5156_v15  ;;  %v4640_v43 = vsel %vm348_vm11, 1.0, %v5156_v15  ;;  %v703_v44 = vcombine.low %v4635_v34, %v4636_v35  ;;  %v704_v47 = vcombine.high %v4635_v34, %v4636_v35 }
  0x39   : >> { %v869_v48 = vrot.slane %v861_v38, %v5263_v51  ;;  %v876_v49 = vrot.slane %v862_v39, %v5263_v51  ;;  %v887_v50 = vrot.slane %v879_v40, %v5263_v51  ;;  %v894_v52 = vrot.slane %v880_v41, %v5263_v51 }
  0x3a   : >> { %v711_v53 = vrot.slane %v703_v44, %v5263_v51  ;;  %v718_v54 = vrot.slane %v704_v47, %v5263_v51  ;;  %v721_v55 = vcombine.low %v4637_v36, %v4638_v37  ;;  %v729_v16 = vcombine.low %v4639_v42, %v4640_v43 }
  0x3b   : >> { %v878_v17 = vcombine.high %v869_v48, %v876_v49  ;;  %v896_v18 = vcombine.high %v887_v50, %v894_v52  ;;  %v877_v19 = vcombine.low %v869_v48, %v876_v49  ;;  %v895_v20 = vcombine.low %v887_v50, %v894_v52 }
  0x3c   : >> { %v719_v21 = vcombine.high %v711_v53, %v711_v53  ;;  %v720_v22 = vcombine.high %v718_v54, %v718_v54  ;;  %v728_v23 = vrot.slane %v721_v55, %v5263_v51  ;;  %v730_v26 = vcombine.high %v4639_v42, %v4640_v43 }
  0x3d   : >> { %v1222_v27 = vpack.c.bf16 %v896_v18, %v878_v17  ;;  %v1221_v28 = vpack.c.bf16 %v895_v20, %v877_v19  ;;  %v737_v29 = vrot.slane %v729_v16, %v5263_v51  ;;  %vm321_vm12 = vcmp.eq.s32.totalorder %v5266_v56, %v7087_v3 }
  0x3e   : >> { %v5350_v30 = vrot.slane %v730_v26, %v5263_v51  ;;  %v1041_v31 = vcombine.low %v711_v53, %v719_v21  ;;  %v1042_v32 = vcombine.low %v718_v54, %v720_v22  ;;  %vm322_vm13 = vcmp.eq.s32.totalorder %v5269_v57, %v7087_v3 }
  0x3f   : >> { %4660 = vmatprep.mubr.msk.bf16.mxu0 %vm1251_vm1, %v1222_v27  ;;  %v745_v33 = vcombine.high %v737_v29, %v737_v29  ;;  %v1059_v34 = vcombine.low %v728_v23, %v737_v29  ;;  %vm323_vm14 = vcmp.eq.s32.totalorder %v5282_v62, %v7086_v1  ;;  %vm324_vm15 = vcmp.eq.s32.totalorder %v5285_v63, %v7086_v1 }
  0x40   : >> { %1314 = vmatmul.mubr.bf16.vlgmr.msra.gmra.mxu0 %v1221_v28  ;;  %v746_v35 = vcombine.high %v5350_v30, %v5350_v30  ;;  %v1049_v36 = vrot.slane %v1041_v31, %v5263_v51  ;;  %v1056_v37 = vrot.slane %v1042_v32, %v5263_v51  ;;  %vm325_vm0 = vcmp.eq.s32.totalorder %v5282_v62, %v7088_v2 }
  0x41   : >> { %v1060_v38 = vcombine.low %v745_v33, %v5350_v30  ;;  %v1067_v39 = vrot.slane %v1059_v34, %v5263_v51  ;;  %vm326_vm2 = vcmp.eq.s32.totalorder %v5285_v63, %v7088_v2  ;;  %v4613_v40 = vsel %vm321_vm12, 1.0, %v5156_v15 }
  0x42   : >> { %v1058_v41 = vcombine.high %v1049_v36, %v1056_v37  ;;  %v1057_v42 = vcombine.low %v1049_v36, %v1056_v37  ;;  %v4614_v43 = vsel %vm322_vm13, 1.0, %v5156_v15  ;;  %v4615_v44 = vsel %vm323_vm14, 1.0, %v5156_v15 }
  0x43   : >> { %v1074_v47 = vrot.slane %v1060_v38, %v5263_v51  ;;  %v4616_v48 = vsel %vm324_vm15, 1.0, %v5156_v15  ;;  %v4617_v49 = vsel %vm325_vm0, 1.0, %v5156_v15  ;;  %v4618_v50 = vsel %vm326_vm2, 1.0, %v5156_v15 }
  0x44   : >> { %v545_v52 = vcombine.low %v4613_v40, %v4614_v43  ;;  %v553_v56 = vcombine.low %v4615_v44, %v4616_v48  ;;  %v554_v53 = vcombine.high %v4615_v44, %v4616_v48  ;;  %v571_v54 = vcombine.low %v4617_v49, %v4618_v50 }
  0x45   : >> { %v1076_v55 = vcombine.high %v1067_v39, %v1074_v47  ;;  %v1075_v16 = vcombine.low %v1067_v39, %v1074_v47  ;;  %v572_v17 = vcombine.high %v4617_v49, %v4618_v50  ;;  %vm349_vm3 = vcmp.eq.s32.totalorder %v5312_v24, %v7088_v2 }
  0x46   : >> { %v552_v57 = vrot.slane %v545_v52, %v5263_v51  ;;  %v561_v18 = vrot.slane %v553_v56, %v5263_v51  ;;  %v568_v19 = vrot.slane %v554_v53, %v5263_v51  ;;  %v579_v20 = vrot.slane %v571_v54, %v5263_v51 }
  0x47   : >> { %v1232_v21 = vpack.c.bf16 %v1076_v55, %v1058_v41  ;;  %v1231_v22 = vpack.c.bf16 %v1075_v16, %v1057_v42  ;;  %v5389_v23 = vrot.slane %v572_v17, %v5263_v51  ;;  %vm350_vm4 = vcmp.eq.s32.totalorder %v5315_v25, %v7088_v2 }
  0x48   : >> { %v569_v26 = vcombine.high %v561_v18, %v561_v18  ;;  %v570_v27 = vcombine.high %v568_v19, %v568_v19  ;;  %v587_v28 = vcombine.high %v579_v20, %v579_v20  ;;  %v897_v29 = vcombine.low %v552_v57, %v561_v18 }
  0x49   : >> { %4665 = vmatprep.mubr.msk.bf16.mxu1 %vm1251_vm1, %v1232_v21  ;;  %vm351_vm5 = vcmp.eq.s32.totalorder %v5312_v24, %v7087_v3  ;;  %vm352_vm6 = vcmp.eq.s32.totalorder %v5315_v25, %v7087_v3  ;;  %vm353_vm7 = vcmp.eq.s32.totalorder %v5294_v13, %v7086_v1  ;;  %vm354_vm8 = vcmp.eq.s32.totalorder %v5297_v14, %v7086_v1 }
  0x4a   : >> { %1354 = vmatmul.mubr.bf16.vlgmr.msra.gmra.mxu1 %v1231_v22  ;;  %v898_v31 = vcombine.low %v569_v26, %v568_v19  ;;  %v905_v32 = vrot.slane %v897_v29, %v5263_v51  ;;  %v915_v33 = vcombine.low %v570_v27, %v579_v20  ;;  %v916_v34 = vcombine.low %v587_v28, %v5389_v23 }
  0x4b   : >> { %v4641_v36 = vsel %vm349_vm3, 1.0, %v5156_v15  ;;  %v4642_v37 = vsel %vm350_vm4, 1.0, %v5156_v15  ;;  %v4643_v38 = vsel %vm351_vm5, 1.0, %v5156_v15  ;;  %v4644_v39 = vsel %vm352_vm6, 1.0, %v5156_v15 }
  0x4c   : >> { %v912_v40 = vrot.slane %v898_v31, %v5263_v51  ;;  %v923_v41 = vrot.slane %v915_v33, %v5263_v51  ;;  %v930_v42 = vrot.slane %v916_v34, %v5263_v51  ;;  %v5418_v43 = vsel %vm353_vm7, 1.0, %v5156_v15 }
  0x4d   : >> { %v5421_v24 = vsel %vm354_vm8, 1.0, %v5156_v15  ;;  %v747_v44 = vcombine.low %v4641_v36, %v4642_v37  ;;  %v748_v47 = vcombine.high %v4641_v36, %v4642_v37  ;;  %v765_v25 = vcombine.low %v4643_v38, %v4644_v39 }
  0x4e   : >> { %v914_v48 = vcombine.high %v905_v32, %v912_v40  ;;  %v932_v49 = vcombine.high %v923_v41, %v930_v42  ;;  %v913_v50 = vcombine.low %v905_v32, %v912_v40  ;;  %v931_v52 = vcombine.low %v923_v41, %v930_v42 }
  0x4f   : >> { %v755_v56 = vrot.slane %v747_v44, %v5263_v51  ;;  %v762_v53 = vrot.slane %v748_v47, %v5263_v51  ;;  %v772_v54 = vrot.slane %v765_v25, %v5263_v51  ;;  %v773_v55 = vcombine.low %v5418_v43, %v5421_v24 }
  0x50   : >> { %v1224_v16 = vpack.c.bf16 %v932_v49, %v914_v48  ;;  %v1223_v17 = vpack.c.bf16 %v931_v52, %v913_v50  ;;  %vm327_vm9 = vcmp.eq.s32.totalorder %v5282_v62, %v7087_v3  ;;  %vm328_vm10 = vcmp.eq.s32.totalorder %v5285_v63, %v7087_v3 }
  0x51   : >> { %v763_v57 = vcombine.high %v755_v56, %v755_v56  ;;  %v764_v18 = vcombine.high %v762_v53, %v762_v53  ;;  %v781_v19 = vrot.slane %v773_v55, %v5263_v51  ;;  %v1077_v20 = vcombine.low %v746_v35, %v755_v56 }
  0x52   : >> { %4661 = vmatprep.mubr.msk.bf16.mxu0 %vm1251_vm1, %v1224_v16  ;;  %vm329_vm11 = vcmp.eq.s32.totalorder %v5288_v0, %v7086_v1  ;;  %vm330_vm12 = vcmp.eq.s32.totalorder %v5291_v12, %v7086_v1  ;;  %vm331_vm13 = vcmp.eq.s32.totalorder %v5288_v0, %v7088_v2  ;;  %vm332_vm14 = vcmp.eq.s32.totalorder %v5291_v12, %v7088_v2 }
  0x53   : >> { %1322 = vmatmul.mubr.bf16.gmra.mxu0 %v1223_v17  ;;  %v789_v21 = vcombine.high %v781_v19, %v781_v19  ;;  %v1078_v22 = vcombine.low %v763_v57, %v762_v53  ;;  %v1085_v30 = vrot.slane %v1077_v20, %v5263_v51  ;;  %v1095_v35 = vcombine.low %v764_v18, %v772_v54 }
  0x54   : >> { %v4619_v26 = vsel %vm327_vm9, 1.0, %v5156_v15  ;;  %v4620_v27 = vsel %vm328_vm10, 1.0, %v5156_v15  ;;  %v4621_v28 = vsel %vm329_vm11, 1.0, %v5156_v15  ;;  %v4622_v29 = vsel %vm330_vm12, 1.0, %v5156_v15 }
  0x55   : >> { %v1092_v31 = vrot.slane %v1078_v22, %v5263_v51  ;;  %v1096_v32 = vcombine.low %v781_v19, %v789_v21  ;;  %v1103_v33 = vrot.slane %v1095_v35, %v5263_v51  ;;  %v5459_v34 = vsel %vm331_vm13, 1.0, %v5156_v15 }
  0x56   : >> { %v5462_v62 = vsel %vm332_vm14, 1.0, %v5156_v15  ;;  %v588_v36 = vcombine.high %v5389_v23, %v5389_v23  ;;  %v589_v63 = vcombine.low %v4619_v26, %v4620_v27  ;;  %v597_v37 = vcombine.low %v4621_v28, %v4622_v29 }
  0x57   : >> { %v1094_v38 = vcombine.high %v1085_v30, %v1092_v31  ;;  %v1110_v39 = vrot.slane %v1096_v32, %v5263_v51  ;;  %v1093_v40 = vcombine.low %v1085_v30, %v1092_v31  ;;  %v598_v41 = vcombine.high %v4621_v28, %v4622_v29 }
  0x58   : >> { %v596_v42 = vrot.slane %v589_v63, %v5263_v51  ;;  %v605_v44 = vrot.slane %v597_v37, %v5263_v51  ;;  %v615_v47 = vcombine.low %v5459_v34, %v5462_v62  ;;  %v5473_v25 = vrot.slane %v5279_v61, %v5257_v45 }
  0x59   : >> { %v1112_v48 = vcombine.high %v1103_v33, %v1110_v39  ;;  %v1111_v23 = vcombine.low %v1103_v33, %v1110_v39  ;;  %v612_v49 = vrot.slane %v598_v41, %v5263_v51  ;;  %v5478_v50 = vrot.slane %v5279_v61, %v5260_v46 }
  0x5a   : >> { %v613_v52 = vcombine.high %v605_v44, %v605_v44  ;;  %v623_v56 = vrot.slane %v615_v47, %v5263_v51  ;;  %v933_v53 = vcombine.low %v588_v36, %v596_v42  ;;  %vm355_vm15 = vcmp.eq.s32.totalorder %v5294_v13, %v7088_v2 }
  0x5b   : >> { %v1234_v54 = vpack.c.bf16 %v1112_v48, %v1094_v38  ;;  %v1233_v55 = vpack.c.bf16 %v1111_v23, %v1093_v40  ;;  %v614_v16 = vcombine.high %v612_v49, %v612_v49  ;;  %vm356_vm0 = vcmp.eq.s32.totalorder %v5297_v14, %v7088_v2 }
  0x5c   : >> { %v631_v17 = vcombine.high %v623_v56, %v623_v56  ;;  %v934_v57 = vcombine.low %v605_v44, %v613_v52  ;;  %v941_v18 = vrot.slane %v933_v53, %v5263_v51  ;;  %vm357_vm2 = vcmp.eq.s32.totalorder %v5294_v13, %v7087_v3 }
  0x5d   : >> { %4666 = vmatprep.mubr.msk.bf16.mxu1 %vm1251_vm1, %v1234_v54  ;;  %v951_v61 = vcombine.low %v612_v49, %v614_v16  ;;  %vm358_vm3 = vcmp.eq.s32.totalorder %v5297_v14, %v7087_v3  ;;  %vm359_vm4 = vcmp.eq.s32.totalorder %v5473_v25, %v7086_v1  ;;  %vm360_vm5 = vcmp.eq.s32.totalorder %v5478_v50, %v7086_v1 }
  0x5e   : >> { %1362 = vmatmul.mubr.bf16.gmra.mxu1 %v1233_v55  ;;  %v948_v19 = vrot.slane %v934_v57, %v5263_v51  ;;  %v952_v20 = vcombine.low %v623_v56, %v631_v17  ;;  %v4647_v21 = vsel %vm355_vm15, 1.0, %v5156_v15  ;;  %v4648_v22 = vsel %vm356_vm0, 1.0, %v5156_v15 }
  0x5f   : >> { %v959_v30 = vrot.slane %v951_v61, %v5263_v51  ;;  %v4649_v14 = vsel %vm357_vm2, 1.0, %v5156_v15  ;;  %v4650_v35 = vsel %vm358_vm3, 1.0, %v5156_v15  ;;  %v5505_v26 = vsel %vm359_vm4, 1.0, %v5156_v15 }
  0x60   : >> { %v950_v27 = vcombine.high %v941_v18, %v948_v19  ;;  %v966_v28 = vrot.slane %v952_v20, %v5263_v51  ;;  %v949_v29 = vcombine.low %v941_v18, %v948_v19  ;;  %v5509_v31 = vsel %vm360_vm5, 1.0, %v5156_v15 }
  0x61   : >> { %v774_v13 = vcombine.high %v5418_v43, %v5421_v24  ;;  %v791_v32 = vcombine.low %v4647_v21, %v4648_v22  ;;  %v792_v33 = vcombine.high %v4647_v21, %v4648_v22  ;;  %v809_v36 = vcombine.low %v4649_v14, %v4650_v35 }
  0x62   : >> { %v968_v63 = vcombine.high %v959_v30, %v966_v28  ;;  %v967_v37 = vcombine.low %v959_v30, %v966_v28  ;;  %v817_v38 = vcombine.low %v5505_v26, %v5509_v31  ;;  %v5517_v39 = vrot.slane %v5277_v60, %v5257_v45 }
  0x63   : >> { %v788_v40 = vrot.slane %v774_v13, %v5263_v51  ;;  %v799_v41 = vrot.slane %v791_v32, %v5263_v51  ;;  %v806_v42 = vrot.slane %v792_v33, %v5263_v51  ;;  %v816_v43 = vrot.slane %v809_v36, %v5263_v51 }
  0x64   : >> { %v1226_v24 = vpack.c.bf16 %v968_v63, %v950_v27  ;;  %v1225_v44 = vpack.c.bf16 %v967_v37, %v949_v29  ;;  %v5524_v47 = vrot.slane %v817_v38, %v5263_v51  ;;  %v5528_v48 = vrot.slane %v5277_v60, %v5260_v46 }
  0x65   : >> { %v790_v23 = vcombine.high %v788_v40, %v788_v40  ;;  %v807_v45 = vcombine.high %v799_v41, %v799_v41  ;;  %v808_v49 = vcombine.high %v806_v42, %v806_v42  ;;  %vm333_vm6 = vcmp.eq.s32.totalorder %v5288_v0, %v7087_v3 }
  0x66   : >> { %4662 = vmatprep.mubr.msk.bf16.mxu0 %vm1251_vm1, %v1226_v24  ;;  %v1132_v52 = vcombine.low %v816_v43, %v5524_v47  ;;  %vm334_vm7 = vcmp.eq.s32.totalorder %v5291_v12, %v7087_v3  ;;  %vm335_vm8 = vcmp.eq.s32.totalorder %v5517_v39, %v7086_v1  ;;  %vm336_vm9 = vcmp.eq.s32.totalorder %v5528_v48, %v7086_v1 }
  0x67   : >> { %1330 = vmatmul.mubr.bf16.gmra.mxu0 %v1225_v44  ;;  %v1113_v46 = vcombine.low %v788_v40, %v790_v23  ;;  %v1114_v60 = vcombine.low %v799_v41, %v807_v45  ;;  %v1131_v56 = vcombine.low %v806_v42, %v808_v49  ;;  %vm337_vm10 = vcmp.eq.s32.totalorder %v5517_v39, %v7088_v2 }
  0x68   : >> { %v1146_v0 = vrot.slane %v1132_v52, %v5263_v51  ;;  %vm338_vm11 = vcmp.eq.s32.totalorder %v5528_v48, %v7088_v2  ;;  %v4625_v12 = vsel %vm333_vm6, 1.0, %v5156_v15  ;;  %v4626_v53 = vsel %vm334_vm7, 1.0, %v5156_v15 }
  0x69   : >> { %v1121_v54 = vrot.slane %v1113_v46, %v5263_v51  ;;  %v1128_v55 = vrot.slane %v1114_v60, %v5263_v51  ;;  %v1139_v16 = vrot.slane %v1131_v56, %v5263_v51  ;;  %v4627_v17 = vsel %vm335_vm8, 1.0, %v5156_v15 }
  0x6a   : >> { %v4628_v57 = vsel %vm336_vm9, 1.0, %v5156_v15  ;;  %v5553_v18 = vsel %vm337_vm10, 1.0, %v5156_v15  ;;  %v5556_v61 = vsel %vm338_vm11, 1.0, %v5156_v15  ;;  %v616_v19 = vcombine.high %v5459_v34, %v5462_v62 }
  0x6b   : >> { %v1130_v20 = vcombine.high %v1121_v54, %v1128_v55  ;;  %v1148_v21 = vcombine.high %v1139_v16, %v1146_v0  ;;  %v1129_v22 = vcombine.low %v1121_v54, %v1128_v55  ;;  %v1147_v30 = vcombine.low %v1139_v16, %v1146_v0 }
  0x6c   : >> { %v630_v14 = vrot.slane %v616_v19, %v5263_v51  ;;  %v633_v35 = vcombine.low %v4625_v12, %v4626_v53  ;;  %v641_v27 = vcombine.low %v4627_v17, %v4628_v57  ;;  %v642_v28 = vcombine.high %v4627_v17, %v4628_v57 }
  0x6d   : >> { %v1236_v29 = vpack.c.bf16 %v1148_v21, %v1130_v20  ;;  %v1235_v13 = vpack.c.bf16 %v1147_v30, %v1129_v22  ;;  %v659_v32 = vcombine.low %v5553_v18, %v5556_v61  ;;  %vm361_vm12 = vcmp.eq.s32.totalorder %v5473_v25, %v7088_v2 }
  0x6e   : >> { %v632_v33 = vcombine.high %v630_v14, %v630_v14  ;;  %v640_v34 = vrot.slane %v633_v35, %v5263_v51  ;;  %v649_v62 = vrot.slane %v641_v27, %v5263_v51  ;;  %v656_v36 = vrot.slane %v642_v28, %v5263_v51 }
  0x6f   : >> { %4667 = vmatprep.mubr.msk.bf16.mxu1 %vm1251_vm1, %v1236_v29  ;;  %v5570_v63 = vrot.slane %v659_v32, %v5263_v51  ;;  %vm362_vm13 = vcmp.eq.s32.totalorder %v5478_v50, %v7088_v2  ;;  %vm363_vm14 = vcmp.eq.s32.totalorder %v5473_v25, %v7087_v3  ;;  %vm364_vm15 = vcmp.eq.s32.totalorder %v5478_v50, %v7087_v3 }
  0x70   : >> { %1370 = vmatmul.mubr.bf16.gmra.mxu1 %v1235_v13  ;;  %v657_v37 = vcombine.high %v649_v62, %v649_v62  ;;  %v658_v38 = vcombine.high %v656_v36, %v656_v36  ;;  %v969_v40 = vcombine.low %v630_v14, %v632_v33  ;;  %v970_v41 = vcombine.low %v640_v34, %v649_v62 }
  0x71   : >> { %v4653_v42 = vsel %vm361_vm12, 1.0, %v5156_v15  ;;  %v4654_v43 = vsel %vm362_vm13, 1.0, %v5156_v15  ;;  %v4655_v24 = vsel %vm363_vm14, 1.0, %v5156_v15  ;;  %v4656_v44 = vsel %vm364_vm15, 1.0, %v5156_v15 }
  0x72   : >> { %v977_v23 = vrot.slane %v969_v40, %v5263_v51  ;;  %v984_v25 = vrot.slane %v970_v41, %v5263_v51  ;;  %v987_v45 = vcombine.low %v657_v37, %v656_v36  ;;  %v988_v50 = vcombine.low %v658_v38, %v5570_v63 }
  0x73   : >> { %v818_v49 = vcombine.high %v5505_v26, %v5509_v31  ;;  %v833_v52 = vcombine.high %v5524_v47, %v5524_v47  ;;  %v835_v46 = vcombine.low %v4653_v42, %v4654_v43  ;;  %v836_v60 = vcombine.high %v4653_v42, %v4654_v43 }
  0x74   : >> { %v986_v56 = vcombine.high %v977_v23, %v984_v25  ;;  %v995_v0 = vrot.slane %v987_v45, %v5263_v51  ;;  %v1002_v12 = vrot.slane %v988_v50, %v5263_v51  ;;  %v985_v53 = vcombine.low %v977_v23, %v984_v25 }
  0x75   : >> { %v832_v54 = vrot.slane %v818_v49, %v5263_v51  ;;  %v843_v55 = vrot.slane %v835_v46, %v5263_v51  ;;  %v850_v16 = vrot.slane %v836_v60, %v5263_v51  ;;  %v853_v17 = vcombine.low %v4655_v24, %v4656_v44 }
  0x76   : >> { %v1004_v57 = vcombine.high %v995_v0, %v1002_v12  ;;  %v1003_v26 = vcombine.low %v995_v0, %v1002_v12  ;;  %vm339_vm0 = vcmp.eq.s32.totalorder %v5517_v39, %v7087_v3  ;;  %vm340_vm2 = vcmp.eq.s32.totalorder %v5528_v48, %v7087_v3 }
  0x77   : >> { %v834_v31 = vcombine.high %v832_v54, %v832_v54  ;;  %v851_v47 = vcombine.high %v843_v55, %v843_v55  ;;  %v852_v19 = vcombine.high %v850_v16, %v850_v16  ;;  %v860_v20 = vrot.slane %v853_v17, %v5263_v51 }
  0x78   : >> { %v1228_v21 = vpack.c.bf16 %v1004_v57, %v986_v56  ;;  %v1227_v22 = vpack.c.bf16 %v1003_v26, %v985_v53  ;;  %v1149_v30 = vcombine.low %v833_v52, %v832_v54  ;;  %vm341_vm3 = vcmp.eq.s32.totalorder %v5272_v58, %v7086_v1 }
  0x79   : >> { %v1150_v14 = vcombine.low %v834_v31, %v843_v55  ;;  %v1167_v35 = vcombine.low %v851_v47, %v850_v16  ;;  %v1168_v27 = vcombine.low %v852_v19, %v860_v20  ;;  %vm342_vm4 = vcmp.eq.s32.totalorder %v5275_v59, %v7086_v1 }
  0x7a   : >> { %4663 = vmatprep.mubr.msk.bf16.mxu0 %vm1251_vm1, %v1228_v21  ;;  %v1157_v28 = vrot.slane %v1149_v30, %v5263_v51  ;;  %v4631_v29 = vsel %vm339_vm0, 1.0, %v5156_v15  ;;  %v4632_v58 = vsel %vm340_vm2, 1.0, %v5156_v15  ;;  %v4633_v13 = vsel %vm341_vm3, 1.0, %v5156_v15 }
  0x7b   : >> { %1338 = vmatmul.mubr.bf16.gmra.mxu0 %v1227_v22  ;;  %v1164_v32 = vrot.slane %v1150_v14, %v5263_v51  ;;  %v1175_v59 = vrot.slane %v1167_v35, %v5263_v51  ;;  %v1182_v33 = vrot.slane %v1168_v27, %v5263_v51  ;;  %v4634_v34 = vsel %vm342_vm4, 1.0, %v5156_v15 }
  0x7c   : >> { %v660_v39 = vcombine.high %v5553_v18, %v5556_v61  ;;  %v675_v62 = vcombine.high %v5570_v63, %v5570_v63  ;;  %v677_v36 = vcombine.low %v4631_v29, %v4632_v58  ;;  %v685_v48 = vcombine.low %v4633_v13, %v4634_v34 }
  0x7d   : >> { %v1166_v37 = vcombine.high %v1157_v28, %v1164_v32  ;;  %v1184_v38 = vcombine.high %v1175_v59, %v1182_v33  ;;  %v1165_v40 = vcombine.low %v1157_v28, %v1164_v32  ;;  %v1183_v41 = vcombine.low %v1175_v59, %v1182_v33 }
  0x7e   : >> { %v674_v42 = vrot.slane %v660_v39, %v5263_v51  ;;  %v684_v43 = vrot.slane %v677_v36, %v5263_v51  ;;  %v686_v24 = vcombine.high %v4633_v13, %v4634_v34  ;;  %v693_v44 = vrot.slane %v685_v48, %v5263_v51 }
  0x7f   : >> { %v1238_v15 = vpack.c.bf16 %v1184_v38, %v1166_v37  ;;  %v1237_v23 = vpack.c.bf16 %v1183_v41, %v1165_v40  ;;  %v5157_v57 = vmov 6   ;;  %vm3290_vm5 = vcmask 41984  }
  0x80   : >> { %v676_v25 = vcombine.high %v674_v42, %v674_v42  ;;  %v700_v18 = vrot.slane %v686_v24, %v5263_v51  ;;  %v701_v61 = vcombine.high %v693_v44, %v693_v44  ;;  %v1005_v63 = vcombine.low %v675_v62, %v674_v42  ;;  %4766 = vset.pattern.permute.xlu0 %v5157_v57 }
  0x81   : >> { %4668 = vmatprep.mubr.msk.bf16.mxu1 %vm1251_vm1, %v1238_v15  ;;  %4767 = vset.pattern.permute.xlu1 %v5157_v57  ;;  %vm4481_vm6 = vcmask (%p170_p4), 1041409   ;;  %vm4483_vm7 = vcmask (%p170_p4), 1042434   ;;  %vm4485_vm8 = vcmask (%p170_p4), 1043459   ;;  %vm4487_vm9 = vcmask (%p170_p4), 1044484  }
  0x82   : >> { %1378 = vmatmul.mubr.bf16.gmra.mxu1 %v1237_v23  ;;  %v702_v45 = vcombine.high %v700_v18, %v700_v18  ;;  %v1006_v50 = vcombine.low %v676_v25, %v684_v43  ;;  %v1013_v49 = vrot.slane %v1005_v63, %v5263_v51  ;;  %v1023_v52 = vcombine.low %v693_v44, %v701_v61 }
  0x83   : > { %vm4489_vm10 = vcmask (%p170_p4), 1045509   ;;  %vm4491_vm11 = vcmask (%p170_p4), 1046534   ;;  %vm4493_vm12 = vcmask (%p170_p4), 1047559  }
  0x84   : >> { %v1020_v46 = vrot.slane %v1006_v50, %v5263_v51  ;;  %v1024_v60 = vcombine.low %v700_v18, %v702_v45  ;;  %v1031_v56 = vrot.slane %v1023_v52, %v5263_v51 }
  0x86   : >> { %v1022_v0 = vcombine.high %v1013_v49, %v1020_v46  ;;  %v1038_v12 = vrot.slane %v1024_v60, %v5263_v51  ;;  %v1021_v53 = vcombine.low %v1013_v49, %v1020_v46 }
  0x88   : >> { %v1040_v54 = vcombine.high %v1031_v56, %v1038_v12  ;;  %v1039_v55 = vcombine.low %v1031_v56, %v1038_v12 }
  0x8a   : >> { %v1230_v16 = vpack.c.bf16 %v1040_v54, %v1022_v0  ;;  %v1229_v17 = vpack.c.bf16 %v1039_v55, %v1021_v53 }
  0x8c   : >> { %4664 = vmatprep.mubr.msk.bf16.mxu0 %vm1251_vm1, %v1230_v16  ;;  %vm3286_vm1 = vcmask 48128  }
  0x8d   : >> { %1346 = vmatmul.mubr.bf16.gmra.mxu0 %v1229_v17 }
 0x100   : >> { %v1315_v26 = vpop.f32.mrf.mxu0 }
 0x101   : >> { %v1404_v31 = vcombine.high %v1315_v26, %v1315_v26  ;;  %v5633_v47 = vrot.slane %v1315_v26, %v5263_v51 }
 0x102   : >> { %v1317_v19 = vpop.f32.mrf.mxu0 }
 0x103   : >> { %v5636_v20 = vrot.slane %v1404_v31, %v5263_v51  ;;  %v5640_v21 = vcombine.high %v5633_v47, %v5633_v47  ;;  %v1782_v22 = vadd.f32 1e-09, %v5633_v47 }
 0x104   : >> { %v1318_v30 = vpop.f32.mrf.mxu0 }
 0x105   : >> { %v1783_v14 = vadd.f32 1e-09, %v5640_v21  ;;  %v1784_v35 = vadd.f32 1e-09, %v5636_v20  ;;  %4770 = vrcp.f32 %v1782_v22  ;;  %v5646_v27 = vrot.slane %v1318_v30, %v5263_v51 }
 0x106   : >> { %v1320_v28 = vpop.f32.mrf.mxu0  ;;  %v1421_v29 = vcombine.high %v1318_v30, %v1318_v30  ;;  %v5651_v32 = vcombine.high %v5636_v20, %v5636_v20 }
 0x107   : >> { %4772 = vrcp.f32 %v1784_v35  ;;  %v1786_v58 = vadd.f32 1e-09, %v5646_v27  ;;  %v5676_v44 = vcombine.high %v5646_v27, %v5646_v27 }
 0x108   : >> { %4774 = vrcp.f32 %v1783_v14  ;;  %v5657_v34 = vrot.slane %v1421_v29, %v5263_v51  ;;  %v1785_v38 = vadd.f32 1e-09, %v5651_v32 }
 0x109   : >> { %4776 = vrcp.f32 %v1786_v58  ;;  %v1787_v49 = vadd.f32 1e-09, %v5676_v44 }
 0x10a   : >> { %v1355_v13 = vpop.f32.mrf.mxu1  ;;  %v1788_v43 = vadd.f32 1e-09, %v5657_v34  ;;  %v5686_v52 = vcombine.high %v5657_v34, %v5657_v34 }
 0x10b   : >> { %v1574_v59 = vcombine.high %v1355_v13, %v1355_v13  ;;  %v5654_v33 = vrot.slane %v1355_v13, %v5263_v51 }
 0x10c   : >> { %v1357_v39 = vpop.f32.mrf.mxu1  ;;  %v1789_v55 = vadd.f32 1e-09, %v5686_v52 }
 0x10d   : >> { %v5660_v62 = vrot.slane %v1574_v59, %v5263_v51  ;;  %v5664_v36 = vcombine.high %v5654_v33, %v5654_v33  ;;  %v1822_v48 = vadd.f32 1e-09, %v5654_v33 }
 0x10e   : >> { %v1358_v37 = vpop.f32.mrf.mxu1 }
 0x10f   : >> { %v1823_v40 = vadd.f32 1e-09, %v5664_v36  ;;  %4778 = vrcp.f32 %v1822_v48  ;;  %v5671_v42 = vcombine.high %v5660_v62, %v5660_v62  ;;  %v1824_v15 = vadd.f32 1e-09, %v5660_v62 }
 0x110   : >> { %v1360_v41 = vpop.f32.mrf.mxu1  ;;  %v1591_v61 = vcombine.high %v1358_v37, %v1358_v37  ;;  %v5689_v46 = vrot.slane %v1358_v37, %v5263_v51 }
 0x111   : >> { %4780 = vrcp.f32 %v1823_v40  ;;  %v1825_v18 = vadd.f32 1e-09, %v5671_v42 }
 0x112   : >> { %v4771_v24 = vpop.eup %4770  ;;  %4782 = vrcp.f32 %v1785_v38  ;;  %7097 = vst [vmem:[#allocation13_spill] sm:$0xff] %v5689_v46  ;;  %v5693_v0 = vrot.slane %v1591_v61, %v5263_v51  ;;  %v5698_v16 = vcombine.high %v5689_v46, %v5689_v46 }
 0x113   : >> { %1928 = vperm.xlu0 %4766, %v4771_v24   ;;  %v1323_v23 = vpop.f32.mrf.mxu0  ;;  %4784 = vrcp.f32 %v1788_v43 }
 0x114   : >> { %v4773_v25 = vpop.eup %4772  ;;  %v5681_v63 = vrot.slane %v1323_v23, %v5263_v51  ;;  %4786 = vrcp.f32 %v1824_v15  ;;  %v1438_v12 = vcombine.high %v1323_v23, %v1323_v23  ;;  %v1828_v57 = vadd.f32 1e-09, %v5693_v0 }
 0x115   : >> { %v1325_v45 = vpop.f32.mrf.mxu0  ;;  %v4775_v50 = vpop.eup %4774  ;;  %1952 = vperm.xlu1 %4767, %v4773_v25   ;;  %4788 = vrcp.f32 %v1825_v18  ;;  %v1827_v30 = vadd.f32 1e-09, %v5698_v16  ;;  %v5718_v39 = vcombine.high %v5693_v0, %v5693_v0 }
 0x116   : >> { %v1790_v60 = vadd.f32 1e-09, %v5681_v63  ;;  %v4777_v54 = vpop.eup %4776  ;;  %4790 = vrcp.f32 %v1787_v49  ;;  %v5702_v26 = vrot.slane %v1438_v12, %v5263_v51  ;;  %v5706_v19 = vcombine.high %v5681_v63, %v5681_v63 }
 0x117   : >> { %1940 = vperm.xlu0 %4766, %v4775_v50   ;;  %v1326_v56 = vpop.f32.mrf.mxu0  ;;  %v1829_v15 = vadd.f32 1e-09, %v5718_v39 }
 0x118   : >> { %4792 = vrcp.f32 %v1790_v60  ;;  %v1792_v29 = vadd.f32 1e-09, %v5702_v26  ;;  %v1791_v13 = vadd.f32 1e-09, %v5706_v19  ;;  %v5722_v40 = vrot.slane %v1326_v56, %v5263_v51 }
 0x119   : >> { %v1328_v53 = vpop.f32.mrf.mxu0  ;;  %4794 = vrcp.f32 %v1789_v55  ;;  %v5727_v23 = vcombine.high %v5702_v26, %v5702_v26  ;;  %v1455_v61 = vcombine.high %v1326_v56, %v1326_v56 }
 0x11a   : >> { %4796 = vrcp.f32 %v1828_v57  ;;  %v1794_v45 = vadd.f32 1e-09, %v5722_v40 }
 0x11b   : >> { %1976 = vperm.xlu0 %4766, %v4777_v54   ;;  %4798 = vrcp.f32 %v1827_v30  ;;  %v1793_v60 = vadd.f32 1e-09, %v5727_v23  ;;  %v5741_v56 = vrot.slane %v1455_v61, %v5263_v51 }
 0x11c   : >> { %v4779_v17 = vpop.eup %4778  ;;  %4800 = vrcp.f32 %v1792_v29 }
 0x11d   : >> { %2408 = vperm.xlu1 %4767, %v4779_v17   ;;  %4802 = vrcp.f32 %v1791_v13 }
 0x11e   : >> { %v4781_v31 = vpop.eup %4780  ;;  %v1363_v22 = vpop.f32.mrf.mxu1 }
 0x11f   : >> { %2420 = vperm.xlu0 %4766, %v4781_v31   ;;  %v5710_v14 = vrot.slane %v1363_v22, %v5263_v51  ;;  %v4783_v35 = vpop.eup %4782  ;;  %v1608_v41 = vcombine.high %v1363_v22, %v1363_v22  ;;  %v5746_v31 = vcombine.high %v5722_v40, %v5722_v40 }
 0x120   : >> { %v1365_v28 = vpop.f32.mrf.mxu1  ;;  %v4785_v58 = vpop.eup %4784 }
 0x121   : >> { %1964 = vperm.xlu1 %4767, %v4783_v35   ;;  %v1830_v48 = vadd.f32 1e-09, %v5710_v14  ;;  %v4787_v37 = vpop.eup %4786  ;;  %v5731_v50 = vrot.slane %v1608_v41, %v5263_v51  ;;  %v5736_v12 = vcombine.high %v5710_v14, %v5710_v14  ;;  %v1796_v28 = vadd.f32 1e-09, %v5741_v56 }
 0x122   : >> { %v5714_v59 = vpop.f32.mrf.mxu1  ;;  %v4789_v43 = vpop.eup %4788 }
 0x123   : >> { %2000 = vperm.xlu0 %4766, %v4785_v58   ;;  %v4791_v24 = vpop.eup %4790  ;;  %4804 = vrcp.f32 %v1830_v48  ;;  %v1832_v55 = vadd.f32 1e-09, %v5731_v50  ;;  %v1831_v22 = vadd.f32 1e-09, %v5736_v12  ;;  %v5754_v29 = vrot.slane %v5714_v59, %v5263_v51 }
 0x124   : >> { %v1368_v38 = vpop.f32.mrf.mxu1  ;;  %4806 = vrcp.f32 %v1829_v15  ;;  %v5758_v13 = vcombine.high %v5731_v50, %v5731_v50  ;;  %v1625_v15 = vcombine.high %v5714_v59, %v5714_v59 }
 0x125   : >> { %2432 = vperm.xlu1 %4767, %v4787_v37   ;;  %v4793_v18 = vpop.eup %4792  ;;  %4808 = vrcp.f32 %v1794_v45  ;;  %v1795_v38 = vadd.f32 1e-09, %v5746_v31  ;;  %v1834_v61 = vadd.f32 1e-09, %v5754_v29  ;;  %v5771_v45 = vcombine.high %v5741_v56, %v5741_v56 }
 0x126   : >> { %v4795_v54 = vpop.eup %4794  ;;  %4810 = vrcp.f32 %v1793_v60 }
 0x127   : >> { %2444 = vperm.xlu0 %4766, %v4789_v43   ;;  %v1331_v25 = vpop.f32.mrf.mxu0  ;;  %v4797_v57 = vpop.eup %4796  ;;  %4812 = vrcp.f32 %v1832_v55  ;;  %v5779_v55 = vrot.slane %v1625_v15, %v5263_v51 }
 0x128   : >> { %v4799_v30 = vpop.eup %4798  ;;  %4814 = vrcp.f32 %v1831_v22  ;;  %v1472_v41 = vcombine.high %v1331_v25, %v1331_v25  ;;  %v5762_v43 = vrot.slane %v1331_v25, %v5263_v51 }
 0x129   : >> { %1988 = vperm.xlu1 %4767, %v4791_v24   ;;  %v1333_v49 = vpop.f32.mrf.mxu0  ;;  %v4801_v58 = vpop.eup %4800  ;;  %4816 = vrcp.f32 %v1796_v28 }
 0x12a   : >> { %v4803_v37 = vpop.eup %4802  ;;  %v1833_v49 = vadd.f32 1e-09, %v5758_v13  ;;  %4818 = vrcp.f32 %v1795_v38  ;;  %v5775_v25 = vrot.slane %v1472_v41, %v5263_v51  ;;  %v1836_v38 = vadd.f32 1e-09, %v5779_v55 }
 0x12b   : >> { %2024 = vperm.xlu0 %4766, %v4793_v18   ;;  %v5738_v53 = vpop.f32.mrf.mxu0  ;;  %4820 = vrcp.f32 %v1834_v61  ;;  %v5792_v41 = vcombine.high %v5762_v43, %v5762_v43 }
 0x12c   : >> { %4822 = vrcp.f32 %v1833_v49  ;;  %v1800_v22 = vadd.f32 1e-09, %v5775_v25  ;;  %v5799_v49 = vrot.slane %v5738_v53, %v5263_v51 }
 0x12d   : >> { %2012 = vperm.xlu1 %4767, %v4795_v54   ;;  %v1336_v17 = vpop.f32.mrf.mxu0  ;;  %v1798_v54 = vadd.f32 1e-09, %v5762_v43 }
 0x12f   : >> { %2480 = vperm.xlu0 %4766, %v4797_v57   ;;  %v1797_v57 = vadd.f32 1e-09, %v5771_v45  ;;  %4824 = vrcp.f32 %v1798_v54 }
 0x130   : >> { %v5749_v35 = vpop.f32.mrf.mxu1  ;;  %v4805_v24 = vpop.eup %4804 }
 0x131   : >> { %2468 = vperm.xlu1 %4767, %v4799_v30   ;;  %v4807_v59 = vpop.eup %4806  ;;  %4826 = vrcp.f32 %v1797_v57  ;;  %v1799_v57 = vadd.f32 1e-09, %v5792_v41  ;;  %v1642_v2 = vcombine.high %v5749_v35, %v5749_v35 }
 0x132   : >> { %v1373_v48 = vpop.f32.mrf.mxu1  ;;  %v4809_v17 = vpop.eup %4808  ;;  %4828 = vrcp.f32 %v1800_v22 }
 0x133   : >> { %2048 = vperm.xlu0 %4766, %v4801_v58   ;;  %v4811_v28 = vpop.eup %4810  ;;  %v5787_v58 = vcombine.high %v5779_v55, %v5779_v55  ;;  %4830 = vrcp.f32 %v1836_v38  ;;  %v5828_v4 = vrot.slane %v1642_v2, %v5263_v51  ;;  %v5841_v2 = vcombine.high %v5799_v49, %v5799_v49 }
 0x134   : >> { %v5766_v18 = vpop.f32.mrf.mxu1 }
 0x135   : >> { %2036 = vperm.xlu1 %4767, %v4803_v37   ;;  %v4813_v37 = vpop.eup %4812  ;;  %v1837_v61 = vadd.f32 1e-09, %v5787_v58 }
 0x136   : >> { %v1376_v60 = vpop.f32.mrf.mxu1  ;;  %v4815_v15 = vpop.eup %4814 }
 0x137   : >> { %2504 = vperm.xlu0 %4766, %v4805_v24   ;;  %v5803_v60 = vrot.slane %v5749_v35, %v5263_v51  ;;  %4832 = vrcp.f32 %v1837_v61 }
 0x138   : >> { %4834 = vrcp.f32 %v1799_v57 }
 0x139   : >> { %2492 = vperm.xlu1 %4767, %v4807_v59   ;;  %v4817_v59 = vpop.eup %4816  ;;  %v1838_v38 = vadd.f32 1e-09, %v5803_v60 }
 0x13a   : >> { %v4819_v22 = vpop.eup %4818 }
 0x13b   : >> { %2072 = vperm.xlu0 %4766, %v4809_v17   ;;  %v5783_v30 = vpop.f32.mrf.mxu0 }
 0x13c   : >> { %v1506_v11 = vcombine.high %v5783_v30, %v5783_v30 }
 0x13d   : >> { %2060 = vperm.xlu1 %4767, %v4811_v28   ;;  %v1341_v48 = vpop.f32.mrf.mxu0  ;;  %v1802_v28 = vadd.f32 1e-09, %v5799_v49 }
 0x13f   : >> { %2528 = vperm.xlu0 %4766, %v4813_v37   ;;  %v5794_v24 = vpop.f32.mrf.mxu0  ;;  %v1489_v37 = vcombine.high %v5738_v53, %v5738_v53  ;;  %4836 = vrcp.f32 %v1802_v28  ;;  %v5835_v28 = vcombine.high %v5828_v4, %v5828_v4 }
 0x140   : >> { %4838 = vrcp.f32 %v1838_v38  ;;  %v1840_v38 = vadd.f32 1e-09, %v5828_v4 }
 0x141   : >> { %2516 = vperm.xlu1 %4767, %v4815_v15   ;;  %v1344_v54 = vpop.f32.mrf.mxu0  ;;  %v5815_v15 = vcombine.high %v5803_v60, %v5803_v60  ;;  %v5825_v3 = vrot.slane %v1489_v37, %v5263_v51  ;;  %7099 = vst [vmem:[#allocation15_spill] sm:$0xff] %v5835_v28 }
 0x142   : >> { %v5805_v17 = vpop.f32.mrf.mxu1  ;;  %v4821_v54 = vpop.eup %4820 }
 0x143   : >> { %2096 = vperm.xlu0 %4766, %v4817_v59   ;;  %v4823_v61 = vpop.eup %4822  ;;  %7098 = vst [vmem:[#allocation14_spill] sm:$0xff] %v5825_v3  ;;  %v1804_v57 = vadd.f32 1e-09, %v5825_v3 }
 0x144   : >> { %v1381_v48 = vpop.f32.mrf.mxu1  ;;  %v4825_v53 = vpop.eup %4824 }
 0x145   : >> { %2084 = vperm.xlu1 %4767, %v4819_v22   ;;  %v5822_v48 = vcombine.high %v5775_v25, %v5775_v25  ;;  %v1839_v22 = vadd.f32 1e-09, %v5815_v15  ;;  %v4827_v5 = vpop.eup %4826 }
 0x146   : >> { %v5818_v59 = vpop.f32.mrf.mxu1  ;;  %v4829_v7 = vpop.eup %4828 }
 0x147   : >> { %2552 = vperm.xlu0 %4766, %v4821_v54   ;;  %v1801_v6 = vadd.f32 1e-09, %v5822_v48  ;;  %4840 = vrcp.f32 %v1839_v22  ;;  %v5846_v54 = vrot.slane %v5783_v30, %v5263_v51  ;;  %v5851_v22 = vrot.slane %v5766_v18, %v5263_v51 }
 0x148   : >> { %v1384_v35 = vpop.f32.mrf.mxu1 }
 0x149   : >> { %2540 = vperm.xlu1 %4767, %v4823_v61   ;;  %4842 = vrcp.f32 %v1801_v6  ;;  %7100 = vst [vmem:[#allocation16_spill] sm:$0xff] %v5846_v54  ;;  %7101 = vst [vmem:[#allocation17_spill] sm:$0xff] %v5851_v22  ;;  %v1803_v6 = vadd.f32 1e-09, %v5841_v2 }
 0x14a   : >> { %4844 = vrcp.f32 %v1804_v57  ;;  %v5859_v57 = vcombine.high %v5851_v22, %v5851_v22 }
 0x14b   : >> { %2120 = vperm.xlu0 %4766, %v4825_v53   ;;  %v4831_v53 = vpop.eup %4830  ;;  %4846 = vrcp.f32 %v1840_v38  ;;  %v5865_v38 = vcombine.high %v5825_v3, %v5825_v3 }
 0x14c   : >> { %v4833_v35 = vpop.eup %4832  ;;  %7102 = vst [vmem:[#allocation18_spill] sm:$0xff] %v5859_v57 }
 0x14d   : >> { %2108 = vperm.xlu1 %4767, %v4827_v5   ;;  %v5837_v37 = vpop.f32.mrf.mxu0  ;;  %v1841_v5 = vadd.f32 1e-09, %v5835_v28  ;;  %v5872_v28 = vrot.slane %v1506_v11, %v5263_v51 }
 0x14f   : >> { %2144 = vperm.xlu0 %4766, %v4829_v7   ;;  %v1349_v61 = vpop.f32.mrf.mxu0  ;;  %v1806_v7 = vadd.f32 1e-09, %v5846_v54  ;;  %4848 = vrcp.f32 %v1841_v5  ;;  %v1843_v5 = vadd.f32 1e-09, %v5859_v57  ;;  %v1808_v11 = vadd.f32 1e-09, %v5872_v28 }
 0x150   : >> { %v4835_v61 = vpop.eup %4834  ;;  %4850 = vrcp.f32 %v1803_v6  ;;  %v5876_v6 = vcombine.high %v5846_v54, %v5846_v54  ;;  %v5902_v54 = vcombine.high %v5872_v28, %v5872_v28 }
 0x151   : >> { %2576 = vperm.xlu1 %4767, %v4831_v53   ;;  %v5853_v8 = vpop.f32.mrf.mxu0  ;;  %v4837_v10 = vpop.eup %4836  ;;  %4852 = vrcp.f32 %v1806_v7 }
 0x152   : >> { %v4839_v53 = vpop.eup %4838  ;;  %7103 = vst [vmem:[#allocation19_spill] sm:$0xff] %v5876_v6  ;;  %7107 = vst [vmem:[#allocation23_spill] sm:$0xff] %v5902_v54 }
 0x153   : >> { %2588 = vperm.xlu0 %4766, %v4833_v35   ;;  %v1352_v9 = vpop.f32.mrf.mxu0  ;;  %v1842_v35 = vadd.f32 1e-09, %v5851_v22 }
 0x154   : >> { %v1659_v9 = vcombine.high %v5766_v18, %v5766_v18  ;;  %v4841_v30 = vpop.eup %4840 }
 0x155   : >> { %2132 = vperm.xlu1 %4767, %v4835_v61   ;;  %v1805_v61 = vadd.f32 1e-09, %v5865_v38  ;;  %4854 = vrcp.f32 %v1842_v35 }
 0x156   : >> { %v5880_v3 = vrot.slane %v1659_v9, %v5263_v51  ;;  %v4843_v18 = vpop.eup %4842  ;;  %4856 = vrcp.f32 %v1843_v5  ;;  %v1676_v5 = vcombine.high %v5805_v17, %v5805_v17 }
 0x157   : >> { %2168 = vperm.xlu0 %4766, %v4837_v10   ;;  %v5884_v10 = vrot.slane %v5805_v17, %v5263_v51  ;;  %v4845_v7 = vpop.eup %4844  ;;  %4858 = vrcp.f32 %v1805_v61 }
 0x158   : >> { %7104 = vst [vmem:[#allocation20_spill] sm:$0xff] %v5880_v3  ;;  %v5890_v57 = vcombine.high %v5880_v3, %v5880_v3  ;;  %v4847_v35 = vpop.eup %4846  ;;  %4860 = vrcp.f32 %v1808_v11  ;;  %v5908_v17 = vrot.slane %v1676_v5, %v5263_v51 }
 0x159   : >> { %2600 = vperm.xlu1 %4767, %v4839_v53   ;;  %v1807_v53 = vadd.f32 1e-09, %v5876_v6  ;;  %v1846_v9 = vadd.f32 1e-09, %v5884_v10 }
 0x15a   : >> { %7105 = vst [vmem:[#allocation21_spill] sm:$0xff] %v5890_v57  ;;  %v1845_v6 = vadd.f32 1e-09, %v5890_v57  ;;  %7108 = vst [vmem:[#allocation24_spill] sm:$0xff] %v5908_v17 }
 0x15b   : >> { %2612 = vperm.xlu0 %4766, %v4841_v30   ;;  %v5895_v30 = vrot.slane %v5794_v24, %v5263_v51  ;;  %4862 = vrcp.f32 %v1807_v53  ;;  %v1809_v53 = vadd.f32 1e-09, %v5902_v54 }
 0x15c   : >> { %4864 = vrcp.f32 %v1846_v9 }
 0x15d   : >> { %2156 = vperm.xlu1 %4767, %v4843_v18   ;;  %7106 = vst [vmem:[#allocation22_spill] sm:$0xff] %v5895_v30  ;;  %v4849_v18 = vpop.eup %4848  ;;  %v1810_v22 = vadd.f32 1e-09, %v5895_v30  ;;  %4866 = vrcp.f32 %v1845_v6  ;;  %v5921_v6 = vcombine.high %v5895_v30, %v5895_v30 }
 0x15e   : >> { %v4851_v61 = vpop.eup %4850 }
 0x15f   : >> { %2192 = vperm.xlu0 %4766, %v4845_v7   ;;  %v4853_v11 = vpop.eup %4852  ;;  %v1523_v7 = vcombine.high %v5794_v24, %v5794_v24  ;;  %4868 = vrcp.f32 %v1810_v22  ;;  %v1848_v24 = vadd.f32 1e-09, %v5908_v17  ;;  %7111 = vst [vmem:[#allocation27_spill] sm:$0xff] %v5921_v6  ;;  %v1811_v30 = vadd.f32 1e-09, %v5921_v6 }
 0x160   : >> { %4870 = vrcp.f32 %v1809_v53  ;;  %v5931_v53 = vcombine.high %v5908_v17, %v5908_v17 }
 0x161   : >> { %2624 = vperm.xlu1 %4767, %v4847_v35   ;;  %v5913_v35 = vcombine.high %v5884_v10, %v5884_v10  ;;  %4872 = vrcp.f32 %v1848_v24 }
 0x162   : >> { %v4855_v9 = vpop.eup %4854  ;;  %7113 = vst [vmem:[#allocation29_spill] sm:$0xff] %v5931_v53  ;;  %v1849_v17 = vadd.f32 1e-09, %v5931_v53 }
 0x163   : >> { %2636 = vperm.xlu0 %4766, %v4849_v18   ;;  %7109 = vst [vmem:[#allocation25_spill] sm:$0xff] %v5913_v35  ;;  %v5916_v18 = vrot.slane %v1523_v7, %v5263_v51  ;;  %v4857_v57 = vpop.eup %4856  ;;  %v1847_v5 = vadd.f32 1e-09, %v5913_v35  ;;  %v5927_v7 = vrot.slane %v5818_v59, %v5263_v51  ;;  %v1693_v35 = vcombine.high %v5818_v59, %v5818_v59 }
 0x164   : >> { %v1540_v59 = vcombine.high %v5837_v37, %v5837_v37 }
 0x165   : >> { %2180 = vperm.xlu1 %4767, %v4851_v61   ;;  %7110 = vst [vmem:[#allocation26_spill] sm:$0xff] %v5916_v18  ;;  %v4859_v61 = vpop.eup %4858  ;;  %7112 = vst [vmem:[#allocation28_spill] sm:$0xff] %v5927_v7  ;;  %4874 = vrcp.f32 %v1847_v5  ;;  %v5944_v54 = vcombine.high %v5916_v18, %v5916_v18  ;;  %v5948_v6 = vrot.slane %v1693_v35, %v5263_v51 }
 0x166   : >> { %v4861_v22 = vpop.eup %4860  ;;  %v5955_v53 = vcombine.high %v5927_v7, %v5927_v7  ;;  %v5959_v35 = vrot.slane %v1540_v59, %v5263_v51 }
 0x167   : >> { %2216 = vperm.xlu0 %4766, %v4853_v11   ;;  %v1812_v11 = vadd.f32 1e-09, %v5916_v18  ;;  %7115 = vst [vmem:[#allocation31_spill] sm:$0xff] %v5944_v54  ;;  %v1826_v18 = vadd.f32 1e-09, %v5689_v46 }
 0x168   : >> { %7116 = vst [vmem:[#allocation32_spill] sm:$0xff] %v5955_v53  ;;  %7117 = vst [vmem:[#allocation33_spill] sm:$0xff] %v5959_v35  ;;  %v1816_v59 = vadd.f32 1e-09, %v5959_v35 }
 0x169   : >> { %2648 = vperm.xlu1 %4767, %v4855_v9   ;;  %v4863_v9 = vpop.eup %4862  ;;  %4876 = vrcp.f32 %v1812_v11 }
 0x16a   : >> { %v4865_v24 = vpop.eup %4864  ;;  %4878 = vrcp.f32 %v1811_v30 }
 0x16b   : >> { %2660 = vperm.xlu0 %4766, %v4857_v57   ;;  %v5936_v57 = vrot.slane %v5837_v37, %v5263_v51  ;;  %v1557_v37 = vcombine.high %v5853_v8, %v5853_v8 }
 0x16d   : >> { %2204 = vperm.xlu1 %4767, %v4859_v61   ;;  %7114 = vst [vmem:[#allocation30_spill] sm:$0xff] %v5936_v57  ;;  %v1850_v61 = vadd.f32 1e-09, %v5927_v7  ;;  %v1814_v5 = vadd.f32 1e-09, %v5936_v57  ;;  %v5974_v7 = vrot.slane %v1557_v37, %v5263_v51 }
 0x16f   : >> { %2240 = vperm.xlu0 %4766, %v4861_v22   ;;  %v4867_v22 = vpop.eup %4866  ;;  %4880 = vrcp.f32 %v1850_v61  ;;  %7119 = vst [vmem:[#allocation35_spill] sm:$0xff] %v5974_v7 }
 0x170   : >> { %v4869_v11 = vpop.eup %4868  ;;  %4882 = vrcp.f32 %v1849_v17  ;;  %v5965_v17 = vrot.slane %v5853_v8, %v5263_v51 }
 0x171   : >> { %2228 = vperm.xlu1 %4767, %v4863_v9   ;;  %v1813_v9 = vadd.f32 1e-09, %v5944_v54  ;;  %4884 = vrcp.f32 %v1814_v5  ;;  %v4871_v30 = vpop.eup %4870  ;;  %v5970_v5 = vcombine.high %v5936_v57, %v5936_v57  ;;  %v5988_v57 = vcombine.high %v5959_v35, %v5959_v35 }
 0x172   : >> { %v4873_v61 = vpop.eup %4872  ;;  %v5978_v8 = vcombine.high %v5965_v17, %v5965_v17 }
 0x173   : >> { %2696 = vperm.xlu0 %4766, %v4865_v24   ;;  %v1852_v24 = vadd.f32 1e-09, %v5948_v6  ;;  %4886 = vrcp.f32 %v1813_v9  ;;  %7118 = vst [vmem:[#allocation34_spill] sm:$0xff] %v5970_v5 }
 0x174   : >> { %7120 = vst [vmem:[#allocation36_spill] sm:$0xff] %v5978_v8 }
 0x175   : >> { %2684 = vperm.xlu1 %4767, %v4867_v22   ;;  %v1851_v22 = vadd.f32 1e-09, %v5955_v53  ;;  %4888 = vrcp.f32 %v1852_v24  ;;  %v5983_v24 = vcombine.high %v5974_v7, %v5974_v7 }
 0x177   : >> { %2264 = vperm.xlu0 %4766, %v4869_v11   ;;  %v4875_v11 = vpop.eup %4874  ;;  %4890 = vrcp.f32 %v1851_v22  ;;  %v1818_v22 = vadd.f32 1e-09, %v5965_v17 }
 0x178   : >> { %v4877_v9 = vpop.eup %4876  ;;  %4892 = vrcp.f32 %v1816_v59  ;;  %v1821_v59 = vadd.f32 1e-09, %v5983_v24 }
 0x179   : >> { %2252 = vperm.xlu1 %4767, %v4871_v30   ;;  %v1815_v30 = vadd.f32 1e-09, %v5970_v5  ;;  %v4879_v53 = vpop.eup %4878 }
 0x17b   : >> { %2720 = vperm.xlu0 %4766, %v4873_v61   ;;  %v1819_v61 = vadd.f32 1e-09, %v5978_v8  ;;  %4894 = vrcp.f32 %v1815_v30  ;;  %v1817_v8 = vadd.f32 1e-09, %v5988_v57 }
 0x17c   : >> { %v4881_v37 = vpop.eup %4880 }
 0x17d   : >> { %2708 = vperm.xlu1 %4767, %v4875_v11   ;;  %v4883_v54 = vpop.eup %4882  ;;  %4896 = vrcp.f32 %v1819_v61 }
 0x17e   : >> { %v4885_v11 = vpop.eup %4884  ;;  %4898 = vrcp.f32 %v1818_v22  ;;  %v1844_v22 = vadd.f32 1e-09, %v5880_v3 }
 0x17f   : >> { %2288 = vperm.xlu0 %4766, %v4877_v9   ;;  %v5158_v9 = vmov 269488144   ;;  %4900 = vrcp.f32 %v1821_v59 }
 0x180   : >> { %v1932_v5 = vunpack.c.l.s4 %v5158_v9  ;;  %4902 = vrcp.f32 %v1817_v8 }
 0x181   : >> { %2276 = vperm.xlu1 %4767, %v4879_v53   ;;  %v4887_v53 = vpop.eup %4886  ;;  %4904 = vrcp.f32 %v1826_v18 }
 0x182   : >> { %v1933_v30 = vunpack.c.0.s8 %v1932_v5  ;;  %v4889_v35 = vpop.eup %4888 }
 0x183   : >> { %2744 = vperm.xlu0 %4766, %v4881_v37   ;;  %v5996_v37 = vcombine.high %v5754_v29, %v5754_v29 }
 0x184   : >> { %v4891_v61 = vpop.eup %4890 }
 0x185   : >> { %2732 = vperm.xlu1 %4767, %v4883_v54   ;;  %7121 = vst [vmem:[#allocation37_spill] sm:$0xff] %v5996_v37  ;;  %v1820_v54 = vadd.f32 1e-09, %v5974_v7  ;;  %v4893_v59 = vpop.eup %4892  ;;  %v1835_v5 = vadd.f32 1e-09, %v5996_v37 }
 0x187   : >> { %2312 = vperm.xlu0 %4766, %v4885_v11   ;;  %v6001_v11 = vsub.s32 %v1933_v30, %v7086_v1  ;;  %4906 = vrcp.f32 %v1820_v54 }
 0x188   : >> { %v4895_v8 = vpop.eup %4894  ;;  %4908 = vrcp.f32 %v1844_v22 }
 0x189   : >> { %2300 = vperm.xlu1 %4767, %v4887_v53   ;;  %v6006_v53 = vcombine.high %v5948_v6, %v5948_v6  ;;  %4910 = vrcp.f32 %v1835_v5 }
 0x18b   : >> { %2768 = vperm.xlu0 %4766, %v4889_v35   ;;  %7122 = vst [vmem:[#allocation38_spill] sm:$0xff] %v6006_v53  ;;  %v4897_v35 = vpop.eup %4896  ;;  %v1853_v30 = vadd.f32 1e-09, %v6006_v53 }
 0x18c   : >> { %v4899_v37 = vpop.eup %4898 }
 0x18d   : >> { %2756 = vperm.xlu1 %4767, %v4891_v61   ;;  %v4901_v22 = vpop.eup %4900  ;;  %4912 = vrcp.f32 %v1853_v30 }
 0x18e   : >> { %v1929_v9 = vpop.permute.xlu0 %1928  ;;  %v4903_v5 = vpop.eup %4902 }
 0x18f   : >> { %2336 = vperm.xlu0 %4766, %v4893_v59   ;;  %v1937_v18 = vrot.slane %v1929_v9, %v6001_v11 }
 0x190   : >> { %v1953_v61 = vpop.permute.xlu1 %1952 }
 0x191   : >> { %2324 = vperm.xlu1 %4767, %v4895_v8   ;;  %v6012_v46 = vmul.f32 %v1937_v18, %v5633_v47  ;;  %v1961_v47 = vrot.slane %v1953_v61, %v6001_v11 }
 0x192   : >> { %v1941_v3 = vpop.permute.xlu0 %1940 }
 0x193   : >> { %v1949_v1 = vrot.slane %v1941_v3, %v6001_v11  ;;  %2372 = vperm.xlu0 %4766, %v4897_v35   ;;  %v4905_v35 = vpop.eup %4904  ;;  %v6030_v7 = vmul.f32 %v1961_v47, %v5636_v20 }
 0x195   : >> { %2360 = vperm.xlu1 %4767, %v4899_v37   ;;  %v6015_v54 = vmul.f32 %v1949_v1, %v5640_v21  ;;  %v4907_v1 = vpop.eup %4906 }
 0x196   : >> { %v1977_v59 = vpop.permute.xlu0 %1976 }
 0x197   : >> { %v2934_v9 = vcombine.low %v6012_v46, %v6015_v54  ;;  %2396 = vperm.xlu0 %4766, %v4901_v22   ;;  %v1985_v20 = vrot.slane %v1977_v59, %v6001_v11 }
 0x198   : >> { %v2409_v8 = vpop.permute.xlu1 %2408 }
 0x199   : >> { %v2417_v3 = vrot.slane %v2409_v8, %v6001_v11  ;;  %2348 = vperm.xlu1 %4767, %v4903_v5   ;;  %v4909_v8 = vpop.eup %4908 }
 0x19a   : >> { %v2421_v53 = vpop.permute.xlu0 %2420 }
 0x19b   : >> { %v2429_v37 = vrot.slane %v2421_v53, %v6001_v11  ;;  %2456 = vperm.xlu0 %4766, %v4905_v35   ;;  %v6023_v18 = vmul.f32 %v2417_v3, %v5654_v33  ;;  %v4911_v33 = vpop.eup %4910 }
 0x19c   : >> { %v1965_v21 = vpop.permute.xlu1 %1964 }
 0x19d   : >> { %7123 = vst [vmem:[#allocation39_spill] sm:$0xff] %v6023_v18  ;;  %v1973_v30 = vrot.slane %v1965_v21, %v6001_v11  ;;  %2384 = vperm.xlu1 %4767, %v4907_v1   ;;  %v6027_v22 = vmul.f32 %v2429_v37, %v5664_v36  ;;  %v2942_v1 = vrot.slane %v2934_v9, %v5263_v51  ;;  %v4913_v21 = vpop.eup %4912 }
 0x19e   : >> { %v2001_v5 = vpop.permute.xlu0 %2000  ;;  %v6052_v9 = vmul.f32 %v1985_v20, %v5646_v27 }
 0x19f   : >> { %7124 = vst [vmem:[#allocation40_spill] sm:$0xff] %v6027_v22  ;;  %v6033_v61 = vmul.f32 %v1973_v30, %v5651_v32  ;;  %v3115_v53 = vcombine.low %v6023_v18, %v6027_v22  ;;  %2672 = vperm.xlu0 %4766, %v4909_v8   ;;  %v2009_v59 = vrot.slane %v2001_v5, %v6001_v11 }
 0x1a0   : >> { %v2433_v3 = vpop.permute.xlu1 %2432 }
 0x1a1   : >> { %v2935_v35 = vcombine.low %v6030_v7, %v6033_v61  ;;  %v2441_v36 = vrot.slane %v2433_v3, %v6001_v11  ;;  %2564 = vperm.xlu1 %4767, %v4911_v33  }
 0x1a2   : >> { %v2445_v37 = vpop.permute.xlu0 %2444 }
 0x1a3   : >> { %v2949_v32 = vrot.slane %v2935_v35, %v5263_v51  ;;  %v2453_v47 = vrot.slane %v2445_v37, %v6001_v11  ;;  %v6045_v22 = vmul.f32 %v2441_v36, %v5660_v62 }
 0x1a4   : >> { %v1989_v30 = vpop.permute.xlu1 %1988 }
 0x1a5   : >> { %v2950_v8 = vcombine.low %v2942_v1, %v2949_v32  ;;  %7125 = vst [vmem:[#allocation41_spill] sm:$0xff] %v6045_v22  ;;  %v1997_v18 = vrot.slane %v1989_v30, %v6001_v11  ;;  %2780 = vperm.xlu1 %4767, %v4913_v21   ;;  %v6049_v33 = vmul.f32 %v2453_v47, %v5671_v42 }
 0x1a6   : >> { %v2025_v3 = vpop.permute.xlu0 %2024  ;;  %v6062_v1 = vrot.slane %v3115_v53, %v5263_v51 }
 0x1a7   : >> { %7126 = vst [vmem:[#allocation42_spill] sm:$0xff] %v6049_v33  ;;  %v6056_v35 = vmul.f32 %v1997_v18, %v5676_v44  ;;  %v3116_v37 = vcombine.low %v6045_v22, %v6049_v33  ;;  %v2033_v36 = vrot.slane %v2025_v3, %v6001_v11  ;;  %v6071_v44 = vmul.f32 %v2009_v59, %v5657_v34  ;;  %v7143_v22 = vld [vmem:[#allocation17_spill] sm:$0xff] }
 0x1a8   : >> { %v2013_v62 = vpop.permute.xlu1 %2012 }
 0x1a9   : >> { %v2951_v42 = vcombine.low %v6052_v9, %v6056_v35  ;;  %v6067_v27 = vrot.slane %v3116_v37, %v5263_v51  ;;  %v2021_v5 = vrot.slane %v2013_v62, %v6001_v11  ;;  %v6079_v53 = vmul.f32 %v2033_v36, %v5681_v63 }
 0x1aa   : >> { %v2481_v20 = vpop.permute.xlu0 %2480 }
 0x1ab   : >> { %v6076_v32 = vmul.f32 %v2021_v5, %v5686_v52  ;;  %v2489_v21 = vrot.slane %v2481_v20, %v6001_v11  ;;  %v2959_v37 = vrot.slane %v2951_v42, %v5263_v51  ;;  %v2974_v36 = vrot.slane %v6079_v53, %v5263_v51 }
 0x1ac   : >> { %v2469_v47 = vpop.permute.xlu1 %2468 }
 0x1ad   : >> { %v2952_v30 = vcombine.low %v6071_v44, %v6076_v32  ;;  %v2477_v3 = vrot.slane %v2469_v47, %v6001_v11  ;;  %v6086_v34 = vmul.f32 %v2489_v21, %v5693_v0  ;;  %v3291_v18 = vsel %vm3290_vm5, %v2974_v36, 0.0 }
 0x1ae   : >> { %v2049_v59 = vpop.permute.xlu0 %2048 }
 0x1af   : >> { %7127 = vst [vmem:[#allocation43_spill] sm:$0xff] %v6086_v34  ;;  %v2966_v52 = vrot.slane %v2952_v30, %v5263_v51  ;;  %v6091_v62 = vmul.f32 %v2477_v3, %v5698_v16  ;;  %v2057_v63 = vrot.slane %v2049_v59, %v6001_v11  ;;  %v3287_v16 = vsel %vm3286_vm1, %v2950_v8, 0.0 }
 0x1b0   : >> { %v2037_v5 = vpop.permute.xlu1 %2036 }
 0x1b1   : >> { %7128 = vst [vmem:[#allocation44_spill] sm:$0xff] %v6091_v62  ;;  %v2967_v20 = vcombine.low %v2959_v37, %v2966_v52  ;;  %v3139_v0 = vcombine.low %v6091_v62, %v6086_v34  ;;  %v2045_v47 = vrot.slane %v2037_v5, %v6001_v11  ;;  %v6100_v42 = vmul.f32 %v2057_v63, %v5702_v26 }
 0x1b2   : >> { %v2505_v21 = vpop.permute.xlu0 %2504 }
 0x1b3   : >> { %v3288_v30 = vsel %vm3286_vm1, %v2967_v20, 0.0  ;;  %v6105_v3 = vmul.f32 %v2045_v47, %v5706_v19  ;;  %v2513_v59 = vrot.slane %v2505_v21, %v6001_v11 }
 0x1b4   : >> { %v3289_v37 = vadd.f32 %v3288_v30, %v3287_v16  ;;  %v2493_v52 = vpop.permute.xlu1 %2492 }
 0x1b5   : >> { %v2975_v5 = vcombine.low %v6105_v3, %v6100_v42  ;;  %v2501_v26 = vrot.slane %v2493_v52, %v6001_v11  ;;  %v6113_v63 = vmul.f32 %v2513_v59, %v5710_v14 }
 0x1b6   : >> { %v3292_v8 = vadd.f32 %v3291_v18, %v3289_v37  ;;  %v2073_v34 = vpop.permute.xlu0 %2072  ;;  %v3147_v18 = vrot.slane %v3139_v0, %v5263_v51 }
 0x1b7   : >> { %7129 = vst [vmem:[#allocation45_spill] sm:$0xff] %v6113_v63  ;;  %v6116_v20 = vmul.f32 %v2501_v26, %v5718_v39  ;;  %v2081_v19 = vrot.slane %v2073_v34, %v6001_v11 }
 0x1b8   : >> { %v3293_v47 = vrot.slane %v3292_v8, 4  ;;  %v2061_v21 = vpop.permute.xlu1 %2060 }
 0x1b9   : >> { %7130 = vst [vmem:[#allocation46_spill] sm:$0xff] %v6116_v20  ;;  %v3140_v36 = vcombine.low %v6116_v20, %v6113_v63  ;;  %v2069_v16 = vrot.slane %v2061_v21, %v6001_v11  ;;  %v6123_v30 = vmul.f32 %v2081_v19, %v5722_v40 }
 0x1ba   : >> { %v3294_v52 = vadd.f32 %v3293_v47, %v3292_v8  ;;  %v2529_v14 = vpop.permute.xlu0 %2528  ;;  %v2983_v47 = vrot.slane %v2975_v5, %v5263_v51 }
 0x1bb   : >> { %v3154_v59 = vrot.slane %v3140_v36, %v5263_v51  ;;  %v6128_v39 = vmul.f32 %v2069_v16, %v5727_v23  ;;  %v2537_v34 = vrot.slane %v2529_v14, %v6001_v11 }
 0x1bc   : >> { %v3295_v37 = vrot.slane %v3294_v52, 2  ;;  %v2517_v26 = vpop.permute.xlu1 %2516 }
 0x1bd   : >> { %v3155_v62 = vcombine.low %v3147_v18, %v3154_v59  ;;  %v2976_v21 = vcombine.low %v6128_v39, %v6123_v30  ;;  %v2525_v40 = vrot.slane %v2517_v26, %v6001_v11  ;;  %v6135_v8 = vmul.f32 %v2537_v34, %v5731_v50 }
 0x1be   : >> { %v3296_v19 = vadd.f32 %v3295_v37, %v3294_v52  ;;  %v2097_v0 = vpop.permute.xlu0 %2096 }
 0x1bf   : >> { %7131 = vst [vmem:[#allocation47_spill] sm:$0xff] %v6135_v8  ;;  %v2990_v23 = vrot.slane %v2976_v21, %v5263_v51  ;;  %v6140_v36 = vmul.f32 %v2525_v40, %v5736_v12  ;;  %v2105_v16 = vrot.slane %v2097_v0, %v6001_v11 }
 0x1c0   : >> { %v3297_v14 = vrot.slane %v3296_v19, 1  ;;  %v2085_v18 = vpop.permute.xlu1 %2084 }
 0x1c1   : >> { %7132 = vst [vmem:[#allocation48_spill] sm:$0xff] %v6140_v36  ;;  %v2991_v59 = vcombine.low %v2983_v47, %v2990_v23  ;;  %v3156_v26 = vcombine.low %v6140_v36, %v6135_v8  ;;  %v2093_v50 = vrot.slane %v2085_v18, %v6001_v11  ;;  %v6147_v52 = vmul.f32 %v2105_v16, %v5741_v56  ;;  %v7140_v36 = vld [vmem:[#allocation14_spill] sm:$0xff] }
 0x1c2   : >> { %v3298_v34 = vadd.f32 %v3297_v14, %v3296_v19  ;;  %v2553_v5 = vpop.permute.xlu0 %2552 }
 0x1c3   : >> { %v6150_v37 = vmul.f32 %v2093_v50, %v5746_v31  ;;  %v2561_v12 = vrot.slane %v2553_v5, %v6001_v11 }
 0x1c4   : >> { %v3376_v21 = vadd.f32 1e-09, %v3298_v34  ;;  %v2541_v40 = vpop.permute.xlu1 %2540 }
 0x1c5   : >> { %v2992_v0 = vcombine.low %v6150_v37, %v6147_v52  ;;  %v2549_v47 = vrot.slane %v2541_v40, %v6001_v11  ;;  %v6157_v23 = vmul.f32 %v2561_v12, %v5754_v29  ;;  %v3164_v29 = vrot.slane %v3156_v26, %v5263_v51 }
 0x1c6   : >> { %4914 = vrcp.f32 %v3376_v21  ;;  %v2121_v56 = vpop.permute.xlu0 %2120 }
 0x1c7   : >> { %7133 = vst [vmem:[#allocation49_spill] sm:$0xff] %v6157_v23  ;;  %v6160_v19 = vmul.f32 %v2549_v47, %v5758_v13  ;;  %v2129_v31 = vrot.slane %v2121_v56, %v6001_v11 }
 0x1c8   : >> { %v2109_v16 = vpop.permute.xlu1 %2108 }
 0x1c9   : >> { %7134 = vst [vmem:[#allocation50_spill] sm:$0xff] %v6160_v19  ;;  %v3157_v14 = vcombine.low %v6160_v19, %v6157_v23  ;;  %v2117_v18 = vrot.slane %v2109_v16, %v6001_v11  ;;  %v6167_v50 = vmul.f32 %v2129_v31, %v5762_v43  ;;  %v3343_v16 = vsel %vm3286_vm1, %v3155_v62, 0.0 }
 0x1ca   : >> { %v2145_v34 = vpop.permute.xlu0 %2144  ;;  %v3000_v43 = vrot.slane %v2992_v0, %v5263_v51 }
 0x1cb   : >> { %v3171_v5 = vrot.slane %v3157_v14, %v5263_v51  ;;  %v6172_v12 = vmul.f32 %v2117_v18, %v5771_v45 }
 0x1cc   : >> { %v2577_v13 = vpop.permute.xlu1 %2576 }
 0x1cd   : >> { %v3172_v21 = vcombine.low %v3164_v29, %v3171_v5  ;;  %v2993_v40 = vcombine.low %v6172_v12, %v6167_v50  ;;  %v2585_v47 = vrot.slane %v2577_v13, %v6001_v11 }
 0x1ce   : >> { %v2589_v56 = vpop.permute.xlu0 %2588 }
 0x1cf   : >> { %v3007_v31 = vrot.slane %v2993_v40, %v5263_v51  ;;  %v2597_v26 = vrot.slane %v2589_v56, %v6001_v11  ;;  %v3344_v14 = vsel %vm3286_vm1, %v3172_v21, 0.0  ;;  %v6185_v5 = vmul.f32 %v2585_v47, %v5779_v55 }
 0x1d0   : >> { %v2133_v45 = vpop.permute.xlu1 %2132  ;;  %v6182_v18 = vadd.f32 %v3344_v14, %v3343_v16  ;;  %v3299_v40 = vsel %vm3286_vm1, %v2991_v59, 0.0 }
 0x1d1   : >> { %v3008_v29 = vcombine.low %v3000_v43, %v3007_v31  ;;  %7135 = vst [vmem:[#allocation51_spill] sm:$0xff] %v6185_v5  ;;  %v2141_v13 = vrot.slane %v2133_v45, %v6001_v11  ;;  %v6189_v23 = vmul.f32 %v2597_v26, %v5787_v58  ;;  %v2153_v58 = vrot.slane %v2145_v34, %v6001_v11 }
 0x1d2   : >> { %v6191_v62 = vpop.permute.xlu0 %2168 }
 0x1d3   : >> { %7136 = vst [vmem:[#allocation52_spill] sm:$0xff] %v6189_v23  ;;  %v4915_v0 = vpop.eup %4914  ;;  %v3300_v56 = vsel %vm3286_vm1, %v3008_v29, 0.0  ;;  %v6196_v21 = vmul.f32 %v2141_v13, %v5792_v41  ;;  %v3180_v16 = vcombine.low %v6185_v5, %v6189_v23 }
 0x1d4   : >> { %v3400_v55 = vcombine.high %v4915_v0, %v4915_v0  ;;  %v3407_v47 = vrot.slane %v4915_v0, %v5263_v51  ;;  %v3301_v43 = vadd.f32 %v3300_v56, %v3299_v40  ;;  %v2601_v31 = vpop.permute.xlu1 %2600 }
 0x1d5   : >> { %v3015_v26 = vrot.slane %v6196_v21, %v5263_v51  ;;  %v2609_v34 = vrot.slane %v2601_v31, %v6001_v11 }
 0x1d6   : >> { %v3414_v59 = vrot.slane %v3400_v55, %v5263_v51  ;;  %v3415_v14 = vcombine.high %v3407_v47, %v3407_v47  ;;  %v6206_v45 = vmul.f32 %v3407_v47, %v6012_v46  ;;  %v6209_v41 = vmul.f32 %v3407_v47, %v6052_v9  ;;  %v2613_v29 = vpop.permute.xlu0 %2612 }
 0x1d7   : >> { %v6212_v13 = vmul.f32 %v3407_v47, %v6079_v53  ;;  %v3302_v0 = vsel %vm3290_vm5, %v3015_v26, 0.0  ;;  %v6230_v47 = vmul.f32 %v2153_v58, %v5775_v25  ;;  %v2621_v31 = vrot.slane %v2613_v29, %v6001_v11 }
 0x1d8   : >> { %v3416_v40 = vcombine.high %v3414_v59, %v3414_v59  ;;  %v6217_v56 = vmul.f32 %v3415_v14, %v6015_v54  ;;  %v6220_v55 = vmul.f32 %v3414_v59, %v6030_v7  ;;  %v6223_v46 = vmul.f32 %v3415_v14, %v6056_v35  ;;  %v2157_v9 = vpop.permute.xlu1 %2156 }
 0x1d9   : >> { %v6226_v23 = vmul.f32 %v3414_v59, %v6071_v44  ;;  %v3640_v53 = vadd.f32 1e-09, %v6206_v45  ;;  %v3644_v44 = vadd.f32 1e-09, %v6209_v41  ;;  %v3303_v59 = vadd.f32 %v3302_v0, %v3301_v43 }
 0x1da   : >> { %v6234_v54 = vmul.f32 %v3416_v40, %v6033_v61  ;;  %v6237_v7 = vmul.f32 %v3416_v40, %v6076_v32  ;;  %v3641_v35 = vadd.f32 1e-09, %v6217_v56  ;;  %v3642_v26 = vadd.f32 1e-09, %v6220_v55  ;;  %v2193_v14 = vpop.permute.xlu0 %2192 }
 0x1db   : >> { %4916 = vlog2.f32 %v3640_v53  ;;  %v6243_v25 = vmul.f32 %v2609_v34, %v5803_v60  ;;  %v3645_v61 = vadd.f32 1e-09, %v6223_v46  ;;  %v2165_v32 = vrot.slane %v2157_v9, %v6001_v11 }
 0x1dc   : >> { %v3643_v58 = vadd.f32 1e-09, %v6234_v54  ;;  %4918 = vlog2.f32 %v3641_v35  ;;  %v2625_v29 = vpop.permute.xlu1 %2624  ;;  %v3646_v40 = vadd.f32 1e-09, %v6226_v23  ;;  %v3304_v5 = vrot.slane %v3303_v59, 4 }
 0x1dd   : >> { %7137 = vst [vmem:[#allocation53_spill] sm:$0xff] %v6243_v25  ;;  %4920 = vlog2.f32 %v3642_v26  ;;  %v6250_v19 = vmul.f32 %v2621_v31, %v5815_v15  ;;  %v3647_v43 = vadd.f32 1e-09, %v6237_v7  ;;  %v2177_v60 = vrot.slane %v6191_v62, %v6001_v11 }
 0x1de   : >> { %4922 = vlog2.f32 %v3643_v58  ;;  %v6256_v0 = vmul.f32 %v2165_v32, %v5822_v48  ;;  %v2637_v34 = vpop.permute.xlu0 %2636  ;;  %v3648_v9 = vadd.f32 1e-09, %v6212_v13  ;;  %v3305_v53 = vadd.f32 %v3304_v5, %v3303_v59 }
 0x1df   : >> { %7138 = vst [vmem:[#allocation54_spill] sm:$0xff] %v6250_v19  ;;  %4924 = vlog2.f32 %v3644_v44  ;;  %v3181_v35 = vcombine.low %v6243_v25, %v6250_v19  ;;  %v6262_v15 = vrot.slane %v3180_v16, %v5263_v51  ;;  %v6271_v5 = vmul.f32 %v2177_v60, %v5799_v49 }
 0x1e0   : >> { %4926 = vlog2.f32 %v3645_v61  ;;  %v3016_v31 = vcombine.low %v6230_v47, %v6256_v0  ;;  %v2181_v26 = vpop.permute.xlu1 %2180  ;;  %v3306_v62 = vrot.slane %v3305_v53, 2 }
 0x1e1   : >> { %4928 = vlog2.f32 %v3646_v40  ;;  %v6267_v48 = vrot.slane %v3181_v35, %v5263_v51  ;;  %v2189_v58 = vrot.slane %v2181_v26, %v6001_v11  ;;  %v2633_v26 = vrot.slane %v2625_v29, %v6001_v11 }
 0x1e2   : >> { %4930 = vlog2.f32 %v3647_v43  ;;  %v2217_v44 = vpop.permute.xlu0 %2216  ;;  %v3307_v59 = vadd.f32 %v3306_v62, %v3305_v53  ;;  %v2201_v43 = vrot.slane %v2193_v14, %v6001_v11 }
 0x1e3   : >> { %4932 = vlog2.f32 %v3648_v9  ;;  %v6276_v61 = vmul.f32 %v2189_v58, %v5841_v2  ;;  %v6283_v9 = vrot.slane %v3016_v31, %v5263_v51  ;;  %v2645_v2 = vrot.slane %v2637_v34, %v6001_v11 }
 0x1e4   : >> { %v2649_v32 = vpop.permute.xlu1 %2648  ;;  %v3308_v40 = vrot.slane %v3307_v59, 1  ;;  %v2225_v16 = vrot.slane %v2217_v44, %v6001_v11  ;;  %v6298_v34 = vmul.f32 %v2201_v43, %v7140_v36 }
 0x1e5   : >> { %v3017_v35 = vcombine.low %v6271_v5, %v6276_v61  ;;  %v2657_v58 = vrot.slane %v2649_v32, %v6001_v11 }
 0x1e6   : >> { %v2661_v49 = vpop.permute.xlu0 %2660  ;;  %v3309_v60 = vadd.f32 %v3308_v40, %v3307_v59 }
 0x1e7   : >> { %v6286_v53 = vrot.slane %v3017_v35, %v5263_v51  ;;  %v6295_v35 = vmul.f32 %v2633_v26, %v5828_v4  ;;  %v7141_v4 = vld [vmem:[#allocation15_spill] sm:$0xff] }
 0x1e8   : >> { %v4917_v62 = vpop.eup %4916  ;;  %v2205_v19 = vpop.permute.xlu1 %2204  ;;  %v3377_v8 = vadd.f32 1e-09, %v3309_v60  ;;  %v2669_v60 = vrot.slane %v2661_v49, %v6001_v11  ;;  %v6307_v26 = vmul.f32 %v2645_v2, %v7141_v4 }
 0x1e9   : >> { %v4919_v25 = vpop.eup %4918  ;;  %v3713_v29 = vmul.f32 0.6931472, %v4917_v62  ;;  %v2213_v31 = vrot.slane %v2205_v19, %v6001_v11  ;;  %7139 = vst [vmem:[#allocation55_spill] sm:$0xff] %v6295_v35 }
 0x1ea   : >> { %v4921_v59 = vpop.eup %4920  ;;  %v3715_v40 = vmul.f32 0.6931472, %v4919_v25  ;;  %v2241_v32 = vpop.permute.xlu0 %2240  ;;  %4934 = vrcp.f32 %v3377_v8  ;;  %7142 = vst [vmem:[#allocation14_spill] sm:$0xff] %v6307_v26  ;;  %v7145_v8 = vld [vmem:[#allocation16_spill] sm:$0xff] }
 0x1eb   : >> { %v4923_v63 = vpop.eup %4922  ;;  %v3717_v44 = vmul.f32 0.6931472, %v4921_v59  ;;  %v6301_v62 = vmul.f32 %v2213_v31, %v5865_v38  ;;  %v3856_v19 = vmul.f32 %v3713_v29, %v6206_v45  ;;  %v6310_v59 = vmul.f32 %v2657_v58, %v7143_v22  ;;  %v7146_v58 = vld [vmem:[#allocation18_spill] sm:$0xff] }
 0x1ec   : >> { %v4925_v14 = vpop.eup %4924  ;;  %v3719_v20 = vmul.f32 0.6931472, %v4923_v63  ;;  %v3857_v25 = vmul.f32 %v3715_v40, %v6217_v56  ;;  %v2229_v36 = vpop.permute.xlu1 %2228  ;;  %v6313_v38 = vmul.f32 %v2225_v16, %v7145_v8  ;;  %v7148_v16 = vld [vmem:[#allocation19_spill] sm:$0xff] }
 0x1ed   : >> { %v4927_v43 = vpop.eup %4926  ;;  %v3721_v33 = vmul.f32 0.6931472, %v4925_v14  ;;  %7144 = vst [vmem:[#allocation15_spill] sm:$0xff] %v6310_v59  ;;  %v2237_v49 = vrot.slane %v2229_v36, %v6001_v11  ;;  %v3858_v45 = vmul.f32 %v3717_v44, %v6220_v55  ;;  %v3033_v22 = vcombine.low %v6298_v34, %v6301_v62 }
 0x1ee   : >> { %v4929_v31 = vpop.eup %4928  ;;  %v3723_v63 = vmul.f32 0.6931472, %v4927_v43  ;;  %v3859_v56 = vmul.f32 %v3719_v20, %v6234_v54  ;;  %v4000_v29 = vcombine.low %v3856_v19, %v3857_v25  ;;  %v6318_v2 = vpop.permute.xlu0 %2696  ;;  %v6323_v14 = vmul.f32 %v2669_v60, %v7146_v58 }
 0x1ef   : >> { %v4931_v40 = vpop.eup %4930  ;;  %v3725_v4 = vmul.f32 0.6931472, %v4929_v31  ;;  %v6326_v8 = vmul.f32 %v2237_v49, %v7148_v16  ;;  %v3860_v55 = vmul.f32 %v3721_v33, %v6209_v41  ;;  %v2249_v33 = vrot.slane %v2241_v32, %v6001_v11 }
 0x1f0   : >> { %7147 = vst [vmem:[#allocation17_spill] sm:$0xff] %v6323_v14  ;;  %v4933_v36 = vpop.eup %4932  ;;  %v3727_v43 = vmul.f32 0.6931472, %v4931_v40  ;;  %v3861_v20 = vmul.f32 %v3723_v63, %v6223_v46  ;;  %v4001_v54 = vcombine.low %v3858_v45, %v3859_v56  ;;  %v6330_v44 = vpop.permute.xlu1 %2684  ;;  %v4008_v31 = vrot.slane %v4000_v29, %v5263_v51 }
 0x1f1   : >> { %v3729_v19 = vmul.f32 0.6931472, %v4933_v36  ;;  %v3862_v25 = vmul.f32 %v3725_v4, %v6226_v23  ;;  %v3034_v60 = vcombine.low %v6313_v38, %v6326_v8  ;;  %v3197_v46 = vcombine.low %v6295_v35, %v6307_v26 }
 0x1f2   : >> { %v3863_v49 = vmul.f32 %v3727_v43, %v6237_v7  ;;  %v4015_v58 = vrot.slane %v4001_v54, %v5263_v51  ;;  %v4017_v40 = vcombine.low %v3860_v55, %v3861_v20  ;;  %v6339_v41 = vpop.permute.xlu0 %2264  ;;  %v3041_v63 = vrot.slane %v3033_v22, %v5263_v51 }
 0x1f3   : >> { %v3198_v23 = vcombine.low %v6310_v59, %v6323_v14  ;;  %v3048_v45 = vrot.slane %v3034_v60, %v5263_v51  ;;  %v3864_v56 = vmul.f32 %v3729_v19, %v6212_v13  ;;  %v6349_v4 = vmul.f32 %v2249_v33, %v5872_v28 }
 0x1f4   : >> { %v4016_v7 = vcombine.low %v4008_v31, %v4015_v58  ;;  %v4018_v29 = vcombine.low %v3862_v25, %v3863_v49  ;;  %v2253_v32 = vpop.permute.xlu1 %2252  ;;  %v7149_v36 = vcombine.low %v6062_v1, %v6067_v27  ;;  %v4025_v22 = vrot.slane %v4017_v40, %v5263_v51 }
 0x1f5   : >> { %v3049_v16 = vcombine.low %v3041_v63, %v3048_v45  ;;  %v3056_v13 = vrot.slane %v6349_v4, %v5263_v51  ;;  %v7150_v28 = vcombine.low %v6262_v15, %v6267_v48  ;;  %v6370_v1 = vrot.slane %v3197_v46, %v5263_v51 }
 0x1f6   : >> { %v6355_v43 = vsel %vm3286_vm1, %v7149_v36, 0.0  ;;  %v4032_v55 = vrot.slane %v4018_v29, %v5263_v51  ;;  %v6361_v20 = vpop.permute.xlu0 %2720  ;;  %v6373_v27 = vrot.slane %v3198_v23, %v5263_v51  ;;  %v7151_v19 = vcombine.low %v6283_v9, %v6286_v53 }
 0x1f7   : >> { %v6367_v54 = vsel %vm3286_vm1, %v7150_v28, 0.0  ;;  %v3311_v31 = vsel %vm3286_vm1, %v3049_v16, 0.0  ;;  %v4935_v60 = vpop.eup %4934  ;;  %v4040_v15 = vrot.slane %v3864_v56, %v5263_v51  ;;  %v4352_v48 = vsel %vm3286_vm1, %v4016_v7, 0.0 }
 0x1f8   : >> { %v3310_v25 = vsel %vm3286_vm1, %v7151_v19, 0.0  ;;  %v4033_v49 = vcombine.low %v4025_v22, %v4032_v55  ;;  %v6382_v40 = vpop.permute.xlu1 %2708  ;;  %v3417_v33 = vcombine.high %v4935_v60, %v4935_v60  ;;  %v3424_v46 = vrot.slane %v4935_v60, %v5263_v51 }
 0x1f9   : >> { %v3312_v58 = vadd.f32 %v3311_v31, %v3310_v25  ;;  %v3313_v63 = vsel %vm3290_vm5, %v3056_v13, 0.0  ;;  %v2693_v9 = vrot.slane %v6330_v44, %v6001_v11  ;;  %v2705_v45 = vrot.slane %v6318_v2, %v6001_v11 }
 0x1fa   : >> { %v4353_v53 = vsel %vm3286_vm1, %v4033_v49, 0.0  ;;  %v2261_v56 = vrot.slane %v2253_v32, %v6001_v11  ;;  %v2289_v7 = vpop.permute.xlu0 %2288  ;;  %v3431_v16 = vrot.slane %v3417_v33, %v5263_v51  ;;  %v3432_v36 = vcombine.high %v3424_v46, %v3424_v46 }
 0x1fb   : >> { %v3314_v23 = vadd.f32 %v3313_v63, %v3312_v58  ;;  %v4354_v29 = vadd.f32 %v4353_v53, %v4352_v48  ;;  %v6394_v22 = vmul.f32 %v3424_v46, %v6105_v3  ;;  %v4355_v55 = vsel %vm3290_vm5, %v4040_v15, 0.0  ;;  %v7152_v48 = vld [vmem:[#allocation23_spill] sm:$0xff] }
 0x1fc   : >> { %v6398_v44 = vmul.f32 %v3424_v46, %v6150_v37  ;;  %v6401_v13 = vmul.f32 %v3424_v46, %v6196_v21  ;;  %v2273_v2 = vrot.slane %v6339_v41, %v6001_v11  ;;  %v2277_v32 = vpop.permute.xlu1 %2276  ;;  %v3433_v19 = vcombine.high %v3431_v16, %v3431_v16 }
 0x1fd   : >> { %v4356_v28 = vadd.f32 %v4355_v55, %v4354_v29  ;;  %v6406_v25 = vmul.f32 %v3432_v36, %v6100_v42  ;;  %v6409_v3 = vmul.f32 %v3431_v16, %v6128_v39  ;;  %v6412_v31 = vmul.f32 %v3432_v36, %v6147_v52 }
 0x1fe   : >> { %v6415_v37 = vmul.f32 %v3431_v16, %v6172_v12  ;;  %v3649_v21 = vadd.f32 1e-09, %v6394_v22  ;;  %v3315_v60 = vrot.slane %v3314_v23, 4  ;;  %v6418_v49 = vpop.permute.xlu0 %2744  ;;  %v6421_v15 = vmul.f32 %v3433_v19, %v6123_v30 }
 0x1ff   : >> { %v4357_v41 = vrot.slane %v4356_v28, 4  ;;  %v6424_v42 = vmul.f32 %v3433_v19, %v6167_v50  ;;  %v3650_v39 = vadd.f32 1e-09, %v6406_v25  ;;  %v3651_v52 = vadd.f32 1e-09, %v6409_v3  ;;  %v7153_v50 = vld [vmem:[#allocation22_spill] sm:$0xff] }
 0x200   : >> { %4936 = vlog2.f32 %v3649_v21  ;;  %v6429_v12 = vmul.f32 %v2705_v45, %v5884_v10  ;;  %v6432_v58 = vmul.f32 %v2261_v56, %v7152_v48  ;;  %v6434_v33 = vpop.permute.xlu1 %2732  ;;  %v3652_v30 = vadd.f32 1e-09, %v6421_v15 }
 0x201   : >> { %v4358_v46 = vadd.f32 %v4357_v41, %v4356_v28  ;;  %v3653_v63 = vadd.f32 1e-09, %v6398_v44  ;;  %v6439_v53 = vmul.f32 %v2273_v2, %v7153_v50  ;;  %v3654_v29 = vadd.f32 1e-09, %v6412_v31 }
 0x202   : >> { %4938 = vlog2.f32 %v3650_v39  ;;  %v3316_v16 = vadd.f32 %v3315_v60, %v3314_v23  ;;  %v2729_v10 = vrot.slane %v6361_v20, %v6001_v11  ;;  %v2313_v45 = vpop.permute.xlu0 %2312  ;;  %v3655_v36 = vadd.f32 1e-09, %v6415_v37  ;;  %v7154_v39 = vld [vmem:[#allocation27_spill] sm:$0xff] }
 0x203   : >> { %v4359_v56 = vrot.slane %v4358_v46, 2  ;;  %4940 = vlog2.f32 %v3651_v52  ;;  %v2285_v55 = vrot.slane %v2277_v32, %v6001_v11  ;;  %v3656_v28 = vadd.f32 1e-09, %v6424_v42  ;;  %v7155_v32 = vld [vmem:[#allocation26_spill] sm:$0xff] }
 0x204   : >> { %4942 = vlog2.f32 %v3652_v30  ;;  %v3317_v19 = vrot.slane %v3316_v16, 2  ;;  %v2297_v2 = vrot.slane %v2289_v7, %v6001_v11  ;;  %v2301_v21 = vpop.permute.xlu1 %2300  ;;  %v3657_v23 = vadd.f32 1e-09, %v6401_v13  ;;  %v7157_v7 = vld [vmem:[#allocation21_spill] sm:$0xff] }
 0x205   : >> { %v4360_v41 = vadd.f32 %v4359_v56, %v4358_v46  ;;  %4944 = vlog2.f32 %v3653_v63  ;;  %v3057_v20 = vcombine.low %v6432_v58, %v6439_v53  ;;  %v6452_v52 = vmul.f32 %v2285_v55, %v7154_v39  ;;  %v7159_v63 = vld [vmem:[#allocation25_spill] sm:$0xff] }
 0x206   : >> { %4946 = vlog2.f32 %v3654_v29  ;;  %v3318_v60 = vadd.f32 %v3317_v19, %v3316_v16  ;;  %v6455_v48 = vmul.f32 %v2297_v2, %v7155_v32  ;;  %v2769_v30 = vpop.permute.xlu0 %2768  ;;  %v6458_v14 = vmul.f32 %v2693_v9, %v7157_v7 }
 0x207   : >> { %v4361_v50 = vrot.slane %v4360_v41, 1  ;;  %4948 = vlog2.f32 %v3655_v36  ;;  %v2717_v46 = vrot.slane %v6382_v40, %v6001_v11  ;;  %v2309_v9 = vrot.slane %v2301_v21, %v6001_v11  ;;  %v7158_v40 = vld [vmem:[#allocation24_spill] sm:$0xff] }
 0x208   : >> { %7156 = vst [vmem:[#allocation16_spill] sm:$0xff] %v6455_v48  ;;  %4950 = vlog2.f32 %v3656_v28  ;;  %v3319_v29 = vrot.slane %v3318_v60, 1  ;;  %v3058_v16 = vcombine.low %v6452_v52, %v6455_v48  ;;  %v2757_v56 = vpop.permute.xlu1 %2756  ;;  %v3065_v2 = vrot.slane %v3057_v20, %v5263_v51  ;;  %v7160_v20 = vld [vmem:[#allocation30_spill] sm:$0xff] }
 0x209   : >> { %v4362_v55 = vadd.f32 %v4361_v50, %v4360_v41  ;;  %4952 = vlog2.f32 %v3657_v23  ;;  %v6471_v28 = vmul.f32 %v2729_v10, %v7158_v40  ;;  %v2321_v39 = vrot.slane %v2313_v45, %v6001_v11  ;;  %v7162_v40 = vld [vmem:[#allocation31_spill] sm:$0xff] }
 0x20a   : >> { %v3320_v19 = vadd.f32 %v3319_v29, %v3318_v60  ;;  %v2337_v32 = vpop.permute.xlu0 %2336  ;;  %v6475_v59 = vmul.f32 %v2717_v46, %v7159_v63  ;;  %v2741_v41 = vrot.slane %v6434_v33, %v6001_v11  ;;  %v2753_v23 = vrot.slane %v6418_v49, %v6001_v11  ;;  %v7168_v49 = vld [vmem:[#allocation28_spill] sm:$0xff] }
 0x20b   : >> { %v4440_v7 = vadd.f32 2.8903718, %v4362_v55  ;;  %v3072_v60 = vrot.slane %v3058_v16, %v5263_v51  ;;  %v6483_v50 = vmul.f32 %v2321_v39, %v7160_v20  ;;  %v2345_v45 = vrot.slane %v2337_v32, %v6001_v11  ;;  %v7163_v20 = vld [vmem:[#allocation12_spill] sm:$0xff] }
 0x20c   : >> { %v3378_v21 = vadd.f32 1e-09, %v3320_v19  ;;  %v2325_v10 = vpop.permute.xlu1 %2324  ;;  %v6487_v46 = vmul.f32 %v2309_v9, %v7162_v40  ;;  %v2765_v63 = vrot.slane %v2757_v56, %v6001_v11  ;;  %v2777_v33 = vrot.slane %v2769_v30, %v6001_v11  ;;  %v7166_v9 = vld [vmem:[#allocation33_spill] sm:$0xff] }
 0x20d   : >> { %7161 = vst [vmem:[#allocation18_spill] sm:$0xff] %v6483_v50  ;;  %v4937_v29 = vpop.eup %4936  ;;  %v4449_v55 = vmul.f32 0.34597626, %v4440_v7  ;;  %v2333_v16 = vrot.slane %v2325_v10, %v6001_v11  ;;  %v7165_v7 = vld [vmem:[#allocation29_spill] sm:$0xff]  ;;  %v6503_v30 = vmul.f32 %v2345_v45, %v7166_v9  ;;  %v3073_v40 = vcombine.low %v3065_v2, %v3072_v60  ;;  %v7169_v10 = vld [vmem:[#allocation34_spill] sm:$0xff] }
 0x20e   : >> { %v3731_v36 = vmul.f32 0.6931472, %v4937_v29  ;;  %4954 = vrcp.f32 %v3378_v21  ;;  %v2373_v19 = vpop.permute.xlu0 %2372  ;;  %v6498_v26 = vmul.f32 %v2741_v41, %v7165_v7  ;;  %v3074_v56 = vcombine.low %v6487_v46, %v6483_v50  ;;  %v7170_v41 = vld [vmem:[#allocation32_spill] sm:$0xff] }
 0x20f   : >> { %v4939_v39 = vpop.eup %4938  ;;  %v6495_v32 = vadd.f32 %v7163_v20, %v4449_v55   ;;  %7167 = vst [vmem:[#allocation19_spill] sm:$0xff] %v6503_v30  ;;  %v6506_v35 = vmul.f32 %v2753_v23, %v7168_v49  ;;  %v6509_v48 = vmul.f32 %v2333_v16, %v7169_v10  ;;  %v6512_v7 = vmul.f32 %v2765_v63, %v7170_v41  ;;  %v7171_v41 = vld [vmem:[#allocation36_spill] sm:$0xff] }
 0x210   : >> { %v4941_v21 = vpop.eup %4940  ;;  %v3733_v29 = vmul.f32 0.6931472, %v4939_v39  ;;  %v2361_v55 = vpop.permute.xlu1 %2360  ;;  %v6515_v50 = vmul.f32 %v2777_v33, %v5948_v6  ;;  %v2381_v45 = vrot.slane %v2373_v19, %v6001_v11  ;;  %v3865_v2 = vmul.f32 %v3731_v36, %v6394_v22 }
 0x211   : >> { %7164 = vst [vmem:[#allocation56_spill] sm:$0xff] %v6495_v32  ;;  %v4943_v20 = vpop.eup %4942  ;;  %v3735_v32 = vmul.f32 0.6931472, %v4941_v21  ;;  %v3075_v60 = vcombine.low %v6509_v48, %v6503_v30  ;;  %v3082_v63 = vrot.slane %v3074_v56, %v5263_v51  ;;  %v2369_v6 = vrot.slane %v2361_v55, %v6001_v11 }
 0x212   : >> { %v4945_v9 = vpop.eup %4944  ;;  %v3737_v39 = vmul.f32 0.6931472, %v4943_v20  ;;  %v3866_v23 = vmul.f32 %v3733_v29, %v6406_v25  ;;  %v6528_v30 = vmul.f32 %v2381_v45, %v7171_v41 }
 0x213   : >> { %v4947_v49 = vpop.eup %4946  ;;  %v3739_v16 = vmul.f32 0.6931472, %v4945_v9  ;;  %v3867_v21 = vmul.f32 %v3735_v32, %v6409_v3  ;;  %v3089_v22 = vrot.slane %v3075_v60, %v5263_v51  ;;  %v3321_v9 = vsel %vm3286_vm1, %v3073_v40, 0.0 }
 0x214   : >> { %v4949_v33 = vpop.eup %4948  ;;  %v3741_v10 = vmul.f32 0.6931472, %v4947_v49  ;;  %v3868_v19 = vmul.f32 %v3737_v39, %v6421_v15  ;;  %v4041_v20 = vcombine.low %v3865_v2, %v3866_v23  ;;  %v2349_v36 = vpop.permute.xlu1 %2348 }
 0x215   : >> { %v4951_v25 = vpop.eup %4950  ;;  %v3743_v29 = vmul.f32 0.6931472, %v4949_v33  ;;  %v2357_v3 = vrot.slane %v2349_v36, %v6001_v11  ;;  %v3869_v55 = vmul.f32 %v3739_v16, %v6398_v44  ;;  %v2397_v39 = vpop.permute.xlu0 %2396  ;;  %v3090_v33 = vcombine.low %v3082_v63, %v3089_v22  ;;  %v7172_v22 = vld [vmem:[#allocation35_spill] sm:$0xff] }
 0x216   : >> { %v4953_v32 = vpop.eup %4952  ;;  %v3745_v56 = vmul.f32 0.6931472, %v4951_v25  ;;  %v3870_v49 = vmul.f32 %v3741_v10, %v6412_v31  ;;  %v4042_v15 = vcombine.low %v3867_v21, %v3868_v19  ;;  %v4049_v60 = vrot.slane %v4041_v20, %v5263_v51 }
 0x217   : >> { %v3747_v2 = vmul.f32 0.6931472, %v4953_v32  ;;  %v3871_v23 = vmul.f32 %v3743_v29, %v6415_v37  ;;  %v6539_v36 = vmul.f32 %v2357_v3, %v5988_v57  ;;  %v3322_v31 = vsel %vm3286_vm1, %v3090_v33, 0.0 }
 0x218   : >> { %v3872_v45 = vmul.f32 %v3745_v56, %v6424_v42  ;;  %v4056_v40 = vrot.slane %v4042_v15, %v5263_v51  ;;  %v4058_v41 = vcombine.low %v3869_v55, %v3870_v49  ;;  %v2385_v25 = vpop.permute.xlu1 %2384  ;;  %v2405_v16 = vrot.slane %v2397_v39, %v6001_v11 }
 0x219   : >> { %v3873_v44 = vmul.f32 %v3747_v2, %v6401_v13  ;;  %v2393_v37 = vrot.slane %v2385_v25, %v6001_v11  ;;  %v6546_v63 = vmul.f32 %v2369_v6, %v5965_v17  ;;  %v3323_v42 = vadd.f32 %v3322_v31, %v3321_v9 }
 0x21a   : >> { %v4057_v21 = vcombine.low %v4049_v60, %v4056_v40  ;;  %v4059_v10 = vcombine.low %v3871_v23, %v3872_v45  ;;  %v3097_v57 = vrot.slane %v6539_v36, %v5263_v51  ;;  %v6552_v13 = vmul.f32 %v2405_v16, %v5983_v24 }
 0x21b   : >> { %v4955_v19 = vpop.eup %4954  ;;  %v4081_v20 = vrot.slane %v3873_v44, %v5263_v51  ;;  %v6555_v29 = vmul.f32 %v2393_v37, %v7172_v22  ;;  %v4066_v3 = vrot.slane %v4058_v41, %v5263_v51  ;;  %v3098_v9 = vcombine.low %v6546_v63, %v6528_v30 }
 0x21c   : >> { %v4073_v32 = vrot.slane %v4059_v10, %v5263_v51  ;;  %v3434_v56 = vcombine.high %v4955_v19, %v4955_v19  ;;  %v3441_v17 = vrot.slane %v4955_v19, %v5263_v51  ;;  %v4363_v6 = vsel %vm3286_vm1, %v4057_v21, 0.0  ;;  %v2457_v19 = vpop.permute.xlu0 %2456 }
 0x21d   : >> { %v3324_v55 = vsel %vm3290_vm5, %v3097_v57, 0.0  ;;  %v3099_v24 = vcombine.low %v6555_v29, %v6552_v13  ;;  %v4366_v23 = vsel %vm3290_vm5, %v4081_v20, 0.0 }
 0x21e   : >> { %v4074_v49 = vcombine.low %v4066_v3, %v4073_v32  ;;  %v3448_v15 = vrot.slane %v3434_v56, %v5263_v51  ;;  %v3449_v39 = vcombine.high %v3441_v17, %v3441_v17  ;;  %v6568_v2 = vmul.f32 %v3441_v17, %v6230_v47  ;;  %v2565_v32 = vpop.permute.xlu1 %2564 }
 0x21f   : >> { %v6572_v60 = vmul.f32 %v3441_v17, %v6298_v34  ;;  %v3325_v33 = vadd.f32 %v3324_v55, %v3323_v42  ;;  %v3113_v45 = vrot.slane %v3099_v24, %v5263_v51  ;;  %v6598_v42 = vmul.f32 %v3441_v17, %v6349_v4 }
 0x220   : >> { %v4364_v40 = vsel %vm3286_vm1, %v4074_v49, 0.0  ;;  %v3450_v41 = vcombine.high %v3448_v15, %v3448_v15  ;;  %v6577_v25 = vmul.f32 %v3449_v39, %v6256_v0  ;;  %v6580_v44 = vmul.f32 %v3448_v15, %v6271_v5 }
 0x221   : >> { %v4365_v31 = vadd.f32 %v4364_v40, %v4363_v6  ;;  %v6583_v47 = vmul.f32 %v3449_v39, %v6301_v62  ;;  %v6586_v16 = vmul.f32 %v3448_v15, %v6313_v38  ;;  %v3658_v34 = vadd.f32 1e-09, %v6568_v2  ;;  %v7173_v15 = vld [vmem:[#allocation13_spill] sm:$0xff] }
 0x222   : >> { %v6590_v37 = vmul.f32 %v3450_v41, %v6276_v61  ;;  %v6593_v21 = vmul.f32 %v3450_v41, %v6326_v8  ;;  %v3659_v0 = vadd.f32 1e-09, %v6577_v25  ;;  %v3660_v5 = vadd.f32 1e-09, %v6580_v44 }
 0x223   : >> { %v4367_v10 = vadd.f32 %v4366_v23, %v4365_v31  ;;  %v3239_v62 = vcombine.low %v6512_v7, %v6515_v50  ;;  %v3106_v38 = vrot.slane %v3098_v9, %v5263_v51  ;;  %v3662_v20 = vadd.f32 1e-09, %v6572_v60 }
 0x224   : >> { %v3661_v61 = vadd.f32 1e-09, %v6590_v37  ;;  %v3663_v8 = vadd.f32 1e-09, %v6583_v47  ;;  %4956 = vlog2.f32 %v3658_v34  ;;  %v3326_v22 = vrot.slane %v3325_v33, 4 }
 0x225   : >> { %v4368_v57 = vrot.slane %v4367_v10, 4  ;;  %4958 = vlog2.f32 %v3659_v0  ;;  %v3114_v3 = vcombine.low %v3106_v38, %v3113_v45  ;;  %v3664_v4 = vadd.f32 1e-09, %v6586_v16  ;;  %v2673_v38 = vpop.permute.xlu0 %2672 }
 0x226   : >> { %v3665_v56 = vadd.f32 1e-09, %v6593_v21  ;;  %4960 = vlog2.f32 %v3660_v5  ;;  %v2465_v17 = vrot.slane %v2457_v19, %v6001_v11  ;;  %v3327_v9 = vadd.f32 %v3326_v22, %v3325_v33  ;;  %v7175_v5 = vld [vmem:[#allocation37_spill] sm:$0xff]  ;;  %v2781_v19 = vpop.permute.xlu1 %2780 }
 0x227   : >> { %v4369_v6 = vadd.f32 %v4368_v57, %v4367_v10  ;;  %4962 = vlog2.f32 %v3661_v61  ;;  %v3332_v55 = vsel %vm3286_vm1, %v3114_v3, 0.0  ;;  %v3666_v24 = vadd.f32 1e-09, %v6598_v42 }
 0x228   : >> { %4964 = vlog2.f32 %v3662_v20  ;;  %v3334_v49 = vadd.f32 %v6355_v43, %v3332_v55  ;;  %v6613_v39 = vmul.f32 %v2465_v17, %v7173_v15  ;;  %v3328_v45 = vrot.slane %v3327_v9, 2 }
 0x229   : >> { %v4370_v23 = vrot.slane %v4369_v6, 2  ;;  %4966 = vlog2.f32 %v3663_v8  ;;  %v2573_v40 = vrot.slane %v2565_v32, %v6001_v11  ;;  %v7174_v33 = vcombine.low %v6458_v14, %v6429_v12 }
 0x22a   : >> { %4968 = vlog2.f32 %v3664_v4  ;;  %v3238_v31 = vcombine.low %v6498_v26, %v6506_v35  ;;  %v3138_v43 = vrot.slane %v6613_v39, %v5263_v51  ;;  %v3329_v0 = vadd.f32 %v3328_v45, %v3327_v9 }
 0x22b   : >> { %v6620_v41 = vrot.slane %v7174_v33, %v5263_v51  ;;  %v4371_v34 = vadd.f32 %v4370_v23, %v4369_v6  ;;  %4970 = vlog2.f32 %v3665_v56  ;;  %v6627_v10 = vmul.f32 %v2573_v40, %v7175_v5  ;;  %v7178_v33 = vld [vmem:[#allocation20_spill] sm:$0xff] }
 0x22c   : >> { %4972 = vlog2.f32 %v3666_v24  ;;  %v7176_v61 = vcombine.low %v6475_v59, %v6471_v28  ;;  %v3253_v8 = vrot.slane %v3239_v62, %v5263_v51  ;;  %v3335_v57 = vsel %vm3290_vm5, %v3138_v43, 0.0 }
 0x22d   : >> { %v4372_v22 = vrot.slane %v4371_v34, 1  ;;  %v3330_v3 = vrot.slane %v3329_v0, 1  ;;  %v3336_v32 = vadd.f32 %v3335_v57, %v3334_v49  ;;  %v3179_v4 = vrot.slane %v6627_v10, %v5263_v51 }
 0x22e   : >> { %v6633_v20 = vrot.slane %v7176_v61, %v5263_v51  ;;  %v3246_v56 = vrot.slane %v3238_v31, %v5263_v51  ;;  %v7177_v17 = vcombine.low %v6370_v1, %v6373_v27  ;;  %v2681_v9 = vrot.slane %v2673_v38, %v6001_v11  ;;  %v7179_v61 = vld [vmem:[#allocation38_spill] sm:$0xff] }
 0x22f   : >> { %v2789_v55 = vrot.slane %v2781_v19, %v6001_v11  ;;  %v4373_v62 = vadd.f32 %v4372_v22, %v4371_v34  ;;  %v3331_v24 = vadd.f32 %v3330_v3, %v3329_v0  ;;  %v3337_v15 = vrot.slane %v3336_v32, 4 }
 0x230   : >> { %v3355_v6 = vsel %vm3286_vm1, %v7177_v17, 0.0  ;;  %v3346_v23 = vsel %vm3290_vm5, %v3179_v4, 0.0  ;;  %v3237_v49 = vcombine.low %v6620_v41, %v6633_v20  ;;  %v3254_v45 = vcombine.low %v3246_v56, %v3253_v8  ;;  %v7180_v17 = vld [vmem:[#allocation11_spill] sm:$0xff] }
 0x231   : >> { %v3347_v40 = vadd.f32 %v3346_v23, %v6182_v18  ;;  %v6651_v31 = vmul.f32 %v2681_v9, %v7178_v33  ;;  %v4957_v1 = vpop.eup %4956  ;;  %v4441_v27 = vadd.f32 2.8903718, %v4373_v62  ;;  %v3379_v43 = vadd.f32 1e-09, %v3331_v24 }
 0x232   : >> { %v3338_v5 = vadd.f32 %v3337_v15, %v3336_v32  ;;  %v3356_v11 = vadd.f32 %v3355_v6, %v6367_v54  ;;  %v4959_v34 = vpop.eup %4958  ;;  %v3749_v0 = vmul.f32 0.6931472, %v4957_v1  ;;  %v6657_v41 = vmul.f32 %v2789_v55, %v7179_v61 }
 0x233   : >> { %v3348_v38 = vrot.slane %v3347_v40, 4  ;;  %v3220_v19 = vrot.slane %v6651_v31, %v5263_v51  ;;  %v4961_v20 = vpop.eup %4960  ;;  %v4450_v18 = vmul.f32 0.34597626, %v4441_v27  ;;  %v3751_v8 = vmul.f32 0.6931472, %v4959_v34 }
 0x234   : >> { %4974 = vrcp.f32 %v3379_v43  ;;  %v3339_v57 = vrot.slane %v3338_v5, 2  ;;  %v4963_v22 = vpop.eup %4962  ;;  %v3753_v3 = vmul.f32 0.6931472, %v4961_v20  ;;  %v3874_v32 = vmul.f32 %v3749_v0, %v6568_v2 }
 0x235   : >> { %v3349_v4 = vadd.f32 %v3348_v38, %v3347_v40  ;;  %v3357_v54 = vsel %vm3290_vm5, %v3220_v19, 0.0  ;;  %v4965_v56 = vpop.eup %4964  ;;  %v6662_v6 = vadd.f32 %v7180_v17, %v4450_v18   ;;  %v3755_v9 = vmul.f32 0.6931472, %v4963_v22 }
 0x236   : >> { %v3875_v55 = vmul.f32 %v3751_v8, %v6577_v25  ;;  %v3340_v24 = vadd.f32 %v3339_v57, %v3338_v5  ;;  %v4967_v15 = vpop.eup %4966  ;;  %v3757_v23 = vmul.f32 0.6931472, %v4965_v56  ;;  %v3876_v33 = vmul.f32 %v3753_v3, %v6580_v44 }
 0x237   : >> { %v7181_v62 = vmov %v6662_v6  ;;  %v3350_v1 = vrot.slane %v3349_v4, 2  ;;  %v3366_v27 = vsel %vm3286_vm1, %v3254_v45, 0.0  ;;  %v4969_v43 = vpop.eup %4968  ;;  %v3759_v2 = vmul.f32 0.6931472, %v4967_v15 }
 0x238   : >> { %v3877_v40 = vmul.f32 %v3755_v9, %v6590_v37  ;;  %v4082_v34 = vcombine.low %v3874_v32, %v3875_v55  ;;  %v3341_v0 = vrot.slane %v3340_v24, 1  ;;  %v4971_v38 = vpop.eup %4970  ;;  %v3761_v19 = vmul.f32 0.6931472, %v4969_v43 }
 0x239   : >> { %v3351_v61 = vadd.f32 %v3350_v1, %v3349_v4  ;;  %v3358_v20 = vadd.f32 %v3357_v54, %v3356_v11  ;;  %v3261_v25 = vrot.slane %v6657_v41, %v5263_v51  ;;  %v4973_v5 = vpop.eup %4972  ;;  %v3763_v18 = vmul.f32 0.6931472, %v4971_v38 }
 0x23a   : >> { %v3878_v44 = vmul.f32 %v3757_v23, %v6572_v60  ;;  %v3879_v8 = vmul.f32 %v3759_v2, %v6583_v47  ;;  %v4083_v45 = vcombine.low %v3876_v33, %v3877_v40  ;;  %v3765_v57 = vmul.f32 0.6931472, %v4973_v5 }
 0x23b   : >> { %v4090_v22 = vrot.slane %v4082_v34, %v5263_v51  ;;  %v3342_v37 = vadd.f32 %v3341_v0, %v3340_v24  ;;  %v3352_v3 = vrot.slane %v3351_v61, 1  ;;  %v3880_v32 = vmul.f32 %v3761_v19, %v6586_v16 }
 0x23c   : >> { %v3881_v4 = vmul.f32 %v3763_v18, %v6593_v21  ;;  %v4097_v11 = vrot.slane %v4083_v45, %v5263_v51  ;;  %v4099_v54 = vcombine.low %v3878_v44, %v3879_v8  ;;  %v3882_v56 = vmul.f32 %v3765_v57, %v6598_v42  ;;  %v7182_v45 = vld [vmem:[#allocation18_spill] sm:$0xff] }
 0x23d   : >> { %v3380_v17 = vadd.f32 1e-09, %v3342_v37  ;;  %v3353_v6 = vadd.f32 %v3352_v3, %v3351_v61  ;;  %v3365_v47 = vsel %vm3286_vm1, %v3237_v49, 0.0  ;;  %v3368_v55 = vsel %vm3290_vm5, %v3261_v25, 0.0  ;;  %v7183_v3 = vld [vmem:[#allocation16_spill] sm:$0xff] }
 0x23e   : >> { %v4098_v60 = vcombine.low %v4090_v22, %v4097_v11  ;;  %v4100_v9 = vcombine.low %v3880_v32, %v3881_v4  ;;  %v4122_v24 = vrot.slane %v3882_v56, %v5263_v51  ;;  %v3359_v15 = vrot.slane %v3358_v20, 4 }
 0x23f   : >> { %4976 = vrcp.f32 %v3380_v17  ;;  %v3367_v16 = vadd.f32 %v3366_v27, %v3365_v47  ;;  %v4107_v21 = vrot.slane %v4099_v54, %v5263_v51  ;;  %v3381_v1 = vadd.f32 1e-09, %v3353_v6 }
 0x240   : >> { %v4114_v23 = vrot.slane %v4100_v9, %v5263_v51  ;;  %v4374_v2 = vsel %vm3286_vm1, %v4098_v60, 0.0  ;;  %v4377_v34 = vsel %vm3290_vm5, %v4122_v24, 0.0  ;;  %v3360_v0 = vadd.f32 %v3359_v15, %v3358_v20 }
 0x241   : >> { %v4975_v33 = vpop.eup %4974  ;;  %v3369_v42 = vadd.f32 %v3368_v55, %v3367_v16  ;;  %4978 = vrcp.f32 %v3381_v1 }
 0x242   : >> { %v4115_v43 = vcombine.low %v4107_v21, %v4114_v23  ;;  %v3451_v40 = vcombine.high %v4975_v33, %v4975_v33  ;;  %v3458_v49 = vrot.slane %v4975_v33, %v5263_v51  ;;  %v3361_v17 = vrot.slane %v3360_v0, 2 }
 0x243   : >> { %v3370_v18 = vrot.slane %v3369_v42, 4 }
 0x244   : >> { %v4375_v38 = vsel %vm3286_vm1, %v4115_v43, 0.0  ;;  %v3465_v27 = vrot.slane %v3451_v40, %v5263_v51  ;;  %v3466_v19 = vcombine.high %v3458_v49, %v3458_v49  ;;  %v6688_v61 = vmul.f32 %v3458_v49, %v6432_v58  ;;  %v7185_v40 = vld [vmem:[#allocation39_spill] sm:$0xff] }
 0x245   : >> { %v4376_v25 = vadd.f32 %v4375_v38, %v4374_v2  ;;  %v6691_v5 = vmul.f32 %v3458_v49, %v6487_v46  ;;  %v6706_v37 = vmul.f32 %v3458_v49, %v6539_v36  ;;  %v6723_v24 = vadd.f32 %v3370_v18, %v3369_v42 }
 0x246   : >> { %v3467_v44 = vcombine.high %v3465_v27, %v3465_v27  ;;  %v6694_v8 = vmul.f32 %v3466_v19, %v6439_v53  ;;  %v6697_v20 = vmul.f32 %v3465_v27, %v6452_v52  ;;  %v6700_v57 = vmul.f32 %v3466_v19, %v7182_v45  ;;  %v7184_v53 = vld [vmem:[#allocation19_spill] sm:$0xff] }
 0x247   : >> { %v4378_v22 = vadd.f32 %v4377_v34, %v4376_v25  ;;  %v6703_v58 = vmul.f32 %v3465_v27, %v6509_v48  ;;  %v3667_v46 = vadd.f32 1e-09, %v6688_v61  ;;  %v3671_v56 = vadd.f32 1e-09, %v6691_v5  ;;  %v7186_v25 = vld [vmem:[#allocation40_spill] sm:$0xff] }
 0x248   : >> { %v6710_v32 = vmul.f32 %v3467_v44, %v7183_v3  ;;  %v6713_v4 = vmul.f32 %v3467_v44, %v7184_v53  ;;  %v3668_v52 = vadd.f32 1e-09, %v6694_v8  ;;  %v3669_v11 = vadd.f32 1e-09, %v6697_v20  ;;  %v7188_v3 = vld [vmem:[#allocation42_spill] sm:$0xff] }
 0x249   : >> { %v4379_v54 = vrot.slane %v4378_v22, 4  ;;  %4980 = vlog2.f32 %v3667_v46  ;;  %v3672_v36 = vadd.f32 1e-09, %v6700_v57  ;;  %v3673_v60 = vadd.f32 1e-09, %v6703_v58 }
 0x24a   : >> { %v3670_v48 = vadd.f32 1e-09, %v6710_v32  ;;  %4982 = vlog2.f32 %v3668_v52  ;;  %v3674_v47 = vadd.f32 1e-09, %v6713_v4  ;;  %v3675_v55 = vadd.f32 1e-09, %v6706_v37 }
 0x24b   : >> { %v4380_v6 = vadd.f32 %v4379_v54, %v4378_v22  ;;  %4984 = vlog2.f32 %v3669_v11  ;;  %v6726_v23 = vadd.f32 %v3361_v17, %v3360_v0  ;;  %v3372_v49 = vrot.slane %v6723_v24, 2 }
 0x24c   : >> { %v4977_v9 = vpop.eup %4976  ;;  %4986 = vlog2.f32 %v3670_v48 }
 0x24d   : >> { %v4381_v15 = vrot.slane %v4380_v6, 2  ;;  %4988 = vlog2.f32 %v3671_v56  ;;  %v3468_v16 = vcombine.high %v4977_v9, %v4977_v9  ;;  %v3475_v21 = vrot.slane %v4977_v9, %v5263_v51 }
 0x24e   : >> { %4990 = vlog2.f32 %v3672_v36  ;;  %v4979_v27 = vpop.eup %4978 }
 0x24f   : >> { %v4382_v33 = vadd.f32 %v4381_v15, %v4380_v6  ;;  %4992 = vlog2.f32 %v3673_v60  ;;  %v3482_v1 = vrot.slane %v3468_v16, %v5263_v51  ;;  %v3483_v43 = vcombine.high %v3475_v21, %v3475_v21 }
 0x250   : >> { %4994 = vlog2.f32 %v3674_v47  ;;  %v6730_v2 = vmul.f32 %v3475_v21, %v6546_v63  ;;  %v6733_v42 = vmul.f32 %v3475_v21, %v7185_v40  ;;  %v7187_v63 = vld [vmem:[#allocation41_spill] sm:$0xff]  ;;  %v3485_v6 = vcombine.high %v4979_v27, %v4979_v27 }
 0x251   : >> { %v4383_v34 = vrot.slane %v4382_v33, 1  ;;  %4996 = vlog2.f32 %v3675_v55  ;;  %v3484_v38 = vcombine.high %v3482_v1, %v3482_v1  ;;  %v6737_v0 = vmul.f32 %v3483_v43, %v6528_v30 }
 0x252   : >> { %v6740_v19 = vmul.f32 %v3482_v1, %v6555_v29  ;;  %v6743_v18 = vmul.f32 %v3483_v43, %v7186_v25  ;;  %v6746_v44 = vmul.f32 %v3482_v1, %v7187_v63  ;;  %v3676_v45 = vadd.f32 1e-09, %v6730_v2  ;;  %v7189_v1 = vld [vmem:[#allocation10_spill] sm:$0xff] }
 0x253   : >> { %v4384_v22 = vadd.f32 %v4383_v34, %v4382_v33  ;;  %v6750_v46 = vmul.f32 %v3484_v38, %v6552_v13  ;;  %v6753_v53 = vmul.f32 %v3484_v38, %v7188_v3  ;;  %v3677_v30 = vadd.f32 1e-09, %v6737_v0 }
 0x254   : >> { %v6757_v29 = vmul.f32 %v3475_v21, %v6613_v39  ;;  %v3678_v52 = vadd.f32 1e-09, %v6740_v19  ;;  %v3680_v11 = vadd.f32 1e-09, %v6733_v42  ;;  %4998 = vlog2.f32 %v3676_v45 }
 0x255   : >> { %v4442_v54 = vadd.f32 2.8903718, %v4384_v22  ;;  %v3679_v56 = vadd.f32 1e-09, %v6750_v46  ;;  %v3681_v48 = vadd.f32 1e-09, %v6743_v18  ;;  %5000 = vlog2.f32 %v3677_v30 }
 0x256   : >> { %v4981_v13 = vpop.eup %4980  ;;  %v3682_v36 = vadd.f32 1e-09, %v6746_v44  ;;  %v3683_v17 = vadd.f32 1e-09, %v6753_v53  ;;  %5002 = vlog2.f32 %v3678_v52  ;;  %v6766_v47 = vrot.slane %v4979_v27, %v5263_v51 }
 0x257   : >> { %v4983_v39 = vpop.eup %4982  ;;  %v4451_v60 = vmul.f32 0.34597626, %v4442_v54  ;;  %v3767_v9 = vmul.f32 0.6931472, %v4981_v13  ;;  %5004 = vlog2.f32 %v3679_v56  ;;  %v3684_v16 = vadd.f32 1e-09, %v6757_v29 }
 0x258   : >> { %v4985_v55 = vpop.eup %4984  ;;  %v3769_v15 = vmul.f32 0.6931472, %v4983_v39  ;;  %5006 = vlog2.f32 %v3680_v11  ;;  %v3499_v21 = vrot.slane %v3485_v6, %v5263_v51  ;;  %v3500_v63 = vcombine.high %v6766_v47, %v6766_v47  ;;  %v7190_v13 = vld [vmem:[#allocation44_spill] sm:$0xff]  ;;  %v7191_v6 = vld [vmem:[#allocation43_spill] sm:$0xff] }
 0x259   : >> { %v4987_v33 = vpop.eup %4986  ;;  %v6771_v43 = vadd.f32 %v7189_v1, %v4451_v60   ;;  %v3771_v40 = vmul.f32 0.6931472, %v4985_v55  ;;  %v3883_v34 = vmul.f32 %v3767_v9, %v6688_v61  ;;  %5008 = vlog2.f32 %v3681_v48 }
 0x25a   : >> { %v4989_v38 = vpop.eup %4988  ;;  %v3773_v25 = vmul.f32 0.6931472, %v4987_v33  ;;  %v3884_v27 = vmul.f32 %v3769_v15, %v6694_v8  ;;  %5010 = vlog2.f32 %v3682_v36  ;;  %v3501_v30 = vcombine.high %v3499_v21, %v3499_v21 }
 0x25b   : >> { %v4991_v45 = vpop.eup %4990  ;;  %v3775_v22 = vmul.f32 0.6931472, %v4989_v38  ;;  %v3885_v3 = vmul.f32 %v3771_v40, %v6697_v20  ;;  %5012 = vlog2.f32 %v3683_v17  ;;  %v6782_v36 = vmul.f32 %v6766_v47, %v7190_v13 }
 0x25c   : >> { %v4993_v52 = vpop.eup %4992  ;;  %v3777_v11 = vmul.f32 0.6931472, %v4991_v45  ;;  %v3886_v54 = vmul.f32 %v3773_v25, %v6710_v32  ;;  %v4123_v61 = vcombine.low %v3883_v34, %v3884_v27  ;;  %5014 = vlog2.f32 %v3684_v16  ;;  %v7192_v16 = vld [vmem:[#allocation46_spill] sm:$0xff]  ;;  %v7194_v25 = vld [vmem:[#allocation48_spill] sm:$0xff] }
 0x25d   : >> { %v4995_v56 = vpop.eup %4994  ;;  %v3779_v48 = vmul.f32 0.6931472, %v4993_v52  ;;  %v3887_v8 = vmul.f32 %v3775_v22, %v6691_v5  ;;  %v6785_v39 = vmul.f32 %v3500_v63, %v7191_v6  ;;  %v6791_v33 = vmul.f32 %v3499_v21, %v7192_v16  ;;  %v7193_v5 = vld [vmem:[#allocation45_spill] sm:$0xff]  ;;  %v7195_v22 = vld [vmem:[#allocation47_spill] sm:$0xff] }
 0x25e   : >> { %v4997_v20 = vpop.eup %4996  ;;  %v3781_v17 = vmul.f32 0.6931472, %v4995_v56  ;;  %v3888_v60 = vmul.f32 %v3777_v11, %v6700_v57  ;;  %v4124_v9 = vcombine.low %v3885_v3, %v3886_v54  ;;  %v4131_v32 = vrot.slane %v4123_v61, %v5263_v51  ;;  %v7196_v3 = vld [vmem:[#allocation50_spill] sm:$0xff]  ;;  %v7197_v11 = vld [vmem:[#allocation49_spill] sm:$0xff] }
 0x25f   : >> { %v3783_v55 = vmul.f32 0.6931472, %v4997_v20  ;;  %v3889_v15 = vmul.f32 %v3779_v48, %v6703_v58  ;;  %v6794_v1 = vmul.f32 %v3501_v30, %v7193_v5  ;;  %v6800_v57 = vmul.f32 %v6766_v47, %v7194_v25 }
 0x260   : >> { %v3890_v40 = vmul.f32 %v3781_v17, %v6713_v4  ;;  %v4138_v34 = vrot.slane %v4124_v9, %v5263_v51  ;;  %v4140_v38 = vcombine.low %v3887_v8, %v3888_v60  ;;  %v6804_v58 = vmul.f32 %v3500_v63, %v7195_v22 }
 0x261   : >> { %v4999_v27 = vpop.eup %4998  ;;  %v3891_v45 = vmul.f32 %v3783_v55, %v6706_v37  ;;  %v6807_v52 = vmul.f32 %v3499_v21, %v7196_v3  ;;  %v6810_v54 = vmul.f32 %v3501_v30, %v7197_v11  ;;  %v3363_v6 = vrot.slane %v6726_v23, 1 }
 0x262   : >> { %v5001_v4 = vpop.eup %5000  ;;  %v4139_v61 = vcombine.low %v4131_v32, %v4138_v34  ;;  %v4141_v56 = vcombine.low %v3889_v15, %v3890_v40  ;;  %v3785_v48 = vmul.f32 0.6931472, %v4999_v27  ;;  %v4148_v37 = vrot.slane %v4140_v38, %v5263_v51 }
 0x263   : >> { %v5003_v8 = vpop.eup %5002  ;;  %v3787_v13 = vmul.f32 0.6931472, %v5001_v4  ;;  %v4163_v17 = vrot.slane %v3891_v45, %v5263_v51  ;;  %v3373_v55 = vadd.f32 %v3372_v49, %v6723_v24  ;;  %v3685_v34 = vadd.f32 1e-09, %v6782_v36 }
 0x264   : >> { %v5005_v20 = vpop.eup %5004  ;;  %v4155_v63 = vrot.slane %v4141_v56, %v5263_v51  ;;  %v3789_v21 = vmul.f32 0.6931472, %v5003_v8  ;;  %v3892_v30 = vmul.f32 %v3785_v48, %v6730_v2  ;;  %v4385_v5 = vsel %vm3286_vm1, %v4139_v61, 0.0 }
 0x265   : >> { %v5007_v60 = vpop.eup %5006  ;;  %v3791_v9 = vmul.f32 0.6931472, %v5005_v20  ;;  %v3893_v32 = vmul.f32 %v3787_v13, %v6737_v0  ;;  %v4388_v3 = vsel %vm3290_vm5, %v4163_v17, 0.0  ;;  %v3686_v13 = vadd.f32 1e-09, %v6785_v39 }
 0x266   : >> { %v5009_v15 = vpop.eup %5008  ;;  %v4156_v16 = vcombine.low %v4148_v37, %v4155_v63  ;;  %v3793_v40 = vmul.f32 0.6931472, %v5007_v60  ;;  %v3894_v27 = vmul.f32 %v3789_v21, %v6740_v19  ;;  %v3687_v21 = vadd.f32 1e-09, %v6791_v33 }
 0x267   : >> { %v5011_v38 = vpop.eup %5010  ;;  %v3795_v25 = vmul.f32 0.6931472, %v5009_v15  ;;  %v3895_v45 = vmul.f32 %v3791_v9, %v6750_v46  ;;  %v4164_v2 = vcombine.low %v3892_v30, %v3893_v32  ;;  %v3374_v60 = vrot.slane %v3373_v55, 1 }
 0x268   : >> { %v5013_v22 = vpop.eup %5012  ;;  %v4386_v0 = vsel %vm3286_vm1, %v4156_v16, 0.0  ;;  %v3797_v24 = vmul.f32 0.6931472, %v5011_v38  ;;  %v3896_v49 = vmul.f32 %v3793_v40, %v6733_v42  ;;  %v3688_v32 = vadd.f32 1e-09, %v6794_v1 }
 0x269   : >> { %v5015_v11 = vpop.eup %5014  ;;  %v4387_v4 = vadd.f32 %v4386_v0, %v4385_v5  ;;  %v3799_v61 = vmul.f32 0.6931472, %v5013_v22  ;;  %v3897_v56 = vmul.f32 %v3795_v25, %v6743_v18  ;;  %v4165_v48 = vcombine.low %v3894_v27, %v3895_v45 }
 0x26a   : >> { %v3801_v8 = vmul.f32 0.6931472, %v5015_v11  ;;  %v3898_v19 = vmul.f32 %v3797_v24, %v6746_v44  ;;  %v4172_v46 = vrot.slane %v4164_v2, %v5263_v51  ;;  %v3364_v18 = vadd.f32 %v3363_v6, %v6726_v23 }
 0x26b   : >> { %v4389_v20 = vadd.f32 %v4388_v3, %v4387_v4  ;;  %v3899_v37 = vmul.f32 %v3799_v61, %v6753_v53  ;;  %v4179_v63 = vrot.slane %v4165_v48, %v5263_v51  ;;  %v4181_v17 = vcombine.low %v3896_v49, %v3897_v56 }
 0x26c   : >> { %v3900_v42 = vmul.f32 %v3801_v8, %v6757_v29  ;;  %v6840_v15 = vmul.f32 %v6766_v47, %v6627_v10  ;;  %v3689_v53 = vadd.f32 1e-09, %v6800_v57  ;;  %v3690_v16 = vadd.f32 1e-09, %v6804_v58 }
 0x26d   : >> { %v4390_v9 = vrot.slane %v4389_v20, 4  ;;  %v4180_v30 = vcombine.low %v4172_v46, %v4179_v63  ;;  %v4182_v44 = vcombine.low %v3898_v19, %v3899_v37  ;;  %5016 = vlog2.f32 %v3685_v34  ;;  %v7198_v37 = vld [vmem:[#allocation9_spill] sm:$0xff] }
 0x26e   : >> { %v4189_v5 = vrot.slane %v4181_v17, %v5263_v51  ;;  %5018 = vlog2.f32 %v3686_v13  ;;  %v4204_v6 = vrot.slane %v3900_v42, %v5263_v51  ;;  %v3691_v40 = vadd.f32 1e-09, %v6807_v52 }
 0x26f   : >> { %v4391_v29 = vadd.f32 %v4390_v9, %v4389_v20  ;;  %v4196_v23 = vrot.slane %v4182_v44, %v5263_v51  ;;  %v3692_v38 = vadd.f32 1e-09, %v6810_v54  ;;  %5020 = vlog2.f32 %v3687_v21 }
 0x270   : >> { %v4396_v25 = vsel %vm3286_vm1, %v4180_v30, 0.0  ;;  %5022 = vlog2.f32 %v3688_v32  ;;  %v3693_v34 = vadd.f32 1e-09, %v6840_v15  ;;  %v3375_v27 = vadd.f32 %v3374_v60, %v3373_v55 }
 0x271   : >> { %v4392_v10 = vrot.slane %v4391_v29, 2  ;;  %v4197_v47 = vcombine.low %v4189_v5, %v4196_v23  ;;  %5024 = vlog2.f32 %v3689_v53  ;;  %v3382_v22 = vadd.f32 1e-09, %v3364_v18 }
 0x272   : >> { %5026 = vlog2.f32 %v3690_v16  ;;  %v4399_v24 = vsel %vm3290_vm5, %v4204_v6, 0.0  ;;  %v3383_v11 = vadd.f32 1e-09, %v3375_v27 }
 0x273   : >> { %v4393_v45 = vadd.f32 %v4392_v10, %v4391_v29  ;;  %v4397_v2 = vsel %vm3286_vm1, %v4197_v47, 0.0  ;;  %5028 = vlog2.f32 %v3691_v40 }
 0x274   : >> { %v4398_v0 = vadd.f32 %v4397_v2, %v4396_v25  ;;  %5030 = vlog2.f32 %v3692_v38 }
 0x275   : >> { %v4394_v3 = vrot.slane %v4393_v45, 1  ;;  %5032 = vlog2.f32 %v3693_v34 }
 0x276   : >> { %v4400_v49 = vadd.f32 %v4399_v24, %v4398_v0  ;;  %5034 = vrcp.f32 %v3382_v22 }
 0x277   : >> { %v4395_v4 = vadd.f32 %v4394_v3, %v4393_v45  ;;  %5036 = vrcp.f32 %v3383_v11 }
 0x278   : >> { %v4401_v61 = vrot.slane %v4400_v49, 4 }
 0x279   : >> { %v4443_v56 = vadd.f32 2.8903718, %v4395_v4 }
 0x27a   : >> { %v4402_v48 = vadd.f32 %v4401_v61, %v4400_v49  ;;  %v5017_v55 = vpop.eup %5016 }
 0x27b   : >> { %v4452_v8 = vmul.f32 0.34597626, %v4443_v56  ;;  %v5019_v19 = vpop.eup %5018  ;;  %v3803_v13 = vmul.f32 0.6931472, %v5017_v55  ;;  %v7200_v55 = vld [vmem:[#allocation8_spill] sm:$0xff] }
 0x27c   : >> { %v4403_v46 = vrot.slane %v4402_v48, 2  ;;  %v5021_v20 = vpop.eup %5020  ;;  %v3805_v17 = vmul.f32 0.6931472, %v5019_v19  ;;  %v7201_v19 = vld [vmem:[#allocation51_spill] sm:$0xff] }
 0x27d   : >> { %v6854_v8 = vadd.f32 %v7198_v37, %v4452_v8   ;;  %v5023_v42 = vpop.eup %5022  ;;  %v3807_v18 = vmul.f32 0.6931472, %v5021_v20  ;;  %v3901_v30 = vmul.f32 %v3803_v13, %v6782_v36  ;;  %v7202_v37 = vld [vmem:[#allocation53_spill] sm:$0xff] }
 0x27e   : >> { %v4404_v21 = vadd.f32 %v4403_v46, %v4402_v48  ;;  %v5025_v60 = vpop.eup %5024  ;;  %v3809_v9 = vmul.f32 0.6931472, %v5023_v42  ;;  %v3902_v44 = vmul.f32 %v3805_v17, %v6785_v39  ;;  %v7203_v42 = vld [vmem:[#allocation52_spill] sm:$0xff] }
 0x27f   : >> { %v7199_v63 = vmov %v6854_v8  ;;  %v5027_v32 = vpop.eup %5026  ;;  %v3811_v16 = vmul.f32 0.6931472, %v5025_v60  ;;  %v3903_v23 = vmul.f32 %v3807_v18, %v6791_v33 }
 0x280   : >> { %v4405_v53 = vrot.slane %v4404_v21, 1  ;;  %v5029_v29 = vpop.eup %5028  ;;  %v3813_v5 = vmul.f32 0.6931472, %v5027_v32  ;;  %v3904_v6 = vmul.f32 %v3809_v9, %v6794_v1  ;;  %v4205_v40 = vcombine.low %v3901_v30, %v3902_v44  ;;  %v7204_v30 = vld [vmem:[#allocation54_spill] sm:$0xff]  ;;  %v7205_v32 = vld [vmem:[#allocation55_spill] sm:$0xff] }
 0x281   : >> { %v5031_v38 = vpop.eup %5030  ;;  %v3815_v47 = vmul.f32 0.6931472, %v5029_v29  ;;  %v3905_v27 = vmul.f32 %v3811_v16, %v6800_v57  ;;  %v7206_v29 = vld [vmem:[#allocation14_spill] sm:$0xff] }
 0x282   : >> { %v4406_v10 = vadd.f32 %v4405_v53, %v4404_v21  ;;  %v5033_v25 = vpop.eup %5032  ;;  %v3817_v34 = vmul.f32 0.6931472, %v5031_v38  ;;  %v3906_v36 = vmul.f32 %v3813_v5, %v6804_v58  ;;  %v4206_v39 = vcombine.low %v3903_v23, %v3904_v6  ;;  %v7207_v38 = vld [vmem:[#allocation15_spill] sm:$0xff] }
 0x283   : >> { %v5035_v45 = vpop.eup %5034  ;;  %v3819_v22 = vmul.f32 0.6931472, %v5033_v25  ;;  %v3907_v0 = vmul.f32 %v3815_v47, %v6807_v52  ;;  %v4213_v33 = vrot.slane %v4205_v40, %v5263_v51 }
 0x284   : >> { %v4444_v2 = vadd.f32 2.8903718, %v4406_v10  ;;  %v3908_v1 = vmul.f32 %v3817_v34, %v6810_v54  ;;  %v4220_v3 = vrot.slane %v4206_v39, %v5263_v51  ;;  %v4222_v24 = vcombine.low %v3905_v27, %v3906_v36  ;;  %v5037_v58 = vpop.eup %5036  ;;  %v7208_v27 = vld [vmem:[#allocation17_spill] sm:$0xff] }
 0x285   : >> { %v3502_v49 = vcombine.high %v5035_v45, %v5035_v45  ;;  %v3909_v4 = vmul.f32 %v3819_v22, %v6840_v15  ;;  %v3509_v57 = vrot.slane %v5035_v45, %v5263_v51  ;;  %v3519_v18 = vcombine.high %v5037_v58, %v5037_v58 }
 0x286   : >> { %v4453_v11 = vmul.f32 0.34597626, %v4444_v2  ;;  %v4221_v61 = vcombine.low %v4213_v33, %v4220_v3  ;;  %v4223_v56 = vcombine.low %v3907_v0, %v3908_v1  ;;  %v4230_v13 = vrot.slane %v4222_v24, %v5263_v51 }
 0x287   : >> { %v3516_v48 = vrot.slane %v3502_v49, %v5263_v51  ;;  %v4245_v8 = vrot.slane %v3909_v4, %v5263_v51  ;;  %v3517_v54 = vcombine.high %v3509_v57, %v3509_v57  ;;  %v6874_v46 = vmul.f32 %v3509_v57, %v7201_v19 }
 0x288   : >> { %v6870_v52 = vadd.f32 %v7200_v55, %v4453_v11   ;;  %v4237_v15 = vrot.slane %v4223_v56, %v5263_v51  ;;  %v4407_v9 = vsel %vm3286_vm1, %v4221_v61, 0.0  ;;  %v6889_v53 = vmul.f32 %v3509_v57, %v7205_v32 }
 0x289   : >> { %v3518_v20 = vcombine.high %v3516_v48, %v3516_v48  ;;  %v6879_v17 = vmul.f32 %v3516_v48, %v7202_v37  ;;  %v6882_v21 = vmul.f32 %v3517_v54, %v7203_v42  ;;  %v4410_v16 = vsel %vm3290_vm5, %v4245_v8, 0.0 }
 0x28a   : >> { %v4238_v60 = vcombine.low %v4230_v13, %v4237_v15  ;;  %v6893_v5 = vmul.f32 %v3517_v54, %v7206_v29  ;;  %v3694_v23 = vadd.f32 1e-09, %v6874_v46  ;;  %v6899_v10 = vmul.f32 %v3516_v48, %v7207_v38 }
 0x28b   : >> { %v6886_v44 = vmul.f32 %v3518_v20, %v7204_v30  ;;  %v3695_v6 = vadd.f32 1e-09, %v6882_v21  ;;  %v3696_v47 = vadd.f32 1e-09, %v6879_v17  ;;  %v3526_v25 = vrot.slane %v5037_v58, %v5263_v51 }
 0x28c   : >> { %v4408_v40 = vsel %vm3286_vm1, %v4238_v60, 0.0  ;;  %v6904_v36 = vmul.f32 %v3518_v20, %v7208_v27  ;;  %v6907_v39 = vmul.f32 %v3509_v57, %v6651_v31  ;;  %v3698_v2 = vadd.f32 1e-09, %v6889_v53 }
 0x28d   : >> { %v4409_v34 = vadd.f32 %v4408_v40, %v4407_v9  ;;  %v3697_v45 = vadd.f32 1e-09, %v6886_v44  ;;  %5038 = vlog2.f32 %v3694_v23  ;;  %v3533_v22 = vrot.slane %v3519_v18, %v5263_v51 }
 0x28e   : >> { %v3534_v0 = vcombine.high %v3526_v25, %v3526_v25  ;;  %v3699_v1 = vadd.f32 1e-09, %v6893_v5  ;;  %5040 = vlog2.f32 %v3695_v6  ;;  %v6914_v3 = vmul.f32 %v3526_v25, %v6458_v14 }
 0x28f   : >> { %v4411_v33 = vadd.f32 %v4410_v16, %v4409_v34  ;;  %v3700_v24 = vadd.f32 1e-09, %v6899_v10  ;;  %5042 = vlog2.f32 %v3696_v47  ;;  %v3535_v31 = vcombine.high %v3533_v22, %v3533_v22 }
 0x290   : >> { %v6918_v49 = vmul.f32 %v3534_v0, %v6429_v12  ;;  %v3701_v4 = vadd.f32 1e-09, %v6904_v36  ;;  %5044 = vlog2.f32 %v3697_v45  ;;  %v6922_v57 = vmul.f32 %v3533_v22, %v6475_v59 }
 0x291   : >> { %v4412_v11 = vrot.slane %v4411_v33, 4  ;;  %v3702_v58 = vadd.f32 1e-09, %v6907_v39  ;;  %5046 = vlog2.f32 %v3698_v2  ;;  %v6926_v14 = vmul.f32 %v3535_v31, %v6471_v28  ;;  %v7209_v2 = vld [vmem:[#allocation7_spill] sm:$0xff] }
 0x292   : >> { %5048 = vlog2.f32 %v3699_v1  ;;  %v6929_v56 = vmul.f32 %v3526_v25, %v6498_v26  ;;  %v3703_v12 = vadd.f32 1e-09, %v6914_v3  ;;  %v6933_v48 = vmul.f32 %v3534_v0, %v6506_v35 }
 0x293   : >> { %v4413_v61 = vadd.f32 %v4412_v11, %v4411_v33  ;;  %5050 = vlog2.f32 %v3700_v24  ;;  %v3704_v59 = vadd.f32 1e-09, %v6918_v49  ;;  %v6937_v8 = vmul.f32 %v3533_v22, %v6512_v7 }
 0x294   : >> { %5052 = vlog2.f32 %v3701_v4  ;;  %v3705_v28 = vadd.f32 1e-09, %v6922_v57  ;;  %v6941_v54 = vmul.f32 %v3535_v31, %v6515_v50  ;;  %v3706_v26 = vadd.f32 1e-09, %v6926_v14 }
 0x295   : >> { %v4414_v55 = vrot.slane %v4413_v61, 2  ;;  %5054 = vlog2.f32 %v3702_v58  ;;  %v6945_v13 = vmul.f32 %v3526_v25, %v6657_v41  ;;  %v3707_v35 = vadd.f32 1e-09, %v6929_v56 }
 0x296   : >> { %5056 = vlog2.f32 %v3703_v12  ;;  %v3708_v15 = vadd.f32 1e-09, %v6933_v48  ;;  %v3709_v20 = vadd.f32 1e-09, %v6937_v8  ;;  %v3710_v37 = vadd.f32 1e-09, %v6941_v54 }
 0x297   : >> { %v4415_v19 = vadd.f32 %v4414_v55, %v4413_v61  ;;  %5058 = vlog2.f32 %v3704_v59  ;;  %v3711_v18 = vadd.f32 1e-09, %v6945_v13 }
 0x298   : >> { %5060 = vlog2.f32 %v3705_v28 }
 0x299   : >> { %v4416_v7 = vrot.slane %v4415_v19, 1  ;;  %5062 = vlog2.f32 %v3706_v26 }
 0x29a   : >> { %v5039_v50 = vpop.eup %5038  ;;  %5064 = vlog2.f32 %v3707_v35 }
 0x29b   : >> { %v4417_v42 = vadd.f32 %v4416_v7, %v4415_v19  ;;  %v5041_v41 = vpop.eup %5040  ;;  %v3821_v60 = vmul.f32 0.6931472, %v5039_v50  ;;  %5066 = vlog2.f32 %v3708_v15 }
 0x29c   : >> { %v5043_v9 = vpop.eup %5042  ;;  %v3823_v32 = vmul.f32 0.6931472, %v5041_v41  ;;  %5068 = vlog2.f32 %v3709_v20 }
 0x29d   : >> { %v4445_v30 = vadd.f32 2.8903718, %v4417_v42  ;;  %v5045_v16 = vpop.eup %5044  ;;  %v3825_v29 = vmul.f32 0.6931472, %v5043_v9  ;;  %v3910_v23 = vmul.f32 %v3821_v60, %v6874_v46  ;;  %5070 = vlog2.f32 %v3710_v37 }
 0x29e   : >> { %v5047_v6 = vpop.eup %5046  ;;  %v3827_v38 = vmul.f32 0.6931472, %v5045_v16  ;;  %v3911_v47 = vmul.f32 %v3823_v32, %v6882_v21  ;;  %5072 = vlog2.f32 %v3711_v18 }
 0x29f   : >> { %v4454_v40 = vmul.f32 0.34597626, %v4445_v30  ;;  %v5049_v25 = vpop.eup %5048  ;;  %v3829_v34 = vmul.f32 0.6931472, %v5047_v6  ;;  %v3912_v27 = vmul.f32 %v3825_v29, %v6879_v17 }
 0x2a0   : >> { %v5051_v45 = vpop.eup %5050  ;;  %v3831_v0 = vmul.f32 0.6931472, %v5049_v25  ;;  %v3913_v33 = vmul.f32 %v3827_v38, %v6886_v44  ;;  %v4246_v1 = vcombine.low %v3910_v23, %v3911_v47 }
 0x2a1   : >> { %v6956_v6 = vadd.f32 %v7209_v2, %v4454_v40   ;;  %v5053_v46 = vpop.eup %5052  ;;  %v3833_v24 = vmul.f32 0.6931472, %v5051_v45  ;;  %v3914_v4 = vmul.f32 %v3829_v34, %v6889_v53 }
 0x2a2   : >> { %v5055_v31 = vpop.eup %5054  ;;  %v3835_v11 = vmul.f32 0.6931472, %v5053_v46  ;;  %v3915_v21 = vmul.f32 %v3831_v0, %v6893_v5  ;;  %v4247_v58 = vcombine.low %v3912_v27, %v3913_v33  ;;  %v4254_v59 = vrot.slane %v4246_v1, %v5263_v51 }
 0x2a3   : >> { %v7210_v22 = vmov %v6956_v6  ;;  %v5057_v61 = vpop.eup %5056  ;;  %v3837_v12 = vmul.f32 0.6931472, %v5055_v31  ;;  %v3916_v17 = vmul.f32 %v3833_v24, %v6899_v10 }
 0x2a4   : >> { %v5059_v55 = vpop.eup %5058  ;;  %v3917_v28 = vmul.f32 %v3835_v11, %v6904_v36  ;;  %v4261_v44 = vrot.slane %v4247_v58, %v5263_v51  ;;  %v4263_v26 = vcombine.low %v3914_v4, %v3915_v21  ;;  %v3839_v19 = vmul.f32 0.6931472, %v5057_v61 }
 0x2a5   : >> { %v5061_v35 = vpop.eup %5060  ;;  %v3841_v15 = vmul.f32 0.6931472, %v5059_v55  ;;  %v3918_v53 = vmul.f32 %v3837_v12, %v6907_v39 }
 0x2a6   : >> { %v5063_v7 = vpop.eup %5062  ;;  %v4262_v5 = vcombine.low %v4254_v59, %v4261_v44  ;;  %v4264_v20 = vcombine.low %v3916_v17, %v3917_v28  ;;  %v3843_v37 = vmul.f32 0.6931472, %v5061_v35  ;;  %v3919_v10 = vmul.f32 %v3839_v19, %v6914_v3 }
 0x2a7   : >> { %v5065_v50 = vpop.eup %5064  ;;  %v3845_v42 = vmul.f32 0.6931472, %v5063_v7  ;;  %v3920_v18 = vmul.f32 %v3841_v15, %v6918_v49  ;;  %v4271_v36 = vrot.slane %v4263_v26, %v5263_v51  ;;  %v4286_v40 = vrot.slane %v3918_v53, %v5263_v51 }
 0x2a8   : >> { %v5067_v41 = vpop.eup %5066  ;;  %v4278_v60 = vrot.slane %v4264_v20, %v5263_v51  ;;  %v3847_v9 = vmul.f32 0.6931472, %v5065_v50  ;;  %v3921_v16 = vmul.f32 %v3843_v37, %v6922_v57  ;;  %v4418_v3 = vsel %vm3286_vm1, %v4262_v5, 0.0  ;;  %v7211_v37 = vld [vmem:[#allocation6_spill] sm:$0xff] }
 0x2a9   : >> { %v5069_v30 = vpop.eup %5068  ;;  %v3849_v32 = vmul.f32 0.6931472, %v5067_v41  ;;  %v3922_v39 = vmul.f32 %v3845_v42, %v6926_v14  ;;  %v4287_v29 = vcombine.low %v3919_v10, %v3920_v18  ;;  %v4421_v24 = vsel %vm3290_vm5, %v4286_v40, 0.0  ;;  %v7212_v41 = vld [vmem:[#allocation5_spill] sm:$0xff] }
 0x2aa   : >> { %v5071_v23 = vpop.eup %5070  ;;  %v4279_v6 = vcombine.low %v4271_v36, %v4278_v60  ;;  %v3851_v49 = vmul.f32 0.6931472, %v5069_v30  ;;  %v3923_v25 = vmul.f32 %v3847_v9, %v6929_v56  ;;  %v7218_v9 = vmov %v6771_v43  ;;  %v7221_v60 = vld [vmem:[#allocation56_spill] sm:$0xff] (%p170_p4) }
 0x2ab   : >> { %v5073_v38 = vpop.eup %5072  ;;  %v3853_v47 = vmul.f32 0.6931472, %v5071_v23  ;;  %v3924_v34 = vmul.f32 %v3849_v32, %v6933_v48  ;;  %v4288_v27 = vcombine.low %v3921_v16, %v3922_v39  ;;  %v4295_v2 = vrot.slane %v4287_v29, %v5263_v51 }
 0x2ac   : >> { %v4419_v45 = vsel %vm3286_vm1, %v4279_v6, 0.0  ;;  %v3855_v57 = vmul.f32 0.6931472, %v5073_v38  ;;  %v3925_v14 = vmul.f32 %v3851_v49, %v6937_v8  ;;  %v7215_v6 = vmov %v7210_v22 }
 0x2ad   : >> { %v4420_v0 = vadd.f32 %v4419_v45, %v4418_v3  ;;  %v3926_v33 = vmul.f32 %v3853_v47, %v6941_v54  ;;  %v4302_v1 = vrot.slane %v4288_v27, %v5263_v51  ;;  %v4304_v46 = vcombine.low %v3923_v25, %v3924_v34 }
 0x2ae   : >> { %v3927_v56 = vmul.f32 %v3855_v57, %v6945_v13  ;;  %v4465_v30 = vmul.f32 (%p170_p4), 0.5, %v7221_v60  ;;  %v4466_v32 = vmul.f32 (%p170_p4), 0.5, %v7181_v62  ;;  %v4467_v16 = vmul.f32 (%p170_p4), 0.5, %v6771_v43 }
 0x2af   : >> { %v4422_v31 = vadd.f32 %v4421_v24, %v4420_v0  ;;  %v4303_v48 = vcombine.low %v4295_v2, %v4302_v1  ;;  %v4305_v11 = vcombine.low %v3925_v14, %v3926_v33  ;;  %v4312_v21 = vrot.slane %v4304_v46, %v5263_v51 }
 0x2b0   : >> { %v4327_v12 = vrot.slane %v3927_v56, %v5263_v51  ;;  %v4468_v39 = vmul.f32 (%p170_p4), 0.5, %v7199_v63  ;;  %v4469_v29 = vmul.f32 (%p170_p4), 0.5, %v6870_v52  ;;  %v4470_v23 = vmul.f32 (%p170_p4), 0.5, %v7210_v22 }
 0x2b1   : >> { %v4423_v4 = vrot.slane %v4422_v31, 4  ;;  %v4319_v8 = vrot.slane %v4305_v11, %v5263_v51  ;;  %v4429_v54 = vsel %vm3286_vm1, %v4303_v48, 0.0  ;;  %v7220_v11 = vld [vmem:[#allocation56_spill] sm:$0xff]  ;;  %v4482_v40 = vsel (%p170_p4), %vm4481_vm6, %v4466_v32, %v4465_v30 }
 0x2b2   : >> { %v4432_v13 = vsel %vm3290_vm5, %v4327_v12, 0.0  ;;  %v4484_v49 = vsel (%p170_p4), %vm4483_vm7, %v4467_v16, %v4482_v40 }
 0x2b3   : >> { %v4424_v58 = vadd.f32 %v4423_v4, %v4422_v31  ;;  %v4320_v61 = vcombine.low %v4312_v21, %v4319_v8  ;;  %v7217_v8 = vmov %v7199_v63  ;;  %v4486_v6 = vsel (%p170_p4), %vm4485_vm8, %v4468_v39, %v4484_v49 }
 0x2b5   : >> { %v4425_v17 = vrot.slane %v4424_v58, 2  ;;  %v4430_v59 = vsel %vm3286_vm1, %v4320_v61, 0.0 }
 0x2b6   : >> { %v4431_v55 = vadd.f32 %v4430_v59, %v4429_v54 }
 0x2b7   : >> { %v4426_v28 = vadd.f32 %v4425_v17, %v4424_v58 }
 0x2b8   : >> { %v4433_v44 = vadd.f32 %v4432_v13, %v4431_v55 }
 0x2b9   : >> { %v4427_v26 = vrot.slane %v4426_v28, 1 }
 0x2ba   : >> { %v4434_v19 = vrot.slane %v4433_v44, 4 }
 0x2bb   : >> { %v4428_v35 = vadd.f32 %v4427_v26, %v4426_v28 }
 0x2bc   : >> { %v4435_v15 = vadd.f32 %v4434_v19, %v4433_v44 }
 0x2bd   : >> { %v4446_v7 = vadd.f32 2.8903718, %v4428_v35 }
 0x2be   : >> { %v4436_v53 = vrot.slane %v4435_v15, 2 }
 0x2bf   : >> { %v4455_v5 = vmul.f32 0.34597626, %v4446_v7  ;;  %v7216_v7 = vmov %v6870_v52 }
 0x2c0   : >> { %v4437_v20 = vadd.f32 %v4436_v53, %v4435_v15 }
 0x2c1   : >> { %v4463_v51 = vadd.f32 %v7211_v37, %v4455_v5  }
 0x2c2   : >> { %v4438_v50 = vrot.slane %v4437_v20, 1 }
 0x2c3   : >> { %v7214_v5 = vmov %v4463_v51  ;;  %v4471_v3 = vmul.f32 (%p170_p4), 0.5, %v4463_v51 }
 0x2c4   : >> { %v4439_v42 = vadd.f32 %v4438_v50, %v4437_v20 }
 0x2c6   : >> { %v4447_v10 = vadd.f32 2.8903718, %v4439_v42 }
 0x2c8   : >> { %v4456_v18 = vmul.f32 0.34597626, %v4447_v10  ;;  %v7219_v10 = vmov %v7181_v62  ;;  %172 = sbr.rel (!%p170_p4) target bundleno = 18 (0x12), region = 70  ;;  %v4488_v62 = vsel (%p170_p4), %vm4487_vm9, %v4469_v29, %v4486_v6 }
 0x2c9   : > { %v4490_v43 = vsel (%p170_p4), %vm4489_vm10, %v4470_v23, %v4488_v62 }
 0x2ca   : >> { %v4464_v36 = vadd.f32 %v7212_v41, %v4456_v18   ;;  %v4492_v63 = vsel (%p170_p4), %vm4491_vm11, %v4471_v3, %v4490_v43 }
 0x2cc   : >> { %v7213_v4 = vmov %v4464_v36  ;;  %v4472_v9 = vmul.f32 (%p170_p4), 0.5, %v4464_v36 }
 0x2ce   : > { %v4494_v38 = vsel %vm4493_vm12, %v4472_v9, %v4492_v63 }
 0x2cf   : > { %4497 = vst.msk [vmem:[%s5203_s21] sm:$0xff] %vm3286_vm1, %v4494_v38 }
 0x2d0 PF: > { %s12_s9 = sadd.s32 1, %s5116_s9  }
 0x2d1   : > { %p9_p5 = scmp.ge.s32.totalorder %s12_s9, 6  }
 0x2d3   :  { %11 = sbr.rel (!%p9_p5) target bundleno = 1 (0x1), region = 81 }

</bundles_post_ra>
